<compile_context>
chip_gen: v5e
topology: v5e:2x2
jax: 0.10.0
libtpu: 0.0.40
codegen_flags: <defaults>
</compile_context>

<pallas_src>
import jax
import jax.numpy as jnp
from jax.experimental import pallas as pl
from jax.experimental.pallas import tpu as pltpu


def _round_up(x: int, m: int) -> int:
    return (x + m - 1) // m * m


def mlp_block_kernel(x_ref, wg_ref, wu_ref, wo_ref, o_ref, acc_ref):
    """One (row-tile i, intermediate-slab j) step of the fused gated MLP."""
    j = pl.program_id(1)

    @pl.when(j == 0)
    def _():
        acc_ref[...] = jnp.zeros_like(acc_ref)

    x = x_ref[...]                                                       # (tm, E)
    gate = jnp.dot(x, wg_ref[...], preferred_element_type=jnp.float32)   # (tm, ti)
    up = jnp.dot(x, wu_ref[...], preferred_element_type=jnp.float32)     # (tm, ti)
    # SiLU(gate) * up in f32 on the VPU/EUP, then cast back to the MXU dtype
    # (matches the PyTorch `.to(self.dtype)` before wo).
    hidden = (gate * jax.nn.sigmoid(gate) * up).astype(x_ref.dtype)      # (tm, ti)
    acc_ref[...] += jnp.dot(hidden, wo_ref[...],
                            preferred_element_type=jnp.float32)          # (tm, E)

    @pl.when(j == pl.num_programs(1) - 1)
    def _():
        o_ref[...] = acc_ref[...].astype(o_ref.dtype)


def _vmem_limit_bytes(tm: int, ti: int, E: int, dtype) -> int:
    """Scoped-VMEM budget: double-buffered pipeline + f32 acc + f32 temporaries."""
    b = jnp.dtype(dtype).itemsize
    per_step = (tm * E * b          # x block
                + 2 * E * ti * b    # gate + up weight slabs
                + ti * E * b        # wo slab
                + tm * E * b)       # out block
    temporaries = 3 * tm * ti * 4   # in-kernel f32 gate/up/hidden
    total = 2 * per_step + tm * E * 4 + temporaries
    # Headroom for compiler-internal scratch, capped below v7x's 64 MiB/TC.
    return min(max(int(1.5 * total), 32 << 20), 56 << 20)


def mlp_block(x, wi_fused_kernel, wo_kernel, *,
              tile_m: int = 512, tile_i: int = 1024,
              mxu_dtype=jnp.bfloat16):
    """x: (..., E); wi_fused_kernel: (E, 2, I); wo_kernel: (I, E).

    Output dtype matches x.dtype; matmuls run in `mxu_dtype` (default bf16)
    with f32 accumulation.
    """
    orig_shape = x.shape
    orig_dtype = x.dtype
    E = orig_shape[-1]
    assert wi_fused_kernel.shape[0] == E and wi_fused_kernel.shape[1] == 2
    I = wi_fused_kernel.shape[-1]
    assert wo_kernel.shape == (I, E)

    x2d = x.reshape(-1, E)                       # (M, E)
    M = x2d.shape[0]

    # --- dtype for the MXU --------------------------------------------------
    if mxu_dtype is not None and jnp.dtype(mxu_dtype) != jnp.dtype(orig_dtype):
        x2d = x2d.astype(mxu_dtype)
        wi = wi_fused_kernel.astype(mxu_dtype)
        wo = wo_kernel.astype(mxu_dtype)
    else:
        wi, wo = wi_fused_kernel, wo_kernel
    kdtype = x2d.dtype

    # --- pad E to lane-dense (multiple of 128): unmasked output stores ------
    E_pad = _round_up(E, 128)
    if E_pad != E:
        x2d = jnp.pad(x2d, ((0, 0), (0, E_pad - E)))
        wi = jnp.pad(wi, ((0, E_pad - E), (0, 0), (0, 0)))
        wo = jnp.pad(wo, ((0, 0), (0, E_pad - E)))

    # --- pad I to multiple of 128 (zero columns/rows contribute nothing) ----
    I_pad = _round_up(I, 128)
    if I_pad != I:
        wi = jnp.pad(wi, ((0, 0), (0, 0), (0, I_pad - I)))
        wo = jnp.pad(wo, ((0, I_pad - I), (0, 0)))

    wbytes = jnp.dtype(kdtype).itemsize

    # --- intermediate slab size ----------------------------------------------
    # Weight-resident fast path: if the whole (double-buffered) bf16 weight set
    # fits comfortably, use ti = I so weight index_maps are constant over the
    # grid and Pallas skips re-DMA of weights across row tiles (v5e/v6e win).
    resident_weight_bytes = 2 * 3 * E_pad * I_pad * wbytes
    if resident_weight_bytes <= (40 << 20):
        ti = I_pad
    else:
        ti = max(128, (min(tile_i, I_pad) // 128) * 128)
        while I_pad % ti != 0:
            ti -= 128
    num_i_blocks = I_pad // ti

    # --- row tile: MXU-aligned (multiple of 128), prefer a divisor of M -----
    tm = max(128, (min(tile_m, _round_up(M, 128)) // 128) * 128)
    tm_div = tm
    while tm_div >= 128 and M % tm_div != 0:
        tm_div -= 128
    if tm_div >= 128:
        tm = tm_div                               # no activation padding needed
    M_pad = _round_up(M, tm)
    if M_pad != M:
        x2d = jnp.pad(x2d, ((0, M_pad - M), (0, 0)))

    # Free, contiguous reshape: columns [0:I_pad] = gate, [I_pad:2*I_pad] = up.
    w_fused_2d = wi.reshape(E_pad, 2 * I_pad)

    grid = (M_pad // tm, num_i_blocks)

    out2d = pl.pallas_call(
        mlp_block_kernel,
        out_shape=jax.ShapeDtypeStruct((M_pad, E_pad), orig_dtype),
        grid_spec=pltpu.PrefetchScalarGridSpec(
            num_scalar_prefetch=0,
            grid=grid,
            in_specs=[
                # x rows: constant across j -> no re-DMA on j steps.
                pl.BlockSpec((tm, E_pad), lambda i, j: (i, 0)),
                # gate weight slab: columns [j*ti : (j+1)*ti] of (E, 2I)
                pl.BlockSpec((E_pad, ti), lambda i, j: (0, j)),
                # up weight slab: columns [I + j*ti : I + (j+1)*ti] of (E, 2I)
                pl.BlockSpec((E_pad, ti), lambda i, j: (0, j + num_i_blocks)),
                # W_o slab: rows [j*ti : (j+1)*ti]
                pl.BlockSpec((ti, E_pad), lambda i, j: (j, 0)),
            ],
            # Same output block across the j axis -> resident accumulator.
            out_specs=pl.BlockSpec((tm, E_pad), lambda i, j: (i, 0)),
            scratch_shapes=[pltpu.VMEM((tm, E_pad), jnp.float32)],
        ),
        compiler_params=pltpu.CompilerParams(
            dimension_semantics=("parallel", "arbitrary"),
            vmem_limit_bytes=_vmem_limit_bytes(tm, ti, E_pad, kdtype),
        ),
    )(x2d, w_fused_2d, w_fused_2d, wo)

    return out2d[:M, :E].reshape(orig_shape)


def _reference(x, wi_fused_kernel, wo_kernel, mxu_dtype=jnp.bfloat16):
    """Plain-JAX reference mirroring the PyTorch MlpBlock forward (bf16 MXU path)."""
    xd = x.astype(mxu_dtype)
    wid = wi_fused_kernel.astype(mxu_dtype)
    wod = wo_kernel.astype(mxu_dtype)
    fused = jnp.einsum("...e,eki->...ki", xd, wid,
                       preferred_element_type=jnp.float32)
    gate = fused[..., 0, :]
    up = fused[..., 1, :]
    hidden = (jax.nn.silu(gate) * up).astype(mxu_dtype)
    out = jnp.einsum("...i,ie->...e", hidden, wod,
                     preferred_element_type=jnp.float32)
    return out.astype(x.dtype)


if __name__ == "__main__":
    # Small but TPU-tile-friendly sizes (lane-dense E, I multiple of 128).
    batch, seq = 2, 128
    embed_dim, intermediate_dim = 256, 512
    param_dtype = jnp.float32

    key = jax.random.PRNGKey(0)
    kx, kwi, kwo = jax.random.split(key, 3)

    x = jax.random.normal(kx, (batch, seq, embed_dim), dtype=param_dtype)
    # Deterministic parameter init (DenseGeneral kernel layouts).
    wi_fused_kernel = (
        jax.random.normal(kwi, (embed_dim, 2, intermediate_dim), dtype=param_dtype)
        * (1.0 / jnp.sqrt(embed_dim))
    )
    wo_kernel = (
        jax.random.normal(kwo, (intermediate_dim, embed_dim), dtype=param_dtype)
        * (1.0 / jnp.sqrt(intermediate_dim))
    )

    out = mlp_block(x, wi_fused_kernel, wo_kernel, tile_m=512, tile_i=1024)
    out = jax.block_until_ready(out)

    ref = _reference(x, wi_fused_kernel, wo_kernel)
    assert out.shape == (batch, seq, embed_dim)
    assert jnp.allclose(out, ref, atol=2e-2, rtol=2e-2), "mismatch vs reference"

    print("KERNEL_OK")
</pallas_src>

<mosaic_0001>
module attributes {stable_mosaic.version = 11 : i64} {
  func.func @mlp_block_kernel(%arg0: i32, %arg1: i32, %arg2: memref<256x256xbf16, #tpu.memory_space<vmem>>, %arg3: memref<256x512xbf16, #tpu.memory_space<vmem>>, %arg4: memref<256x512xbf16, #tpu.memory_space<vmem>>, %arg5: memref<512x256xbf16, #tpu.memory_space<vmem>>, %arg6: memref<256x256xf32, #tpu.memory_space<vmem>>, %arg7: memref<256x256xf32, #tpu.memory_space<vmem>>) attributes {dimension_semantics = [#tpu.dimension_semantics<parallel>, #tpu.dimension_semantics<arbitrary>], iteration_bounds = array<i64: 1, 1>, scalar_prefetch = 0 : i64, scratch_operands = 1 : i64, tpu.core_type = #tpu.core_type<tc>, window_params = [{transform_indices = @transform_0, window_bounds = array<i64: 256, 256>}, {transform_indices = @transform_1, window_bounds = array<i64: 256, 512>}, {transform_indices = @transform_2, window_bounds = array<i64: 256, 512>}, {transform_indices = @transform_3, window_bounds = array<i64: 512, 256>}, {transform_indices = @transform_4, window_bounds = array<i64: 256, 256>}]} {
    %c0_i32 = arith.constant 0 : i32
    %0 = arith.cmpi eq, %arg1, %c0_i32 : i32
    %1 = arith.extui %0 : i1 to i32
    %c0_i32_0 = arith.constant 0 : i32
    %2 = arith.cmpi ne, %1, %c0_i32_0 : i32
    scf.if %2 {
      %cst_17 = arith.constant 0.000000e+00 : f32
      %24 = vector.broadcast %cst_17 : f32 to vector<256x256xf32>
      %c0_18 = arith.constant 0 : index
      %c0_19 = arith.constant 0 : index
      %25 = vector.load %arg7[%c0_18, %c0_19] : memref<256x256xf32, #tpu.memory_space<vmem>>, vector<256x256xf32>
      tpu.vector_store %arg7[%c0_18, %c0_19], %24 {strides = array<i32>} : memref<256x256xf32, #tpu.memory_space<vmem>>, vector<256x256xf32>,
    } else {
    }
    %c0 = arith.constant 0 : index
    %c0_1 = arith.constant 0 : index
    %3 = vector.load %arg2[%c0, %c0_1] : memref<256x256xbf16, #tpu.memory_space<vmem>>, vector<256x256xbf16>
    %c0_2 = arith.constant 0 : index
    %c0_3 = arith.constant 0 : index
    %4 = vector.load %arg3[%c0_2, %c0_3] : memref<256x512xbf16, #tpu.memory_space<vmem>>, vector<256x512xbf16>
    %cst = arith.constant dense<0.000000e+00> : vector<256x512xf32>
    %5 = tpu.matmul %3, %4, %cst {dimension_numbers = #tpu.dot_dimension_numbers<[1], [0], [0], [1], [0, 0, 1, 1], [], []>} : vector<256x256xbf16>, vector<256x512xbf16>, vector<256x512xf32> -> vector<256x512xf32>
    %c0_4 = arith.constant 0 : index
    %c0_5 = arith.constant 0 : index
    %6 = vector.load %arg4[%c0_4, %c0_5] : memref<256x512xbf16, #tpu.memory_space<vmem>>, vector<256x512xbf16>
    %cst_6 = arith.constant dense<0.000000e+00> : vector<256x512xf32>
    %7 = tpu.matmul %3, %6, %cst_6 {dimension_numbers = #tpu.dot_dimension_numbers<[1], [0], [0], [1], [0, 0, 1, 1], [], []>} : vector<256x256xbf16>, vector<256x512xbf16>, vector<256x512xf32> -> vector<256x512xf32>
    %8 = arith.negf %5 : vector<256x512xf32>
    %9 = math.exp %8 : vector<256x512xf32>
    %cst_7 = arith.constant 1.000000e+00 : f32
    %10 = vector.broadcast %cst_7 : f32 to vector<256x512xf32>
    %11 = arith.addf %10, %9 : vector<256x512xf32>
    %12 = arith.divf %10, %11 : vector<256x512xf32>
    %13 = arith.mulf %5, %12 : vector<256x512xf32>
    %14 = arith.mulf %13, %7 : vector<256x512xf32>
    %15 = arith.truncf %14 : vector<256x512xf32> to vector<256x512xbf16>
    %c0_8 = arith.constant 0 : index
    %c0_9 = arith.constant 0 : index
    %16 = vector.load %arg7[%c0_8, %c0_9] : memref<256x256xf32, #tpu.memory_space<vmem>>, vector<256x256xf32>
    %c0_10 = arith.constant 0 : index
    %c0_11 = arith.constant 0 : index
    %17 = vector.load %arg5[%c0_10, %c0_11] : memref<512x256xbf16, #tpu.memory_space<vmem>>, vector<512x256xbf16>
    %cst_12 = arith.constant dense<0.000000e+00> : vector<256x256xf32>
    %18 = tpu.matmul %15, %17, %cst_12 {dimension_numbers = #tpu.dot_dimension_numbers<[1], [0], [0], [1], [0, 0, 1, 1], [], []>} : vector<256x512xbf16>, vector<512x256xbf16>, vector<256x256xf32> -> vector<256x256xf32>
    %19 = arith.addf %16, %18 : vector<256x256xf32>
    %c0_13 = arith.constant 0 : index
    %c0_14 = arith.constant 0 : index
    %20 = vector.load %arg7[%c0_13, %c0_14] : memref<256x256xf32, #tpu.memory_space<vmem>>, vector<256x256xf32>
    tpu.vector_store %arg7[%c0_13, %c0_14], %19 {strides = array<i32>} : memref<256x256xf32, #tpu.memory_space<vmem>>, vector<256x256xf32>,
    %c0_i32_15 = arith.constant 0 : i32
    %21 = arith.cmpi eq, %arg1, %c0_i32_15 : i32
    %22 = arith.extui %21 : i1 to i32
    %c0_i32_16 = arith.constant 0 : i32
    %23 = arith.cmpi ne, %22, %c0_i32_16 : i32
    scf.if %23 {
      %c0_17 = arith.constant 0 : index
      %c0_18 = arith.constant 0 : index
      %24 = vector.load %arg7[%c0_17, %c0_18] : memref<256x256xf32, #tpu.memory_space<vmem>>, vector<256x256xf32>
      %c0_19 = arith.constant 0 : index
      %c0_20 = arith.constant 0 : index
      %25 = vector.load %arg6[%c0_19, %c0_20] : memref<256x256xf32, #tpu.memory_space<vmem>>, vector<256x256xf32>
      tpu.vector_store %arg6[%c0_19, %c0_20], %24 {strides = array<i32>} : memref<256x256xf32, #tpu.memory_space<vmem>>, vector<256x256xf32>,
    } else {
    }
    return
  }
  func.func @transform_0(%arg0: i32, %arg1: i32) -> (i32, i32) {
    %c0_i32 = arith.constant 0 : i32
    %c0_i32_0 = arith.constant 0 : i32
    return %arg0, %c0_i32 : i32, i32
  }
  func.func @transform_1(%arg0: i32, %arg1: i32) -> (i32, i32) {
    %c0_i32 = arith.constant 0 : i32
    %c0_i32_0 = arith.constant 0 : i32
    return %c0_i32, %arg1 : i32, i32
  }
  func.func @transform_2(%arg0: i32, %arg1: i32) -> (i32, i32) {
    %c1_i32 = arith.constant 1 : i32
    %0 = arith.addi %arg1, %c1_i32 : i32
    %c0_i32 = arith.constant 0 : i32
    %c0_i32_0 = arith.constant 0 : i32
    return %c0_i32, %0 : i32, i32
  }
  func.func @transform_3(%arg0: i32, %arg1: i32) -> (i32, i32) {
    %c0_i32 = arith.constant 0 : i32
    %c0_i32_0 = arith.constant 0 : i32
    return %arg1, %c0_i32 : i32, i32
  }
  func.func @transform_4(%arg0: i32, %arg1: i32) -> (i32, i32) {
    %c0_i32 = arith.constant 0 : i32
    %c0_i32_0 = arith.constant 0 : i32
    return %arg0, %c0_i32 : i32, i32
  }
}

</mosaic_0001>

<bundles_post_ra>
// kernel: tpu_custom_call.1
= control target key start
LH: loop header
LB: loop body
LE: loop exit
PB: predicated region body
PF: predicated region fallthrough
CT: control target
= control target key end

     0   :  { %9 = vsyncpa [#allocation4], 0  ;;  %s14483_s0 = inlined_call_operand.hbm [shape: bf16[256,256], index: 0, kind: input, shape index: {}]   ;;  %s14484_s1 = inlined_call_operand.hbm [shape: bf16[256,1024], index: 1, kind: input, shape index: {}]   ;;  %s14485_s2 = inlined_call_operand.hbm [shape: bf16[256,1024], index: 2, kind: input, shape index: {}]   ;;  %s14486_s3 = inlined_call_operand.hbm [shape: bf16[512,256], index: 3, kind: input, shape index: {}]   ;;  %s14487_s4 = inlined_call_operand.hbm [shape: f32[256,256], index: 4, kind: output, shape index: {}]  }
   0x1   :  { %10 = vsyncpa [#allocation7], 0 }
   0x2   :  { %11 = vsyncpa [#allocation10], 0  ;;  %s30_s17 = sshll.u32 %s14484_s1, 4  ;;  %s31_s17 = int_to_ptr.hbm [resolvable:$true] %s30_s17 }
   0x3   :  { %12 = vsyncpa [#allocation5], 0  ;;  %s8630_s18 = smov [#allocation6]   ;;  %s8631_s20 = smov 512  }
   0x4   :  { %s32_s19 = sshll.u32 %s8630_s18, 4  ;;  %s8632_s21 = smov 256   ;;  %s33_s19 = int_to_ptr.vmem [resolvable:$true] %s32_s19 }
   0x5   :  { %s8633_s22 = smov 16   ;;  %s17_s25 = sshll.u32 %s14483_s0, 4  ;;  %s18_s25 = int_to_ptr.hbm [resolvable:$true] %s17_s25 }
   0x6   :  { %38 = dma.hbm_to_vmem [thread:$0]  %s31_s17, 8192, %s33_s19, [#allocation7], %s8631_s20, %s8632_s21, %s8633_s22  }
   0x7   :  { %s8634_s26 = smov [#allocation3]   ;;  %s6731_s29 = scalar_lea.hbm %s14485_s2, 16 }
   0x8   :  { %s19_s27 = sshll.u32 %s8634_s26, 4  ;;  %s8635_s30 = smov 128   ;;  %s20_s27 = int_to_ptr.vmem [resolvable:$true] %s19_s27 }
   0x9   :  { %s8636_s5 = smov 8   ;;  %s47_s6 = sshll.u32 %s6731_s29, 4  ;;  %s48_s6 = int_to_ptr.hbm [resolvable:$true] %s47_s6 }
   0xa   :  { %25 = dma.hbm_to_vmem [thread:$0]  %s18_s25, 4096, %s20_s27, [#allocation4], %s8635_s30, %s8635_s30, %s8636_s5  }
   0xb   :  { %s8637_s7 = smov [#allocation8]   ;;  %s60_s0 = sshll.u32 %s14486_s3, 4  ;;  %s61_s0 = int_to_ptr.hbm [resolvable:$true] %s60_s0 }
   0xc   :  { %s49_s8 = sshll.u32 %s8637_s7, 4  ;;  %s8638_s11 = smov [#allocation9]   ;;  %s50_s8 = int_to_ptr.vmem [resolvable:$true] %s49_s8 }
   0xd   :  { %55 = dma.hbm_to_vmem [thread:$0]  %s48_s6, 8192, %s50_s8, [#allocation7], %s8631_s20, %s8632_s21, %s8633_s22  }
   0xe   :  { %s62_s12 = sshll.u32 %s8638_s11, 4  ;;  %s63_s12 = int_to_ptr.vmem [resolvable:$true] %s62_s12 }
   0xf   :  { %68 = dma.hbm_to_vmem [thread:$0]  %s61_s0, 8192, %s63_s12, [#allocation10], %s8635_s30, %s8635_s30, %s8636_s5  }
  0x10   :  { %8622 = dma.done.wait [#allocation4], 4096  }
  0x11   :  { %8623 = vsyncadd [#allocation4], 4294963200 }
  0x12   :  { %8624 = dma.done.wait [#allocation7], 16384  }
  0x13   :  { %8625 = vsyncadd [#allocation7], 4294950912 }
  0x14   :  { %8626 = dma.done.wait [#allocation10], 8192  }
  0x15   :  { %8627 = vsyncadd [#allocation10], 4294959104  ;;  %v6974_v0 = vld [vmem:[#allocation6 + $0xe0] sm:$0xf]  ;;  %v7818_v1 = vld [vmem:[#allocation6 + $0xec] sm:$0xf0] }
  0x16   :  { %v7102_v2 = vld [vmem:[#allocation6 + $0x1e0] sm:$0xf]  ;;  %v6975_v3 = vor.u32 %v7818_v1, %v6974_v0  ;;  %v7850_v4 = vld [vmem:[#allocation6 + $0x1ec] sm:$0xf0]  ;;  %v7816_v5 = vld [vmem:[#allocation6 + $0xe4] sm:$0xf] }
  0x17   :  { %v6976_v6 = vld [vmem:[#allocation6 + $0xf0] sm:$0xf0]  ;;  %v7103_v7 = vor.u32 %v7850_v4, %v7102_v2  ;;  %v7848_v9 = vld [vmem:[#allocation6 + $0x1e4] sm:$0xf]  ;;  %v6958_v11 = vld [vmem:[#allocation6 + $0xc0] sm:$0xf] }
  0x18   :  { %v6979_v8 = vor.u32 %v7816_v5, %v6976_v6  ;;  %v7104_v10 = vld [vmem:[#allocation6 + $0x1f0] sm:$0xf0]  ;;  %731 = vmatpush.bf16.msra.mxu0 %v6975_v3  ;;  %v7814_v13 = vld [vmem:[#allocation6 + $0xcc] sm:$0xf0]  ;;  %v7086_v14 = vld [vmem:[#allocation6 + $0x1c0] sm:$0xf] }
  0x19   :  { %v7107_v12 = vor.u32 %v7848_v9, %v7104_v10  ;;  %v7846_v15 = vld [vmem:[#allocation6 + $0x1cc] sm:$0xf0]  ;;  %820 = vmatpush.bf16.msra.mxu1 %v7103_v7  ;;  %v6959_v16 = vor.u32 %v7814_v13, %v6958_v11  ;;  %v7812_v18 = vld [vmem:[#allocation6 + $0xc4] sm:$0xf]  ;;  %v6960_v19 = vld [vmem:[#allocation6 + $0xd0] sm:$0xf0] }
  0x1a   :  { %909 = vmatpush.bf16.msra.mxu2 %v6979_v8  ;;  %v7087_v17 = vor.u32 %v7846_v15, %v7086_v14  ;;  %v7844_v20 = vld [vmem:[#allocation6 + $0x1c4] sm:$0xf]  ;;  %v6963_v21 = vor.u32 %v7812_v18, %v6960_v19  ;;  %v7088_v22 = vld [vmem:[#allocation6 + $0x1d0] sm:$0xf0]  ;;  %v6942_v23 = vld [vmem:[#allocation6 + $0xa0] sm:$0xf] }
  0x1b   :  { %998 = vmatpush.bf16.msra.mxu3 %v7107_v12  ;;  %v7810_v24 = vld [vmem:[#allocation6 + $0xac] sm:$0xf0]  ;;  %v7091_v25 = vor.u32 %v7844_v20, %v7088_v22  ;;  %v7070_v26 = vld [vmem:[#allocation6 + $0x1a0] sm:$0xf]  ;;  %v7808_v28 = vld [vmem:[#allocation6 + $0xa4] sm:$0xf] }
  0x1c   :  { %v7842_v27 = vld [vmem:[#allocation6 + $0x1ac] sm:$0xf0]  ;;  %732 = vmatpush.bf16.msra.mxu0 %v6959_v16  ;;  %v6943_v29 = vor.u32 %v7810_v24, %v6942_v23  ;;  %v6944_v30 = vld [vmem:[#allocation6 + $0xb0] sm:$0xf0]  ;;  %v7840_v31 = vld [vmem:[#allocation6 + $0x1a4] sm:$0xf] }
  0x1d   :  { %v7072_v32 = vld [vmem:[#allocation6 + $0x1b0] sm:$0xf0]  ;;  %821 = vmatpush.bf16.msra.mxu1 %v7087_v17  ;;  %v7071_v33 = vor.u32 %v7842_v27, %v7070_v26  ;;  %v6947_v34 = vor.u32 %v7808_v28, %v6944_v30  ;;  %v6926_v35 = vld [vmem:[#allocation6 + $0x80] sm:$0xf]  ;;  %v7806_v36 = vld [vmem:[#allocation6 + $0x8c] sm:$0xf0] }
  0x1e   :  { %910 = vmatpush.bf16.msra.mxu2 %v6963_v21  ;;  %v7054_v37 = vld [vmem:[#allocation6 + $0x180] sm:$0xf]  ;;  %v7075_v38 = vor.u32 %v7840_v31, %v7072_v32  ;;  %v7838_v39 = vld [vmem:[#allocation6 + $0x18c] sm:$0xf0]  ;;  %v7804_v40 = vld [vmem:[#allocation6 + $0x84] sm:$0xf]  ;;  %v6927_v44 = vor.u32 %v7806_v36, %v6926_v35 }
  0x1f   :  { %999 = vmatpush.bf16.msra.mxu3 %v7091_v25  ;;  %v6928_v41 = vld [vmem:[#allocation6 + $0x90] sm:$0xf0]  ;;  %v7836_v42 = vld [vmem:[#allocation6 + $0x184] sm:$0xf]  ;;  %v7055_v45 = vor.u32 %v7838_v39, %v7054_v37  ;;  %v6910_v47 = vld [vmem:[#allocation6 + $0x60] sm:$0xf] }
  0x20   :  { %v7056_v43 = vld [vmem:[#allocation6 + $0x190] sm:$0xf0]  ;;  %733 = vmatpush.bf16.msra.mxu0 %v6943_v29  ;;  %v6931_v46 = vor.u32 %v7804_v40, %v6928_v41  ;;  %v7802_v48 = vld [vmem:[#allocation6 + $0x6c] sm:$0xf0]  ;;  %v7038_v49 = vld [vmem:[#allocation6 + $0x160] sm:$0xf] }
  0x21   :  { %822 = vmatpush.bf16.msra.mxu1 %v7071_v33  ;;  %v7059_v50 = vor.u32 %v7836_v42, %v7056_v43  ;;  %v7834_v51 = vld [vmem:[#allocation6 + $0x16c] sm:$0xf0]  ;;  %v7800_v52 = vld [vmem:[#allocation6 + $0x64] sm:$0xf]  ;;  %v6912_v53 = vld [vmem:[#allocation6 + $0x70] sm:$0xf0]  ;;  %v6911_v56 = vor.u32 %v7802_v48, %v6910_v47 }
  0x22   :  { %911 = vmatpush.bf16.msra.mxu2 %v6947_v34  ;;  %v7832_v54 = vld [vmem:[#allocation6 + $0x164] sm:$0xf]  ;;  %v7040_v55 = vld [vmem:[#allocation6 + $0x170] sm:$0xf0]  ;;  %v7039_v57 = vor.u32 %v7834_v51, %v7038_v49  ;;  %v6915_v58 = vor.u32 %v7800_v52, %v6912_v53  ;;  %v6894_v59 = vld [vmem:[#allocation6 + $0x40] sm:$0xf] }
  0x23   :  { %1000 = vmatpush.bf16.msra.mxu3 %v7075_v38  ;;  %v7798_v60 = vld [vmem:[#allocation6 + $0x4c] sm:$0xf0]  ;;  %v7022_v61 = vld [vmem:[#allocation6 + $0x140] sm:$0xf]  ;;  %v7043_v62 = vor.u32 %v7832_v54, %v7040_v55  ;;  %v7796_v0 = vld [vmem:[#allocation6 + $0x44] sm:$0xf] }
  0x24   :  { %734 = vmatpush.bf16.msra.mxu0 %v6927_v44  ;;  %v7830_v63 = vld [vmem:[#allocation6 + $0x14c] sm:$0xf0]  ;;  %v6896_v1 = vld [vmem:[#allocation6 + $0x50] sm:$0xf0]  ;;  %v7828_v2 = vld [vmem:[#allocation6 + $0x144] sm:$0xf]  ;;  %v6895_v4 = vor.u32 %v7798_v60, %v6894_v59 }
  0x25   :  { %823 = vmatpush.bf16.msra.mxu1 %v7055_v45  ;;  %v7024_v3 = vld [vmem:[#allocation6 + $0x150] sm:$0xf0]  ;;  %v7023_v5 = vor.u32 %v7830_v63, %v7022_v61  ;;  %v6899_v6 = vor.u32 %v7796_v0, %v6896_v1  ;;  %v6878_v7 = vld [vmem:[#allocation6 + $0x20] sm:$0xf]  ;;  %v7794_v8 = vld [vmem:[#allocation6 + $0x2c] sm:$0xf0] }
  0x26   :  { %912 = vmatpush.bf16.msra.mxu2 %v6931_v46  ;;  %v7006_v9 = vld [vmem:[#allocation6 + $0x120] sm:$0xf]  ;;  %v7027_v10 = vor.u32 %v7828_v2, %v7024_v3  ;;  %v7826_v11 = vld [vmem:[#allocation6 + $0x12c] sm:$0xf0]  ;;  %v7792_v12 = vld [vmem:[#allocation6 + $0x24] sm:$0xf]  ;;  %v6879_v16 = vor.u32 %v7794_v8, %v6878_v7 }
  0x27   :  { %1001 = vmatpush.bf16.msra.mxu3 %v7059_v50  ;;  %v6880_v13 = vld [vmem:[#allocation6 + $0x30] sm:$0xf0]  ;;  %v7824_v14 = vld [vmem:[#allocation6 + $0x124] sm:$0xf]  ;;  %v6862_v17 = vld [vmem:[#allocation6] sm:$0xf]  ;;  %v7007_v19 = vor.u32 %v7826_v11, %v7006_v9 }
  0x28   :  { %735 = vmatpush.bf16.msra.mxu0 %v6911_v56  ;;  %v7008_v15 = vld [vmem:[#allocation6 + $0x130] sm:$0xf0]  ;;  %v7790_v18 = vld [vmem:[#allocation6 + $0xc] sm:$0xf0]  ;;  %v6883_v20 = vor.u32 %v7792_v12, %v6880_v13  ;;  %v6990_v21 = vld [vmem:[#allocation6 + $0x100] sm:$0xf] }
  0x29   :  { %824 = vmatpush.bf16.msra.mxu1 %v7039_v57  ;;  %v7822_v22 = vld [vmem:[#allocation6 + $0x10c] sm:$0xf0]  ;;  %v7788_v23 = vld [vmem:[#allocation6 + $0x4] sm:$0xf]  ;;  %v7011_v24 = vor.u32 %v7824_v14, %v7008_v15  ;;  %v6864_v25 = vld [vmem:[#allocation6 + $0x10] sm:$0xf0]  ;;  %v6863_v31 = vor.u32 %v7790_v18, %v6862_v17 }
  0x2a   :  { %913 = vmatpush.bf16.msra.mxu2 %v6915_v58  ;;  %v7820_v26 = vld [vmem:[#allocation6 + $0x104] sm:$0xf]  ;;  %v6992_v27 = vld [vmem:[#allocation6 + $0x110] sm:$0xf0]  ;;  %v6734_v28 = vld [vmem:[#allocation3] sm:$0xf]  ;;  %v6991_v35 = vor.u32 %v7822_v22, %v6990_v21  ;;  %v6867_v36 = vor.u32 %v7788_v23, %v6864_v25 }
  0x2b   :  { %1002 = vmatpush.bf16.msra.mxu3 %v7043_v62  ;;  %v7817_v29 = vld [vmem:[#allocation6 + $0xec] sm:$0xf]  ;;  %v6984_v30 = vld [vmem:[#allocation6 + $0xf8] sm:$0xf0]  ;;  %v7757_v32 = vld [vmem:[#allocation3 + $0x4] sm:$0xf0]  ;;  %v6995_v39 = vor.u32 %v7820_v26, %v6992_v27 }
  0x2c   :  { %736 = vmatpush.bf16.msra.mxu0 %v6895_v4  ;;  %v7849_v33 = vld [vmem:[#allocation6 + $0x1ec] sm:$0xf]  ;;  %v7112_v34 = vld [vmem:[#allocation6 + $0x1f8] sm:$0xf0]  ;;  %v7756_v37 = vld [vmem:[#allocation3 + $0x4] sm:$0xf]  ;;  %v6987_v40 = vor.u32 %v7817_v29, %v6984_v30  ;;  %v8681_v43 = vor.u32 %v7757_v32, %v6734_v28 }
  0x2d   :  { %825 = vmatpush.bf16.msra.mxu1 %v7023_v5  ;;  %v6736_v38 = vld [vmem:[#allocation3 + $0x8] sm:$0xf0]  ;;  %v6982_v41 = vld [vmem:[#allocation6 + $0xe8] sm:$0xf]  ;;  %v7819_v42 = vld [vmem:[#allocation6 + $0xf4] sm:$0xf0]  ;;  %v7115_v44 = vor.u32 %v7849_v33, %v7112_v34 }
  0x2e   :  { %914 = vmatpush.bf16.msra.mxu2 %v6899_v6  ;;  %14717 = vst [vmem:[#allocation16_spill] sm:$0xff] %v8681_v43  ;;  %v7110_v45 = vld [vmem:[#allocation6 + $0x1e8] sm:$0xf]  ;;  %v7851_v46 = vld [vmem:[#allocation6 + $0x1f4] sm:$0xf0]  ;;  %v8683_v47 = vor.u32 %v7756_v37, %v6736_v38  ;;  %v6983_v48 = vor.u32 %v7819_v42, %v6982_v41  ;;  %s8639_s2 = smov [#allocation11]  }
  0x2f   :  { %1003 = vmatpush.bf16.msra.mxu3 %v7027_v10  ;;  %v7111_v49 = vor.u32 %v7851_v46, %v7110_v45  ;;  %v7813_v50 = vld [vmem:[#allocation6 + $0xcc] sm:$0xf]  ;;  %v6968_v51 = vld [vmem:[#allocation6 + $0xd8] sm:$0xf0]  ;;  %v6966_v55 = vld [vmem:[#allocation6 + $0xc8] sm:$0xf] }
  0x30   :  { %737 = vmatpush.bf16.msra.mxu0 %v6879_v16  ;;  %14718 = vst [vmem:[#allocation17_spill] sm:$0xff] %v8683_v47  ;;  %v7845_v52 = vld [vmem:[#allocation6 + $0x1cc] sm:$0xf]  ;;  %v6971_v53 = vor.u32 %v7813_v50, %v6968_v51  ;;  %v7096_v54 = vld [vmem:[#allocation6 + $0x1d8] sm:$0xf0]  ;;  %s6714_s3 = sshll.u32 %s8639_s2, 4  ;;  %s6715_s3 = int_to_ptr.vmem [resolvable:$true] %s6714_s3 }
  0x31   :  { %826 = vmatpush.bf16.msra.mxu1 %v7007_v19  ;;  %v7815_v56 = vld [vmem:[#allocation6 + $0xd4] sm:$0xf0]  ;;  %v7099_v57 = vor.u32 %v7845_v52, %v7096_v54  ;;  %v7094_v59 = vld [vmem:[#allocation6 + $0x1c8] sm:$0xf]  ;;  %v6742_v62 = vld [vmem:[#allocation3 + $0x10] sm:$0xf] }
  0x32   :  { %915 = vmatpush.bf16.msra.mxu2 %v6883_v20  ;;  %v6967_v58 = vor.u32 %v7815_v56, %v6966_v55  ;;  %v7847_v60 = vld [vmem:[#allocation6 + $0x1d4] sm:$0xf0]  ;;  %v7758_v0 = vld [vmem:[#allocation3 + $0x14] sm:$0xf]  ;;  %v6744_v1 = vld [vmem:[#allocation3 + $0x18] sm:$0xf0] }
  0x33   :  { %1004 = vmatpush.bf16.msra.mxu3 %v7011_v24  ;;  %v7095_v61 = vor.u32 %v7847_v60, %v7094_v59  ;;  %v7759_v63 = vld [vmem:[#allocation3 + $0x14] sm:$0xf0]  ;;  %v8691_v3 = vor.u32 %v7758_v0, %v6744_v1  ;;  %v6750_v4 = vld [vmem:[#allocation3 + $0x20] sm:$0xf]  ;;  %v7761_v5 = vld [vmem:[#allocation3 + $0x24] sm:$0xf0] }
  0x34   :  { %738 = vmatpush.bf16.msra.mxu0 %v6863_v31  ;;  %v8689_v2 = vor.u32 %v7759_v63, %v6742_v62  ;;  %v7760_v6 = vld [vmem:[#allocation3 + $0x24] sm:$0xf]  ;;  %v6752_v7 = vld [vmem:[#allocation3 + $0x28] sm:$0xf0]  ;;  %v8697_v8 = vor.u32 %v7761_v5, %v6750_v4  ;;  %v6952_v11 = vld [vmem:[#allocation6 + $0xb8] sm:$0xf0] }
  0x35   :  { %827 = vmatpush.bf16.msra.mxu1 %v6991_v35  ;;  %14720 = vst [vmem:[#allocation19_spill] sm:$0xff] %v8691_v3  ;;  %v8699_v9 = vor.u32 %v7760_v6, %v6752_v7  ;;  %v7809_v10 = vld [vmem:[#allocation6 + $0xac] sm:$0xf]  ;;  %v7080_v14 = vld [vmem:[#allocation6 + $0x1b8] sm:$0xf0]  ;;  %s6716_s15 = sshll.u32 %s14487_s4, 4  ;;  %s6717_s15 = int_to_ptr.hbm [resolvable:$true] %s6716_s15 }
  0x36   :  { %916 = vmatpush.bf16.msra.mxu2 %v6867_v36  ;;  %14719 = vst [vmem:[#allocation18_spill] sm:$0xff] %v8689_v2  ;;  %v7841_v12 = vld [vmem:[#allocation6 + $0x1ac] sm:$0xf]  ;;  %v6955_v13 = vor.u32 %v7809_v10, %v6952_v11  ;;  %v6950_v15 = vld [vmem:[#allocation6 + $0xa8] sm:$0xf] }
  0x37   :  { %1005 = vmatpush.bf16.msra.mxu3 %v6995_v39  ;;  %739 = vmatmul.bf16.vlgmr.msra.gmra.mxu0 %v8681_v43  ;;  %14721 = vst [vmem:[#allocation20_spill] sm:$0xff] %v8697_v8  ;;  %v7811_v16 = vld [vmem:[#allocation6 + $0xb4] sm:$0xf0]  ;;  %v7083_v17 = vor.u32 %v7841_v12, %v7080_v14  ;;  %v7078_v19 = vld [vmem:[#allocation6 + $0x1a8] sm:$0xf] }
  0x38   :  { %828 = vmatmul.bf16.vlgmr.msra.gmra.mxu1 %v8683_v47  ;;  %1087 = vmatpush.bf16.msrb.mxu0 %v6983_v48  ;;  %14722 = vst [vmem:[#allocation21_spill] sm:$0xff] %v8699_v9  ;;  %v6951_v18 = vor.u32 %v7811_v16, %v6950_v15  ;;  %v7843_v20 = vld [vmem:[#allocation6 + $0x1b4] sm:$0xf0]  ;;  %v6758_v22 = vld [vmem:[#allocation3 + $0x30] sm:$0xf] }
  0x39   :  { %917 = vmatmul.bf16.vlgmr.msra.gmra.mxu2 %v8681_v43  ;;  %1176 = vmatpush.bf16.msrb.mxu1 %v7111_v49  ;;  %v7079_v21 = vor.u32 %v7843_v20, %v7078_v19  ;;  %v7763_v23 = vld [vmem:[#allocation3 + $0x34] sm:$0xf0]  ;;  %v7762_v24 = vld [vmem:[#allocation3 + $0x34] sm:$0xf]  ;;  %v6760_v25 = vld [vmem:[#allocation3 + $0x38] sm:$0xf0] }
  0x3a   :  { %1265 = vmatpush.bf16.msrb.mxu2 %v6987_v40  ;;  %1006 = vmatmul.bf16.vlgmr.msra.gmra.mxu3 %v8683_v47  ;;  %v8705_v26 = vor.u32 %v7763_v23, %v6758_v22  ;;  %v8707_v27 = vor.u32 %v7762_v24, %v6760_v25  ;;  %v6766_v28 = vld [vmem:[#allocation3 + $0x40] sm:$0xf]  ;;  %v7765_v29 = vld [vmem:[#allocation3 + $0x44] sm:$0xf0]  ;;  %v7764_v30 = vld [vmem:[#allocation3 + $0x44] sm:$0xf] }
  0x3b   :  { %1354 = vmatpush.bf16.msrb.mxu3 %v7115_v44  ;;  %v6768_v31 = vld [vmem:[#allocation3 + $0x48] sm:$0xf0]  ;;  %v8713_v32 = vor.u32 %v7765_v29, %v6766_v28  ;;  %v6936_v35 = vld [vmem:[#allocation6 + $0x98] sm:$0xf0]  ;;  %v6934_v39 = vld [vmem:[#allocation6 + $0x88] sm:$0xf] }
  0x3c   :  { %1088 = vmatpush.bf16.msrb.mxu0 %v6967_v58  ;;  %14723 = vst [vmem:[#allocation22_spill] sm:$0xff] %v8705_v26  ;;  %v8715_v33 = vor.u32 %v7764_v30, %v6768_v31  ;;  %v7805_v34 = vld [vmem:[#allocation6 + $0x8c] sm:$0xf]  ;;  %v7064_v38 = vld [vmem:[#allocation6 + $0x198] sm:$0xf0] }
  0x3d   :  { %1177 = vmatpush.bf16.msrb.mxu1 %v7095_v61  ;;  %14724 = vst [vmem:[#allocation23_spill] sm:$0xff] %v8707_v27  ;;  %v7837_v36 = vld [vmem:[#allocation6 + $0x18c] sm:$0xf]  ;;  %v6939_v37 = vor.u32 %v7805_v34, %v6936_v35  ;;  %v7807_v40 = vld [vmem:[#allocation6 + $0x94] sm:$0xf0] }
  0x3e   :  { %1266 = vmatpush.bf16.msrb.mxu2 %v6971_v53  ;;  %14725 = vst [vmem:[#allocation24_spill] sm:$0xff] %v8713_v32  ;;  %v7067_v41 = vor.u32 %v7837_v36, %v7064_v38  ;;  %v6935_v42 = vor.u32 %v7807_v40, %v6934_v39  ;;  %v7062_v44 = vld [vmem:[#allocation6 + $0x188] sm:$0xf]  ;;  %v7839_v45 = vld [vmem:[#allocation6 + $0x194] sm:$0xf0] }
  0x3f   :  { %1355 = vmatpush.bf16.msrb.mxu3 %v7099_v57  ;;  %14726 = vst [vmem:[#allocation25_spill] sm:$0xff] %v8715_v33  ;;  %v7063_v46 = vor.u32 %v7839_v45, %v7062_v44  ;;  %v6774_v48 = vld [vmem:[#allocation3 + $0x50] sm:$0xf]  ;;  %v7767_v49 = vld [vmem:[#allocation3 + $0x54] sm:$0xf0] }
  0x40   :  { %1089 = vmatpush.bf16.msrb.mxu0 %v6951_v18  ;;  %v7766_v50 = vld [vmem:[#allocation3 + $0x54] sm:$0xf]  ;;  %v6776_v51 = vld [vmem:[#allocation3 + $0x58] sm:$0xf0]  ;;  %v8721_v52 = vor.u32 %v7767_v49, %v6774_v48  ;;  %v6782_v54 = vld [vmem:[#allocation3 + $0x60] sm:$0xf] }
  0x41   :  { %1178 = vmatpush.bf16.msrb.mxu1 %v7079_v21  ;;  %v8723_v53 = vor.u32 %v7766_v50, %v6776_v51  ;;  %v7769_v55 = vld [vmem:[#allocation3 + $0x64] sm:$0xf0]  ;;  %v7768_v56 = vld [vmem:[#allocation3 + $0x64] sm:$0xf]  ;;  %v6784_v57 = vld [vmem:[#allocation3 + $0x68] sm:$0xf0] }
  0x42   :  { %1267 = vmatpush.bf16.msrb.mxu2 %v6955_v13  ;;  %14727 = vst [vmem:[#allocation26_spill] sm:$0xff] %v8721_v52  ;;  %v8729_v58 = vor.u32 %v7769_v55, %v6782_v54  ;;  %v8731_v59 = vor.u32 %v7768_v56, %v6784_v57  ;;  %v6790_v60 = vld [vmem:[#allocation3 + $0x70] sm:$0xf]  ;;  %v7771_v61 = vld [vmem:[#allocation3 + $0x74] sm:$0xf0] }
  0x43   :  { %1356 = vmatpush.bf16.msrb.mxu3 %v7083_v17  ;;  %14728 = vst [vmem:[#allocation27_spill] sm:$0xff] %v8723_v53  ;;  %v7770_v62 = vld [vmem:[#allocation3 + $0x74] sm:$0xf]  ;;  %v6792_v63 = vld [vmem:[#allocation3 + $0x78] sm:$0xf0]  ;;  %v8737_v0 = vor.u32 %v7771_v61, %v6790_v60 }
  0x44   :  { %1090 = vmatpush.bf16.msrb.mxu0 %v6935_v42  ;;  %14729 = vst [vmem:[#allocation28_spill] sm:$0xff] %v8729_v58  ;;  %v8739_v1 = vor.u32 %v7770_v62, %v6792_v63  ;;  %v6798_v4 = vld [vmem:[#allocation3 + $0x80] sm:$0xf]  ;;  %v7773_v5 = vld [vmem:[#allocation3 + $0x84] sm:$0xf0] }
  0x45   :  { %1179 = vmatpush.bf16.msrb.mxu1 %v7063_v46  ;;  %14730 = vst [vmem:[#allocation29_spill] sm:$0xff] %v8731_v59  ;;  %v7772_v6 = vld [vmem:[#allocation3 + $0x84] sm:$0xf]  ;;  %v6800_v7 = vld [vmem:[#allocation3 + $0x88] sm:$0xf0]  ;;  %v8745_v10 = vor.u32 %v7773_v5, %v6798_v4 }
  0x46   :  { %1268 = vmatpush.bf16.msrb.mxu2 %v6939_v37  ;;  %14731 = vst [vmem:[#allocation30_spill] sm:$0xff] %v8737_v0  ;;  %v8747_v12 = vor.u32 %v7772_v6, %v6800_v7  ;;  %v7801_v13 = vld [vmem:[#allocation6 + $0x6c] sm:$0xf]  ;;  %v6920_v14 = vld [vmem:[#allocation6 + $0x78] sm:$0xf0] }
  0x47   :  { %744 = vmatmul.bf16.gmra.mxu0 %v8689_v2  ;;  %1357 = vmatpush.bf16.msrb.mxu3 %v7067_v41  ;;  %14732 = vst [vmem:[#allocation31_spill] sm:$0xff] %v8739_v1  ;;  %v7833_v15 = vld [vmem:[#allocation6 + $0x16c] sm:$0xf]  ;;  %v6923_v17 = vor.u32 %v7801_v13, %v6920_v14  ;;  %v7048_v18 = vld [vmem:[#allocation6 + $0x178] sm:$0xf0] }
  0x48   :  { %833 = vmatmul.bf16.gmra.mxu1 %v8691_v3  ;;  %14733 = vst [vmem:[#allocation32_spill] sm:$0xff] %v8745_v10  ;;  %v7051_v20 = vor.u32 %v7833_v15, %v7048_v18  ;;  %v6918_v22 = vld [vmem:[#allocation6 + $0x68] sm:$0xf]  ;;  %v7803_v23 = vld [vmem:[#allocation6 + $0x74] sm:$0xf0] }
  0x49   :  { %922 = vmatmul.bf16.gmra.mxu2 %v8689_v2  ;;  %14734 = vst [vmem:[#allocation33_spill] sm:$0xff] %v8747_v12  ;;  %v7046_v24 = vld [vmem:[#allocation6 + $0x168] sm:$0xf]  ;;  %v6919_v28 = vor.u32 %v7803_v23, %v6918_v22  ;;  %v7835_v29 = vld [vmem:[#allocation6 + $0x174] sm:$0xf0] }
  0x4a   :  { %1011 = vmatmul.bf16.gmra.mxu3 %v8691_v3  ;;  %1269 = vmatpush.bf16.msrb.mxu2 %v6923_v17  ;;  %v7047_v34 = vor.u32 %v7835_v29, %v7046_v24  ;;  %v6806_v37 = vld [vmem:[#allocation3 + $0x90] sm:$0xf]  ;;  %v7775_v38 = vld [vmem:[#allocation3 + $0x94] sm:$0xf0]  ;;  %v7774_v39 = vld [vmem:[#allocation3 + $0x94] sm:$0xf] }
  0x4b   :  { %1358 = vmatpush.bf16.msrb.mxu3 %v7051_v20  ;;  %1091 = vmatpush.bf16.msrb.mxu0 %v6919_v28  ;;  %v6808_v40 = vld [vmem:[#allocation3 + $0x98] sm:$0xf0]  ;;  %v8759_v42 = vor.u32 %v7775_v38, %v6806_v37  ;;  %v6814_v60 = vld [vmem:[#allocation3 + $0xa0] sm:$0xf]  ;;  %v7777_v61 = vld [vmem:[#allocation3 + $0xa4] sm:$0xf0] }
  0x4c   :  { %1180 = vmatpush.bf16.msrb.mxu1 %v7047_v34  ;;  %v8761_v46 = vor.u32 %v7774_v39, %v6808_v40  ;;  %v7776_v62 = vld [vmem:[#allocation3 + $0xa4] sm:$0xf]  ;;  %v6816_v63 = vld [vmem:[#allocation3 + $0xa8] sm:$0xf0]  ;;  %v8777_v5 = vor.u32 %v7777_v61, %v6814_v60  ;;  %v7032_v23 = vld [vmem:[#allocation6 + $0x158] sm:$0xf0] }
  0x4d   :  { %14735 = vst [vmem:[#allocation34_spill] sm:$0xff] %v8759_v42  ;;  %v7797_v17 = vld [vmem:[#allocation6 + $0x4c] sm:$0xf]  ;;  %v7779_v34 = vld [vmem:[#allocation3 + $0xb4] sm:$0xf0] }
  0x4e   :  { %14736 = vst [vmem:[#allocation35_spill] sm:$0xff] %v8761_v46  ;;  %v7829_v22 = vld [vmem:[#allocation6 + $0x14c] sm:$0xf]  ;;  %v6824_v37 = vld [vmem:[#allocation3 + $0xb8] sm:$0xf0] }
  0x4f   :  { %14737 = vst [vmem:[#allocation36_spill] sm:$0xff] %v8777_v5  ;;  %v7035_v28 = vor.u32 %v7829_v22, %v7032_v23  ;;  %v6902_v38 = vld [vmem:[#allocation6 + $0x48] sm:$0xf]  ;;  %v7799_v39 = vld [vmem:[#allocation6 + $0x54] sm:$0xf0] }
  0x50   :  { %v7831_v60 = vld [vmem:[#allocation6 + $0x154] sm:$0xf0]  ;;  %v6832_v22 = vld [vmem:[#allocation3 + $0xc8] sm:$0xf0] }
  0x51   :  { %1359 = vmatpush.bf16.msrb.mxu3 %v7035_v28 }
  0x57   :  { %749 = vmatmul.bf16.gmra.mxu0 %v8697_v8 }
  0x58   :  { %838 = vmatmul.bf16.gmra.mxu1 %v8699_v9 }
  0x59   :  { %927 = vmatmul.bf16.gmra.mxu2 %v8697_v8 }
  0x5a   :  { %1016 = vmatmul.bf16.gmra.mxu3 %v8699_v9 }
  0x67   :  { %754 = vmatmul.bf16.gmra.mxu0 %v8705_v26 }
  0x68   :  { %843 = vmatmul.bf16.gmra.mxu1 %v8707_v27 }
  0x69   :  { %932 = vmatmul.bf16.gmra.mxu2 %v8705_v26 }
  0x6a   :  { %1021 = vmatmul.bf16.gmra.mxu3 %v8707_v27 }
  0x77   :  { %759 = vmatmul.bf16.gmra.mxu0 %v8713_v32 }
  0x78   :  { %848 = vmatmul.bf16.gmra.mxu1 %v8715_v33 }
  0x79   :  { %937 = vmatmul.bf16.gmra.mxu2 %v8713_v32 }
  0x7a   :  { %1026 = vmatmul.bf16.gmra.mxu3 %v8715_v33 }
  0x87   :  { %764 = vmatmul.bf16.gmra.mxu0 %v8721_v52 }
  0x88   :  { %853 = vmatmul.bf16.gmra.mxu1 %v8723_v53 }
  0x89   :  { %942 = vmatmul.bf16.gmra.mxu2 %v8721_v52 }
  0x8a   :  { %1031 = vmatmul.bf16.gmra.mxu3 %v8723_v53 }
  0x97   :  { %769 = vmatmul.bf16.gmra.mxu0 %v8729_v58 }
  0x98   :  { %858 = vmatmul.bf16.gmra.mxu1 %v8731_v59 }
  0x99   :  { %947 = vmatmul.bf16.gmra.mxu2 %v8729_v58 }
  0x9a   :  { %1036 = vmatmul.bf16.gmra.mxu3 %v8731_v59 }
  0xa7   :  { %774 = vmatmul.bf16.gmra.mxu0 %v8737_v0 }
  0xa8   :  { %863 = vmatmul.bf16.gmra.mxu1 %v8739_v1 }
  0xa9   :  { %952 = vmatmul.bf16.gmra.mxu2 %v8737_v0 }
  0xaa   :  { %1041 = vmatmul.bf16.gmra.mxu3 %v8739_v1 }
  0xb4   :  { %v740_v11 = vpop.f32.mrf.mxu0 }
  0xb5   :  { %v829_v16 = vpop.f32.mrf.mxu1 }
  0xb6   :  { %v8749_v19 = vadd.f32 %v829_v16, %v740_v11  ;;  %v8779_v11 = vor.u32 %v7776_v62, %v6816_v63 }
  0xb7   :  { %779 = vmatmul.bf16.gmra.mxu0 %v8745_v10 }
  0xb8   :  { %868 = vmatmul.bf16.gmra.mxu1 %v8747_v12  ;;  %14738 = vst [vmem:[#allocation37_spill] sm:$0xff] %v8779_v11 }
  0xb9   :  { %957 = vmatmul.bf16.gmra.mxu2 %v8745_v10 }
  0xba   :  { %1046 = vmatmul.bf16.gmra.mxu3 %v8747_v12 }
  0xbc   :  { %v918_v21 = vpop.f32.mrf.mxu2  ;;  %v742_v30 = vpop.f32.mrf.mxu0 }
  0xbd   :  { %v1007_v25 = vpop.f32.mrf.mxu3  ;;  %v831_v35 = vpop.f32.mrf.mxu1 }
  0xbe   :  { %v8755_v31 = vadd.f32 %v1007_v25, %v918_v21  ;;  %v8757_v36 = vadd.f32 %v831_v35, %v742_v30  ;;  %v6904_v21 = vld [vmem:[#allocation6 + $0x58] sm:$0xf0]  ;;  %v6822_v30 = vld [vmem:[#allocation3 + $0xb0] sm:$0xf]  ;;  %v7778_v35 = vld [vmem:[#allocation3 + $0xb4] sm:$0xf] }
  0xbf   :  { %v6907_v25 = vor.u32 %v7797_v17, %v6904_v21  ;;  %v6830_v17 = vld [vmem:[#allocation3 + $0xc0] sm:$0xf]  ;;  %v7780_v21 = vld [vmem:[#allocation3 + $0xc4] sm:$0xf] }
  0xc1   :  { %1270 = vmatpush.bf16.msrb.mxu2 %v6907_v25 }
  0xc4   :  { %v920_v41 = vpop.f32.mrf.mxu2  ;;  %v745_v45 = vpop.f32.mrf.mxu0 }
  0xc5   :  { %v1009_v44 = vpop.f32.mrf.mxu3  ;;  %v834_v49 = vpop.f32.mrf.mxu1 }
  0xc6   :  { %v8763_v48 = vadd.f32 %v1009_v44, %v920_v41  ;;  %v8765_v50 = vadd.f32 %v834_v49, %v745_v45  ;;  %v8797_v41 = vor.u32 %v7779_v34, %v6822_v30  ;;  %v6903_v44 = vor.u32 %v7799_v39, %v6902_v38 }
  0xc7   :  { %784 = vmatmul.bf16.gmra.mxu0 %v8759_v42  ;;  %v8821_v34 = vor.u32 %v7780_v21, %v6832_v22  ;;  %v7825_v21 = vld [vmem:[#allocation6 + $0x12c] sm:$0xf]  ;;  %v7016_v22 = vld [vmem:[#allocation6 + $0x138] sm:$0xf0] }
  0xc8   :  { %873 = vmatmul.bf16.gmra.mxu1 %v8761_v46  ;;  %14742 = vst [vmem:[#allocation41_spill] sm:$0xff] %v8797_v41  ;;  %1092 = vmatpush.bf16.msrb.mxu0 %v6903_v44 }
  0xc9   :  { %962 = vmatmul.bf16.gmra.mxu2 %v8759_v42  ;;  %14752 = vst [vmem:[#allocation51_spill] sm:$0xff] %v8821_v34 }
  0xca   :  { %1051 = vmatmul.bf16.gmra.mxu3 %v8761_v46 }
  0xcc   :  { %v923_v51 = vpop.f32.mrf.mxu2  ;;  %v8771_v55 = vpop.f32.mrf.mxu0 }
  0xcd   :  { %v1012_v54 = vpop.f32.mrf.mxu3  ;;  %v8775_v57 = vpop.f32.mrf.mxu1 }
  0xce   :  { %v8773_v56 = vadd.f32 %v1012_v54, %v923_v51  ;;  %v8801_v51 = vor.u32 %v7778_v35, %v6824_v37  ;;  %v7030_v54 = vld [vmem:[#allocation6 + $0x148] sm:$0xf] }
  0xcf   :  { %v7031_v62 = vor.u32 %v7831_v60, %v7030_v54  ;;  %v7793_v54 = vld [vmem:[#allocation6 + $0x2c] sm:$0xf]  ;;  %v6888_v60 = vld [vmem:[#allocation6 + $0x38] sm:$0xf0] }
  0xd0   :  { %14744 = vst [vmem:[#allocation43_spill] sm:$0xff] %v8801_v51 }
  0xd1   :  { %1181 = vmatpush.bf16.msrb.mxu1 %v7031_v62 }
  0xd4   :  { %v925_v4 = vpop.f32.mrf.mxu2  ;;  %v750_v7 = vpop.f32.mrf.mxu0 }
  0xd5   :  { %v1014_v6 = vpop.f32.mrf.mxu3  ;;  %v839_v14 = vpop.f32.mrf.mxu1 }
  0xd6   :  { %v8781_v13 = vadd.f32 %v1014_v6, %v925_v4  ;;  %v8784_v15 = vadd.f32 %v839_v14, %v750_v7 }
  0xd7   :  { %789 = vmatmul.bf16.gmra.mxu0 %v8777_v5 }
  0xd8   :  { %878 = vmatmul.bf16.gmra.mxu1 %v8779_v11 }
  0xd9   :  { %967 = vmatmul.bf16.gmra.mxu2 %v8777_v5 }
  0xda   :  { %1056 = vmatmul.bf16.gmra.mxu3 %v8779_v11 }
  0xdc   :  { %v928_v16 = vpop.f32.mrf.mxu2  ;;  %v8789_v20 = vpop.f32.mrf.mxu0 }
  0xdd   :  { %v1017_v18 = vpop.f32.mrf.mxu3  ;;  %v8791_v24 = vpop.f32.mrf.mxu1 }
  0xde   :  { %14739 = vst [vmem:[#allocation38_spill] sm:$0xff] %v8791_v24  ;;  %v8793_v29 = vadd.f32 %v1017_v18, %v928_v16  ;;  %v7781_v18 = vld [vmem:[#allocation3 + $0xc4] sm:$0xf0] }
  0xdf   :  { %v8817_v25 = vor.u32 %v7781_v18, %v6830_v17  ;;  %v6891_v17 = vor.u32 %v7793_v54, %v6888_v60 }
  0xe0   :  { %14740 = vst [vmem:[#allocation39_spill] sm:$0xff] %v8793_v29 }
  0xe1   :  { %14750 = vst [vmem:[#allocation49_spill] sm:$0xff] %v8817_v25  ;;  %1271 = vmatpush.bf16.msrb.mxu2 %v6891_v17 }
  0xe4   :  { %v8795_v40 = vpop.f32.mrf.mxu2  ;;  %v755_v49 = vpop.f32.mrf.mxu0 }
  0xe5   :  { %14741 = vst [vmem:[#allocation40_spill] sm:$0xff] %v8795_v40  ;;  %v8799_v45 = vpop.f32.mrf.mxu3  ;;  %v844_v61 = vpop.f32.mrf.mxu1 }
  0xe6   :  { %14743 = vst [vmem:[#allocation42_spill] sm:$0xff] %v8799_v45  ;;  %v8807_v63 = vadd.f32 %v844_v61, %v755_v49  ;;  %v7791_v45 = vld [vmem:[#allocation6 + $0x14] sm:$0xf0] }
  0xe7   :  { %794 = vmatmul.bf16.gmra.mxu0 %v8797_v41 }
  0xe8   :  { %883 = vmatmul.bf16.gmra.mxu1 %v8801_v51  ;;  %14745 = vst [vmem:[#allocation44_spill] sm:$0xff] %v8807_v63 }
  0xe9   :  { %972 = vmatmul.bf16.gmra.mxu2 %v8797_v41 }
  0xea   :  { %1061 = vmatmul.bf16.gmra.mxu3 %v8801_v51 }
  0xec   :  { %v933_v4 = vpop.f32.mrf.mxu2  ;;  %v8809_v7 = vpop.f32.mrf.mxu0 }
  0xed   :  { %v1022_v6 = vpop.f32.mrf.mxu3  ;;  %14746 = vst [vmem:[#allocation45_spill] sm:$0xff] %v8809_v7  ;;  %v8811_v14 = vpop.f32.mrf.mxu1 }
  0xee   :  { %14747 = vst [vmem:[#allocation46_spill] sm:$0xff] %v8811_v14  ;;  %v8813_v16 = vadd.f32 %v1022_v6, %v933_v4 }
  0xf0   :  { %14748 = vst [vmem:[#allocation47_spill] sm:$0xff] %v8813_v16  ;;  %v7782_v16 = vld [vmem:[#allocation3 + $0xd4] sm:$0xf] }
  0xf4   :  { %v8815_v23 = vpop.f32.mrf.mxu2  ;;  %v760_v30 = vpop.f32.mrf.mxu0 }
  0xf5   :  { %14749 = vst [vmem:[#allocation48_spill] sm:$0xff] %v8815_v23  ;;  %v8819_v28 = vpop.f32.mrf.mxu3  ;;  %v849_v35 = vpop.f32.mrf.mxu1  ;;  %v7014_v23 = vld [vmem:[#allocation6 + $0x128] sm:$0xf] }
  0xf6   :  { %14751 = vst [vmem:[#allocation50_spill] sm:$0xff] %v8819_v28  ;;  %v8831_v49 = vadd.f32 %v849_v35, %v760_v30  ;;  %v6886_v28 = vld [vmem:[#allocation6 + $0x28] sm:$0xf]  ;;  %v7019_v30 = vor.u32 %v7825_v21, %v7016_v22  ;;  %v6838_v35 = vld [vmem:[#allocation3 + $0xd0] sm:$0xf] }
  0xf7   :  { %799 = vmatmul.bf16.gmra.mxu0 %v8817_v25 }
  0xf8   :  { %888 = vmatmul.bf16.gmra.mxu1 %v8821_v34  ;;  %14755 = vst [vmem:[#allocation54_spill] sm:$0xff] %v8831_v49  ;;  %v7783_v49 = vld [vmem:[#allocation3 + $0xd4] sm:$0xf0]  ;;  %1360 = vmatpush.bf16.msrb.mxu3 %v7019_v30 }
  0xf9   :  { %977 = vmatmul.bf16.gmra.mxu2 %v8817_v25  ;;  %v8843_v17 = vor.u32 %v7783_v49, %v6838_v35 }
  0xfa   :  { %1066 = vmatmul.bf16.gmra.mxu3 %v8821_v34 }
  0xfb   :  { %14761 = vst [vmem:[#allocation60_spill] sm:$0xff] %v8843_v17 }
  0xfc   :  { %v938_v37 = vpop.f32.mrf.mxu2  ;;  %v8827_v39 = vpop.f32.mrf.mxu0 }
  0xfd   :  { %v1027_v38 = vpop.f32.mrf.mxu3  ;;  %14753 = vst [vmem:[#allocation52_spill] sm:$0xff] %v8827_v39  ;;  %v8829_v44 = vpop.f32.mrf.mxu1  ;;  %v7795_v39 = vld [vmem:[#allocation6 + $0x34] sm:$0xf0] }
  0xfe   :  { %14754 = vst [vmem:[#allocation53_spill] sm:$0xff] %v8829_v44  ;;  %v8833_v61 = vadd.f32 %v1027_v38, %v938_v37  ;;  %v7827_v44 = vld [vmem:[#allocation6 + $0x134] sm:$0xf0]  ;;  %v6840_v37 = vld [vmem:[#allocation3 + $0xd8] sm:$0xf0]  ;;  %v6887_v38 = vor.u32 %v7795_v39, %v6886_v28 }
  0xff   :  { %v8845_v14 = vor.u32 %v7782_v16, %v6840_v37  ;;  %v6846_v16 = vld [vmem:[#allocation3 + $0xe0] sm:$0xf] }
 0x100   :  { %14756 = vst [vmem:[#allocation55_spill] sm:$0xff] %v8833_v61  ;;  %1093 = vmatpush.bf16.msrb.mxu0 %v6887_v38 }
 0x101   :  { %14762 = vst [vmem:[#allocation61_spill] sm:$0xff] %v8845_v14 }
 0x104   :  { %v8835_v62 = vpop.f32.mrf.mxu2  ;;  %v765_v6 = vpop.f32.mrf.mxu0 }
 0x105   :  { %14757 = vst [vmem:[#allocation56_spill] sm:$0xff] %v8835_v62  ;;  %v8837_v4 = vpop.f32.mrf.mxu3  ;;  %v854_v18 = vpop.f32.mrf.mxu1  ;;  %v7015_v62 = vor.u32 %v7827_v44, %v7014_v23 }
 0x106   :  { %14758 = vst [vmem:[#allocation57_spill] sm:$0xff] %v8837_v4  ;;  %v8839_v4 = vadd.f32 %v854_v18, %v765_v6 }
 0x107   :  { %1182 = vmatpush.bf16.msrb.mxu1 %v7015_v62  ;;  %804 = vmatmul.bf16.gmra.mxu0 %v8843_v17  ;;  %v7785_v62 = vld [vmem:[#allocation3 + $0xe4] sm:$0xf0] }
 0x108   :  { %14759 = vst [vmem:[#allocation58_spill] sm:$0xff] %v8839_v4  ;;  %893 = vmatmul.bf16.gmra.mxu1 %v8845_v14  ;;  %v8859_v6 = vor.u32 %v7785_v62, %v6846_v16  ;;  %v7784_v16 = vld [vmem:[#allocation3 + $0xe4] sm:$0xf]  ;;  %v6848_v62 = vld [vmem:[#allocation3 + $0xe8] sm:$0xf0] }
 0x109   :  { %982 = vmatmul.bf16.gmra.mxu2 %v8843_v17 }
 0x10a   :  { %1071 = vmatmul.bf16.gmra.mxu3 %v8845_v14  ;;  %14767 = vst [vmem:[#allocation66_spill] sm:$0xff] %v8859_v6 }
 0x10c   :  { %v943_v61 = vpop.f32.mrf.mxu2  ;;  %v8841_v60 = vpop.f32.mrf.mxu0 }
 0x10d   :  { %v1032_v54 = vpop.f32.mrf.mxu3  ;;  %14760 = vst [vmem:[#allocation59_spill] sm:$0xff] %v8841_v60  ;;  %v8847_v21 = vpop.f32.mrf.mxu1 }
 0x10e   :  { %14763 = vst [vmem:[#allocation62_spill] sm:$0xff] %v8847_v21  ;;  %v8853_v23 = vadd.f32 %v1032_v54, %v943_v61  ;;  %v7821_v21 = vld [vmem:[#allocation6 + $0x10c] sm:$0xf] }
 0x110   :  { %14764 = vst [vmem:[#allocation63_spill] sm:$0xff] %v8853_v23  ;;  %v6872_v23 = vld [vmem:[#allocation6 + $0x18] sm:$0xf0] }
 0x114   :  { %v8855_v28 = vpop.f32.mrf.mxu2  ;;  %v770_v44 = vpop.f32.mrf.mxu0 }
 0x115   :  { %14765 = vst [vmem:[#allocation64_spill] sm:$0xff] %v8855_v28  ;;  %v8857_v39 = vpop.f32.mrf.mxu3  ;;  %v859_v49 = vpop.f32.mrf.mxu1  ;;  %v7789_v28 = vld [vmem:[#allocation6 + $0xc] sm:$0xf] }
 0x116   :  { %14766 = vst [vmem:[#allocation65_spill] sm:$0xff] %v8857_v39  ;;  %v8871_v39 = vadd.f32 %v859_v49, %v770_v44  ;;  %v6875_v4 = vor.u32 %v7789_v28, %v6872_v23  ;;  %v6998_v49 = vld [vmem:[#allocation6 + $0x108] sm:$0xf]  ;;  %v6854_v28 = vld [vmem:[#allocation3 + $0xf0] sm:$0xf] }
 0x117   :  { %809 = vmatmul.bf16.gmra.mxu0 %v8859_v6 }
 0x118   :  { %14772 = vst [vmem:[#allocation71_spill] sm:$0xff] %v8871_v39  ;;  %v7823_v39 = vld [vmem:[#allocation6 + $0x114] sm:$0xf0]  ;;  %1272 = vmatpush.bf16.msrb.mxu2 %v6875_v4 }
 0x119   :  { %987 = vmatmul.bf16.gmra.mxu2 %v8859_v6 }
 0x11c   :  { %v948_v18 = vpop.f32.mrf.mxu2  ;;  %v8861_v30 = vpop.f32.mrf.mxu0 }
 0x11d   :  { %v1037_v22 = vpop.f32.mrf.mxu3  ;;  %14768 = vst [vmem:[#allocation67_spill] sm:$0xff] %v8861_v30  ;;  %v8863_v35 = vpop.f32.mrf.mxu1  ;;  %v7000_v30 = vld [vmem:[#allocation6 + $0x118] sm:$0xf0] }
 0x11e   :  { %14769 = vst [vmem:[#allocation68_spill] sm:$0xff] %v8863_v35  ;;  %v8873_v35 = vor.u32 %v7784_v16, %v6848_v62  ;;  %v7003_v7 = vor.u32 %v7821_v21, %v7000_v30  ;;  %v8875_v63 = vadd.f32 %v1037_v22, %v948_v18  ;;  %v6999_v21 = vor.u32 %v7823_v39, %v6998_v49  ;;  %v7787_v18 = vld [vmem:[#allocation3 + $0xf4] sm:$0xf0] }
 0x120   :  { %14773 = vst [vmem:[#allocation72_spill] sm:$0xff] %v8873_v35  ;;  %898 = vmatmul.bf16.gmra.mxu1 %v8873_v35  ;;  %1076 = vmatmul.bf16.gmra.mxu3 %v8873_v35 }
 0x121   :  { %14774 = vst [vmem:[#allocation73_spill] sm:$0xff] %v8875_v63  ;;  %1361 = vmatpush.bf16.msrb.mxu3 %v7003_v7  ;;  %1183 = vmatpush.bf16.msrb.mxu1 %v6999_v21  ;;  %v6856_v7 = vld [vmem:[#allocation3 + $0xf8] sm:$0xf0] }
 0x124   :  { %v8867_v61 = vpop.f32.mrf.mxu2  ;;  %v775_v38 = vpop.f32.mrf.mxu0 }
 0x125   :  { %14770 = vst [vmem:[#allocation69_spill] sm:$0xff] %v8867_v61  ;;  %v8869_v37 = vpop.f32.mrf.mxu3  ;;  %v864_v54 = vpop.f32.mrf.mxu1  ;;  %v6870_v61 = vld [vmem:[#allocation6 + $0x8] sm:$0xf] }
 0x126   :  { %14771 = vst [vmem:[#allocation70_spill] sm:$0xff] %v8869_v37  ;;  %v6871_v16 = vor.u32 %v7791_v45, %v6870_v61  ;;  %v8883_v23 = vadd.f32 %v864_v54, %v775_v38  ;;  %v7786_v45 = vld [vmem:[#allocation3 + $0xf4] sm:$0xf] }
 0x127   :  { %v8893_v39 = vor.u32 %v7786_v45, %v6856_v7 }
 0x128   :  { %1094 = vmatpush.bf16.msrb.mxu0 %v6871_v16  ;;  %14777 = vst [vmem:[#allocation76_spill] sm:$0xff] %v8883_v23  ;;  %v7882_v23 = vld [vmem:[#allocation8 + $0xec] sm:$0xf0] }
 0x129   :  { %14781 = vst [vmem:[#allocation80_spill] sm:$0xff] %v8893_v39 }
 0x12c   :  { %v953_v60 = vpop.f32.mrf.mxu2  ;;  %v8877_v40 = vpop.f32.mrf.mxu0 }
 0x12d   :  { %v1042_v37 = vpop.f32.mrf.mxu3  ;;  %14775 = vst [vmem:[#allocation74_spill] sm:$0xff] %v8877_v40  ;;  %v8879_v44 = vpop.f32.mrf.mxu1  ;;  %v8889_v40 = vor.u32 %v7787_v18, %v6854_v28 }
 0x12e   :  { %14776 = vst [vmem:[#allocation75_spill] sm:$0xff] %v8879_v44  ;;  %v8895_v61 = vadd.f32 %v1042_v37, %v953_v60 }
 0x12f   :  { %14780 = vst [vmem:[#allocation79_spill] sm:$0xff] %v8889_v40  ;;  %814 = vmatmul.bf16.gmra.mxu0 %v8889_v40  ;;  %992 = vmatmul.bf16.gmra.mxu2 %v8889_v40 }
 0x130   :  { %14782 = vst [vmem:[#allocation81_spill] sm:$0xff] %v8895_v61  ;;  %903 = vmatmul.bf16.gmra.mxu1 %v8893_v39  ;;  %1081 = vmatmul.bf16.gmra.mxu3 %v8893_v39  ;;  %v7230_v61 = vld [vmem:[#allocation8 + $0xe0] sm:$0xf] }
 0x134   :  { %v8885_v22 = vpop.f32.mrf.mxu2  ;;  %v780_v62 = vpop.f32.mrf.mxu0 }
 0x135   :  { %14778 = vst [vmem:[#allocation77_spill] sm:$0xff] %v8885_v22  ;;  %v8887_v30 = vpop.f32.mrf.mxu3  ;;  %v869_v44 = vpop.f32.mrf.mxu1 }
 0x136   :  { %14779 = vst [vmem:[#allocation78_spill] sm:$0xff] %v8887_v30  ;;  %v8909_v37 = vadd.f32 %v869_v44, %v780_v62  ;;  %v7358_v62 = vld [vmem:[#allocation8 + $0x1e0] sm:$0xf] }
 0x138   :  { %14787 = vst [vmem:[#allocation86_spill] sm:$0xff] %v8909_v37 }
 0x13c   :  { %v958_v4 = vpop.f32.mrf.mxu2  ;;  %v8897_v54 = vpop.f32.mrf.mxu0 }
 0x13d   :  { %v1047_v38 = vpop.f32.mrf.mxu3  ;;  %14783 = vst [vmem:[#allocation82_spill] sm:$0xff] %v8897_v54  ;;  %v8899_v49 = vpop.f32.mrf.mxu1  ;;  %v7232_v54 = vld [vmem:[#allocation8 + $0xf0] sm:$0xf0] }
 0x13e   :  { %14784 = vst [vmem:[#allocation83_spill] sm:$0xff] %v8899_v49  ;;  %v8911_v45 = vadd.f32 %v1047_v38, %v958_v4  ;;  %v7880_v49 = vld [vmem:[#allocation8 + $0xe4] sm:$0xf]  ;;  %v7914_v4 = vld [vmem:[#allocation8 + $0x1ec] sm:$0xf0] }
 0x13f   :  { %1095 = vmatmul.bf16.vlgmr.msrb.gmra.mxu0 %v8681_v43  ;;  %1273 = vmatmul.bf16.vlgmr.msrb.gmra.mxu2 %v8681_v43  ;;  %v7235_v22 = vor.u32 %v7880_v49, %v7232_v54  ;;  %v7359_v37 = vor.u32 %v7914_v4, %v7358_v62  ;;  %v7216_v62 = vld [vmem:[#allocation8 + $0xd0] sm:$0xf0] }
 0x140   :  { %14788 = vst [vmem:[#allocation87_spill] sm:$0xff] %v8911_v45  ;;  %1184 = vmatmul.bf16.vlgmr.msrb.gmra.mxu1 %v8683_v47  ;;  %1362 = vmatmul.bf16.vlgmr.msrb.gmra.mxu3 %v8683_v47 }
 0x141   :  { %2005 = vmatpush.bf16.msra.mxu2 %v7235_v22  ;;  %1916 = vmatpush.bf16.msra.mxu1 %v7359_v37 }
 0x144   :  { %v8903_v16 = vpop.f32.mrf.mxu2  ;;  %v785_v28 = vpop.f32.mrf.mxu0 }
 0x145   :  { %14785 = vst [vmem:[#allocation84_spill] sm:$0xff] %v8903_v16  ;;  %v8905_v21 = vpop.f32.mrf.mxu3  ;;  %v874_v18 = vpop.f32.mrf.mxu1  ;;  %v7360_v16 = vld [vmem:[#allocation8 + $0x1f0] sm:$0xf0] }
 0x146   :  { %14786 = vst [vmem:[#allocation85_spill] sm:$0xff] %v8905_v21  ;;  %v7912_v21 = vld [vmem:[#allocation8 + $0x1e4] sm:$0xf]  ;;  %v8923_v24 = vadd.f32 %v874_v18, %v785_v28 }
 0x147   :  { %v7363_v44 = vor.u32 %v7912_v21, %v7360_v16 }
 0x148   :  { %14793 = vst [vmem:[#allocation92_spill] sm:$0xff] %v8923_v24 }
 0x149   :  { %2094 = vmatpush.bf16.msra.mxu3 %v7363_v44  ;;  %v7876_v44 = vld [vmem:[#allocation8 + $0xc4] sm:$0xf] }
 0x14a   :  { %v7219_v4 = vor.u32 %v7876_v44, %v7216_v62 }
 0x14c   :  { %v963_v60 = vpop.f32.mrf.mxu2  ;;  %v8913_v7 = vpop.f32.mrf.mxu0  ;;  %2006 = vmatpush.bf16.msra.mxu2 %v7219_v4 }
 0x14d   :  { %14789 = vst [vmem:[#allocation88_spill] sm:$0xff] %v8913_v7  ;;  %v1052_v30 = vpop.f32.mrf.mxu3  ;;  %v8917_v63 = vpop.f32.mrf.mxu1  ;;  %v7231_v7 = vor.u32 %v7882_v23, %v7230_v61 }
 0x14e   :  { %14790 = vst [vmem:[#allocation89_spill] sm:$0xff] %v8917_v63  ;;  %v8927_v22 = vadd.f32 %v1052_v30, %v963_v60 }
 0x14f   :  { %1827 = vmatpush.bf16.msra.mxu0 %v7231_v7  ;;  %1278 = vmatmul.bf16.gmra.mxu2 %v8689_v2 }
 0x150   :  { %1100 = vmatmul.bf16.gmra.mxu0 %v8689_v2  ;;  %14794 = vst [vmem:[#allocation93_spill] sm:$0xff] %v8927_v22  ;;  %1189 = vmatmul.bf16.gmra.mxu1 %v8691_v3 }
 0x151   :  { %1367 = vmatmul.bf16.gmra.mxu3 %v8691_v3 }
 0x154   :  { %v8919_v38 = vpop.f32.mrf.mxu2  ;;  %v790_v45 = vpop.f32.mrf.mxu0 }
 0x155   :  { %14791 = vst [vmem:[#allocation90_spill] sm:$0xff] %v8919_v38  ;;  %v8921_v29 = vpop.f32.mrf.mxu3  ;;  %v879_v54 = vpop.f32.mrf.mxu1 }
 0x156   :  { %14792 = vst [vmem:[#allocation91_spill] sm:$0xff] %v8921_v29  ;;  %v8939_v30 = vadd.f32 %v879_v54, %v790_v45  ;;  %v7214_v45 = vld [vmem:[#allocation8 + $0xc0] sm:$0xf]  ;;  %v7878_v54 = vld [vmem:[#allocation8 + $0xcc] sm:$0xf0] }
 0x158   :  { %14798 = vst [vmem:[#allocation97_spill] sm:$0xff] %v8939_v30  ;;  %v7910_v30 = vld [vmem:[#allocation8 + $0x1cc] sm:$0xf0] }
 0x15c   :  { %v968_v49 = vpop.f32.mrf.mxu2  ;;  %v8929_v16 = vpop.f32.mrf.mxu0 }
 0x15d   :  { %14795 = vst [vmem:[#allocation94_spill] sm:$0xff] %v8929_v16  ;;  %v1057_v23 = vpop.f32.mrf.mxu3  ;;  %v8935_v21 = vpop.f32.mrf.mxu1 }
 0x15e   :  { %14797 = vst [vmem:[#allocation96_spill] sm:$0xff] %v8935_v21  ;;  %v7344_v21 = vld [vmem:[#allocation8 + $0x1d0] sm:$0xf0]  ;;  %v8947_v16 = vadd.f32 %v1057_v23, %v968_v49 }
 0x15f   :  { %1283 = vmatmul.bf16.gmra.mxu2 %v8697_v8 }
 0x160   :  { %1105 = vmatmul.bf16.gmra.mxu0 %v8697_v8  ;;  %1194 = vmatmul.bf16.gmra.mxu1 %v8699_v9  ;;  %14801 = vst [vmem:[#allocation100_spill] sm:$0xff] %v8947_v16 }
 0x161   :  { %1372 = vmatmul.bf16.gmra.mxu3 %v8699_v9 }
 0x164   :  { %v8933_v61 = vpop.f32.mrf.mxu2  ;;  %v795_v28 = vpop.f32.mrf.mxu0 }
 0x165   :  { %14796 = vst [vmem:[#allocation95_spill] sm:$0xff] %v8933_v61  ;;  %v8941_v18 = vpop.f32.mrf.mxu3  ;;  %v884_v37 = vpop.f32.mrf.mxu1  ;;  %v7908_v61 = vld [vmem:[#allocation8 + $0x1c4] sm:$0xf] }
 0x166   :  { %14799 = vst [vmem:[#allocation98_spill] sm:$0xff] %v8941_v18  ;;  %v7342_v18 = vld [vmem:[#allocation8 + $0x1c0] sm:$0xf]  ;;  %v7347_v38 = vor.u32 %v7908_v61, %v7344_v21  ;;  %v8953_v49 = vadd.f32 %v884_v37, %v795_v28 }
 0x167   :  { %v7343_v63 = vor.u32 %v7910_v30, %v7342_v18 }
 0x168   :  { %2095 = vmatpush.bf16.msra.mxu3 %v7347_v38  ;;  %14803 = vst [vmem:[#allocation102_spill] sm:$0xff] %v8953_v49 }
 0x169   :  { %1917 = vmatpush.bf16.msra.mxu1 %v7343_v63 }
 0x16c   :  { %v973_v60 = vpop.f32.mrf.mxu2  ;;  %v8945_v7 = vpop.f32.mrf.mxu0 }
 0x16d   :  { %14800 = vst [vmem:[#allocation99_spill] sm:$0xff] %v8945_v7  ;;  %v1062_v29 = vpop.f32.mrf.mxu3  ;;  %v7215_v7 = vor.u32 %v7878_v54, %v7214_v45  ;;  %v8951_v24 = vpop.f32.mrf.mxu1  ;;  %v7200_v45 = vld [vmem:[#allocation8 + $0xb0] sm:$0xf0]  ;;  %v7904_v54 = vld [vmem:[#allocation8 + $0x1a4] sm:$0xf] }
 0x16e   :  { %14802 = vst [vmem:[#allocation101_spill] sm:$0xff] %v8951_v24  ;;  %v8959_v4 = vadd.f32 %v1062_v29, %v973_v60  ;;  %v7872_v60 = vld [vmem:[#allocation8 + $0xa4] sm:$0xf] }
 0x16f   :  { %1288 = vmatmul.bf16.gmra.mxu2 %v8705_v26  ;;  %1828 = vmatpush.bf16.msra.mxu0 %v7215_v7 }
 0x170   :  { %1110 = vmatmul.bf16.gmra.mxu0 %v8705_v26  ;;  %1199 = vmatmul.bf16.gmra.mxu1 %v8707_v27  ;;  %14805 = vst [vmem:[#allocation104_spill] sm:$0xff] %v8959_v4 }
 0x171   :  { %1377 = vmatmul.bf16.gmra.mxu3 %v8707_v27 }
 0x174   :  { %v975_v22 = vpop.f32.mrf.mxu2  ;;  %v800_v44 = vpop.f32.mrf.mxu0 }
 0x175   :  { %v1064_v23 = vpop.f32.mrf.mxu3  ;;  %v889_v21 = vpop.f32.mrf.mxu1 }
 0x176   :  { %v8963_v30 = vadd.f32 %v1064_v23, %v975_v22  ;;  %v8965_v63 = vadd.f32 %v889_v21, %v800_v44  ;;  %v7203_v22 = vor.u32 %v7872_v60, %v7200_v45  ;;  %v7198_v44 = vld [vmem:[#allocation8 + $0xa0] sm:$0xf]  ;;  %v7874_v23 = vld [vmem:[#allocation8 + $0xac] sm:$0xf0] }
 0x177   :  { %v7199_v49 = vor.u32 %v7874_v23, %v7198_v44 }
 0x178   :  { %14806 = vst [vmem:[#allocation105_spill] sm:$0xff] %v8963_v30  ;;  %2007 = vmatpush.bf16.msra.mxu2 %v7203_v22  ;;  %v7906_v30 = vld [vmem:[#allocation8 + $0x1ac] sm:$0xf0] }
 0x179   :  { %14807 = vst [vmem:[#allocation106_spill] sm:$0xff] %v8965_v63  ;;  %v7326_v63 = vld [vmem:[#allocation8 + $0x1a0] sm:$0xf]  ;;  %1829 = vmatpush.bf16.msra.mxu0 %v7199_v49 }
 0x17a   :  { %v7327_v16 = vor.u32 %v7906_v30, %v7326_v63 }
 0x17c   :  { %v978_v61 = vpop.f32.mrf.mxu2  ;;  %v8957_v62 = vpop.f32.mrf.mxu0  ;;  %1918 = vmatpush.bf16.msra.mxu1 %v7327_v16 }
 0x17d   :  { %14804 = vst [vmem:[#allocation103_spill] sm:$0xff] %v8957_v62  ;;  %v1067_v38 = vpop.f32.mrf.mxu3  ;;  %v8967_v18 = vpop.f32.mrf.mxu1  ;;  %v7328_v62 = vld [vmem:[#allocation8 + $0x1b0] sm:$0xf0] }
 0x17e   :  { %14808 = vst [vmem:[#allocation107_spill] sm:$0xff] %v8967_v18  ;;  %v7331_v21 = vor.u32 %v7904_v54, %v7328_v62  ;;  %v8973_v18 = vadd.f32 %v1067_v38, %v978_v61 }
 0x17f   :  { %1293 = vmatmul.bf16.gmra.mxu2 %v8713_v32 }
 0x180   :  { %1115 = vmatmul.bf16.gmra.mxu0 %v8713_v32  ;;  %1204 = vmatmul.bf16.gmra.mxu1 %v8715_v33  ;;  %14809 = vst [vmem:[#allocation108_spill] sm:$0xff] %v8973_v18  ;;  %v7870_v18 = vld [vmem:[#allocation8 + $0x8c] sm:$0xf0] }
 0x181   :  { %1382 = vmatmul.bf16.gmra.mxu3 %v8715_v33 }
 0x182   :  { %2096 = vmatpush.bf16.msra.mxu3 %v7331_v21  ;;  %v7868_v21 = vld [vmem:[#allocation8 + $0x84] sm:$0xf] }
 0x184   :  { %v980_v28 = vpop.f32.mrf.mxu2  ;;  %v805_v37 = vpop.f32.mrf.mxu0 }
 0x185   :  { %v1069_v7 = vpop.f32.mrf.mxu3  ;;  %v894_v24 = vpop.f32.mrf.mxu1 }
 0x186   :  { %v8975_v33 = vadd.f32 %v1069_v7, %v980_v28  ;;  %v8977_v45 = vadd.f32 %v894_v24, %v805_v37 }
 0x188   :  { %14810 = vst [vmem:[#allocation109_spill] sm:$0xff] %v8975_v33  ;;  %v7182_v33 = vld [vmem:[#allocation8 + $0x80] sm:$0xf] }
 0x189   :  { %14811 = vst [vmem:[#allocation110_spill] sm:$0xff] %v8977_v45 }
 0x18c   :  { %v983_v29 = vpop.f32.mrf.mxu2  ;;  %v807_v4 = vpop.f32.mrf.mxu0 }
 0x18d   :  { %v1072_v60 = vpop.f32.mrf.mxu3  ;;  %v896_v62 = vpop.f32.mrf.mxu1 }
 0x18e   :  { %v8981_v38 = vadd.f32 %v1072_v60, %v983_v29  ;;  %v8985_v63 = vadd.f32 %v896_v62, %v807_v4  ;;  %v7184_v4 = vld [vmem:[#allocation8 + $0x90] sm:$0xf0]  ;;  %v7900_v60 = vld [vmem:[#allocation8 + $0x184] sm:$0xf] }
 0x18f   :  { %1298 = vmatmul.bf16.gmra.mxu2 %v8721_v52 }
 0x190   :  { %1120 = vmatmul.bf16.gmra.mxu0 %v8721_v52  ;;  %1209 = vmatmul.bf16.gmra.mxu1 %v8723_v53  ;;  %14812 = vst [vmem:[#allocation111_spill] sm:$0xff] %v8981_v38 }
 0x191   :  { %1387 = vmatmul.bf16.gmra.mxu3 %v8723_v53  ;;  %14813 = vst [vmem:[#allocation112_spill] sm:$0xff] %v8985_v63 }
 0x194   :  { %v985_v22 = vpop.f32.mrf.mxu2  ;;  %v810_v61 = vpop.f32.mrf.mxu0 }
 0x195   :  { %v1074_v54 = vpop.f32.mrf.mxu3 }
 0x196   :  { %v8987_v24 = vadd.f32 %v1074_v54, %v985_v22  ;;  %v7312_v22 = vld [vmem:[#allocation8 + $0x190] sm:$0xf0]  ;;  %v7187_v54 = vor.u32 %v7868_v21, %v7184_v4  ;;  %v7310_v21 = vld [vmem:[#allocation8 + $0x180] sm:$0xf]  ;;  %v7902_v4 = vld [vmem:[#allocation8 + $0x18c] sm:$0xf0] }
 0x198   :  { %14814 = vst [vmem:[#allocation113_spill] sm:$0xff] %v8987_v24  ;;  %2008 = vmatpush.bf16.msra.mxu2 %v7187_v54 }
 0x19c   :  { %v988_v16 = vpop.f32.mrf.mxu2  ;;  %v812_v30 = vpop.f32.mrf.mxu0 }
 0x19d   :  { %v899_v49 = vpop.f32.mrf.mxu1 }
 0x19e   :  { %v8989_v28 = vadd.f32 %v899_v49, %v810_v61  ;;  %v7315_v49 = vor.u32 %v7900_v60, %v7312_v22 }
 0x19f   :  { %1303 = vmatmul.bf16.gmra.mxu2 %v8729_v58 }
 0x1a0   :  { %1125 = vmatmul.bf16.gmra.mxu0 %v8729_v58  ;;  %14815 = vst [vmem:[#allocation114_spill] sm:$0xff] %v8989_v28  ;;  %1214 = vmatmul.bf16.gmra.mxu1 %v8731_v59 }
 0x1a1   :  { %1392 = vmatmul.bf16.gmra.mxu3 %v8731_v59  ;;  %v7183_v59 = vor.u32 %v7870_v18, %v7182_v33 }
 0x1a2   :  { %2097 = vmatpush.bf16.msra.mxu3 %v7315_v49  ;;  %v7311_v49 = vor.u32 %v7902_v4, %v7310_v21 }
 0x1a3   :  { %v1077_v37 = vpop.f32.mrf.mxu3  ;;  %1830 = vmatpush.bf16.msra.mxu0 %v7183_v59 }
 0x1a4   :  { %v990_v7 = vpop.f32.mrf.mxu2  ;;  %v8997_v63 = vadd.f32 %v1077_v37, %v988_v16  ;;  %1919 = vmatpush.bf16.msra.mxu1 %v7311_v49 }
 0x1a5   :  { %v901_v29 = vpop.f32.mrf.mxu1 }
 0x1a6   :  { %14816 = vst [vmem:[#allocation115_spill] sm:$0xff] %v8997_v63 }
 0x1ab   :  { %v1079_v23 = vpop.f32.mrf.mxu3 }
 0x1ac   :  { %v815_v44 = vpop.f32.mrf.mxu0  ;;  %v9003_v16 = vadd.f32 %v1079_v23, %v990_v7 }
 0x1ad   :  { %v904_v62 = vpop.f32.mrf.mxu1 }
 0x1ae   :  { %14818 = vst [vmem:[#allocation117_spill] sm:$0xff] %v9003_v16  ;;  %v9005_v37 = vadd.f32 %v904_v62, %v815_v44 }
 0x1af   :  { %1308 = vmatmul.bf16.gmra.mxu2 %v8737_v0 }
 0x1b0   :  { %1130 = vmatmul.bf16.gmra.mxu0 %v8737_v0  ;;  %1219 = vmatmul.bf16.gmra.mxu1 %v8739_v1  ;;  %14819 = vst [vmem:[#allocation118_spill] sm:$0xff] %v9005_v37 }
 0x1b1   :  { %1397 = vmatmul.bf16.gmra.mxu3 %v8739_v1  ;;  %v9001_v1 = vadd.f32 %v901_v29, %v812_v30 }
 0x1b2   :  { %v993_v61 = vpop.f32.mrf.mxu2 }
 0x1b3   :  { %v1082_v24 = vpop.f32.mrf.mxu3  ;;  %14817 = vst [vmem:[#allocation116_spill] sm:$0xff] %v9001_v1 }
 0x1b4   :  { %v817_v28 = vpop.f32.mrf.mxu0  ;;  %v9008_v33 = vadd.f32 %v1082_v24, %v993_v61 }
 0x1b5   :  { %v906_v38 = vpop.f32.mrf.mxu1 }
 0x1b6   :  { %14820 = vst [vmem:[#allocation119_spill] sm:$0xff] %v9008_v33  ;;  %v9010_v18 = vadd.f32 %v906_v38, %v817_v28 }
 0x1b8   :  { %14821 = vst [vmem:[#allocation120_spill] sm:$0xff] %v9010_v18  ;;  %v7898_v18 = vld [vmem:[#allocation8 + $0x16c] sm:$0xf0] }
 0x1ba   :  { %v995_v45 = vpop.f32.mrf.mxu2 }
 0x1bb   :  { %v1084_v60 = vpop.f32.mrf.mxu3 }
 0x1bc   :  { %v1096_v0 = vpop.f32.mrf.mxu0  ;;  %v9013_v59 = vadd.f32 %v1084_v60, %v995_v45  ;;  %v7896_v60 = vld [vmem:[#allocation8 + $0x164] sm:$0xf] }
 0x1bd   :  { %v1185_v22 = vpop.f32.mrf.mxu1 }
 0x1be   :  { %14822 = vst [vmem:[#allocation121_spill] sm:$0xff] %v9013_v59  ;;  %v9015_v21 = vadd.f32 %v1185_v22, %v1096_v0  ;;  %v7296_v22 = vld [vmem:[#allocation8 + $0x170] sm:$0xf0]  ;;  %v7294_v59 = vld [vmem:[#allocation8 + $0x160] sm:$0xf] }
 0x1bf   :  { %1313 = vmatmul.bf16.gmra.mxu2 %v8745_v10  ;;  %v7295_v37 = vor.u32 %v7898_v18, %v7294_v59 }
 0x1c0   :  { %1135 = vmatmul.bf16.gmra.mxu0 %v8745_v10  ;;  %1224 = vmatmul.bf16.gmra.mxu1 %v8747_v12  ;;  %14823 = vst [vmem:[#allocation122_spill] sm:$0xff] %v9015_v21  ;;  %v7866_v21 = vld [vmem:[#allocation8 + $0x6c] sm:$0xf0] }
 0x1c1   :  { %1402 = vmatmul.bf16.gmra.mxu3 %v8747_v12  ;;  %1920 = vmatpush.bf16.msra.mxu1 %v7295_v37 }
 0x1c2   :  { %v1274_v54 = vpop.f32.mrf.mxu2 }
 0x1c3   :  { %v1363_v10 = vpop.f32.mrf.mxu3 }
 0x1c4   :  { %v1098_v63 = vpop.f32.mrf.mxu0  ;;  %v9017_v29 = vadd.f32 %v1363_v10, %v1274_v54  ;;  %v7864_v10 = vld [vmem:[#allocation8 + $0x64] sm:$0xf] }
 0x1c5   :  { %v1187_v30 = vpop.f32.mrf.mxu1 }
 0x1c6   :  { %14824 = vst [vmem:[#allocation123_spill] sm:$0xff] %v9017_v29  ;;  %v9019_v44 = vadd.f32 %v1187_v30, %v1098_v63  ;;  %v7168_v63 = vld [vmem:[#allocation8 + $0x70] sm:$0xf0]  ;;  %v7166_v29 = vld [vmem:[#allocation8 + $0x60] sm:$0xf] }
 0x1c7   :  { %v7171_v30 = vor.u32 %v7864_v10, %v7168_v63  ;;  %v7167_v33 = vor.u32 %v7866_v21, %v7166_v29 }
 0x1c8   :  { %14825 = vst [vmem:[#allocation124_spill] sm:$0xff] %v9019_v44  ;;  %v7299_v44 = vor.u32 %v7896_v60, %v7296_v22 }
 0x1c9   :  { %2009 = vmatpush.bf16.msra.mxu2 %v7171_v30  ;;  %1831 = vmatpush.bf16.msra.mxu0 %v7167_v33 }
 0x1ca   :  { %v1276_v7 = vpop.f32.mrf.mxu2  ;;  %2098 = vmatpush.bf16.msra.mxu3 %v7299_v44 }
 0x1cb   :  { %v1365_v38 = vpop.f32.mrf.mxu3 }
 0x1cd   :  { %v1101_v23 = vpop.f32.mrf.mxu0  ;;  %v1190_v24 = vpop.f32.mrf.mxu1 }
 0x1ce   :  { %v9031_v10 = vadd.f32 %v1190_v24, %v1101_v23  ;;  %v7152_v24 = vld [vmem:[#allocation8 + $0x50] sm:$0xf0] }
 0x1cf   :  { %1318 = vmatmul.bf16.gmra.mxu2 %v8759_v42 }
 0x1d0   :  { %1140 = vmatmul.bf16.gmra.mxu0 %v8759_v42  ;;  %1229 = vmatmul.bf16.gmra.mxu1 %v8761_v46  ;;  %14827 = vst [vmem:[#allocation126_spill] sm:$0xff] %v9031_v10 }
 0x1d1   :  { %1407 = vmatmul.bf16.gmra.mxu3 %v8761_v46 }
 0x1d2   :  { %v1279_v45 = vpop.f32.mrf.mxu2 }
 0x1d4   :  { %v1368_v28 = vpop.f32.mrf.mxu3 }
 0x1d5   :  { %v1103_v0 = vpop.f32.mrf.mxu0  ;;  %v1192_v62 = vpop.f32.mrf.mxu1  ;;  %v9033_v63 = vadd.f32 %v1368_v28, %v1279_v45  ;;  %v7892_v45 = vld [vmem:[#allocation8 + $0x144] sm:$0xf] }
 0x1d6   :  { %v9035_v30 = vadd.f32 %v1192_v62, %v1103_v0  ;;  %v7280_v0 = vld [vmem:[#allocation8 + $0x150] sm:$0xf0] }
 0x1d7   :  { %14828 = vst [vmem:[#allocation127_spill] sm:$0xff] %v9033_v63 }
 0x1d8   :  { %14829 = vst [vmem:[#allocation128_spill] sm:$0xff] %v9035_v30 }
 0x1da   :  { %v1281_v61 = vpop.f32.mrf.mxu2 }
 0x1dc   :  { %v1370_v4 = vpop.f32.mrf.mxu3 }
 0x1dd   :  { %v1106_v54 = vpop.f32.mrf.mxu0  ;;  %v1195_v49 = vpop.f32.mrf.mxu1  ;;  %v9037_v44 = vadd.f32 %v1370_v4, %v1281_v61 }
 0x1de   :  { %v9039_v46 = vadd.f32 %v1195_v49, %v1106_v54 }
 0x1df   :  { %1323 = vmatmul.bf16.gmra.mxu2 %v8777_v5  ;;  %14830 = vst [vmem:[#allocation129_spill] sm:$0xff] %v9037_v44 }
 0x1e0   :  { %1145 = vmatmul.bf16.gmra.mxu0 %v8777_v5  ;;  %1234 = vmatmul.bf16.gmra.mxu1 %v8779_v11  ;;  %v9029_v5 = vadd.f32 %v1365_v38, %v1276_v7  ;;  %14831 = vst [vmem:[#allocation130_spill] sm:$0xff] %v9039_v46  ;;  %v7860_v38 = vld [vmem:[#allocation8 + $0x44] sm:$0xf] }
 0x1e1   :  { %1412 = vmatmul.bf16.gmra.mxu3 %v8779_v11 }
 0x1e2   :  { %v1284_v16 = vpop.f32.mrf.mxu2  ;;  %14826 = vst [vmem:[#allocation125_spill] sm:$0xff] %v9029_v5 }
 0x1e4   :  { %v1373_v1 = vpop.f32.mrf.mxu3 }
 0x1e5   :  { %v1108_v60 = vpop.f32.mrf.mxu0  ;;  %v1197_v22 = vpop.f32.mrf.mxu1  ;;  %v9043_v33 = vadd.f32 %v1373_v1, %v1284_v16  ;;  %v7155_v1 = vor.u32 %v7860_v38, %v7152_v24  ;;  %v7283_v16 = vor.u32 %v7892_v45, %v7280_v0  ;;  %v7278_v24 = vld [vmem:[#allocation8 + $0x140] sm:$0xf]  ;;  %v7894_v45 = vld [vmem:[#allocation8 + $0x14c] sm:$0xf0] }
 0x1e6   :  { %v9045_v18 = vadd.f32 %v1197_v22, %v1108_v60 }
 0x1e7   :  { %14832 = vst [vmem:[#allocation131_spill] sm:$0xff] %v9043_v33  ;;  %2010 = vmatpush.bf16.msra.mxu2 %v7155_v1  ;;  %2099 = vmatpush.bf16.msra.mxu3 %v7283_v16  ;;  %v7279_v16 = vor.u32 %v7894_v45, %v7278_v24 }
 0x1e8   :  { %14833 = vst [vmem:[#allocation132_spill] sm:$0xff] %v9045_v18 }
 0x1e9   :  { %1921 = vmatpush.bf16.msra.mxu1 %v7279_v16 }
 0x1ea   :  { %v1286_v37 = vpop.f32.mrf.mxu2 }
 0x1ec   :  { %v1375_v59 = vpop.f32.mrf.mxu3 }
 0x1ed   :  { %v1111_v21 = vpop.f32.mrf.mxu0  ;;  %v1200_v7 = vpop.f32.mrf.mxu1  ;;  %v9049_v29 = vadd.f32 %v1375_v59, %v1286_v37  ;;  %v7150_v37 = vld [vmem:[#allocation8 + $0x40] sm:$0xf]  ;;  %v7862_v59 = vld [vmem:[#allocation8 + $0x4c] sm:$0xf0] }
 0x1ee   :  { %v9051_v23 = vadd.f32 %v1200_v7, %v1111_v21  ;;  %v7151_v21 = vor.u32 %v7862_v59, %v7150_v37 }
 0x1ef   :  { %1328 = vmatmul.bf16.gmra.mxu2 %v8797_v41  ;;  %14834 = vst [vmem:[#allocation133_spill] sm:$0xff] %v9049_v29 }
 0x1f0   :  { %1150 = vmatmul.bf16.gmra.mxu0 %v8797_v41  ;;  %1239 = vmatmul.bf16.gmra.mxu1 %v8801_v51  ;;  %14835 = vst [vmem:[#allocation134_spill] sm:$0xff] %v9051_v23 }
 0x1f1   :  { %1417 = vmatmul.bf16.gmra.mxu3 %v8801_v51  ;;  %1832 = vmatpush.bf16.msra.mxu0 %v7151_v21  ;;  %v7238_v51 = vld [vmem:[#allocation8 + $0xe8] sm:$0xf] }
 0x1f2   :  { %v1289_v28 = vpop.f32.mrf.mxu2 }
 0x1f4   :  { %v1378_v62 = vpop.f32.mrf.mxu3 }
 0x1f5   :  { %v1113_v61 = vpop.f32.mrf.mxu0  ;;  %v1202_v4 = vpop.f32.mrf.mxu1  ;;  %v9063_v23 = vadd.f32 %v1378_v62, %v1289_v28 }
 0x1f6   :  { %v9065_v29 = vadd.f32 %v1202_v4, %v1113_v61  ;;  %v7856_v61 = vld [vmem:[#allocation8 + $0x24] sm:$0xf]  ;;  %v7136_v4 = vld [vmem:[#allocation8 + $0x30] sm:$0xf0] }
 0x1f7   :  { %14838 = vst [vmem:[#allocation137_spill] sm:$0xff] %v9063_v23 }
 0x1f8   :  { %14839 = vst [vmem:[#allocation138_spill] sm:$0xff] %v9065_v29 }
 0x1fa   :  { %v1291_v54 = vpop.f32.mrf.mxu2 }
 0x1fc   :  { %v1380_v49 = vpop.f32.mrf.mxu3 }
 0x1fd   :  { %v1116_v60 = vpop.f32.mrf.mxu0  ;;  %v1205_v22 = vpop.f32.mrf.mxu1  ;;  %v9067_v37 = vadd.f32 %v1380_v49, %v1291_v54 }
 0x1fe   :  { %v9069_v59 = vadd.f32 %v1205_v22, %v1116_v60  ;;  %v7139_v60 = vor.u32 %v7856_v61, %v7136_v4 }
 0x1ff   :  { %1333 = vmatmul.bf16.gmra.mxu2 %v8817_v25  ;;  %14840 = vst [vmem:[#allocation139_spill] sm:$0xff] %v9067_v37 }
 0x200   :  { %1155 = vmatmul.bf16.gmra.mxu0 %v8817_v25  ;;  %1244 = vmatmul.bf16.gmra.mxu1 %v8821_v34  ;;  %14841 = vst [vmem:[#allocation140_spill] sm:$0xff] %v9069_v59  ;;  %v7858_v59 = vld [vmem:[#allocation8 + $0x2c] sm:$0xf0] }
 0x201   :  { %1422 = vmatmul.bf16.gmra.mxu3 %v8821_v34  ;;  %2011 = vmatpush.bf16.msra.mxu2 %v7139_v60  ;;  %v7388_v34 = vmul.f32 -1.442695, %v8784_v15 }
 0x202   :  { %v1294_v7 = vpop.f32.mrf.mxu2 }
 0x204   :  { %v1383_v38 = vpop.f32.mrf.mxu3 }
 0x205   :  { %v9057_v0 = vpop.f32.mrf.mxu0  ;;  %v9059_v1 = vpop.f32.mrf.mxu1 }
 0x206   :  { %14836 = vst [vmem:[#allocation135_spill] sm:$0xff] %v9057_v0  ;;  %v9077_v0 = vadd.f32 %v1383_v38, %v1294_v7 }
 0x207   :  { %14837 = vst [vmem:[#allocation136_spill] sm:$0xff] %v9059_v1 }
 0x208   :  { %14844 = vst [vmem:[#allocation143_spill] sm:$0xff] %v9077_v0  ;;  %v7134_v0 = vld [vmem:[#allocation8 + $0x20] sm:$0xf] }
 0x209   :  { %v7135_v4 = vor.u32 %v7858_v59, %v7134_v0 }
 0x20a   :  { %v9073_v21 = vpop.f32.mrf.mxu2 }
 0x20b   :  { %14842 = vst [vmem:[#allocation141_spill] sm:$0xff] %v9073_v21  ;;  %v7264_v21 = vld [vmem:[#allocation8 + $0x130] sm:$0xf0]  ;;  %1833 = vmatpush.bf16.msra.mxu0 %v7135_v4 }
 0x20c   :  { %v9075_v1 = vpop.f32.mrf.mxu3 }
 0x20d   :  { %14843 = vst [vmem:[#allocation142_spill] sm:$0xff] %v9075_v1  ;;  %v1121_v24 = vpop.f32.mrf.mxu0  ;;  %v1210_v45 = vpop.f32.mrf.mxu1  ;;  %v7888_v1 = vld [vmem:[#allocation8 + $0x124] sm:$0xf] }
 0x20e   :  { %v7267_v61 = vor.u32 %v7888_v1, %v7264_v21  ;;  %v9089_v23 = vadd.f32 %v1210_v45, %v1121_v24 }
 0x20f   :  { %1338 = vmatmul.bf16.gmra.mxu2 %v8843_v17 }
 0x210   :  { %1160 = vmatmul.bf16.gmra.mxu0 %v8843_v17  ;;  %1249 = vmatmul.bf16.gmra.mxu1 %v8845_v14  ;;  %14847 = vst [vmem:[#allocation146_spill] sm:$0xff] %v9089_v23  ;;  %v7373_v23 = vmul.f32 -1.442695, %v8755_v31 }
 0x211   :  { %1427 = vmatmul.bf16.gmra.mxu3 %v8845_v14 }
 0x212   :  { %v1299_v28 = vpop.f32.mrf.mxu2  ;;  %2100 = vmatpush.bf16.msra.mxu3 %v7267_v61 }
 0x214   :  { %v1388_v62 = vpop.f32.mrf.mxu3 }
 0x215   :  { %v9081_v54 = vpop.f32.mrf.mxu0  ;;  %v9083_v49 = vpop.f32.mrf.mxu1  ;;  %v9092_v46 = vadd.f32 %v1388_v62, %v1299_v28 }
 0x216   :  { %14845 = vst [vmem:[#allocation144_spill] sm:$0xff] %v9081_v54  ;;  %v7262_v54 = vld [vmem:[#allocation8 + $0x120] sm:$0xf] }
 0x217   :  { %14846 = vst [vmem:[#allocation145_spill] sm:$0xff] %v9083_v49  ;;  %v7890_v49 = vld [vmem:[#allocation8 + $0x12c] sm:$0xf0] }
 0x218   :  { %v7263_v60 = vor.u32 %v7890_v49, %v7262_v54  ;;  %14848 = vst [vmem:[#allocation147_spill] sm:$0xff] %v9092_v46 }
 0x21a   :  { %v1301_v22 = vpop.f32.mrf.mxu2  ;;  %1922 = vmatpush.bf16.msra.mxu1 %v7263_v60 }
 0x21c   :  { %v1390_v7 = vpop.f32.mrf.mxu3 }
 0x21d   :  { %v1126_v38 = vpop.f32.mrf.mxu0  ;;  %v1215_v16 = vpop.f32.mrf.mxu1  ;;  %v9095_v44 = vadd.f32 %v1390_v7, %v1301_v22 }
 0x21e   :  { %v9097_v1 = vadd.f32 %v1215_v16, %v1126_v38  ;;  %v7852_v38 = vld [vmem:[#allocation8 + $0x4] sm:$0xf]  ;;  %v7120_v16 = vld [vmem:[#allocation8 + $0x10] sm:$0xf0] }
 0x21f   :  { %1343 = vmatmul.bf16.gmra.mxu2 %v8859_v6  ;;  %14849 = vst [vmem:[#allocation148_spill] sm:$0xff] %v9095_v44  ;;  %v7123_v44 = vor.u32 %v7852_v38, %v7120_v16 }
 0x220   :  { %1165 = vmatmul.bf16.gmra.mxu0 %v8859_v6  ;;  %1254 = vmatmul.bf16.gmra.mxu1 %v8873_v35  ;;  %14850 = vst [vmem:[#allocation149_spill] sm:$0xff] %v9097_v1  ;;  %v7118_v1 = vld [vmem:[#allocation8] sm:$0xf] }
 0x221   :  { %1432 = vmatmul.bf16.gmra.mxu3 %v8873_v35  ;;  %2012 = vmatpush.bf16.msra.mxu2 %v7123_v44 }
 0x222   :  { %v1304_v37 = vpop.f32.mrf.mxu2 }
 0x224   :  { %v1393_v29 = vpop.f32.mrf.mxu3 }
 0x225   :  { %v1128_v18 = vpop.f32.mrf.mxu0  ;;  %v1217_v33 = vpop.f32.mrf.mxu1  ;;  %v9099_v0 = vadd.f32 %v1393_v29, %v1304_v37  ;;  %v7884_v29 = vld [vmem:[#allocation8 + $0x104] sm:$0xf]  ;;  %v7248_v37 = vld [vmem:[#allocation8 + $0x110] sm:$0xf0] }
 0x226   :  { %v9101_v24 = vadd.f32 %v1217_v33, %v1128_v18  ;;  %v7251_v33 = vor.u32 %v7884_v29, %v7248_v37  ;;  %v7854_v18 = vld [vmem:[#allocation8 + $0xc] sm:$0xf0] }
 0x227   :  { %14851 = vst [vmem:[#allocation150_spill] sm:$0xff] %v9099_v0  ;;  %v7372_v0 = vmul.f32 -1.442695, %v8749_v19  ;;  %v7119_v30 = vor.u32 %v7854_v18, %v7118_v1 }
 0x228   :  { %14852 = vst [vmem:[#allocation151_spill] sm:$0xff] %v9101_v24  ;;  %2101 = vmatpush.bf16.msra.mxu3 %v7251_v33 }
 0x229   :  { %7990 = vpow2.f32 %v7372_v0  ;;  %1834 = vmatpush.bf16.msra.mxu0 %v7119_v30 }
 0x22a   :  { %v1306_v59 = vpop.f32.mrf.mxu2  ;;  %7992 = vpow2.f32 %v7373_v23 }
 0x22c   :  { %v1395_v21 = vpop.f32.mrf.mxu3 }
 0x22d   :  { %v1131_v54 = vpop.f32.mrf.mxu0  ;;  %v1220_v49 = vpop.f32.mrf.mxu1  ;;  %v9103_v45 = vadd.f32 %v1395_v21, %v1306_v59  ;;  %v7246_v59 = vld [vmem:[#allocation8 + $0x100] sm:$0xf]  ;;  %v7886_v21 = vld [vmem:[#allocation8 + $0x10c] sm:$0xf0] }
 0x22e   :  { %v7247_v63 = vor.u32 %v7886_v21, %v7246_v59  ;;  %v9107_v10 = vadd.f32 %v1220_v49, %v1131_v54 }
 0x22f   :  { %1348 = vmatmul.bf16.gmra.mxu2 %v8889_v40  ;;  %14853 = vst [vmem:[#allocation152_spill] sm:$0xff] %v9103_v45  ;;  %v7991_v1 = vpop.eup %7990 }
 0x230   :  { %1170 = vmatmul.bf16.gmra.mxu0 %v8889_v40  ;;  %1259 = vmatmul.bf16.gmra.mxu1 %v8893_v39  ;;  %14854 = vst [vmem:[#allocation153_spill] sm:$0xff] %v9107_v10  ;;  %v7376_v40 = vmul.f32 -1.442695, %v8757_v36  ;;  %v9124_v30 = vadd.f32 1.0, %v7991_v1  ;;  %v7993_v49 = vpop.eup %7992  ;;  %v7240_v10 = vld [vmem:[#allocation8 + $0xf8] sm:$0xf0] }
 0x231   :  { %1437 = vmatmul.bf16.gmra.mxu3 %v8893_v39  ;;  %1923 = vmatpush.bf16.msra.mxu1 %v7247_v63 }
 0x232   :  { %v1309_v61 = vpop.f32.mrf.mxu2  ;;  %7994 = vpow2.f32 %v7376_v40  ;;  %vm3056_vm0 = vweird.f32 %v9124_v30 }
 0x233   :  { %7996 = vrcp.f32 %v9124_v30 }
 0x234   :  { %v1398_v4 = vpop.f32.mrf.mxu3 }
 0x235   :  { %v1133_v28 = vpop.f32.mrf.mxu0  ;;  %v1222_v62 = vpop.f32.mrf.mxu1  ;;  %v9110_v38 = vadd.f32 %v1398_v4, %v1309_v61  ;;  %v7377_v61 = vmul.f32 -1.442695, %v8763_v48 }
 0x236   :  { %v9112_v16 = vadd.f32 %v1222_v62, %v1133_v28 }
 0x237   :  { %14855 = vst [vmem:[#allocation154_spill] sm:$0xff] %v9110_v38  ;;  %7998 = vpow2.f32 %v7377_v61 }
 0x238   :  { %14856 = vst [vmem:[#allocation155_spill] sm:$0xff] %v9112_v16  ;;  %v7995_v40 = vpop.eup %7994 }
 0x239   :  { %v9141_v62 = vadd.f32 1.0, %v7995_v40 }
 0x23a   :  { %v1311_v60 = vpop.f32.mrf.mxu2 }
 0x23b   :  { %vm3116_vm4 = vweird.f32 %v9141_v62 }
 0x23c   :  { %v1400_v46 = vpop.f32.mrf.mxu3 }
 0x23d   :  { %v1136_v22 = vpop.f32.mrf.mxu0  ;;  %v1225_v7 = vpop.f32.mrf.mxu1  ;;  %v9114_v44 = vadd.f32 %v1400_v46, %v1311_v60  ;;  %v9145_v60 = vadd.f32 %v8775_v57, %v8771_v55 }
 0x23e   :  { %v9120_v0 = vadd.f32 %v1225_v7, %v1136_v22  ;;  %v7381_v22 = vmul.f32 -1.442695, %v8773_v56  ;;  %v9153_v7 = vpop.eup %7996 }
 0x23f   :  { %14857 = vst [vmem:[#allocation156_spill] sm:$0xff] %v9114_v44  ;;  %2013 = vmatmul.bf16.vlgmr.msra.gmra.mxu2 %v8681_v43  ;;  %v7384_v29 = vmul.f32 -1.442695, %v9145_v60  ;;  %v7999_v37 = vpop.eup %7998  ;;  %v3052_v33 = vmul.f32 %v9153_v7, %v9124_v30  ;;  %v7881_v44 = vld [vmem:[#allocation8 + $0xec] sm:$0xf]  ;;  %vm3057_vm1 = vweird.f32 %v9153_v7 }
 0x240   :  { %1835 = vmatmul.bf16.vlgmr.msra.gmra.mxu0 %v8681_v43  ;;  %1924 = vmatmul.bf16.vlgmr.msra.gmra.mxu1 %v8683_v47  ;;  %14858 = vst [vmem:[#allocation157_spill] sm:$0xff] %v9120_v0  ;;  %v9169_v21 = vadd.f32 1.0, %v7999_v37  ;;  %vm9230_vm6 = vmor %vm3056_vm0, %vm3057_vm1 }
 0x241   :  { %2102 = vmatmul.bf16.vlgmr.msra.gmra.mxu3 %v8683_v47  ;;  %v3053_v61 = vsub.f32 1.0, %v3052_v33  ;;  %v3060_v33 = vand.u32 2147483647, %v9124_v30 }
 0x242   :  { %v1314_v45 = vpop.f32.mrf.mxu2  ;;  %vm3131_vm12 = vweird.f32 %v9169_v21 }
 0x243   :  { %vm9207_vm2 = vcmp.eq.f32.partialorder %v3060_v33, 8.507059e+37 }
 0x244   :  { %v1403_v24 = vpop.f32.mrf.mxu3 }
 0x245   :  { %v1138_v5 = vpop.f32.mrf.mxu0  ;;  %v1227_v39 = vpop.f32.mrf.mxu1  ;;  %v9122_v63 = vadd.f32 %v1403_v24, %v1314_v45  ;;  %v9138_v24 = vadd.f32 1.0, %v7993_v49  ;;  %v7380_v45 = vmul.f32 -1.442695, %v8765_v50  ;;  %v7385_v49 = vmul.f32 -1.442695, %v8781_v13 }
 0x246   :  { %v9131_v23 = vadd.f32 %v1227_v39, %v1138_v5 }
 0x247   :  { %14859 = vst [vmem:[#allocation158_spill] sm:$0xff] %v9122_v63  ;;  %8000 = vrcp.f32 %v9138_v24  ;;  %v3077_v6 = vand.u32 2147483648, %v9138_v24  ;;  %v3075_v17 = vand.u32 2147483647, %v9138_v24  ;;  %vm3071_vm3 = vweird.f32 %v9138_v24 }
 0x248   :  { %14860 = vst [vmem:[#allocation159_spill] sm:$0xff] %v9131_v23  ;;  %8002 = vpow2.f32 %v7380_v45 }
 0x249   :  { %8004 = vrcp.f32 %v9141_v62  ;;  %v9218_v33 = vor.u32 1.1754944e-38, %v3077_v6  ;;  %v14865_v6 = vld [vmem:[#allocation38_spill] sm:$0xff]  ;;  %vm9249_vm8 = vcmp.eq.f32.partialorder %v3075_v17, 8.507059e+37 }
 0x24a   :  { %v9126_v54 = vpop.f32.mrf.mxu2  ;;  %8006 = vpow2.f32 %v7381_v22 }
 0x24b   :  { %8008 = vpow2.f32 %v7384_v29  ;;  %v3062_v29 = vand.u32 2147483648, %v9124_v30 }
 0x24c   :  { %v9128_v46 = vpop.f32.mrf.mxu3  ;;  %8010 = vrcp.f32 %v9169_v21 }
 0x24d   :  { %v9133_v4 = vpop.f32.mrf.mxu0  ;;  %v9135_v28 = vpop.f32.mrf.mxu1  ;;  %8012 = vpow2.f32 %v7385_v49  ;;  %v9195_v35 = vor.u32 1.1754944e-38, %v3062_v29  ;;  %v7366_v29 = vld [vmem:[#allocation8 + $0x1e8] sm:$0xf] }
 0x24e   :  { %v9167_v18 = vpop.eup %8000 }
 0x24f   :  { %2018 = vmatmul.bf16.gmra.mxu2 %v8689_v2  ;;  %v8003_v59 = vpop.eup %8002  ;;  %v3067_v23 = vmul.f32 %v9167_v18, %v9138_v24  ;;  %vm3072_vm5 = vweird.f32 %v9167_v18 }
 0x250   :  { %1840 = vmatmul.bf16.gmra.mxu0 %v8689_v2  ;;  %1929 = vmatmul.bf16.gmra.mxu1 %v8691_v3  ;;  %v9171_v1 = vpop.eup %8004  ;;  %v9180_v63 = vadd.f32 1.0, %v8003_v59  ;;  %v3054_v59 = vmul.f32 %v9153_v7, %v3053_v61  ;;  %v7368_v2 = vld [vmem:[#allocation8 + $0x1f8] sm:$0xf0]  ;;  %v7243_v61 = vor.u32 %v7881_v44, %v7240_v10  ;;  %v3122_v44 = vand.u32 2147483648, %v9141_v62  ;;  %vm9302_vm10 = vmor %vm3071_vm3, %vm3072_vm5 }
 0x251   :  { %2107 = vmatmul.bf16.gmra.mxu3 %v8691_v3  ;;  %v8007_v22 = vpop.eup %8006  ;;  %v3112_v37 = vmul.f32 %v9171_v1, %v9141_v62  ;;  %v7913_v3 = vld [vmem:[#allocation8 + $0x1ec] sm:$0xf]  ;;  %v3068_v47 = vsub.f32 1.0, %v3067_v23  ;;  %vm3117_vm7 = vweird.f32 %v9171_v1 }
 0x252   :  { %v9148_v5 = vpop.f32.mrf.mxu2  ;;  %v8009_v0 = vpop.eup %8008  ;;  %8014 = vrcp.f32 %v9180_v63  ;;  %v9193_v43 = vadd.f32 1.0, %v8007_v22  ;;  %v7371_v25 = vor.u32 %v7913_v3, %v7368_v2  ;;  %v3055_v23 = vadd.f32 %v9153_v7, %v3054_v59  ;;  %2361 = vmatpush.bf16.msrb.mxu2 %v7243_v61  ;;  %vm9315_vm11 = vmor %vm3116_vm4, %vm3117_vm7 }
 0x253   :  { %v3113_v49 = vsub.f32 1.0, %v3112_v37  ;;  %v9198_v14 = vadd.f32 1.0, %v8009_v0  ;;  %v9202_v41 = vpop.eup %8010  ;;  %v7883_v0 = vld [vmem:[#allocation8 + $0xf4] sm:$0xf0]  ;;  %v3069_v2 = vmul.f32 %v9167_v18, %v3068_v47  ;;  %v3120_v3 = vand.u32 2147483647, %v9141_v62 }
 0x254   :  { %v9150_v39 = vpop.f32.mrf.mxu3  ;;  %v7915_v37 = vld [vmem:[#allocation8 + $0x1f4] sm:$0xf0]  ;;  %v8013_v10 = vpop.eup %8012  ;;  %8016 = vrcp.f32 %v9193_v43  ;;  %2450 = vmatpush.bf16.msrb.mxu3 %v7371_v25  ;;  %v7239_v61 = vor.u32 %v7883_v0, %v7238_v51  ;;  %v3059_v58 = vsel %vm9230_vm6, %v9153_v7, %v3055_v23  ;;  %v3127_v30 = vmul.f32 %v9202_v41, %v9169_v21 }
 0x255   :  { %v9159_v55 = vpop.f32.mrf.mxu0  ;;  %v9161_v57 = vpop.f32.mrf.mxu1  ;;  %v3114_v59 = vmul.f32 %v9171_v1, %v3113_v49  ;;  %8018 = vrcp.f32 %v9198_v14  ;;  %v9236_v49 = vadd.f32 %v14865_v6, %v8789_v20  ;;  %v7367_v12 = vor.u32 %v7915_v37, %v7366_v29  ;;  %v14868_v0 = vld [vmem:[#allocation39_spill] sm:$0xff] }
 0x256   :  { %8020 = vpow2.f32 %v7388_v34  ;;  %v9246_v34 = vadd.f32 1.0, %v8013_v10  ;;  %v3070_v20 = vadd.f32 %v9167_v18, %v3069_v2  ;;  %v7389_v29 = vmul.f32 -1.442695, %v14868_v0  ;;  %2183 = vmatpush.bf16.msrb.mxu0 %v7239_v61 }
 0x257   :  { %2272 = vmatpush.bf16.msrb.mxu1 %v7367_v12  ;;  %v9256_v7 = vadd.f32 %v9128_v46, %v9126_v54  ;;  %v9260_v23 = vadd.f32 %v9135_v28, %v9133_v4  ;;  %v3115_v2 = vadd.f32 %v9171_v1, %v3114_v59  ;;  %v9267_v25 = vadd.f32 %v9150_v39, %v9148_v5  ;;  %v14873_v4 = vld [vmem:[#allocation40_spill] sm:$0xff]  ;;  %v14874_v28 = vld [vmem:[#allocation42_spill] sm:$0xff] }
 0x258   :  { %v9224_v42 = vpop.eup %8014  ;;  %v9271_v12 = vadd.f32 %v9161_v57, %v9159_v55  ;;  %v7392_v46 = vmul.f32 -1.442695, %v9236_v49  ;;  %v9278_v6 = vadd.f32 %v14874_v28, %v14873_v4  ;;  %vm9290_vm9 = vcmp.eq.f32.partialorder %v3120_v3, 8.507059e+37 }
 0x259   :  { %14869 = vst [vmem:[#allocation38_spill] sm:$0xff] %v9256_v7  ;;  %v3172_v17 = vmul.f32 %v9224_v42, %v9180_v63  ;;  %v3123_v57 = vor.u32 1.1754944e-38, %v3122_v44  ;;  %v3128_v61 = vsub.f32 1.0, %v3127_v30  ;;  %8022 = vrcp.f32 %v9246_v34 }
 0x25a   :  { %v9174_v40 = vpop.f32.mrf.mxu2  ;;  %14870 = vst [vmem:[#allocation39_spill] sm:$0xff] %v9260_v23  ;;  %v9273_v54 = vpop.eup %8016  ;;  %8024 = vpow2.f32 %v7389_v29  ;;  %v3074_v3 = vsel %vm9302_vm10, %v9167_v18, %v3070_v20  ;;  %v3119_v18 = vsel %vm9315_vm11, %v9171_v1, %v3115_v2  ;;  %v7393_v62 = vmul.f32 -1.442695, %v9278_v6 }
 0x25b   :  { %14871 = vst [vmem:[#allocation160_spill] sm:$0xff] %v9267_v25  ;;  %v9288_v39 = vpop.eup %8018  ;;  %v3173_v44 = vsub.f32 1.0, %v3172_v17  ;;  %8026 = vpow2.f32 %v7392_v46  ;;  %v3129_v30 = vmul.f32 %v9202_v41, %v3128_v61  ;;  %v3187_v20 = vmul.f32 %v9273_v54, %v9193_v43  ;;  %v14886_v17 = vld [vmem:[#allocation44_spill] sm:$0xff] }
 0x25c   :  { %v9176_v45 = vpop.f32.mrf.mxu3  ;;  %14872 = vst [vmem:[#allocation161_spill] sm:$0xff] %v9271_v12  ;;  %v8021_v4 = vpop.eup %8020  ;;  %v3232_v29 = vmul.f32 %v9288_v39, %v9198_v14  ;;  %v3180_v2 = vand.u32 2147483647, %v9180_v63  ;;  %v7396_v46 = vmul.f32 -1.442695, %v14886_v17  ;;  %v3079_v61 = vsel %vm9249_vm8, %v9218_v33, %v3074_v3 }
 0x25d   :  { %v9187_v16 = vpop.f32.mrf.mxu0  ;;  %v9189_v38 = vpop.f32.mrf.mxu1  ;;  %v9282_v59 = vadd.f32 %v9176_v45, %v9174_v40  ;;  %v3064_v40 = vsel %vm9207_vm2, %v9195_v35, %v3059_v58  ;;  %v3137_v45 = vand.u32 2147483648, %v9169_v21  ;;  %v3182_v35 = vand.u32 2147483648, %v9180_v63 }
 0x25e   :  { %v9286_v5 = vadd.f32 %v9189_v38, %v9187_v16  ;;  %v3135_v16 = vand.u32 2147483647, %v9169_v21  ;;  %vm3132_vm13 = vweird.f32 %v9202_v41  ;;  %vm3176_vm15 = vweird.f32 %v9180_v63 }
 0x25f   :  { %2023 = vmatmul.bf16.gmra.mxu2 %v8697_v8  ;;  %14875 = vst [vmem:[#allocation40_spill] sm:$0xff] %v9282_v59  ;;  %v3138_v1 = vor.u32 1.1754944e-38, %v3137_v45  ;;  %v9341_v28 = vpop.eup %8022  ;;  %v3124_v58 = vsel %vm9290_vm9, %v3123_v57, %v3119_v18  ;;  %v3174_v33 = vmul.f32 %v9224_v42, %v3173_v44  ;;  %v3183_v51 = vor.u32 1.1754944e-38, %v3182_v35  ;;  %v14892_v57 = vld [vmem:[#allocation45_spill] sm:$0xff]  ;;  %v14893_v35 = vld [vmem:[#allocation46_spill] sm:$0xff]  ;;  %vm9390_vm2 = vmor %vm3131_vm12, %vm3132_vm13 }
 0x260   :  { %1845 = vmatmul.bf16.gmra.mxu0 %v8697_v8  ;;  %1934 = vmatmul.bf16.gmra.mxu1 %v8699_v9  ;;  %14876 = vst [vmem:[#allocation42_spill] sm:$0xff] %v9286_v5  ;;  %vm9347_vm14 = vcmp.eq.f32.partialorder %v3135_v16, 8.507059e+37  ;;  %v8025_v45 = vpop.eup %8024  ;;  %8028 = vpow2.f32 %v7393_v62  ;;  %v3130_v16 = vadd.f32 %v9202_v41, %v3129_v30  ;;  %v3188_v3 = vsub.f32 1.0, %v3187_v20 }
 0x261   :  { %2112 = vmatmul.bf16.gmra.mxu3 %v8699_v9  ;;  %vm9363_vm0 = vcmp.eq.f32.partialorder %v3180_v2, 8.507059e+37  ;;  %v3247_v55 = vmul.f32 %v9341_v28, %v9246_v34  ;;  %v9372_v18 = vadd.f32 %v14893_v35, %v14892_v57  ;;  %v9375_v44 = vmul.f32 %v3079_v61, %v8755_v31  ;;  %v14898_v2 = vld [vmem:[#allocation47_spill] sm:$0xff] }
 0x262   :  { %v1324_v47 = vpop.f32.mrf.mxu2  ;;  %vm3191_vm1 = vweird.f32 %v9193_v43  ;;  %v3195_v62 = vand.u32 2147483647, %v9193_v43  ;;  %v9379_v30 = vadd.f32 1.0, %v8025_v45  ;;  %v9384_v20 = vmul.f32 %v3124_v58, %v8757_v36 }
 0x263   :  { %14894 = vst [vmem:[#allocation45_spill] sm:$0xff] %v9375_v44  ;;  %vm3177_vm3 = vweird.f32 %v9224_v42  ;;  %v3134_v36 = vsel %vm9390_vm2, %v9202_v41, %v3130_v16  ;;  %v3189_v21 = vmul.f32 %v9273_v54, %v3188_v3  ;;  %v3248_v5 = vsub.f32 1.0, %v3247_v55 }
 0x264   :  { %v1413_v11 = vpop.f32.mrf.mxu3  ;;  %14895 = vst [vmem:[#allocation46_spill] sm:$0xff] %v9384_v20  ;;  %v7400_v59 = vmul.f32 -1.442695, %v9372_v18  ;;  %vm9418_vm4 = vmor %vm3176_vm15, %vm3177_vm3  ;;  %vm3192_vm5 = vweird.f32 %v9273_v54  ;;  %vm9423_vm6 = vcmp.eq.f32.partialorder %v3195_v62, 8.507059e+37  ;;  %vm3236_vm7 = vweird.f32 %v9198_v14 }
 0x265   :  { %v1148_v37 = vpop.f32.mrf.mxu0  ;;  %v1237_v10 = vpop.f32.mrf.mxu1  ;;  %v9321_v24 = vadd.f32 %v1413_v11, %v1324_v47  ;;  %v9334_v11 = vadd.f32 1.0, %v8021_v4  ;;  %vm3237_vm8 = vweird.f32 %v9288_v39  ;;  %v3190_v62 = vadd.f32 %v9273_v54, %v3189_v21  ;;  %vm9458_vm10 = vmor %vm3191_vm1, %vm3192_vm5 }
 0x266   :  { %v9323_v22 = vadd.f32 %v1237_v10, %v1148_v37  ;;  %v9337_v10 = vmul.f32 %v3064_v40, %v8749_v19  ;;  %vm9476_vm11 = vmor %vm3236_vm7, %vm3237_vm8  ;;  %vm3251_vm12 = vweird.f32 %v9246_v34  ;;  %vm3252_vm13 = vweird.f32 %v9341_v28 }
 0x267   :  { %14883 = vst [vmem:[#allocation162_spill] sm:$0xff] %v9321_v24  ;;  %8030 = vrcp.f32 %v9334_v11  ;;  %v3240_v24 = vand.u32 2147483647, %v9198_v14  ;;  %vm9517_vm15 = vmor %vm3251_vm12, %vm3252_vm13  ;;  %vm3311_vm3 = vweird.f32 %v9379_v30  ;;  %v14929_v44 = vand.u32 2147483647, %v9379_v30 }
 0x268   :  { %14884 = vst [vmem:[#allocation163_spill] sm:$0xff] %v9323_v22  ;;  %v3233_v22 = vsub.f32 1.0, %v3232_v29  ;;  %8032 = vpow2.f32 %v7396_v46  ;;  %v3175_v29 = vadd.f32 %v9224_v42, %v3174_v33  ;;  %v7397_v46 = vmul.f32 -1.442695, %v14898_v2 }
 0x269   :  { %14885 = vst [vmem:[#allocation164_spill] sm:$0xff] %v9337_v10  ;;  %8034 = vrcp.f32 %v9379_v30  ;;  %vm9445_vm9 = vcmp.eq.f32.partialorder %v3240_v24, 8.507059e+37  ;;  %v3255_v24 = vand.u32 2147483647, %v9246_v34  ;;  %vm9606_vm7 = vcmp.eq.f32.partialorder %v14929_v44, 8.507059e+37 }
 0x26a   :  { %v1326_v47 = vpop.f32.mrf.mxu2  ;;  %v3234_v61 = vmul.f32 %v9288_v39, %v3233_v22  ;;  %v3179_v55 = vsel %vm9418_vm4, %v9224_v42, %v3175_v29  ;;  %8036 = vpow2.f32 %v7397_v46 }
 0x26b   :  { %v3184_v4 = vsel %vm9363_vm0, %v3183_v51, %v3179_v55  ;;  %vm3296_vm0 = vweird.f32 %v9334_v11 }
 0x26c   :  { %v1415_v37 = vpop.f32.mrf.mxu3  ;;  %v3235_v31 = vadd.f32 %v9288_v39, %v3234_v61 }
 0x26d   :  { %v9352_v19 = vadd.f32 %v1415_v37, %v1326_v47  ;;  %v9354_v40 = vpop.f32.mrf.mxu0  ;;  %v9356_v38 = vpop.f32.mrf.mxu1  ;;  %v3257_v37 = vand.u32 2147483648, %v9246_v34 }
 0x26e   :  { %v8027_v47 = vpop.eup %8026  ;;  %v9613_v10 = vadd.f32 %v9356_v38, %v9354_v40 }
 0x26f   :  { %14889 = vst [vmem:[#allocation44_spill] sm:$0xff] %v9352_v19  ;;  %v3197_v19 = vand.u32 2147483648, %v9193_v43  ;;  %2028 = vmatmul.bf16.gmra.mxu2 %v8705_v26  ;;  %v9404_v45 = vadd.f32 1.0, %v8027_v47  ;;  %v8029_v57 = vpop.eup %8028  ;;  %v3139_v47 = vsel %vm9347_vm14, %v3138_v1, %v3134_v36  ;;  %v3249_v1 = vmul.f32 %v9341_v28, %v3248_v5  ;;  %v14907_v5 = vld [vmem:[#allocation48_spill] sm:$0xff]  ;;  %v14908_v36 = vld [vmem:[#allocation50_spill] sm:$0xff] }
 0x270   :  { %1850 = vmatmul.bf16.gmra.mxu0 %v8705_v26  ;;  %1939 = vmatmul.bf16.gmra.mxu1 %v8707_v27  ;;  %v9412_v12 = vpop.eup %8030  ;;  %v9443_v25 = vadd.f32 1.0, %v8029_v57  ;;  %v9467_v21 = vadd.f32 %v14908_v36, %v14907_v5  ;;  %v3239_v57 = vsel %vm9476_vm11, %v9288_v39, %v3235_v31  ;;  %vm9499_vm14 = vcmp.eq.f32.partialorder %v3255_v24, 8.507059e+37  ;;  %v7877_v26 = vld [vmem:[#allocation8 + $0xcc] sm:$0xf]  ;;  %v7352_v5 = vld [vmem:[#allocation8 + $0x1d8] sm:$0xf0] }
 0x271   :  { %2117 = vmatmul.bf16.gmra.mxu3 %v8707_v27  ;;  %v3198_v35 = vor.u32 1.1754944e-38, %v3197_v19  ;;  %v3242_v19 = vand.u32 2147483648, %v9198_v14  ;;  %v8033_v63 = vpop.eup %8032  ;;  %8038 = vrcp.f32 %v9404_v45  ;;  %v3292_v42 = vmul.f32 %v9412_v12, %v9334_v11 }
 0x272   :  { %v9406_v58 = vpop.f32.mrf.mxu2  ;;  %8040 = vpow2.f32 %v7400_v59  ;;  %v9463_v46 = vadd.f32 1.0, %v8033_v63  ;;  %v9470_v59 = vmul.f32 %v3139_v47, %v8763_v48  ;;  %v9482_v61 = vpop.eup %8034  ;;  %v3194_v48 = vsel %vm9458_vm10, %v9273_v54, %v3190_v62  ;;  %v14924_v54 = vld [vmem:[#allocation53_spill] sm:$0xff] }
 0x273   :  { %v3243_v51 = vor.u32 1.1754944e-38, %v3242_v19  ;;  %v3302_v14 = vand.u32 2147483648, %v9334_v11  ;;  %8042 = vrcp.f32 %v9443_v25  ;;  %v8037_v41 = vpop.eup %8036  ;;  %v9493_v19 = vmul.f32 %v3184_v4, %v8765_v50  ;;  %14932 = vst [vmem:[#allocation53_spill] sm:$0xff] %v9613_v10 }
 0x274   :  { %v9408_v33 = vpop.f32.mrf.mxu3  ;;  %14909 = vst [vmem:[#allocation47_spill] sm:$0xff] %v9470_v59  ;;  %v3250_v63 = vadd.f32 %v9341_v28, %v3249_v1  ;;  %v3293_v47 = vsub.f32 1.0, %v3292_v42  ;;  %v3317_v39 = vand.u32 2147483648, %v9379_v30  ;;  %8044 = vrcp.f32 %v9463_v46 }
 0x275   :  { %v9430_v16 = vpop.f32.mrf.mxu0  ;;  %v9432_v3 = vpop.f32.mrf.mxu1  ;;  %14912 = vst [vmem:[#allocation48_spill] sm:$0xff] %v9493_v19  ;;  %v7401_v62 = vmul.f32 -1.442695, %v9467_v21  ;;  %v3199_v42 = vsel %vm9423_vm6, %v3198_v35, %v3194_v48  ;;  %v3244_v4 = vsel %vm9445_vm9, %v3243_v51, %v3239_v57  ;;  %v3258_v29 = vor.u32 1.1754944e-38, %v3257_v37  ;;  %v14917_v57 = vld [vmem:[#allocation54_spill] sm:$0xff] }
 0x276   :  { %v3300_v24 = vand.u32 2147483647, %v9334_v11  ;;  %v9521_v36 = vor.u32 1.1754944e-38, %v3302_v14  ;;  %v3307_v43 = vmul.f32 %v9482_v61, %v9379_v30  ;;  %v9526_v35 = vadd.f32 1.0, %v8037_v41  ;;  %v7911_v19 = vld [vmem:[#allocation8 + $0x1d4] sm:$0xf0] }
 0x277   :  { %v9497_v55 = vpop.eup %8038  ;;  %v3254_v34 = vsel %vm9517_vm15, %v9341_v28, %v3250_v63  ;;  %v3294_v37 = vmul.f32 %v9412_v12, %v3293_v47  ;;  %v7404_v14 = vmul.f32 -1.442695, %v14917_v57  ;;  %v9541_v22 = vor.u32 1.1754944e-38, %v3317_v39  ;;  %v14918_v28 = vld [vmem:[#allocation25_spill] sm:$0xff] }
 0x278   :  { %v8041_v1 = vpop.eup %8040  ;;  %v3352_v48 = vmul.f32 %v9497_v55, %v9404_v45  ;;  %v3362_v41 = vand.u32 2147483648, %v9404_v45  ;;  %8046 = vpow2.f32 %v7401_v62  ;;  %v9549_v63 = vmul.f32 %v3199_v42, %v8773_v56  ;;  %v7224_v62 = vld [vmem:[#allocation8 + $0xd8] sm:$0xf0] }
 0x279   :  { %v9539_v7 = vpop.eup %8042  ;;  %v9544_v27 = vadd.f32 1.0, %v8041_v1  ;;  %v9552_v47 = vmul.f32 %v3244_v4, %v9145_v60  ;;  %vm3297_vm1 = vweird.f32 %v9412_v12  ;;  %vm9556_vm2 = vcmp.eq.f32.partialorder %v3300_v24, 8.507059e+37  ;;  %v7909_v1 = vld [vmem:[#allocation8 + $0x1cc] sm:$0xf] }
 0x27a   :  { %v9506_v31 = vpop.f32.mrf.mxu2  ;;  %14919 = vst [vmem:[#allocation50_spill] sm:$0xff] %v9549_v63  ;;  %v9562_v56 = vpop.eup %8044  ;;  %v3259_v60 = vsel %vm9499_vm14, %v3258_v29, %v3254_v34  ;;  %v3308_v42 = vsub.f32 1.0, %v3307_v43  ;;  %v3360_v4 = vand.u32 2147483647, %v9404_v45  ;;  %8048 = vrcp.f32 %v9526_v35  ;;  %v7350_v63 = vld [vmem:[#allocation8 + $0x1c8] sm:$0xf]  ;;  %vm9589_vm5 = vmor %vm3296_vm0, %vm3297_vm1 }
 0x27b   :  { %14920 = vst [vmem:[#allocation54_spill] sm:$0xff] %v9552_v47  ;;  %v3295_v24 = vadd.f32 %v9412_v12, %v3294_v37  ;;  %v3353_v9 = vsub.f32 1.0, %v3352_v48  ;;  %v3367_v8 = vmul.f32 %v9539_v7, %v9443_v25  ;;  %8050 = vpow2.f32 %v7404_v14  ;;  %v7879_v47 = vld [vmem:[#allocation8 + $0xd4] sm:$0xf0] }
 0x27c   :  { %v9508_v50 = vpop.f32.mrf.mxu3  ;;  %8052 = vrcp.f32 %v9544_v27  ;;  %v7227_v43 = vor.u32 %v7877_v26, %v7224_v62  ;;  %v7355_v34 = vor.u32 %v7909_v1, %v7352_v5  ;;  %v9578_v37 = vmul.f32 %v3259_v60, %v8781_v13  ;;  %v14928_v62 = vld [vmem:[#allocation55_spill] sm:$0xff] }
 0x27d   :  { %v9528_v23 = vpop.f32.mrf.mxu0  ;;  %v9530_v51 = vpop.f32.mrf.mxu1  ;;  %vm3312_vm4 = vweird.f32 %v9482_v61  ;;  %v9581_v48 = vor.u32 1.1754944e-38, %v3362_v41  ;;  %v3412_v14 = vmul.f32 %v9562_v56, %v9463_v46  ;;  %vm3356_vm6 = vweird.f32 %v9404_v45 }
 0x27e   :  { %v8047_v59 = vpop.eup %8046  ;;  %v3375_v13 = vand.u32 2147483647, %v9443_v25  ;;  %v7405_v1 = vmul.f32 -1.442695, %v14928_v62  ;;  %2362 = vmatpush.bf16.msrb.mxu2 %v7227_v43  ;;  %2451 = vmatpush.bf16.msrb.mxu3 %v7355_v34  ;;  %v3299_v11 = vsel %vm9589_vm5, %v9412_v12, %v3295_v24  ;;  %v3368_v43 = vsub.f32 1.0, %v3367_v8  ;;  %v14935_v8 = vld [vmem:[#allocation57_spill] sm:$0xff]  ;;  %vm9666_vm12 = vmor %vm3311_vm3, %vm3312_vm4 }
 0x27f   :  { %2033 = vmatmul.bf16.gmra.mxu2 %v8713_v32  ;;  %v3413_v44 = vsub.f32 1.0, %v3412_v14  ;;  %v9631_v40 = vadd.f32 %v9432_v3, %v9430_v16  ;;  %vm9639_vm8 = vcmp.eq.f32.partialorder %v3360_v4, 8.507059e+37  ;;  %vm3371_vm9 = vweird.f32 %v9443_v25 }
 0x280   :  { %1855 = vmatmul.bf16.gmra.mxu0 %v8713_v32  ;;  %1944 = vmatmul.bf16.gmra.mxu1 %v14918_v28  ;;  %v7222_v32 = vld [vmem:[#allocation8 + $0xc8] sm:$0xf]  ;;  %v9602_v20 = vpop.eup %8048  ;;  %8054 = vpow2.f32 %v7405_v1  ;;  %vm3357_vm10 = vweird.f32 %v9497_v55  ;;  %vm3416_vm11 = vweird.f32 %v9463_v46  ;;  %v9653_v3 = vadd.f32 %v9530_v51, %v9528_v23  ;;  %v14944_v1 = vld [vmem:[#allocation58_spill] sm:$0xff] }
 0x281   :  { %2122 = vmatmul.bf16.gmra.mxu3 %v14918_v28  ;;  %v14923_v28 = vld [vmem:[#allocation52_spill] sm:$0xff]  ;;  %v3369_v39 = vmul.f32 %v9539_v7, %v3368_v43  ;;  %v3427_v4 = vmul.f32 %v9602_v20, %v9526_v35  ;;  %v3422_v30 = vand.u32 2147483648, %v9463_v46  ;;  %vm9688_vm13 = vmor %vm3356_vm6, %vm3357_vm10  ;;  %vm3372_vm14 = vweird.f32 %v9539_v7 }
 0x282   :  { %v9575_v29 = vadd.f32 %v14924_v54, %v14923_v28  ;;  %14925 = vst [vmem:[#allocation52_spill] sm:$0xff] %v9578_v37  ;;  %v3309_v28 = vmul.f32 %v9482_v61, %v3308_v42  ;;  %v1334_v5 = vpop.f32.mrf.mxu2  ;;  %v3354_v54 = vmul.f32 %v9497_v55, %v3353_v9  ;;  %v7223_v37 = vor.u32 %v7879_v47, %v7222_v32  ;;  %v14934_v47 = vld [vmem:[#allocation56_spill] sm:$0xff]  ;;  %vm9732_vm1 = vmor %vm3371_vm9, %vm3372_vm14 }
 0x283   :  { %v7351_v42 = vor.u32 %v7911_v19, %v7350_v63  ;;  %v9617_v9 = vadd.f32 %v9408_v33, %v9406_v58  ;;  %v8051_v19 = vpop.eup %8050  ;;  %v9623_v63 = vadd.f32 1.0, %v8047_v59  ;;  %v9627_v24 = vadd.f32 %v14935_v8, %v14934_v47  ;;  %14936 = vst [vmem:[#allocation56_spill] sm:$0xff] %v9631_v40 }
 0x284   :  { %v1423_v60 = vpop.f32.mrf.mxu3  ;;  %v7408_v34 = vmul.f32 -1.442695, %v9575_v29  ;;  %2184 = vmatpush.bf16.msrb.mxu0 %v7223_v37  ;;  %v9633_v38 = vpop.eup %8052  ;;  %v3304_v58 = vsel %vm9556_vm2, %v9521_v36, %v3299_v11  ;;  %v3310_v33 = vadd.f32 %v9482_v61, %v3309_v28  ;;  %v9646_v37 = vadd.f32 %v9508_v50, %v9506_v31  ;;  %14940 = vst [vmem:[#allocation165_spill] sm:$0xff] %v9653_v3  ;;  %v7873_v31 = vld [vmem:[#allocation8 + $0xac] sm:$0xf] }
 0x285   :  { %14933 = vst [vmem:[#allocation55_spill] sm:$0xff] %v9617_v9  ;;  %v9619_v32 = vpop.f32.mrf.mxu0  ;;  %v9621_v12 = vpop.f32.mrf.mxu1  ;;  %2273 = vmatpush.bf16.msrb.mxu1 %v7351_v42  ;;  %v3355_v16 = vadd.f32 %v9497_v55, %v3354_v54  ;;  %v9655_v36 = vadd.f32 %v1423_v60, %v1334_v5  ;;  %v9660_v14 = vadd.f32 1.0, %v8051_v19  ;;  %v3414_v50 = vmul.f32 %v9562_v56, %v3413_v44 }
 0x286   :  { %14939 = vst [vmem:[#allocation57_spill] sm:$0xff] %v9646_v37  ;;  %8056 = vpow2.f32 %v7408_v34  ;;  %v3472_v23 = vmul.f32 %v9633_v38, %v9544_v27  ;;  %v7409_v51 = vmul.f32 -1.442695, %v9627_v24  ;;  %v3314_v26 = vsel %vm9666_vm12, %v9482_v61, %v3310_v33  ;;  %v8055_v54 = vpop.eup %8054  ;;  %v7206_v37 = vld [vmem:[#allocation8 + $0xa8] sm:$0xf] }
 0x287   :  { %14941 = vst [vmem:[#allocation166_spill] sm:$0xff] %v9655_v36  ;;  %8058 = vrcp.f32 %v9623_v63  ;;  %v3420_v28 = vand.u32 2147483647, %v9463_v46  ;;  %v7412_v5 = vmul.f32 -1.442695, %v14944_v1  ;;  %v9682_v60 = vmul.f32 %v3304_v58, %v8784_v15 }
 0x288   :  { %vm9693_vm15 = vcmp.eq.f32.partialorder %v3375_v13, 8.507059e+37  ;;  %vm3417_vm0 = vweird.f32 %v9562_v56  ;;  %v3359_v15 = vsel %vm9688_vm13, %v9497_v55, %v3355_v16  ;;  %v3370_v42 = vadd.f32 %v9539_v7, %v3369_v39 }
 0x289   :  { %14945 = vst [vmem:[#allocation58_spill] sm:$0xff] %v9682_v60  ;;  %v3428_v45 = vsub.f32 1.0, %v3427_v4  ;;  %8060 = vrcp.f32 %v9660_v14  ;;  %v3319_v13 = vsel %vm9606_vm7, %v9541_v22, %v3314_v26  ;;  %v3415_v19 = vadd.f32 %v9562_v56, %v3414_v50  ;;  %vm9752_vm3 = vmor %vm3416_vm11, %vm3417_vm0 }
 0x28a   :  { %v9703_v43 = vpop.f32.mrf.mxu2  ;;  %v3473_v55 = vsub.f32 1.0, %v3472_v23  ;;  %8062 = vpow2.f32 %v7409_v51  ;;  %v14950_v47 = vand.u32 2147483648, %v9443_v25  ;;  %v3435_v58 = vand.u32 2147483647, %v9526_v35 }
 0x28b   :  { %v3437_v33 = vand.u32 2147483648, %v9526_v35  ;;  %8064 = vpow2.f32 %v7412_v5  ;;  %v3364_v39 = vsel %vm9639_vm8, %v9581_v48, %v3359_v15  ;;  %vm9736_vm2 = vcmp.eq.f32.partialorder %v3420_v28, 8.507059e+37 }
 0x28c   :  { %v9705_v34 = vpop.f32.mrf.mxu3  ;;  %v8057_v44 = vpop.eup %8056  ;;  %v3378_v8 = vor.u32 1.1754944e-38, %v14950_v47  ;;  %v3423_v50 = vor.u32 1.1754944e-38, %v3422_v30  ;;  %v9740_v23 = vadd.f32 1.0, %v8055_v54  ;;  %v9743_v51 = vmul.f32 %v3319_v13, %v14868_v0  ;;  %v14959_v30 = vld [vmem:[#allocation62_spill] sm:$0xff]  ;;  %v14977_v54 = vld [vmem:[#allocation29_spill] sm:$0xff] }
 0x28d   :  { %v9719_v16 = vpop.f32.mrf.mxu0  ;;  %v9721_v22 = vpop.f32.mrf.mxu1  ;;  %v3374_v48 = vsel %vm9732_vm1, %v9539_v7, %v3370_v42  ;;  %v3429_v59 = vmul.f32 %v9602_v20, %v3428_v45  ;;  %vm3431_vm4 = vweird.f32 %v9526_v35  ;;  %v3419_v0 = vsel %vm9752_vm3, %v9562_v56, %v3415_v19  ;;  %v14958_v7 = vld [vmem:[#allocation59_spill] sm:$0xff] }
 0x28e   :  { %v9723_v41 = vpop.eup %8058  ;;  %14955 = vst [vmem:[#allocation167_spill] sm:$0xff] %v9743_v51  ;;  %v3474_v26 = vmul.f32 %v9633_v38, %v3473_v55  ;;  %v9762_v28 = vadd.f32 1.0, %v8057_v44  ;;  %v9766_v5 = vadd.f32 %v14959_v30, %v14958_v7  ;;  %v9771_v11 = vmul.f32 %v3364_v39, %v9236_v49  ;;  %v14963_v42 = vld [vmem:[#allocation63_spill] sm:$0xff] }
 0x28f   :  { %2038 = vmatmul.bf16.gmra.mxu2 %v8721_v52  ;;  %v9768_v46 = vpop.eup %8060  ;;  %vm9773_vm5 = vcmp.eq.f32.partialorder %v3435_v58, 8.507059e+37  ;;  %v3438_v15 = vor.u32 1.1754944e-38, %v3437_v33  ;;  %v3487_v56 = vmul.f32 %v9723_v41, %v9623_v63  ;;  %v7413_v45 = vmul.f32 -1.442695, %v14963_v42 }
 0x290   :  { %1860 = vmatmul.bf16.gmra.mxu0 %v8721_v52  ;;  %1949 = vmatmul.bf16.gmra.mxu1 %v8723_v53  ;;  %14960 = vst [vmem:[#allocation59_spill] sm:$0xff] %v9771_v11  ;;  %v8063_v13 = vpop.eup %8062  ;;  %v3379_v19 = vsel %vm9693_vm15, %v3378_v8, %v3374_v48  ;;  %vm3432_vm6 = vweird.f32 %v9602_v20  ;;  %v3480_v55 = vand.u32 2147483647, %v9544_v27  ;;  %8066 = vrcp.f32 %v9740_v23 }
 0x291   :  { %2127 = vmatmul.bf16.gmra.mxu3 %v8723_v53  ;;  %v8065_v49 = vpop.eup %8064  ;;  %v3424_v44 = vsel %vm9736_vm2, %v3423_v50, %v3419_v0  ;;  %v3430_v47 = vadd.f32 %v9602_v20, %v3429_v59  ;;  %vm3477_vm7 = vweird.f32 %v9633_v38  ;;  %v3482_v58 = vand.u32 2147483648, %v9544_v27  ;;  %v7208_v50 = vld [vmem:[#allocation8 + $0xb8] sm:$0xf0]  ;;  %v14964_v59 = vld [vmem:[#allocation64_spill] sm:$0xff]  ;;  %v14965_v0 = vld [vmem:[#allocation65_spill] sm:$0xff] }
 0x292   :  { %v9790_v33 = vpop.f32.mrf.mxu2  ;;  %v3475_v8 = vadd.f32 %v9633_v38, %v3474_v26  ;;  %v3532_v39 = vmul.f32 %v9768_v46, %v9660_v14  ;;  %8068 = vrcp.f32 %v9762_v28  ;;  %v7416_v4 = vmul.f32 -1.442695, %v9766_v5  ;;  %vm9812_vm8 = vmor %vm3431_vm4, %vm3432_vm6 }
 0x293   :  { %v3488_v48 = vsub.f32 1.0, %v3487_v56  ;;  %v9799_v25 = vadd.f32 1.0, %v8063_v13  ;;  %8070 = vpow2.f32 %v7413_v45  ;;  %v9803_v7 = vadd.f32 %v14965_v0, %v14964_v59 }
 0x294   :  { %v9792_v61 = vpop.f32.mrf.mxu3  ;;  %v9806_v30 = vmul.f32 %v3379_v19, %v9278_v6  ;;  %vm3476_vm9 = vweird.f32 %v9544_v27  ;;  %v9817_v56 = vadd.f32 1.0, %v8065_v49  ;;  %v7211_v45 = vor.u32 %v7873_v31, %v7208_v50  ;;  %v7336_v50 = vld [vmem:[#allocation8 + $0x1b8] sm:$0xf0]  ;;  %v14976_v31 = vld [vmem:[#allocation28_spill] sm:$0xff]  ;;  %v7875_v19 = vld [vmem:[#allocation8 + $0xb4] sm:$0xf0] }
 0x295   :  { %v9819_v13 = vpop.f32.mrf.mxu0  ;;  %v9821_v59 = vpop.f32.mrf.mxu1  ;;  %v3434_v6 = vsel %vm9812_vm8, %v9602_v20, %v3430_v47  ;;  %vm9826_vm10 = vcmp.eq.f32.partialorder %v3480_v55, 8.507059e+37  ;;  %v3495_v35 = vand.u32 2147483647, %v9623_v63  ;;  %v3497_v0 = vand.u32 2147483648, %v9623_v63  ;;  %vm9839_vm11 = vmor %vm3476_vm9, %vm3477_vm7  ;;  %v7905_v47 = vld [vmem:[#allocation8 + $0x1ac] sm:$0xf] }
 0x296   :  { %14966 = vst [vmem:[#allocation62_spill] sm:$0xff] %v9806_v30  ;;  %v9832_v27 = vpop.eup %8066  ;;  %v9835_v49 = vmul.f32 %v3424_v44, %v14886_v17  ;;  %v3483_v20 = vor.u32 1.1754944e-38, %v3482_v58  ;;  %v3533_v55 = vsub.f32 1.0, %v3532_v39  ;;  %8072 = vpow2.f32 %v7416_v4  ;;  %2363 = vmatpush.bf16.msrb.mxu2 %v7211_v45 }
 0x297   :  { %v3479_v26 = vsel %vm9839_vm11, %v9633_v38, %v3475_v8  ;;  %v3489_v36 = vmul.f32 %v9723_v41, %v3488_v48  ;;  %8074 = vrcp.f32 %v9799_v25  ;;  %v7417_v17 = vmul.f32 -1.442695, %v9803_v7 }
 0x298   :  { %14971 = vst [vmem:[#allocation63_spill] sm:$0xff] %v9835_v49  ;;  %v9849_v44 = vpop.eup %8068  ;;  %v3439_v58 = vsel %vm9773_vm5, %v3438_v15, %v3434_v6  ;;  %vm3491_vm12 = vweird.f32 %v9623_v63  ;;  %v3542_v39 = vand.u32 2147483648, %v9660_v14  ;;  %8076 = vrcp.f32 %v9817_v56 }
 0x299   :  { %v8071_v4 = vpop.eup %8070  ;;  %vm9856_vm13 = vcmp.eq.f32.partialorder %v3495_v35, 8.507059e+37  ;;  %v3498_v8 = vor.u32 1.1754944e-38, %v3497_v0  ;;  %v3547_v48 = vmul.f32 %v9832_v27, %v9740_v23  ;;  %v7339_v45 = vor.u32 %v7905_v47, %v7336_v50 }
 0x29a   :  { %v3484_v15 = vsel %vm9826_vm10, %v3483_v20, %v3479_v26  ;;  %v3534_v6 = vmul.f32 %v9768_v46, %v3533_v55  ;;  %v3540_v3 = vand.u32 2147483647, %v9660_v14  ;;  %v3557_v35 = vand.u32 2147483648, %v9740_v23  ;;  %v7334_v20 = vld [vmem:[#allocation8 + $0x1a8] sm:$0xf]  ;;  %v9876_v50 = vpop.f32.mrf.mxu2 }
 0x29b   :  { %v9872_v0 = vmul.f32 %v3439_v58, %v14898_v2  ;;  %v3490_v47 = vadd.f32 %v9723_v41, %v3489_v36  ;;  %vm3492_vm14 = vweird.f32 %v9723_v41  ;;  %8078 = vpow2.f32 %v7417_v17  ;;  %2452 = vmatpush.bf16.msrb.mxu3 %v7339_v45  ;;  %v7907_v55 = vld [vmem:[#allocation8 + $0x1b4] sm:$0xf0] }
 0x29c   :  { %v9878_v26 = vpop.f32.mrf.mxu3  ;;  %v8073_v40 = vpop.eup %8072  ;;  %vm3536_vm15 = vweird.f32 %v9660_v14  ;;  %v3543_v9 = vor.u32 1.1754944e-38, %v3542_v39  ;;  %v3592_v2 = vmul.f32 %v9849_v44, %v9762_v28  ;;  %v9883_v58 = vadd.f32 1.0, %v8071_v4  ;;  %vm9898_vm1 = vmor %vm3491_vm12, %vm3492_vm14  ;;  %v14989_v39 = vld [vmem:[#allocation68_spill] sm:$0xff] }
 0x29d   :  { %14978 = vst [vmem:[#allocation64_spill] sm:$0xff] %v9872_v0  ;;  %v9885_v36 = vpop.eup %8074  ;;  %v9888_v17 = vmul.f32 %v3484_v15, %v9372_v18  ;;  %vm3537_vm0 = vweird.f32 %v9768_v46  ;;  %v3548_v45 = vsub.f32 1.0, %v3547_v48  ;;  %v3555_v10 = vand.u32 2147483647, %v9740_v23  ;;  %v14984_v15 = vld [vmem:[#allocation71_spill] sm:$0xff]  ;;  %v9908_v52 = vpop.f32.mrf.mxu0 }
 0x29e   :  { %v3535_v4 = vadd.f32 %v9768_v46, %v3534_v6  ;;  %vm9903_vm2 = vcmp.eq.f32.partialorder %v3540_v3, 8.507059e+37  ;;  %v7420_v48 = vmul.f32 -1.442695, %v14984_v15  ;;  %v7335_v53 = vor.u32 %v7907_v55, %v7334_v20  ;;  %vm9929_vm4 = vmor %vm3536_vm15, %vm3537_vm0 }
 0x29f   :  { %2043 = vmatmul.bf16.gmra.mxu2 %v14976_v31  ;;  %14979 = vst [vmem:[#allocation65_spill] sm:$0xff] %v9888_v17  ;;  %v9910_v17 = vpop.f32.mrf.mxu1  ;;  %v3494_v63 = vsel %vm9898_vm1, %v9723_v41, %v3490_v47  ;;  %v9915_v0 = vor.u32 1.1754944e-38, %v3557_v35  ;;  %v3600_v6 = vand.u32 2147483647, %v9762_v28  ;;  %v9918_v3 = vadd.f32 1.0, %v8073_v40 }
 0x2a0   :  { %1865 = vmatmul.bf16.gmra.mxu0 %v14976_v31  ;;  %1954 = vmatmul.bf16.gmra.mxu1 %v14977_v54  ;;  %v7207_v31 = vor.u32 %v7875_v19, %v7206_v37  ;;  %vm3551_vm3 = vweird.f32 %v9740_v23  ;;  %v3593_v49 = vsub.f32 1.0, %v3592_v2  ;;  %v3607_v37 = vmul.f32 %v9885_v36, %v9799_v25  ;;  %v14985_v19 = vld [vmem:[#allocation73_spill] sm:$0xff]  ;;  %v14988_v2 = vld [vmem:[#allocation67_spill] sm:$0xff] }
 0x2a1   :  { %2132 = vmatmul.bf16.gmra.mxu3 %v14977_v54  ;;  %v9892_v54 = vpop.eup %8076  ;;  %8080 = vrcp.f32 %v9883_v58  ;;  %v7421_v20 = vmul.f32 -1.442695, %v14985_v19  ;;  %2274 = vmatpush.bf16.msrb.mxu1 %v7335_v53  ;;  %v3602_v41 = vand.u32 2147483648, %v9762_v28  ;;  %v3615_v35 = vand.u32 2147483647, %v9799_v25 }
 0x2a2   :  { %2185 = vmatpush.bf16.msrb.mxu0 %v7207_v31  ;;  %v8079_v55 = vpop.eup %8078  ;;  %v3652_v47 = vmul.f32 %v9892_v54, %v9817_v56  ;;  %v9939_v31 = vadd.f32 %v14989_v39, %v14988_v2  ;;  %v3499_v53 = vsel %vm9856_vm13, %v3498_v8, %v3494_v63  ;;  %v3539_v14 = vsel %vm9929_vm4, %v9768_v46, %v3535_v4 }
 0x2a3   :  { %v3549_v30 = vmul.f32 %v9832_v27, %v3548_v45  ;;  %vm3596_vm5 = vweird.f32 %v9762_v28  ;;  %8082 = vpow2.f32 %v7420_v48  ;;  %v9951_v11 = vadd.f32 %v9621_v12, %v9619_v32  ;;  %v1344_v48 = vpop.f32.mrf.mxu2 }
 0x2a4   :  { %8084 = vrcp.f32 %v9918_v3  ;;  %v9955_v2 = vadd.f32 %v9705_v34, %v9703_v43  ;;  %v9959_v38 = vadd.f32 %v9721_v22, %v9719_v16  ;;  %v3594_v46 = vmul.f32 %v9849_v44, %v3593_v49  ;;  %v1433_v43 = vpop.f32.mrf.mxu3  ;;  %v15031_v49 = vld [vmem:[#allocation78_spill] sm:$0xff] }
 0x2a5   :  { %14990 = vst [vmem:[#allocation71_spill] sm:$0xff] %v9951_v11  ;;  %v3608_v8 = vsub.f32 1.0, %v3607_v37  ;;  %v9962_v45 = vadd.f32 1.0, %v8079_v55  ;;  %8086 = vpow2.f32 %v7421_v20  ;;  %vm3552_vm6 = vweird.f32 %v9832_v27  ;;  %v14996_v37 = vld [vmem:[#allocation69_spill] sm:$0xff]  ;;  %v14997_v20 = vld [vmem:[#allocation70_spill] sm:$0xff] }
 0x2a6   :  { %14991 = vst [vmem:[#allocation73_spill] sm:$0xff] %v9955_v2  ;;  %v9965_v4 = vor.u32 1.1754944e-38, %v3602_v41  ;;  %v3653_v32 = vsub.f32 1.0, %v3652_v47  ;;  %v7424_v12 = vmul.f32 -1.442695, %v9939_v31  ;;  %v9971_v16 = vmul.f32 %v3499_v53, %v9467_v21  ;;  %vm10003_vm12 = vmor %vm3551_vm3, %vm3552_vm6 }
 0x2a7   :  { %14992 = vst [vmem:[#allocation67_spill] sm:$0xff] %v9959_v38  ;;  %v9968_v34 = vpop.eup %8080  ;;  %v3550_v22 = vadd.f32 %v9832_v27, %v3549_v30  ;;  %vm9974_vm7 = vcmp.eq.f32.partialorder %v3555_v10, 8.507059e+37  ;;  %vm3611_vm8 = vweird.f32 %v9799_v25  ;;  %v3617_v63 = vand.u32 2147483648, %v9799_v25  ;;  %v1257_v18 = vpop.f32.mrf.mxu1 }
 0x2a8   :  { %14993 = vst [vmem:[#allocation68_spill] sm:$0xff] %v9971_v16  ;;  %v9982_v55 = vadd.f32 %v14997_v20, %v14996_v37  ;;  %v3544_v40 = vsel %vm9903_vm2, %v3543_v9, %v3539_v14  ;;  %vm3597_vm9 = vweird.f32 %v9849_v44  ;;  %vm9987_vm10 = vcmp.eq.f32.partialorder %v3600_v6, 8.507059e+37  ;;  %v1168_v9 = vpop.f32.mrf.mxu0  ;;  %v15003_v37 = vld [vmem:[#allocation30_spill] sm:$0xff]  ;;  %v15004_v20 = vld [vmem:[#allocation31_spill] sm:$0xff] }
 0x2a9   :  { %vm3612_vm11 = vweird.f32 %v9885_v36  ;;  %v3660_v10 = vand.u32 2147483647, %v9817_v56  ;;  %v8083_v30 = vpop.eup %8082  ;;  %v3595_v41 = vadd.f32 %v9849_v44, %v3594_v46  ;;  %v3609_v47 = vmul.f32 %v9885_v36, %v3608_v8  ;;  %vm10038_vm14 = vmor %vm3596_vm5, %vm3597_vm9 }
 0x2aa   :  { %v3662_v39 = vand.u32 2147483648, %v9817_v56  ;;  %8088 = vrcp.f32 %v9962_v45  ;;  %v9997_v53 = vpop.eup %8084  ;;  %v3654_v14 = vmul.f32 %v9892_v54, %v3653_v32  ;;  %v3667_v46 = vmul.f32 %v9968_v34, %v9883_v58  ;;  %vm10076_vm1 = vmor %vm3611_vm8, %vm3612_vm11 }
 0x2ab   :  { %8090 = vpow2.f32 %v7424_v12  ;;  %v10012_v8 = vadd.f32 %v9792_v61, %v9790_v33  ;;  %v8087_v38 = vpop.eup %8086  ;;  %v3554_v23 = vsel %vm10003_vm12, %v9832_v27, %v3550_v22  ;;  %vm10019_vm13 = vcmp.eq.f32.partialorder %v3615_v35, 8.507059e+37  ;;  %v15014_v35 = vld [vmem:[#allocation76_spill] sm:$0xff] }
 0x2ac   :  { %v7425_v32 = vmul.f32 -1.442695, %v9982_v55  ;;  %v10026_v12 = vadd.f32 %v9821_v59, %v9819_v13  ;;  %v10030_v33 = vadd.f32 %v9878_v26, %v9876_v50  ;;  %v10042_v27 = vadd.f32 1.0, %v8083_v30 }
 0x2ad   :  { %15002 = vst [vmem:[#allocation69_spill] sm:$0xff] %v10012_v8  ;;  %v10046_v13 = vadd.f32 %v9910_v17, %v9908_v52  ;;  %v10048_v59 = vadd.f32 %v1433_v43, %v1344_v48  ;;  %v10050_v50 = vadd.f32 %v1257_v18, %v1168_v9  ;;  %v3599_v26 = vsel %vm10038_vm14, %v9849_v44, %v3595_v41 }
 0x2ae   :  { %15007 = vst [vmem:[#allocation70_spill] sm:$0xff] %v10026_v12  ;;  %v3610_v28 = vadd.f32 %v9885_v36, %v3609_v47  ;;  %vm3657_vm15 = vweird.f32 %v9892_v54  ;;  %v7428_v22 = vmul.f32 -1.442695, %v15014_v35  ;;  %v3655_v30 = vadd.f32 %v9892_v54, %v3654_v14 }
 0x2af   :  { %2048 = vmatmul.bf16.gmra.mxu2 %v15003_v37  ;;  %15008 = vst [vmem:[#allocation168_spill] sm:$0xff] %v10030_v33  ;;  %v3668_v6 = vsub.f32 1.0, %v3667_v46  ;;  %v3712_v52 = vmul.f32 %v9997_v53, %v9918_v3  ;;  %v10061_v17 = vadd.f32 1.0, %v8087_v38  ;;  %v10066_v43 = vmul.f32 %v3544_v40, %v14917_v57  ;;  %v1435_v40 = vpop.f32.mrf.mxu3  ;;  %v15045_v33 = vld [vmem:[#allocation87_spill] sm:$0xff] }
 0x2b0   :  { %1870 = vmatmul.bf16.gmra.mxu0 %v15003_v37  ;;  %1959 = vmatmul.bf16.gmra.mxu1 %v15004_v20  ;;  %15011 = vst [vmem:[#allocation169_spill] sm:$0xff] %v10046_v13  ;;  %v10063_v48 = vpop.eup %8088  ;;  %v3618_v44 = vor.u32 1.1754944e-38, %v3617_v63  ;;  %vm3656_vm0 = vweird.f32 %v9817_v56  ;;  %8092 = vpow2.f32 %v7425_v32  ;;  %v3559_v47 = vsel %vm9974_vm7, %v9915_v0, %v3554_v23  ;;  %v1346_v56 = vpop.f32.mrf.mxu2  ;;  %v15054_v13 = vld [vmem:[#allocation82_spill] sm:$0xff] }
 0x2b1   :  { %2137 = vmatmul.bf16.gmra.mxu3 %v15004_v20  ;;  %15012 = vst [vmem:[#allocation170_spill] sm:$0xff] %v10048_v59  ;;  %v8091_v41 = vpop.eup %8090  ;;  %vm10080_vm2 = vcmp.eq.f32.partialorder %v3660_v10, 8.507059e+37  ;;  %v3663_v63 = vor.u32 1.1754944e-38, %v3662_v39  ;;  %8094 = vrcp.f32 %v10042_v27  ;;  %v3604_v0 = vsel %vm9987_vm10, %v9965_v4, %v3599_v26  ;;  %vm10093_vm3 = vmor %vm3656_vm0, %vm3657_vm15  ;;  %v10103_v9 = vpop.f32.mrf.mxu0 }
 0x2b2   :  { %15013 = vst [vmem:[#allocation171_spill] sm:$0xff] %v10050_v50  ;;  %v3614_v25 = vsel %vm10076_vm1, %v9885_v36, %v3610_v28  ;;  %v3675_v10 = vand.u32 2147483647, %v9883_v58  ;;  %8096 = vpow2.f32 %v7428_v22  ;;  %v3659_v39 = vsel %vm10093_vm3, %v9892_v54, %v3655_v30  ;;  %v10105_v36 = vpop.f32.mrf.mxu1  ;;  %v15026_v22 = vld [vmem:[#allocation74_spill] sm:$0xff]  ;;  %v15027_v30 = vld [vmem:[#allocation75_spill] sm:$0xff] }
 0x2b3   :  { %15015 = vst [vmem:[#allocation76_spill] sm:$0xff] %v10066_v43  ;;  %v3669_v21 = vmul.f32 %v9968_v34, %v3668_v6  ;;  %v3713_v4 = vsub.f32 1.0, %v3712_v52  ;;  %8098 = vrcp.f32 %v10061_v17  ;;  %v10108_v18 = vmul.f32 %v3559_v47, %v14928_v62 }
 0x2b4   :  { %v3677_v14 = vand.u32 2147483648, %v9883_v58  ;;  %v3727_v46 = vmul.f32 %v10063_v48, %v9962_v45  ;;  %v10113_v23 = vadd.f32 1.0, %v8091_v41  ;;  %v10116_v54 = vmul.f32 %v3604_v0, %v9575_v29  ;;  %v15028_v41 = vld [vmem:[#allocation81_spill] sm:$0xff] }
 0x2b5   :  { %15022 = vst [vmem:[#allocation172_spill] sm:$0xff] %v10108_v18  ;;  %v3619_v32 = vsel %vm10019_vm13, %v3618_v44, %v3614_v25  ;;  %vm3671_vm4 = vweird.f32 %v9883_v58  ;;  %v3722_v61 = vand.u32 2147483648, %v9918_v3  ;;  %v3664_v62 = vsel %vm10080_vm2, %v3663_v63, %v3659_v39  ;;  %v15030_v25 = vld [vmem:[#allocation77_spill] sm:$0xff] }
 0x2b6   :  { %15023 = vst [vmem:[#allocation173_spill] sm:$0xff] %v10116_v54  ;;  %v8093_v26 = vpop.eup %8092  ;;  %vm3672_vm5 = vweird.f32 %v9968_v34  ;;  %vm10125_vm6 = vcmp.eq.f32.partialorder %v3675_v10, 8.507059e+37  ;;  %v3720_v29 = vand.u32 2147483647, %v9918_v3  ;;  %v10132_v2 = vadd.f32 %v15027_v30, %v15026_v22  ;;  %v7192_v30 = vld [vmem:[#allocation8 + $0x98] sm:$0xf0] }
 0x2b7   :  { %v10134_v6 = vpop.eup %8094  ;;  %v3670_v52 = vadd.f32 %v9968_v34, %v3669_v21  ;;  %v3714_v44 = vmul.f32 %v9997_v53, %v3713_v4  ;;  %v7429_v47 = vmul.f32 -1.442695, %v15028_v41  ;;  %v10139_v38 = vadd.f32 %v1435_v40, %v1346_v56  ;;  %v10156_v40 = vpop.f32.mrf.mxu3  ;;  %vm10165_vm8 = vmor %vm3671_vm4, %vm3672_vm5  ;;  %v7318_v54 = vld [vmem:[#allocation8 + $0x188] sm:$0xf] }
 0x2b8   :  { %v8097_v57 = vpop.eup %8096  ;;  %v3678_v63 = vor.u32 1.1754944e-38, %v3677_v14  ;;  %v3728_v0 = vsub.f32 1.0, %v3727_v46  ;;  %8100 = vrcp.f32 %v10113_v23  ;;  %v10144_v10 = vadd.f32 %v15031_v49, %v15030_v25  ;;  %v10154_v56 = vpop.f32.mrf.mxu2  ;;  %v15038_v49 = vld [vmem:[#allocation32_spill] sm:$0xff] }
 0x2b9   :  { %15029 = vst [vmem:[#allocation74_spill] sm:$0xff] %v10139_v38  ;;  %v10146_v39 = vpop.eup %8098  ;;  %v10149_v22 = vmul.f32 %v3619_v32, %v9627_v24  ;;  %vm3716_vm7 = vweird.f32 %v9918_v3  ;;  %v3723_v21 = vor.u32 1.1754944e-38, %v3722_v61  ;;  %v10152_v4 = vadd.f32 1.0, %v8093_v26  ;;  %v10182_v25 = vpop.f32.mrf.mxu0  ;;  %v15039_v38 = vld [vmem:[#allocation33_spill] sm:$0xff] }
 0x2ba   :  { %v10159_v14 = vmul.f32 %v3664_v62, %v14944_v1  ;;  %vm3717_vm9 = vweird.f32 %v9997_v53  ;;  %vm10170_vm10 = vcmp.eq.f32.partialorder %v3720_v29, 8.507059e+37  ;;  %v3735_v32 = vand.u32 2147483647, %v9962_v45  ;;  %v7869_v62 = vld [vmem:[#allocation8 + $0x8c] sm:$0xf]  ;;  %v10184_v29 = vpop.f32.mrf.mxu1 }
 0x2bb   :  { %15032 = vst [vmem:[#allocation75_spill] sm:$0xff] %v10149_v22  ;;  %v7432_v61 = vmul.f32 -1.442695, %v10132_v2  ;;  %v3674_v1 = vsel %vm10165_vm8, %v9968_v34, %v3670_v52  ;;  %v3715_v58 = vadd.f32 %v9997_v53, %v3714_v44  ;;  %v10180_v26 = vadd.f32 1.0, %v8097_v57  ;;  %v15040_v57 = vld [vmem:[#allocation86_spill] sm:$0xff]  ;;  %vm10206_vm12 = vmor %vm3716_vm7, %vm3717_vm9 }
 0x2bc   :  { %15033 = vst [vmem:[#allocation81_spill] sm:$0xff] %v10159_v14  ;;  %8102 = vpow2.f32 %v7429_v47  ;;  %v3729_v50 = vmul.f32 %v10063_v48, %v3728_v0  ;;  %v3772_v34 = vmul.f32 %v10134_v6, %v10042_v27  ;;  %v3787_v52 = vmul.f32 %v10146_v39, %v10061_v17 }
 0x2bd   :  { %v7433_v44 = vmul.f32 -1.442695, %v10144_v10  ;;  %vm3731_vm11 = vweird.f32 %v9962_v45  ;;  %v3737_v47 = vand.u32 2147483648, %v9962_v45  ;;  %8104 = vrcp.f32 %v10152_v4 }
 0x2be   :  { %v7436_v0 = vmul.f32 -1.442695, %v15040_v57  ;;  %v10200_v46 = vpop.eup %8100  ;;  %vm10210_vm13 = vcmp.eq.f32.partialorder %v3735_v32, 8.507059e+37  ;;  %8106 = vpow2.f32 %v7432_v61  ;;  %v7437_v12 = vmul.f32 -1.442695, %v15045_v33 }
 0x2bf   :  { %2053 = vmatmul.bf16.gmra.mxu2 %v15038_v49  ;;  %v7195_v8 = vor.u32 %v7869_v62, %v7192_v30  ;;  %v3679_v11 = vsel %vm10125_vm6, %v3678_v63, %v3674_v1  ;;  %vm3732_vm14 = vweird.f32 %v10063_v48  ;;  %8108 = vrcp.f32 %v10180_v26  ;;  %v10229_v59 = vpop.f32.mrf.mxu3 }
 0x2c0   :  { %1875 = vmatmul.bf16.gmra.mxu0 %v15038_v49  ;;  %1964 = vmatmul.bf16.gmra.mxu1 %v15039_v38  ;;  %v3730_v3 = vadd.f32 %v10063_v48, %v3729_v50  ;;  %v3773_v32 = vsub.f32 1.0, %v3772_v34  ;;  %v3788_v49 = vsub.f32 1.0, %v3787_v52  ;;  %8110 = vpow2.f32 %v7433_v44  ;;  %vm10244_vm0 = vmor %vm3731_vm11, %vm3732_vm14 }
 0x2c1   :  { %2142 = vmatmul.bf16.gmra.mxu3 %v15039_v38  ;;  %v3719_v38 = vsel %vm10206_vm12, %v9997_v53, %v3715_v58  ;;  %2364 = vmatpush.bf16.msrb.mxu2 %v7195_v8  ;;  %v3782_v62 = vand.u32 2147483648, %v10042_v27  ;;  %v3797_v28 = vand.u32 2147483648, %v10061_v17  ;;  %v3832_v63 = vmul.f32 %v10200_v46, %v10113_v23  ;;  %v10227_v53 = vpop.f32.mrf.mxu2  ;;  %v10250_v44 = vpop.f32.mrf.mxu0 }
 0x2c2   :  { %v8103_v61 = vpop.eup %8102  ;;  %8112 = vpow2.f32 %v7436_v0  ;;  %v3738_v1 = vor.u32 1.1754944e-38, %v3737_v47  ;;  %vm3776_vm15 = vweird.f32 %v10042_v27  ;;  %v3780_v50 = vand.u32 2147483647, %v10042_v27  ;;  %v10252_v47 = vpop.f32.mrf.mxu1 }
 0x2c3   :  { %8114 = vpow2.f32 %v7437_v12  ;;  %v10233_v8 = vpop.eup %8104  ;;  %v10236_v58 = vmul.f32 %v3679_v11, %v14963_v42  ;;  %v3724_v30 = vsel %vm10170_vm10, %v3723_v21, %v3719_v38  ;;  %v3795_v52 = vand.u32 2147483647, %v10061_v17 }
 0x2c4   :  { %v3842_v12 = vand.u32 2147483648, %v10113_v23  ;;  %v8107_v11 = vpop.eup %8106  ;;  %v3734_v42 = vsel %vm10244_vm0, %v10063_v48, %v3730_v3  ;;  %v3774_v38 = vmul.f32 %v10134_v6, %v3773_v32  ;;  %v3789_v45 = vmul.f32 %v10146_v39, %v3788_v49  ;;  %v7901_v3 = vld [vmem:[#allocation8 + $0x18c] sm:$0xf]  ;;  %v7320_v32 = vld [vmem:[#allocation8 + $0x198] sm:$0xf0] }
 0x2c5   :  { %15046 = vst [vmem:[#allocation77_spill] sm:$0xff] %v10236_v58  ;;  %v10259_v21 = vadd.f32 1.0, %v8103_v61  ;;  %v10261_v24 = vpop.eup %8108  ;;  %v10263_v0 = vor.u32 1.1754944e-38, %v3782_v62  ;;  %vm3791_vm1 = vweird.f32 %v10061_v17  ;;  %v10266_v20 = vor.u32 1.1754944e-38, %v3797_v28 }
 0x2c6   :  { %v3833_v37 = vsub.f32 1.0, %v3832_v63  ;;  %v8111_v58 = vpop.eup %8110  ;;  %v10269_v14 = vmul.f32 %v3724_v30, %v9766_v5  ;;  %vm3777_vm2 = vweird.f32 %v10134_v6  ;;  %vm10272_vm3 = vcmp.eq.f32.partialorder %v3780_v50, 8.507059e+37  ;;  %v7190_v30 = vld [vmem:[#allocation8 + $0x88] sm:$0xf] }
 0x2c7   :  { %vm3792_vm4 = vweird.f32 %v10146_v39  ;;  %v3840_v49 = vand.u32 2147483647, %v10113_v23  ;;  %v3739_v62 = vsel %vm10210_vm13, %v3738_v1, %v3734_v42  ;;  %vm10280_vm5 = vcmp.eq.f32.partialorder %v3795_v52, 8.507059e+37  ;;  %v15055_v1 = vld [vmem:[#allocation83_spill] sm:$0xff]  ;;  %v2103_v51 = vpop.f32.mrf.mxu3  ;;  %vm10314_vm7 = vmor %vm3776_vm15, %vm3777_vm2 }
 0x2c8   :  { %15049 = vst [vmem:[#allocation78_spill] sm:$0xff] %v10269_v14  ;;  %v8113_v61 = vpop.eup %8112  ;;  %vm3836_vm6 = vweird.f32 %v10113_v23  ;;  %v10285_v5 = vor.u32 1.1754944e-38, %v3842_v12  ;;  %v3857_v63 = vand.u32 2147483648, %v10152_v4  ;;  %v10288_v50 = vadd.f32 1.0, %v8107_v11  ;;  %v7871_v42 = vld [vmem:[#allocation8 + $0x94] sm:$0xf0]  ;;  %vm10332_vm10 = vmor %vm3791_vm1, %vm3792_vm4 }
 0x2c9   :  { %v8115_v34 = vpop.eup %8114  ;;  %v3775_v14 = vadd.f32 %v10134_v6, %v3774_v38  ;;  %v3790_v22 = vadd.f32 %v10146_v39, %v3789_v45  ;;  %8116 = vrcp.f32 %v10259_v21  ;;  %v10295_v52 = vadd.f32 %v15055_v1, %v15054_v13  ;;  %v7903_v12 = vld [vmem:[#allocation8 + $0x194] sm:$0xf0]  ;;  %v2014_v38 = vpop.f32.mrf.mxu2 }
 0x2ca   :  { %v3834_v18 = vmul.f32 %v10200_v46, %v3833_v37  ;;  %v3847_v11 = vmul.f32 %v10233_v8, %v10152_v4  ;;  %v10300_v43 = vadd.f32 1.0, %v8111_v58  ;;  %v7323_v16 = vor.u32 %v7901_v3, %v7320_v32 }
 0x2cb   :  { %v10303_v45 = vmul.f32 %v3739_v62, %v9803_v7  ;;  %v3892_v13 = vmul.f32 %v10261_v24, %v10180_v26  ;;  %v10308_v1 = vadd.f32 1.0, %v8113_v61  ;;  %vm3837_vm8 = vweird.f32 %v10200_v46  ;;  %v1838_v61 = vpop.f32.mrf.mxu0  ;;  %v1927_v62 = vpop.f32.mrf.mxu1 }
 0x2cc   :  { %vm10319_vm9 = vcmp.eq.f32.partialorder %v3840_v49, 8.507059e+37  ;;  %v10323_v58 = vadd.f32 1.0, %v8115_v34  ;;  %2453 = vmatpush.bf16.msrb.mxu3 %v7323_v16  ;;  %v7191_v3 = vor.u32 %v7871_v42, %v7190_v30  ;;  %v7319_v32 = vor.u32 %v7903_v12, %v7318_v54  ;;  %v15062_v54 = vld [vmem:[#allocation34_spill] sm:$0xff]  ;;  %v15063_v30 = vld [vmem:[#allocation35_spill] sm:$0xff]  ;;  %vm10377_vm12 = vmor %vm3836_vm6, %vm3837_vm8 }
 0x2cd   :  { %v3779_v27 = vsel %vm10314_vm7, %v10134_v6, %v3775_v14  ;;  %v10336_v60 = vor.u32 1.1754944e-38, %v3857_v63  ;;  %8118 = vrcp.f32 %v10288_v50  ;;  %v7440_v16 = vmul.f32 -1.442695, %v10295_v52 }
 0x2ce   :  { %v3794_v6 = vsel %vm10332_vm10, %v10146_v39, %v3790_v22  ;;  %v3835_v17 = vadd.f32 %v10200_v46, %v3834_v18  ;;  %v3848_v14 = vsub.f32 1.0, %v3847_v11  ;;  %8120 = vrcp.f32 %v10300_v43  ;;  %2186 = vmatpush.bf16.msrb.mxu0 %v7191_v3  ;;  %2275 = vmatpush.bf16.msrb.mxu1 %v7319_v32 }
 0x2cf   :  { %v10347_v63 = vpop.eup %8116  ;;  %v3893_v34 = vsub.f32 1.0, %v3892_v13  ;;  %8122 = vrcp.f32 %v10308_v1  ;;  %v10352_v42 = vadd.f32 %v10105_v36, %v10103_v9  ;;  %v10356_v12 = vadd.f32 %v10156_v40, %v10154_v56  ;;  %2058 = vmatmul.bf16.gmra.mxu2 %v15062_v54  ;;  %v2105_v48 = vpop.f32.mrf.mxu3 }
 0x2d0   :  { %1880 = vmatmul.bf16.gmra.mxu0 %v15062_v54  ;;  %1969 = vmatmul.bf16.gmra.mxu1 %v15063_v30  ;;  %v3784_v18 = vsel %vm10272_vm3, %v10263_v0, %v3779_v27  ;;  %vm3851_vm11 = vweird.f32 %v10152_v4  ;;  %v3900_v39 = vand.u32 2147483647, %v10180_v26  ;;  %8124 = vrcp.f32 %v10323_v58 }
 0x2d1   :  { %15064 = vst [vmem:[#allocation86_spill] sm:$0xff] %v10352_v42  ;;  %2147 = vmatmul.bf16.gmra.mxu3 %v15063_v30  ;;  %v10368_v9 = vadd.f32 %v10184_v29, %v10182_v25  ;;  %v3799_v36 = vsel %vm10280_vm5, %v10266_v20, %v3794_v6  ;;  %v3902_v56 = vand.u32 2147483648, %v10180_v26  ;;  %8126 = vpow2.f32 %v7440_v16  ;;  %v2016_v0 = vpop.f32.mrf.mxu2 }
 0x2d2   :  { %15065 = vst [vmem:[#allocation87_spill] sm:$0xff] %v10356_v12  ;;  %v10384_v40 = vadd.f32 %v10229_v59, %v10227_v53  ;;  %v3839_v25 = vsel %vm10377_vm12, %v10200_v46, %v3835_v17  ;;  %v3849_v20 = vmul.f32 %v10233_v8, %v3848_v14  ;;  %v3907_v23 = vmul.f32 %v10347_v63, %v10259_v21  ;;  %v15070_v53 = vld [vmem:[#allocation84_spill] sm:$0xff]  ;;  %v15071_v59 = vld [vmem:[#allocation85_spill] sm:$0xff] }
 0x2d3   :  { %15066 = vst [vmem:[#allocation82_spill] sm:$0xff] %v10368_v9  ;;  %v1926_v29 = vadd.f32 %v10252_v47, %v10250_v44  ;;  %v10394_v28 = vpop.eup %8118  ;;  %v3894_v11 = vmul.f32 %v10261_v24, %v3893_v34  ;;  %v10399_v13 = vadd.f32 %v15071_v59, %v15070_v53  ;;  %v2104_v37 = vadd.f32 %v2103_v51, %v2014_v38  ;;  %v15072_v44 = vld [vmem:[#allocation164_spill] sm:$0xff]  ;;  %v10409_v27 = vpop.f32.mrf.mxu0  ;;  %v15073_v38 = vld [vmem:[#allocation45_spill] sm:$0xff] }
 0x2d4   :  { %15069 = vst [vmem:[#allocation83_spill] sm:$0xff] %v10384_v40  ;;  %v1928_v46 = vadd.f32 %v1927_v62, %v1838_v61  ;;  %v10401_v3 = vpop.eup %8120  ;;  %v10404_v32 = vmul.f32 %v3784_v18, %v14984_v15  ;;  %vm3852_vm13 = vweird.f32 %v10233_v8  ;;  %vm3896_vm14 = vweird.f32 %v10180_v26  ;;  %v10411_v49 = vpop.f32.mrf.mxu1  ;;  %v15074_v15 = vld [vmem:[#allocation46_spill] sm:$0xff]  ;;  %v15083_v59 = vld [vmem:[#allocation92_spill] sm:$0xff]  ;;  %v15087_v40 = vld [vmem:[#allocation89_spill] sm:$0xff] }
 0x2d5   :  { %v5099_v47 = vmul.f32 %v15072_v44, %v1926_v29  ;;  %v10413_v16 = vpop.eup %8122  ;;  %v3844_v51 = vsel %vm10319_vm9, %v10285_v5, %v3839_v25  ;;  %v10419_v61 = vmul.f32 %v15073_v38, %v2104_v37  ;;  %v10422_v6 = vadd.f32 %v2105_v48, %v2016_v0  ;;  %vm10458_vm3 = vmor %vm3851_vm11, %vm3852_vm13 }
 0x2d6   :  { %v5103_v62 = vmul.f32 %v15074_v15, %v1928_v46  ;;  %v10424_v17 = vpop.eup %8124  ;;  %v10427_v14 = vmul.f32 %v3799_v36, %v14985_v19  ;;  %v3850_v34 = vadd.f32 %v10233_v8, %v3849_v20  ;;  %v15075_v18 = vand.u32 2147483647, %v10152_v4  ;;  %v7865_v46 = vld [vmem:[#allocation8 + $0x6c] sm:$0xf]  ;;  %v7176_v15 = vld [vmem:[#allocation8 + $0x78] sm:$0xf0] }
 0x2d7   :  { %v3903_v5 = vor.u32 1.1754944e-38, %v3902_v56  ;;  %v3908_v7 = vsub.f32 1.0, %v3907_v23  ;;  %v8127_v25 = vpop.eup %8126  ;;  %v3895_v29 = vadd.f32 %v10261_v24, %v3894_v11  ;;  %vm3897_vm0 = vweird.f32 %v10261_v24  ;;  %v15092_v4 = vld [vmem:[#allocation93_spill] sm:$0xff] }
 0x2d8   :  { %vm10432_vm15 = vcmp.eq.f32.partialorder %v15075_v18, 8.507059e+37  ;;  %vm10438_vm1 = vcmp.eq.f32.partialorder %v3900_v39, 8.507059e+37  ;;  %v3952_v19 = vmul.f32 %v10394_v28, %v10288_v50  ;;  %v7441_v36 = vmul.f32 -1.442695, %v10399_v13  ;;  %vm10475_vm4 = vmor %vm3896_vm14, %vm3897_vm0  ;;  %v10485_v18 = vpop.f32.mrf.mxu3  ;;  %v15086_v39 = vld [vmem:[#allocation88_spill] sm:$0xff] }
 0x2d9   :  { %v10446_v20 = vmul.f32 %v3844_v51, %v9939_v31  ;;  %vm3911_vm2 = vweird.f32 %v10259_v21  ;;  %v3915_v56 = vand.u32 2147483647, %v10259_v21  ;;  %v3967_v23 = vmul.f32 %v10401_v3, %v10300_v43 }
 0x2da   :  { %v10452_v48 = vpack.c.bf16 %v5103_v62, %v5099_v47  ;;  %v3917_v31 = vand.u32 2147483648, %v10259_v21  ;;  %v4012_v11 = vmul.f32 %v10413_v16, %v10308_v1  ;;  %v4027_v53 = vmul.f32 %v10424_v17, %v10323_v58  ;;  %v10483_v62 = vpop.f32.mrf.mxu2 }
 0x2db   :  { %v7444_v37 = vmul.f32 -1.442695, %v15083_v59  ;;  %v3854_v44 = vsel %vm10458_vm3, %v10233_v8, %v3850_v34  ;;  %v3909_v47 = vmul.f32 %v10347_v63, %v3908_v7  ;;  %v3960_v51 = vand.u32 2147483647, %v10288_v50  ;;  %v10496_v12 = vpop.f32.mrf.mxu0 }
 0x2dc   :  { %15080 = vst [vmem:[#allocation84_spill] sm:$0xff] %v10452_v48  ;;  %v10481_v38 = vadd.f32 1.0, %v8127_v25  ;;  %v3899_v8 = vsel %vm10475_vm4, %v10261_v24, %v3895_v29  ;;  %v3953_v26 = vsub.f32 1.0, %v3952_v19  ;;  %v3962_v34 = vand.u32 2147483648, %v10288_v50  ;;  %v10498_v42 = vpop.f32.mrf.mxu1 }
 0x2dd   :  { %8128 = vpow2.f32 %v7441_v36  ;;  %vm3912_vm5 = vweird.f32 %v10347_v63  ;;  %v3968_v7 = vsub.f32 1.0, %v3967_v23  ;;  %v10494_v25 = vadd.f32 %v15087_v40, %v15086_v39  ;;  %v15090_v36 = vld [vmem:[#allocation36_spill] sm:$0xff]  ;;  %v15091_v23 = vld [vmem:[#allocation37_spill] sm:$0xff] }
 0x2de   :  { %v7179_v9 = vor.u32 %v7865_v46, %v7176_v15  ;;  %vm10500_vm6 = vcmp.eq.f32.partialorder %v3915_v56, 8.507059e+37  ;;  %v3975_v24 = vand.u32 2147483647, %v10300_v43  ;;  %v4013_v29 = vsub.f32 1.0, %v4012_v11  ;;  %vm10526_vm8 = vmor %vm3911_vm2, %vm3912_vm5 }
 0x2df   :  { %v4028_v19 = vsub.f32 1.0, %v4027_v53  ;;  %8130 = vpow2.f32 %v7444_v37  ;;  %v3910_v40 = vadd.f32 %v10347_v63, %v3909_v47  ;;  %v3977_v46 = vand.u32 2147483648, %v10300_v43  ;;  %2063 = vmatmul.bf16.gmra.mxu2 %v15090_v36 }
 0x2e0   :  { %1885 = vmatmul.bf16.gmra.mxu0 %v15090_v36  ;;  %1974 = vmatmul.bf16.gmra.mxu1 %v15091_v23  ;;  %8132 = vrcp.f32 %v10481_v38  ;;  %v7445_v56 = vmul.f32 -1.442695, %v15092_v4  ;;  %v3859_v15 = vsel %vm10432_vm15, %v10336_v60, %v3854_v44  ;;  %v3918_v11 = vor.u32 1.1754944e-38, %v3917_v31  ;;  %v7144_v31 = vld [vmem:[#allocation8 + $0x38] sm:$0xf0] }
 0x2e1   :  { %2365 = vmatpush.bf16.msrb.mxu2 %v7179_v9  ;;  %v3954_v53 = vmul.f32 %v10394_v28, %v3953_v26  ;;  %vm3956_vm7 = vweird.f32 %v10288_v50  ;;  %2152 = vmatmul.bf16.gmra.mxu3 %v15091_v23  ;;  %v3904_v37 = vsel %vm10438_vm1, %v3903_v5, %v3899_v8  ;;  %v3963_v47 = vor.u32 1.1754944e-38, %v3962_v34  ;;  %v10548_v26 = vpop.f32.mrf.mxu3  ;;  %v7174_v50 = vld [vmem:[#allocation8 + $0x68] sm:$0xf]  ;;  %v7867_v23 = vld [vmem:[#allocation8 + $0x74] sm:$0xf0] }
 0x2e2   :  { %v3969_v39 = vmul.f32 %v10401_v3, %v3968_v7  ;;  %v7448_v9 = vmul.f32 -1.442695, %v10494_v25  ;;  %vm3957_vm9 = vweird.f32 %v10394_v28  ;;  %vm10531_vm10 = vcmp.eq.f32.partialorder %v3960_v51, 8.507059e+37  ;;  %v10546_v8 = vpop.f32.mrf.mxu2 }
 0x2e3   :  { %v8129_v30 = vpop.eup %8128  ;;  %vm3971_vm11 = vweird.f32 %v10300_v43  ;;  %v4014_v5 = vmul.f32 %v10413_v16, %v4013_v29  ;;  %v4029_v0 = vmul.f32 %v10424_v17, %v4028_v19  ;;  %v3914_v21 = vsel %vm10526_vm8, %v10347_v63, %v3910_v40  ;;  %vm10568_vm15 = vmor %vm3956_vm7, %vm3957_vm9  ;;  %v15117_v43 = vld [vmem:[#allocation43_spill] sm:$0xff] }
 0x2e4   :  { %vm10541_vm12 = vcmp.eq.f32.partialorder %v3975_v24, 8.507059e+37  ;;  %v3978_v44 = vor.u32 1.1754944e-38, %v3977_v46  ;;  %v4020_v51 = vand.u32 2147483647, %v10308_v1  ;;  %8134 = vpow2.f32 %v7445_v56  ;;  %v10560_v46 = vpop.f32.mrf.mxu0  ;;  %v10562_v56 = vpop.f32.mrf.mxu1 }
 0x2e5   :  { %v8131_v34 = vpop.eup %8130  ;;  %v3955_v7 = vadd.f32 %v10394_v28, %v3954_v53  ;;  %vm3972_vm13 = vweird.f32 %v10401_v3  ;;  %v4022_v29 = vand.u32 2147483648, %v10308_v1  ;;  %v4035_v63 = vand.u32 2147483647, %v10323_v58 }
 0x2e6   :  { %v10554_v24 = vpop.eup %8132  ;;  %v3970_v19 = vadd.f32 %v10401_v3, %v3969_v39  ;;  %vm4017_vm14 = vweird.f32 %v10413_v16  ;;  %v10558_v40 = vadd.f32 1.0, %v8129_v30  ;;  %8136 = vpow2.f32 %v7448_v9  ;;  %vm10582_vm2 = vmor %vm3971_vm11, %vm3972_vm13 }
 0x2e7   :  { %v4015_v60 = vadd.f32 %v10413_v16, %v4014_v5  ;;  %vm4016_vm0 = vweird.f32 %v10308_v1  ;;  %v4030_v30 = vadd.f32 %v10424_v17, %v4029_v0  ;;  %vm4032_vm1 = vweird.f32 %v10424_v17 }
 0x2e8   :  { %v3919_v39 = vsel %vm10500_vm6, %v3918_v11, %v3914_v21  ;;  %vm4031_vm3 = vweird.f32 %v10323_v58  ;;  %v4037_v9 = vand.u32 2147483648, %v10323_v58  ;;  %v10588_v1 = vadd.f32 1.0, %v8131_v34  ;;  %vm10595_vm4 = vmor %vm4016_vm0, %vm4017_vm14 }
 0x2e9   :  { %v3959_v5 = vsel %vm10568_vm15, %v10394_v28, %v3955_v7  ;;  %vm10599_vm5 = vcmp.eq.f32.partialorder %v4020_v51, 8.507059e+37  ;;  %v4023_v11 = vor.u32 1.1754944e-38, %v4022_v29  ;;  %v4072_v58 = vmul.f32 %v10554_v24, %v10481_v38  ;;  %vm10608_vm6 = vmor %vm4031_vm3, %vm4032_vm1  ;;  %v7897_v7 = vld [vmem:[#allocation8 + $0x16c] sm:$0xf] }
 0x2ea   :  { %v8135_v0 = vpop.eup %8134  ;;  %v3974_v21 = vsel %vm10582_vm2, %v10401_v3, %v3970_v19  ;;  %vm10612_vm7 = vcmp.eq.f32.partialorder %v4035_v63, 8.507059e+37  ;;  %v4082_v51 = vand.u32 2147483648, %v10481_v38  ;;  %8138 = vrcp.f32 %v10558_v40  ;;  %v7304_v19 = vld [vmem:[#allocation8 + $0x178] sm:$0xf0]  ;;  %v10637_v48 = vpop.f32.mrf.mxu2 }
 0x2eb   :  { %v10619_v29 = vmul.f32 %v3859_v15, %v9982_v55  ;;  %v10622_v53 = vmul.f32 %v3904_v37, %v15014_v35  ;;  %v4019_v3 = vsel %vm10595_vm4, %v10413_v16, %v4015_v60  ;;  %v4034_v63 = vsel %vm10608_vm6, %v10424_v17, %v4030_v30  ;;  %v15113_v35 = vld [vmem:[#allocation90_spill] sm:$0xff]  ;;  %v15114_v15 = vld [vmem:[#allocation91_spill] sm:$0xff]  ;;  %v10639_v16 = vpop.f32.mrf.mxu3 }
 0x2ec   :  { %v8137_v36 = vpop.eup %8136  ;;  %v3964_v54 = vsel %vm10531_vm10, %v3963_v47, %v3959_v5  ;;  %v4038_v55 = vor.u32 1.1754944e-38, %v4037_v9  ;;  %8140 = vrcp.f32 %v10588_v1  ;;  %v10635_v37 = vadd.f32 %v15114_v15, %v15113_v35  ;;  %v7302_v47 = vld [vmem:[#allocation8 + $0x168] sm:$0xf]  ;;  %v7899_v9 = vld [vmem:[#allocation8 + $0x174] sm:$0xf0] }
 0x2ed   :  { %15111 = vst [vmem:[#allocation85_spill] sm:$0xff] %v10619_v29  ;;  %v10642_v17 = vmul.f32 %v3919_v39, %v15028_v41  ;;  %v3979_v60 = vsel %vm10541_vm12, %v3978_v44, %v3974_v21  ;;  %v4073_v30 = vsub.f32 1.0, %v4072_v58  ;;  %v10646_v22 = vadd.f32 1.0, %v8135_v0  ;;  %v1937_v29 = vpop.f32.mrf.mxu1  ;;  %v15116_v58 = vld [vmem:[#allocation41_spill] sm:$0xff] }
 0x2ee   :  { %15112 = vst [vmem:[#allocation164_spill] sm:$0xff] %v10622_v53  ;;  %v4024_v5 = vsel %vm10599_vm5, %v4023_v11, %v4019_v3  ;;  %v4039_v28 = vsel %vm10612_vm7, %v4038_v55, %v4034_v63  ;;  %v7307_v35 = vor.u32 %v7897_v7, %v7304_v19  ;;  %v7175_v15 = vor.u32 %v7867_v23, %v7174_v50  ;;  %v1848_v53 = vpop.f32.mrf.mxu0  ;;  %v7861_v63 = vld [vmem:[#allocation8 + $0x4c] sm:$0xf]  ;;  %v7160_v19 = vld [vmem:[#allocation8 + $0x58] sm:$0xf0] }
 0x2ef   :  { %v10653_v41 = vmul.f32 %v3964_v54, %v10132_v2  ;;  %v10656_v44 = vor.u32 1.1754944e-38, %v4082_v51  ;;  %v10658_v39 = vadd.f32 1.0, %v8137_v36  ;;  %v10665_v0 = vmul.f32 %v3979_v60, %v10144_v10  ;;  %2068 = vmatmul.bf16.gmra.mxu2 %v15116_v58  ;;  %v15121_v51 = vld [vmem:[#allocation47_spill] sm:$0xff]  ;;  %v15124_v60 = vld [vmem:[#allocation50_spill] sm:$0xff]  ;;  %v7857_v23 = vld [vmem:[#allocation8 + $0x2c] sm:$0xf] }
 0x2f0   :  { %1890 = vmatmul.bf16.gmra.mxu0 %v15116_v58  ;;  %1979 = vmatmul.bf16.gmra.mxu1 %v15117_v43  ;;  %v10662_v11 = vpop.eup %8138  ;;  %v7449_v2 = vmul.f32 -1.442695, %v10635_v37  ;;  %v7303_v54 = vor.u32 %v7899_v9, %v7302_v47  ;;  %v10670_v21 = vmul.f32 %v4024_v5, %v15040_v57  ;;  %v10673_v36 = vmul.f32 %v4039_v28, %v15045_v33  ;;  %v7288_v55 = vld [vmem:[#allocation8 + $0x158] sm:$0xf0]  ;;  %v7863_v47 = vld [vmem:[#allocation8 + $0x54] sm:$0xf0] }
 0x2f1   :  { %15115 = vst [vmem:[#allocation45_spill] sm:$0xff] %v10653_v41  ;;  %2454 = vmatpush.bf16.msrb.mxu3 %v7307_v35  ;;  %2187 = vmatpush.bf16.msrb.mxu0 %v7175_v15  ;;  %v10676_v34 = vmul.f32 %v10554_v24, %v4073_v30  ;;  %8142 = vrcp.f32 %v10646_v22  ;;  %v5104_v7 = vmul.f32 %v15121_v51, %v10422_v6  ;;  %v7286_v9 = vld [vmem:[#allocation8 + $0x148] sm:$0xf]  ;;  %v7895_v5 = vld [vmem:[#allocation8 + $0x154] sm:$0xf0]  ;;  %vm4076_vm8 = vweird.f32 %v10481_v38 }
 0x2f2   :  { %15118 = vst [vmem:[#allocation46_spill] sm:$0xff] %v10665_v0  ;;  %2157 = vmatmul.bf16.gmra.mxu3 %v15117_v43  ;;  %v10681_v10 = vpop.eup %8140  ;;  %2276 = vmatpush.bf16.msrb.mxu1 %v7303_v54  ;;  %v1931_v57 = vadd.f32 %v10411_v49, %v10409_v27  ;;  %v2109_v33 = vadd.f32 %v10485_v18, %v10483_v62  ;;  %8144 = vrcp.f32 %v10658_v39  ;;  %v7893_v49 = vld [vmem:[#allocation8 + $0x14c] sm:$0xf]  ;;  %v7158_v62 = vld [vmem:[#allocation8 + $0x48] sm:$0xf]  ;;  %v2026_v28 = vpop.f32.mrf.mxu2  ;;  %v15128_v54 = vld [vmem:[#allocation58_spill] sm:$0xff]  ;;  %vm4077_vm9 = vweird.f32 %v10554_v24 }
 0x2f3   :  { %15119 = vst [vmem:[#allocation92_spill] sm:$0xff] %v10670_v21  ;;  %v1933_v3 = vadd.f32 %v10498_v42, %v10496_v12  ;;  %v10693_v50 = vmul.f32 %v10662_v11, %v10558_v40  ;;  %v2111_v6 = vadd.f32 %v10548_v26, %v10546_v8  ;;  %v1936_v27 = vadd.f32 %v10562_v56, %v10560_v46  ;;  %v15123_v12 = vld [vmem:[#allocation48_spill] sm:$0xff]  ;;  %v2115_v35 = vpop.f32.mrf.mxu3  ;;  %v15125_v26 = vld [vmem:[#allocation97_spill] sm:$0xff]  ;;  %v15129_v43 = vld [vmem:[#allocation54_spill] sm:$0xff] }
 0x2f4   :  { %15120 = vst [vmem:[#allocation88_spill] sm:$0xff] %v10673_v36  ;;  %8146 = vpow2.f32 %v7449_v2  ;;  %v10701_v42 = vpack.c.bf16 %v5104_v7, %v10419_v61  ;;  %v5107_v18 = vmul.f32 %v15123_v12, %v1931_v57  ;;  %v5108_v30 = vmul.f32 %v15124_v60, %v2109_v33  ;;  %v15126_v56 = vld [vmem:[#allocation100_spill] sm:$0xff]  ;;  %v7891_v0 = vld [vmem:[#allocation8 + $0x134] sm:$0xf0]  ;;  %vm10775_vm12 = vmor %vm4076_vm8, %vm4077_vm9 }
 0x2f5   :  { %v10707_v8 = vmul.f32 %v10681_v10, %v10588_v1  ;;  %v7452_v46 = vmul.f32 -1.442695, %v15125_v26  ;;  %v7453_v15 = vmul.f32 -1.442695, %v15126_v56  ;;  %v15127_v2 = vld [vmem:[#allocation52_spill] sm:$0xff]  ;;  %v5115_v51 = vmul.f32 %v15128_v54, %v1936_v27  ;;  %v1940_v60 = vpop.f32.mrf.mxu1 }
 0x2f6   :  { %15122 = vst [vmem:[#allocation89_spill] sm:$0xff] %v10701_v42  ;;  %v5112_v61 = vmul.f32 %v15127_v2, %v2111_v6  ;;  %v7163_v7 = vor.u32 %v7861_v63, %v7160_v19  ;;  %v7291_v57 = vor.u32 %v7893_v49, %v7288_v55  ;;  %v2114_v33 = vadd.f32 %v10639_v16, %v10637_v48  ;;  %v1851_v12 = vpop.f32.mrf.mxu0  ;;  %v7889_v2 = vld [vmem:[#allocation8 + $0x12c] sm:$0xf]  ;;  %v7272_v27 = vld [vmem:[#allocation8 + $0x138] sm:$0xf0] }
 0x2f7   :  { %v10715_v42 = vpop.eup %8142  ;;  %v5111_v58 = vmul.f32 %v15129_v43, %v1933_v3  ;;  %v7159_v36 = vor.u32 %v7863_v47, %v7158_v62  ;;  %v7287_v21 = vor.u32 %v7895_v5, %v7286_v9  ;;  %v1938_v6 = vadd.f32 %v1937_v29, %v1848_v53  ;;  %v7142_v63 = vld [vmem:[#allocation8 + $0x28] sm:$0xf]  ;;  %v15130_v48 = vld [vmem:[#allocation167_spill] sm:$0xff]  ;;  %v15131_v43 = vld [vmem:[#allocation94_spill] sm:$0xff] }
 0x2f8   :  { %2366 = vmatpush.bf16.msrb.mxu2 %v7163_v7  ;;  %2455 = vmatpush.bf16.msrb.mxu3 %v7291_v57  ;;  %v5116_v16 = vmul.f32 %v15130_v48, %v2114_v33  ;;  %v2116_v19 = vadd.f32 %v2115_v35, %v2026_v28  ;;  %v1941_v49 = vadd.f32 %v1940_v60, %v1851_v12  ;;  %v7859_v55 = vld [vmem:[#allocation8 + $0x34] sm:$0xf0]  ;;  %v7270_v54 = vld [vmem:[#allocation8 + $0x128] sm:$0xf]  ;;  %v10721_v41 = vpop.eup %8144  ;;  %8148 = vpow2.f32 %v7452_v46  ;;  %v15132_v3 = vld [vmem:[#allocation96_spill] sm:$0xff] }
 0x2f9   :  { %v10725_v29 = vadd.f32 %v15132_v3, %v15131_v43  ;;  %2188 = vmatpush.bf16.msrb.mxu0 %v7159_v36  ;;  %2277 = vmatpush.bf16.msrb.mxu1 %v7287_v21  ;;  %v15133_v53 = vld [vmem:[#allocation59_spill] sm:$0xff]  ;;  %v7147_v47 = vor.u32 %v7857_v23, %v7144_v31  ;;  %8150 = vpow2.f32 %v7453_v15  ;;  %v15134_v5 = vld [vmem:[#allocation62_spill] sm:$0xff]  ;;  %v7275_v57 = vor.u32 %v7889_v2, %v7272_v27  ;;  %v15146_v3 = vld [vmem:[#allocation64_spill] sm:$0xff] }
 0x2fa   :  { %v5119_v62 = vmul.f32 %v15133_v53, %v1938_v6  ;;  %v8147_v9 = vpop.eup %8146  ;;  %v5120_v28 = vmul.f32 %v15134_v5, %v2116_v19  ;;  %v15135_v35 = vld [vmem:[#allocation63_spill] sm:$0xff]  ;;  %v15136_v33 = vand.u32 2147483647, %v10481_v38  ;;  %v15140_v60 = vld [vmem:[#allocation98_spill] sm:$0xff]  ;;  %v7143_v21 = vor.u32 %v7859_v55, %v7142_v63  ;;  %v2029_v15 = vpop.f32.mrf.mxu2  ;;  %v15151_v38 = vld [vmem:[#allocation65_spill] sm:$0xff] }
 0x2fb   :  { %v5123_v7 = vmul.f32 %v15135_v35, %v1941_v49  ;;  %v15139_v12 = vld [vmem:[#allocation95_spill] sm:$0xff]  ;;  %v7271_v6 = vor.u32 %v7891_v0, %v7270_v54  ;;  %v10740_v31 = vpack.c.bf16 %v5111_v58, %v5107_v18  ;;  %v4095_v23 = vand.u32 2147483647, %v10558_v40  ;;  %v2118_v48 = vpop.f32.mrf.mxu3 }
 0x2fc   :  { %vm10732_vm10 = vcmp.eq.f32.partialorder %v15136_v33, 8.507059e+37  ;;  %v10738_v36 = vadd.f32 %v15140_v60, %v15139_v12  ;;  %2367 = vmatpush.bf16.msrb.mxu2 %v7147_v47  ;;  %2456 = vmatpush.bf16.msrb.mxu3 %v7275_v57  ;;  %v10743_v2 = vpack.c.bf16 %v5112_v61, %v5108_v30  ;;  %v10745_v27 = vpack.c.bf16 %v5119_v62, %v5115_v51  ;;  %v15147_v47 = vld [vmem:[#allocation49_spill] sm:$0xff] }
 0x2fd   :  { %15141 = vst [vmem:[#allocation93_spill] sm:$0xff] %v10740_v31  ;;  %v10747_v19 = vpack.c.bf16 %v5120_v28, %v5116_v16  ;;  %v4075_v49 = vadd.f32 %v10554_v24, %v10676_v34  ;;  %v4088_v63 = vsub.f32 1.0, %v10693_v50  ;;  %v10752_v0 = vadd.f32 1.0, %v8147_v9  ;;  %2189 = vmatpush.bf16.msrb.mxu0 %v7143_v21  ;;  %2278 = vmatpush.bf16.msrb.mxu1 %v7271_v6  ;;  %v1942_v50 = vpop.f32.mrf.mxu1 }
 0x2fe   :  { %15142 = vst [vmem:[#allocation90_spill] sm:$0xff] %v10743_v2  ;;  %v2119_v58 = vadd.f32 %v2118_v48, %v2029_v15  ;;  %vm4091_vm11 = vweird.f32 %v10558_v40  ;;  %v15145_v18 = vand.u32 2147483648, %v10558_v40  ;;  %v4133_v61 = vsub.f32 1.0, %v10707_v8  ;;  %v1853_v16 = vpop.f32.mrf.mxu0  ;;  %v8149_v55 = vpop.eup %8148  ;;  %v15148_v8 = vld [vmem:[#allocation51_spill] sm:$0xff] }
 0x2ff   :  { %15143 = vst [vmem:[#allocation91_spill] sm:$0xff] %v10745_v27  ;;  %v4147_v51 = vmul.f32 %v10715_v42, %v10646_v22  ;;  %v7456_v34 = vmul.f32 -1.442695, %v10725_v29  ;;  %v4192_v54 = vmul.f32 %v10721_v41, %v10658_v39  ;;  %v7457_v43 = vmul.f32 -1.442695, %v10738_v36  ;;  %v8151_v9 = vpop.eup %8150  ;;  %2073 = vmatmul.bf16.gmra.mxu2 %v15147_v47 }
 0x300   :  { %15144 = vst [vmem:[#allocation47_spill] sm:$0xff] %v10747_v19  ;;  %v10757_v30 = vor.u32 1.1754944e-38, %v15145_v18  ;;  %v10767_v53 = vmul.f32 %v15146_v3, %v2119_v58  ;;  %v1943_v62 = vadd.f32 %v1942_v50, %v1853_v16  ;;  %1895 = vmatmul.bf16.gmra.mxu0 %v15147_v47  ;;  %1984 = vmatmul.bf16.gmra.mxu1 %v15148_v8  ;;  %vm4136_vm13 = vweird.f32 %v10588_v1 }
 0x301   :  { %v4140_v28 = vand.u32 2147483647, %v10588_v1  ;;  %v4142_v35 = vand.u32 2147483648, %v10588_v1  ;;  %v4155_v57 = vand.u32 2147483647, %v10646_v22  ;;  %v4079_v33 = vsel %vm10775_vm12, %v10554_v24, %v4075_v49 }
 0x302   :  { %v4089_v12 = vmul.f32 %v10662_v11, %v4088_v63  ;;  %8152 = vrcp.f32 %v10752_v0  ;;  %v5127_v60 = vmul.f32 %v15151_v38, %v1943_v62  ;;  %2162 = vmatmul.bf16.gmra.mxu3 %v15148_v8  ;;  %v4134_v21 = vmul.f32 %v10681_v10, %v4133_v61  ;;  %v7614_v8 = vld [vmem:[#allocation9 + $0xe0] sm:$0xf] }
 0x303   :  { %v4148_v6 = vsub.f32 1.0, %v4147_v51  ;;  %v4157_v15 = vand.u32 2147483648, %v10646_v22  ;;  %8154 = vpow2.f32 %v7456_v34  ;;  %v4193_v48 = vsub.f32 1.0, %v4192_v54  ;;  %v2120_v34 = vpop.f32.mrf.mxu3 }
 0x304   :  { %v10793_v58 = vadd.f32 1.0, %v8149_v55  ;;  %8156 = vpow2.f32 %v7457_v43  ;;  %v10795_v24 = vpack.c.bf16 %v5127_v60, %v5123_v7  ;;  %v4084_v49 = vsel %vm10732_vm10, %v10656_v44, %v4079_v33  ;;  %v2031_v7 = vpop.f32.mrf.mxu2  ;;  %v15157_v44 = vld [vmem:[#allocation102_spill] sm:$0xff] }
 0x305   :  { %vm4092_vm14 = vweird.f32 %v10662_v11  ;;  %vm10801_vm15 = vcmp.eq.f32.partialorder %v4095_v23, 8.507059e+37  ;;  %vm10805_vm0 = vcmp.eq.f32.partialorder %v4140_v28, 8.507059e+37  ;;  %v4143_v61 = vor.u32 1.1754944e-38, %v4142_v35  ;;  %v1945_v3 = vpop.f32.mrf.mxu1  ;;  %v15160_v28 = vld [vmem:[#allocation68_spill] sm:$0xff] }
 0x306   :  { %15152 = vst [vmem:[#allocation48_spill] sm:$0xff] %v10795_v24  ;;  %vm4151_vm1 = vweird.f32 %v10646_v22  ;;  %v10810_v51 = vadd.f32 1.0, %v8151_v9  ;;  %v4090_v46 = vadd.f32 %v10662_v11, %v4089_v12  ;;  %vm4137_vm2 = vweird.f32 %v10681_v10  ;;  %v1856_v43 = vpop.f32.mrf.mxu0  ;;  %vm10826_vm4 = vmor %vm4091_vm11, %vm4092_vm14  ;;  %v7887_v22 = vld [vmem:[#allocation8 + $0x114] sm:$0xf0] }
 0x307   :  { %v7460_v23 = vmul.f32 -1.442695, %v15157_v44  ;;  %v2121_v16 = vadd.f32 %v2120_v34, %v2031_v7  ;;  %v4135_v50 = vadd.f32 %v10681_v10, %v4134_v21  ;;  %v4149_v55 = vmul.f32 %v10715_v42, %v4148_v6  ;;  %vm10837_vm5 = vmor %vm4136_vm13, %vm4137_vm2  ;;  %v7853_v7 = vld [vmem:[#allocation8 + $0xc] sm:$0xf] }
 0x308   :  { %v10817_v54 = vor.u32 1.1754944e-38, %v4157_v15  ;;  %vm4196_vm3 = vweird.f32 %v10658_v39  ;;  %v10820_v62 = vpop.eup %8152  ;;  %v4194_v5 = vmul.f32 %v10721_v41, %v4193_v48  ;;  %8158 = vrcp.f32 %v10793_v58  ;;  %v15165_v15 = vld [vmem:[#allocation76_spill] sm:$0xff]  ;;  %v7885_v34 = vld [vmem:[#allocation8 + $0x10c] sm:$0xf] }
 0x309   :  { %v5128_v35 = vmul.f32 %v15160_v28, %v2121_v16  ;;  %v1946_v33 = vadd.f32 %v1945_v3, %v1856_v43  ;;  %v8155_v12 = vpop.eup %8154  ;;  %vm4152_vm6 = vweird.f32 %v10715_v42  ;;  %vm10842_vm7 = vcmp.eq.f32.partialorder %v4155_v57, 8.507059e+37  ;;  %v7128_v57 = vld [vmem:[#allocation8 + $0x18] sm:$0xf0] }
 0x30a   :  { %v4200_v60 = vand.u32 2147483647, %v10658_v39  ;;  %v4202_v21 = vand.u32 2147483648, %v10658_v39  ;;  %8160 = vrcp.f32 %v10810_v51  ;;  %v8157_v6 = vpop.eup %8156  ;;  %v4094_v1 = vsel %vm10826_vm4, %v10662_v11, %v4090_v46  ;;  %v7256_v46 = vld [vmem:[#allocation8 + $0x118] sm:$0xf0]  ;;  %vm10888_vm10 = vmor %vm4151_vm1, %vm4152_vm6 }
 0x30b   :  { %8162 = vpow2.f32 %v7460_v23  ;;  %v10853_v48 = vmul.f32 %v15165_v15, %v1946_v33  ;;  %v10856_v16 = vpack.c.bf16 %v5128_v35, %v10767_v53  ;;  %v4139_v43 = vsel %vm10837_vm5, %v10681_v10, %v4135_v50  ;;  %v2123_v38 = vpop.f32.mrf.mxu3  ;;  %v15197_v35 = vld [vmem:[#allocation72_spill] sm:$0xff] }
 0x30c   :  { %v4150_v3 = vadd.f32 %v10715_v42, %v4149_v55  ;;  %v4207_v9 = vmul.f32 %v10820_v62, %v10752_v0  ;;  %v7131_v11 = vor.u32 %v7853_v7, %v7128_v57  ;;  %v4195_v23 = vadd.f32 %v10721_v41, %v4194_v5  ;;  %v2034_v55 = vpop.f32.mrf.mxu2 }
 0x30d   :  { %15166 = vst [vmem:[#allocation50_spill] sm:$0xff] %v10856_v16  ;;  %vm4197_vm8 = vweird.f32 %v10721_v41  ;;  %v10866_v28 = vadd.f32 1.0, %v8155_v12  ;;  %v7259_v33 = vor.u32 %v7885_v34, %v7256_v46  ;;  %v10869_v53 = vmul.f32 %v4084_v49, %v10295_v52  ;;  %v15171_v12 = vld [vmem:[#allocation104_spill] sm:$0xff]  ;;  %v1947_v7 = vpop.f32.mrf.mxu1  ;;  %v7855_v46 = vld [vmem:[#allocation8 + $0x14] sm:$0xf0]  ;;  %v15178_v49 = vld [vmem:[#allocation101_spill] sm:$0xff] }
 0x30e   :  { %vm10871_vm9 = vcmp.eq.f32.partialorder %v4200_v60, 8.507059e+37  ;;  %v4203_v10 = vor.u32 1.1754944e-38, %v4202_v21  ;;  %v10875_v50 = vadd.f32 1.0, %v8157_v6  ;;  %2368 = vmatpush.bf16.msrb.mxu2 %v7131_v11  ;;  %v10877_v15 = vpop.eup %8158  ;;  %v4099_v5 = vsel %vm10801_vm15, %v10757_v30, %v4094_v1  ;;  %vm10902_vm11 = vmor %vm4196_vm3, %vm4197_vm8  ;;  %v1858_v1 = vpop.f32.mrf.mxu0  ;;  %v15174_v34 = vld [vmem:[#allocation172_spill] sm:$0xff]  ;;  %v15176_v11 = vld [vmem:[#allocation61_spill] sm:$0xff] }
 0x30f   :  { %v4144_v52 = vsel %vm10805_vm0, %v4143_v61, %v4139_v43  ;;  %v7461_v60 = vmul.f32 -1.442695, %v15171_v12  ;;  %v2124_v21 = vadd.f32 %v2123_v38, %v2034_v55  ;;  %2457 = vmatpush.bf16.msrb.mxu3 %v7259_v33  ;;  %v4154_v30 = vsel %vm10888_vm10, %v10715_v42, %v4150_v3  ;;  %v15175_v3 = vld [vmem:[#allocation60_spill] sm:$0xff]  ;;  %v7254_v33 = vld [vmem:[#allocation8 + $0x108] sm:$0xf]  ;;  %v15177_v38 = vld [vmem:[#allocation99_spill] sm:$0xff] }
 0x310   :  { %v10893_v6 = vpop.eup %8160  ;;  %v4208_v63 = vsub.f32 1.0, %v4207_v9  ;;  %v4215_v18 = vand.u32 2147483647, %v10752_v0  ;;  %v4217_v61 = vand.u32 2147483648, %v10752_v0  ;;  %v4199_v42 = vsel %vm10902_vm11, %v10721_v41, %v4195_v23  ;;  %1900 = vmatmul.bf16.gmra.mxu0 %v15175_v3  ;;  %1989 = vmatmul.bf16.gmra.mxu1 %v15176_v11  ;;  %v7126_v9 = vld [vmem:[#allocation8 + $0x8] sm:$0xf] }
 0x311   :  { %v8163_v57 = vpop.eup %8162  ;;  %8164 = vrcp.f32 %v10866_v28  ;;  %v5132_v39 = vmul.f32 %v15174_v34, %v2124_v21  ;;  %v1948_v43 = vadd.f32 %v1947_v7, %v1858_v1  ;;  %v4252_v55 = vmul.f32 %v10877_v15, %v10793_v58  ;;  %v15179_v1 = vld [vmem:[#allocation173_spill] sm:$0xff]  ;;  %2078 = vmatmul.bf16.gmra.mxu2 %v15175_v3 }
 0x312   :  { %8166 = vrcp.f32 %v10875_v50  ;;  %v10920_v41 = vadd.f32 %v15178_v49, %v15177_v38  ;;  %v7127_v23 = vor.u32 %v7855_v46, %v7126_v9  ;;  %v4159_v21 = vsel %vm10842_vm7, %v10817_v54, %v4154_v30  ;;  %2167 = vmatmul.bf16.gmra.mxu3 %v15176_v11  ;;  %v15183_v38 = vld [vmem:[#allocation105_spill] sm:$0xff] }
 0x313   :  { %8168 = vpow2.f32 %v7461_v60  ;;  %v5135_v7 = vmul.f32 %v15179_v1, %v1948_v43  ;;  %v7255_v34 = vor.u32 %v7887_v22, %v7254_v33  ;;  %v10929_v16 = vmul.f32 %v4099_v5, %v10399_v13  ;;  %v7929_v3 = vld [vmem:[#allocation9 + $0x64] sm:$0xf0] }
 0x314   :  { %vm4211_vm12 = vweird.f32 %v10752_v0  ;;  %v4267_v9 = vmul.f32 %v10893_v6, %v10810_v51  ;;  %v10934_v46 = vadd.f32 1.0, %v8163_v57  ;;  %2190 = vmatpush.bf16.msrb.mxu0 %v7127_v23  ;;  %v10937_v54 = vmul.f32 %v4144_v52, %v15083_v59  ;;  %v2036_v33 = vpop.f32.mrf.mxu2  ;;  %v2125_v59 = vpop.f32.mrf.mxu3 }
 0x315   :  { %v4204_v40 = vsel %vm10871_vm9, %v4203_v10, %v4199_v42  ;;  %v4209_v60 = vmul.f32 %v10820_v62, %v4208_v63  ;;  %2279 = vmatpush.bf16.msrb.mxu1 %v7255_v34  ;;  %v10943_v13 = vpack.c.bf16 %v5135_v7, %v10853_v48  ;;  %v10946_v5 = vmul.f32 %v4159_v21, %v15092_v4  ;;  %v1950_v22 = vpop.f32.mrf.mxu1 }
 0x316   :  { %v4253_v30 = vsub.f32 1.0, %v4252_v55  ;;  %v4262_v57 = vand.u32 2147483648, %v10793_v58  ;;  %v7464_v43 = vmul.f32 -1.442695, %v10920_v41  ;;  %vm10952_vm13 = vcmp.eq.f32.partialorder %v4215_v18, 8.507059e+37  ;;  %v1861_v23 = vpop.f32.mrf.mxu0 }
 0x317   :  { %15180 = vst [vmem:[#allocation97_spill] sm:$0xff] %v10943_v13  ;;  %v10950_v52 = vpop.eup %8164  ;;  %v4218_v10 = vor.u32 1.1754944e-38, %v4217_v61  ;;  %v4260_v48 = vand.u32 2147483647, %v10793_v58  ;;  %v2126_v63 = vadd.f32 %v2125_v59, %v2036_v33  ;;  %v10960_v4 = vmul.f32 %v4204_v40, %v10494_v25  ;;  %v15184_v61 = vld [vmem:[#allocation75_spill] sm:$0xff]  ;;  %v15185_v33 = vld [vmem:[#allocation106_spill] sm:$0xff] }
 0x318   :  { %v10957_v42 = vpop.eup %8166  ;;  %v4268_v55 = vsub.f32 1.0, %v4267_v9  ;;  %8170 = vrcp.f32 %v10934_v46  ;;  %v7465_v49 = vmul.f32 -1.442695, %v15183_v38  ;;  %v4210_v21 = vadd.f32 %v10820_v62, %v4209_v60  ;;  %v15186_v60 = vld [vmem:[#allocation81_spill] sm:$0xff] }
 0x319   :  { %v8169_v18 = vpop.eup %8168  ;;  %vm4212_vm14 = vweird.f32 %v10820_v62  ;;  %vm4256_vm15 = vweird.f32 %v10793_v58  ;;  %v5136_v1 = vmul.f32 %v15184_v61, %v2126_v63  ;;  %v1951_v7 = vadd.f32 %v1950_v22, %v1861_v23  ;;  %v15192_v22 = vld [vmem:[#allocation108_spill] sm:$0xff]  ;;  %v15200_v58 = vld [vmem:[#allocation78_spill] sm:$0xff] }
 0x31a   :  { %v4254_v25 = vmul.f32 %v10877_v15, %v4253_v30  ;;  %v10969_v34 = vor.u32 1.1754944e-38, %v4262_v57  ;;  %v4275_v9 = vand.u32 2147483647, %v10810_v51  ;;  %8172 = vpow2.f32 %v7464_v43  ;;  %vm10980_vm0 = vmor %vm4211_vm12, %vm4212_vm14 }
 0x31b   :  { %v4312_v40 = vmul.f32 %v10950_v52, %v10866_v28  ;;  %v7468_v59 = vmul.f32 -1.442695, %v15185_v33  ;;  %v5139_v13 = vmul.f32 %v15186_v60, %v1951_v7  ;;  %v10976_v24 = vpack.c.bf16 %v5136_v1, %v5132_v39 }
 0x31c   :  { %v4269_v30 = vmul.f32 %v10893_v6, %v4268_v55  ;;  %v4327_v57 = vmul.f32 %v10957_v42, %v10875_v50  ;;  %v10987_v43 = vadd.f32 1.0, %v8169_v18  ;;  %8174 = vpow2.f32 %v7465_v49  ;;  %v2128_v18 = vpop.f32.mrf.mxu3 }
 0x31d   :  { %15187 = vst [vmem:[#allocation100_spill] sm:$0xff] %v10976_v24  ;;  %v4214_v23 = vsel %vm10980_vm0, %v10820_v62, %v4210_v21  ;;  %vm10992_vm1 = vcmp.eq.f32.partialorder %v4260_v48, 8.507059e+37  ;;  %vm4271_vm2 = vweird.f32 %v10810_v51  ;;  %v4277_v0 = vand.u32 2147483648, %v10810_v51  ;;  %v2039_v48 = vpop.f32.mrf.mxu2  ;;  %v1952_v31 = vpop.f32.mrf.mxu1 }
 0x31e   :  { %v7469_v55 = vmul.f32 -1.442695, %v15192_v22  ;;  %v10999_v61 = vpop.eup %8170  ;;  %vm4257_vm3 = vweird.f32 %v10877_v15  ;;  %vm4272_vm4 = vweird.f32 %v10893_v6  ;;  %v4320_v49 = vand.u32 2147483647, %v10866_v28  ;;  %v1863_v2 = vpop.f32.mrf.mxu0 }
 0x31f   :  { %v4322_v62 = vand.u32 2147483648, %v10866_v28  ;;  %v4255_v21 = vadd.f32 %v10877_v15, %v4254_v25  ;;  %vm11006_vm5 = vcmp.eq.f32.partialorder %v4275_v9, 8.507059e+37  ;;  %v4313_v7 = vsub.f32 1.0, %v4312_v40  ;;  %v15195_v9 = vld [vmem:[#allocation77_spill] sm:$0xff]  ;;  %vm11024_vm7 = vmor %vm4256_vm15, %vm4257_vm3 }
 0x320   :  { %8176 = vpow2.f32 %v7468_v59  ;;  %v2129_v60 = vadd.f32 %v2128_v18, %v2039_v48  ;;  %v8173_v63 = vpop.eup %8172  ;;  %v4219_v24 = vsel %vm10952_vm13, %v4218_v10, %v4214_v23  ;;  %v4270_v19 = vadd.f32 %v10893_v6, %v4269_v30  ;;  %v15196_v48 = vld [vmem:[#allocation66_spill] sm:$0xff]  ;;  %1994 = vmatmul.bf16.gmra.mxu1 %v15197_v35  ;;  %vm11048_vm8 = vmor %vm4271_vm2, %vm4272_vm4 }
 0x321   :  { %v4328_v27 = vsub.f32 1.0, %v4327_v57  ;;  %8178 = vrcp.f32 %v10987_v43  ;;  %vm4316_vm6 = vweird.f32 %v10866_v28  ;;  %v4372_v25 = vmul.f32 %v10999_v61, %v10934_v46  ;;  %1905 = vmatmul.bf16.gmra.mxu0 %v15196_v48  ;;  %2083 = vmatmul.bf16.gmra.mxu2 %v15196_v48 }
 0x322   :  { %8180 = vpow2.f32 %v7469_v55  ;;  %v5140_v40 = vmul.f32 %v15195_v9, %v2129_v60  ;;  %v1953_v59 = vadd.f32 %v1952_v31, %v1863_v2  ;;  %v8175_v10 = vpop.eup %8174  ;;  %v4278_v57 = vor.u32 1.1754944e-38, %v4277_v0  ;;  %2172 = vmatmul.bf16.gmra.mxu3 %v15197_v35 }
 0x323   :  { %v11028_v23 = vor.u32 1.1754944e-38, %v4322_v62  ;;  %v4335_v55 = vand.u32 2147483647, %v10875_v50  ;;  %v4337_v31 = vand.u32 2147483648, %v10875_v50  ;;  %v4259_v2 = vsel %vm11024_vm7, %v10877_v15, %v4255_v21 }
 0x324   :  { %v4314_v18 = vmul.f32 %v10950_v52, %v4313_v7  ;;  %v11036_v60 = vadd.f32 1.0, %v8173_v63  ;;  %v5143_v9 = vmul.f32 %v15200_v58, %v1953_v59  ;;  %v11042_v0 = vmul.f32 %v4219_v24, %v10635_v37 }
 0x325   :  { %vm4317_vm9 = vweird.f32 %v10950_v52  ;;  %v4329_v15 = vmul.f32 %v10957_v42, %v4328_v27  ;;  %vm4331_vm10 = vweird.f32 %v10875_v50  ;;  %v4274_v37 = vsel %vm11048_vm8, %v10893_v6, %v4270_v19  ;;  %v2041_v6 = vpop.f32.mrf.mxu2  ;;  %v1955_v35 = vpop.f32.mrf.mxu1 }
 0x326   :  { %v8177_v21 = vpop.eup %8176  ;;  %vm11058_vm11 = vcmp.eq.f32.partialorder %v4320_v49, 8.507059e+37  ;;  %v4373_v51 = vsub.f32 1.0, %v4372_v25  ;;  %v11062_v7 = vadd.f32 1.0, %v8175_v10  ;;  %v11064_v63 = vpack.c.bf16 %v5143_v9, %v5139_v13  ;;  %v2130_v49 = vpop.f32.mrf.mxu3  ;;  %v15209_v9 = vld [vmem:[#allocation107_spill] sm:$0xff]  ;;  %vm11096_vm14 = vmor %vm4316_vm6, %vm4317_vm9 }
 0x327   :  { %v11066_v59 = vpop.eup %8178  ;;  %v4264_v27 = vsel %vm10992_vm1, %v10969_v34, %v4259_v2  ;;  %v4338_v30 = vor.u32 1.1754944e-38, %v4337_v31  ;;  %v4380_v58 = vand.u32 2147483647, %v10934_v46  ;;  %v4382_v19 = vand.u32 2147483648, %v10934_v46  ;;  %v15208_v2 = vld [vmem:[#allocation103_spill] sm:$0xff] }
 0x328   :  { %15205 = vst [vmem:[#allocation52_spill] sm:$0xff] %v11064_v63  ;;  %v8181_v62 = vpop.eup %8180  ;;  %v4315_v25 = vadd.f32 %v10950_v52, %v4314_v18  ;;  %vm4332_vm12 = vweird.f32 %v10957_v42  ;;  %vm11075_vm13 = vcmp.eq.f32.partialorder %v4335_v55, 8.507059e+37  ;;  %8182 = vrcp.f32 %v11036_v60  ;;  %v1866_v18 = vpop.f32.mrf.mxu0 }
 0x329   :  { %v2131_v39 = vadd.f32 %v2130_v49, %v2041_v6  ;;  %v4279_v34 = vsel %vm11006_vm5, %v4278_v57, %v4274_v37  ;;  %v4330_v10 = vadd.f32 %v10957_v42, %v4329_v15  ;;  %v11083_v31 = vadd.f32 1.0, %v8177_v21  ;;  %v7750_v49 = vld [vmem:[#allocation9 + $0x1f0] sm:$0xf]  ;;  %vm11129_vm1 = vmor %vm4331_vm10, %vm4332_vm12 }
 0x32a   :  { %v11087_v63 = vadd.f32 %v15209_v9, %v15208_v2  ;;  %v4374_v55 = vmul.f32 %v10999_v61, %v4373_v51  ;;  %8184 = vrcp.f32 %v11062_v7  ;;  %v1956_v6 = vadd.f32 %v1955_v35, %v1866_v18  ;;  %v7686_v51 = vld [vmem:[#allocation9 + $0x170] sm:$0xf]  ;;  %v15217_v2 = vld [vmem:[#allocation109_spill] sm:$0xff] }
 0x32b   :  { %v5144_v48 = vmul.f32 %v10303_v45, %v2131_v39  ;;  %vm4376_vm15 = vweird.f32 %v10934_v46  ;;  %v11101_v57 = vor.u32 1.1754944e-38, %v4382_v19  ;;  %v4387_v15 = vmul.f32 %v11066_v59, %v10987_v43  ;;  %v7963_v19 = vld [vmem:[#allocation9 + $0x174] sm:$0xf0] }
 0x32c   :  { %v11105_v21 = vadd.f32 1.0, %v8181_v62  ;;  %v11108_v45 = vmul.f32 %v4264_v27, %v15125_v26  ;;  %v4319_v28 = vsel %vm11096_vm14, %v10950_v52, %v4315_v25  ;;  %vm11113_vm0 = vcmp.eq.f32.partialorder %v4380_v58, 8.507059e+37  ;;  %v7979_v27 = vld [vmem:[#allocation9 + $0x1f4] sm:$0xf0] }
 0x32d   :  { %v11118_v37 = vmul.f32 %v10404_v32, %v1956_v6  ;;  %v11120_v39 = vpack.c.bf16 %v5144_v48, %v5140_v40  ;;  %v11123_v62 = vmul.f32 %v4279_v34, %v15126_v56  ;;  %8186 = vrcp.f32 %v11083_v31  ;;  %v2044_v18 = vpop.f32.mrf.mxu2  ;;  %v15221_v26 = vld [vmem:[#allocation79_spill] sm:$0xff] }
 0x32e   :  { %v7472_v32 = vmul.f32 -1.442695, %v11087_v63  ;;  %v7687_v52 = vor.u32 %v7963_v19, %v7686_v51  ;;  %v11135_v58 = vpop.eup %8182  ;;  %v4334_v56 = vsel %vm11129_vm1, %v10957_v42, %v4330_v10  ;;  %v4375_v40 = vadd.f32 %v10999_v61, %v4374_v55  ;;  %v2133_v6 = vpop.f32.mrf.mxu3  ;;  %v15218_v10 = vld [vmem:[#allocation110_spill] sm:$0xff] }
 0x32f   :  { %15214 = vst [vmem:[#allocation58_spill] sm:$0xff] %v11120_v39  ;;  %vm4377_vm2 = vweird.f32 %v10999_v61  ;;  %v7751_v50 = vor.u32 %v7979_v27, %v7750_v49  ;;  %v4324_v48 = vsel %vm11058_vm11, %v11028_v23, %v4319_v28  ;;  %v4388_v25 = vsub.f32 1.0, %v4387_v15  ;;  %v1957_v49 = vpop.f32.mrf.mxu1  ;;  %v7558_v27 = vld [vmem:[#allocation9 + $0x70] sm:$0xf] }
 0x330   :  { %v4395_v34 = vand.u32 2147483647, %v10987_v43  ;;  %v7473_v9 = vmul.f32 -1.442695, %v15217_v2  ;;  %5917 = vmatpush.bf16.msra.mxu2 %v7687_v52  ;;  %v11147_v1 = vpop.eup %8184  ;;  %v4397_v42 = vand.u32 2147483648, %v10987_v43  ;;  %8188 = vrcp.f32 %v11105_v21  ;;  %vm11158_vm3 = vmor %vm4376_vm15, %vm4377_vm2  ;;  %v1868_v19 = vpop.f32.mrf.mxu0  ;;  %v15222_v52 = vld [vmem:[#allocation80_spill] sm:$0xff] }
 0x331   :  { %v7476_v55 = vmul.f32 -1.442695, %v15218_v10  ;;  %v2134_v51 = vadd.f32 %v2133_v6, %v2044_v18  ;;  %6006 = vmatpush.bf16.msra.mxu3 %v7751_v50  ;;  %v4339_v23 = vsel %vm11075_vm13, %v4338_v30, %v4334_v56  ;;  %v4432_v15 = vmul.f32 %v11135_v58, %v11036_v60  ;;  %1910 = vmatmul.bf16.gmra.mxu0 %v15221_v26  ;;  %v7931_v56 = vld [vmem:[#allocation9 + $0x74] sm:$0xf0]  ;;  %v7622_v50 = vld [vmem:[#allocation9 + $0xf0] sm:$0xf] }
 0x332   :  { %v4442_v28 = vand.u32 2147483648, %v11036_v60  ;;  %8190 = vpow2.f32 %v7472_v32  ;;  %v4379_v30 = vsel %vm11158_vm3, %v10999_v61, %v4375_v40  ;;  %v1958_v46 = vadd.f32 %v1957_v49, %v1868_v19  ;;  %1999 = vmatmul.bf16.gmra.mxu1 %v15222_v52  ;;  %v7947_v40 = vld [vmem:[#allocation9 + $0xf4] sm:$0xf0]  ;;  %2088 = vmatmul.bf16.gmra.mxu2 %v15221_v26 }
 0x333   :  { %v11169_v13 = vmul.f32 %v10427_v14, %v2134_v51  ;;  %v11173_v18 = vpop.eup %8186  ;;  %v4389_v32 = vmul.f32 %v11066_v59, %v4388_v25  ;;  %v4447_v6 = vmul.f32 %v11147_v1, %v11062_v7  ;;  %8192 = vpow2.f32 %v7473_v9  ;;  %2177 = vmatmul.bf16.gmra.mxu3 %v15222_v52 }
 0x334   :  { %v7559_v61 = vor.u32 %v7931_v56, %v7558_v27  ;;  %v11179_v14 = vmul.f32 %v4324_v48, %v10725_v29  ;;  %8194 = vpow2.f32 %v7476_v55  ;;  %v5151_v51 = vmul.f32 %v10446_v20, %v1958_v46  ;;  %v15226_v27 = vld [vmem:[#allocation111_spill] sm:$0xff] }
 0x335   :  { %v7623_v24 = vor.u32 %v7947_v40, %v7622_v50  ;;  %v4384_v25 = vsel %vm11113_vm0, %v11101_v57, %v4379_v30  ;;  %vm4391_vm4 = vweird.f32 %v10987_v43  ;;  %v4398_v9 = vor.u32 1.1754944e-38, %v4397_v42  ;;  %v15227_v40 = vld [vmem:[#allocation112_spill] sm:$0xff] }
 0x336   :  { %v4433_v19 = vsub.f32 1.0, %v4432_v15  ;;  %5739 = vmatpush.bf16.msra.mxu0 %v7559_v61  ;;  %v11188_v49 = vpop.eup %8188  ;;  %v11191_v29 = vmul.f32 %v4339_v23, %v10738_v36  ;;  %vm11193_vm5 = vcmp.eq.f32.partialorder %v4395_v34, 8.507059e+37  ;;  %v4440_v48 = vand.u32 2147483647, %v11036_v60  ;;  %v2046_v23 = vpop.f32.mrf.mxu2 }
 0x337   :  { %v4492_v35 = vmul.f32 %v11173_v18, %v11083_v31  ;;  %5828 = vmatpush.bf16.msra.mxu1 %v7623_v24  ;;  %v11201_v57 = vpack.c.bf16 %v5151_v51, %v11118_v37  ;;  %v4390_v55 = vadd.f32 %v11066_v59, %v4389_v32  ;;  %vm4392_vm6 = vweird.f32 %v11066_v59  ;;  %v2135_v15 = vpop.f32.mrf.mxu3  ;;  %v1960_v24 = vpop.f32.mrf.mxu1 }
 0x338   :  { %v8191_v42 = vpop.eup %8190  ;;  %vm4436_vm7 = vweird.f32 %v11036_v60  ;;  %v11206_v36 = vor.u32 1.1754944e-38, %v4442_v28  ;;  %v4448_v34 = vsub.f32 1.0, %v4447_v6  ;;  %v11209_v30 = vmul.f32 %v4384_v25, %v15157_v44  ;;  %v1871_v51 = vpop.f32.mrf.mxu0  ;;  %vm11222_vm8 = vmor %vm4391_vm4, %vm4392_vm6 }
 0x339   :  { %15225 = vst [vmem:[#allocation54_spill] sm:$0xff] %v11201_v57  ;;  %v4455_v46 = vand.u32 2147483647, %v11062_v7  ;;  %v7477_v37 = vmul.f32 -1.442695, %v15226_v27  ;;  %v2136_v56 = vadd.f32 %v2135_v15, %v2046_v23  ;;  %v8193_v50 = vpop.eup %8192  ;;  %v4434_v32 = vmul.f32 %v11135_v58, %v4433_v19  ;;  %v15230_v23 = vld [vmem:[#allocation85_spill] sm:$0xff] }
 0x33a   :  { %v4457_v61 = vand.u32 2147483648, %v11062_v7  ;;  %v4507_v28 = vmul.f32 %v11188_v49, %v11105_v21  ;;  %v7480_v6 = vmul.f32 -1.442695, %v15227_v40  ;;  %v8195_v57 = vpop.eup %8194  ;;  %v4493_v25 = vsub.f32 1.0, %v4492_v35  ;;  %v15233_v35 = vld [vmem:[#allocation113_spill] sm:$0xff] }
 0x33b   :  { %v11226_v19 = vadd.f32 1.0, %v8191_v42  ;;  %v5152_v15 = vmul.f32 %v15230_v23, %v2136_v56  ;;  %v1961_v39 = vadd.f32 %v1960_v24, %v1871_v51  ;;  %v4394_v52 = vsel %vm11222_vm8, %v11066_v59, %v4390_v55  ;;  %v15234_v56 = vld [vmem:[#allocation164_spill] sm:$0xff] }
 0x33c   :  { %vm4437_vm9 = vweird.f32 %v11135_v58  ;;  %vm11233_vm10 = vcmp.eq.f32.partialorder %v4440_v48, 8.507059e+37  ;;  %v4449_v43 = vmul.f32 %v11147_v1, %v4448_v34  ;;  %vm4451_vm11 = vweird.f32 %v11062_v7 }
 0x33d   :  { %v7481_v42 = vmul.f32 -1.442695, %v15233_v35  ;;  %v11240_v11 = vadd.f32 1.0, %v8193_v50  ;;  %8196 = vpow2.f32 %v7477_v37  ;;  %v5155_v51 = vmul.f32 %v15234_v56, %v1961_v39  ;;  %v15236_v50 = vld [vmem:[#allocation114_spill] sm:$0xff]  ;;  %vm11265_vm14 = vmor %vm4436_vm7, %vm4437_vm9 }
 0x33e   :  { %v11244_v24 = vpack.c.bf16 %v5152_v15, %v11169_v13  ;;  %v4435_v59 = vadd.f32 %v11135_v58, %v4434_v32  ;;  %v4508_v48 = vsub.f32 1.0, %v4507_v28  ;;  %v11247_v55 = vadd.f32 1.0, %v8195_v57  ;;  %v2049_v37 = vpop.f32.mrf.mxu2 }
 0x33f   :  { %8198 = vpow2.f32 %v7480_v6  ;;  %v4494_v34 = vmul.f32 %v11173_v18, %v4493_v25  ;;  %v4500_v44 = vand.u32 2147483647, %v11083_v31  ;;  %v7484_v23 = vmul.f32 -1.442695, %v15236_v50  ;;  %v2138_v32 = vpop.f32.mrf.mxu3  ;;  %v1962_v25 = vpop.f32.mrf.mxu1 }
 0x340   :  { %15235 = vst [vmem:[#allocation167_spill] sm:$0xff] %v11244_v24  ;;  %8200 = vrcp.f32 %v11226_v19  ;;  %v4399_v39 = vsel %vm11193_vm5, %v4398_v9, %v4394_v52  ;;  %vm4452_vm12 = vweird.f32 %v11147_v1  ;;  %vm11256_vm13 = vcmp.eq.f32.partialorder %v4455_v46, 8.507059e+37  ;;  %v1873_v60 = vpop.f32.mrf.mxu0 }
 0x341   :  { %v4502_v57 = vand.u32 2147483648, %v11083_v31  ;;  %8202 = vpow2.f32 %v7481_v42  ;;  %vm4497_vm15 = vweird.f32 %v11173_v18  ;;  %v4515_v52 = vand.u32 2147483647, %v11105_v21  ;;  %vm11297_vm2 = vmor %vm4451_vm11, %vm4452_vm12 }
 0x342   :  { %8204 = vrcp.f32 %v11240_v11  ;;  %v2139_v9 = vadd.f32 %v2138_v32, %v2049_v37  ;;  %v4439_v20 = vsel %vm11265_vm14, %v11135_v58, %v4435_v59  ;;  %v4450_v46 = vadd.f32 %v11147_v1, %v4449_v43  ;;  %v15241_v37 = vld [vmem:[#allocation16_spill] sm:$0xff]  ;;  %v15242_v32 = vld [vmem:[#allocation17_spill] sm:$0xff] }
 0x343   :  { %v4509_v6 = vmul.f32 %v11188_v49, %v4508_v48  ;;  %8206 = vrcp.f32 %v11247_v55  ;;  %v8197_v15 = vpop.eup %8196  ;;  %v4495_v42 = vadd.f32 %v11173_v18, %v4494_v34  ;;  %v1963_v24 = vadd.f32 %v1962_v25, %v1873_v60  ;;  %2191 = vmatmul.bf16.vlgmr.msrb.gmra.mxu0 %v15241_v37  ;;  %2280 = vmatmul.bf16.vlgmr.msrb.gmra.mxu1 %v15242_v32  ;;  %v15247_v34 = vld [vmem:[#allocation45_spill] sm:$0xff] }
 0x344   :  { %8208 = vpow2.f32 %v7484_v23  ;;  %v5156_v56 = vmul.f32 %v10642_v17, %v2139_v9  ;;  %v4458_v59 = vor.u32 1.1754944e-38, %v4457_v61  ;;  %vm4496_vm0 = vweird.f32 %v11083_v31  ;;  %2369 = vmatmul.bf16.vlgmr.msrb.gmra.mxu2 %v15241_v37  ;;  %2458 = vmatmul.bf16.vlgmr.msrb.gmra.mxu3 %v15242_v32 }
 0x345   :  { %v8199_v58 = vpop.eup %8198  ;;  %vm11283_vm1 = vcmp.eq.f32.partialorder %v4500_v44, 8.507059e+37  ;;  %v4517_v48 = vand.u32 2147483648, %v11105_v21  ;;  %v4444_v17 = vsel %vm11233_vm10, %v11206_v36, %v4439_v20  ;;  %v4503_v31 = vor.u32 1.1754944e-38, %v4502_v57  ;;  %vm11313_vm4 = vmor %vm4496_vm0, %vm4497_vm15  ;;  %v15257_v36 = vld [vmem:[#allocation92_spill] sm:$0xff] }
 0x346   :  { %v11288_v28 = vpop.eup %8200  ;;  %vm4511_vm3 = vweird.f32 %v11105_v21  ;;  %v5159_v44 = vmul.f32 %v15247_v34, %v1963_v24  ;;  %v11306_v26 = vmul.f32 %v4399_v39, %v15171_v12  ;;  %v4454_v7 = vsel %vm11297_vm2, %v11147_v1, %v4450_v46  ;;  %v15256_v34 = vld [vmem:[#allocation46_spill] sm:$0xff]  ;;  %v7977_v39 = vld [vmem:[#allocation9 + $0x1e4] sm:$0xf0] }
 0x347   :  { %v8203_v23 = vpop.eup %8202  ;;  %v4510_v24 = vadd.f32 %v11188_v49, %v4509_v6  ;;  %vm4512_vm5 = vweird.f32 %v11188_v49  ;;  %v4499_v12 = vsel %vm11313_vm4, %v11173_v18, %v4495_v42  ;;  %vm11324_vm6 = vcmp.eq.f32.partialorder %v4515_v52, 8.507059e+37  ;;  %v2051_v18 = vpop.f32.mrf.mxu2 }
 0x348   :  { %v11319_v57 = vpop.eup %8204  ;;  %v11328_v1 = vadd.f32 1.0, %v8197_v15  ;;  %v11330_v9 = vpack.c.bf16 %v5159_v44, %v5155_v51  ;;  %v11335_v46 = vmul.f32 %v4444_v17, %v10920_v41  ;;  %v4518_v6 = vor.u32 1.1754944e-38, %v4517_v48  ;;  %v2140_v52 = vpop.f32.mrf.mxu3  ;;  %vm11347_vm7 = vmor %vm4511_vm3, %vm4512_vm5 }
 0x349   :  { %v11332_v20 = vpop.eup %8206  ;;  %v4552_v60 = vmul.f32 %v11288_v28, %v11226_v19  ;;  %v11339_v25 = vadd.f32 1.0, %v8199_v58  ;;  %v4459_v15 = vsel %vm11256_vm13, %v4458_v59, %v4454_v7  ;;  %v4560_v41 = vand.u32 2147483647, %v11226_v19  ;;  %v1876_v48 = vpop.f32.mrf.mxu0 }
 0x34a   :  { %15252 = vst [vmem:[#allocation94_spill] sm:$0xff] %v11330_v9  ;;  %v8209_v42 = vpop.eup %8208  ;;  %v11352_v37 = vadd.f32 1.0, %v8203_v23  ;;  %v2141_v32 = vadd.f32 %v2140_v52, %v2051_v18  ;;  %v4504_v58 = vsel %vm11283_vm1, %v4503_v31, %v4499_v12  ;;  %v4514_v13 = vsel %vm11347_vm7, %v11188_v49, %v4510_v24  ;;  %v1965_v17 = vpop.f32.mrf.mxu1  ;;  %v7678_v12 = vld [vmem:[#allocation9 + $0x160] sm:$0xf]  ;;  %v7961_v18 = vld [vmem:[#allocation9 + $0x164] sm:$0xf0] }
 0x34b   :  { %15253 = vst [vmem:[#allocation96_spill] sm:$0xff] %v11335_v46  ;;  %v4562_v59 = vand.u32 2147483648, %v11226_v19  ;;  %v4577_v21 = vand.u32 2147483648, %v11240_v11  ;;  %v4567_v61 = vmul.f32 %v11319_v57, %v11240_v11  ;;  %8210 = vrcp.f32 %v11328_v1  ;;  %v7742_v52 = vld [vmem:[#allocation9 + $0x1e0] sm:$0xf] }
 0x34c   :  { %v5160_v44 = vmul.f32 %v15256_v34, %v2141_v32  ;;  %v1966_v23 = vadd.f32 %v1965_v17, %v1876_v48  ;;  %v4553_v43 = vsub.f32 1.0, %v4552_v60  ;;  %v4612_v31 = vmul.f32 %v11332_v20, %v11247_v55  ;;  %v7550_v9 = vld [vmem:[#allocation9 + $0x60] sm:$0xf] }
 0x34d   :  { %8212 = vrcp.f32 %v11339_v25  ;;  %v11368_v49 = vadd.f32 1.0, %v8209_v42  ;;  %v4519_v7 = vsel %vm11324_vm6, %v4518_v6, %v4514_v13  ;;  %v11379_v60 = vmul.f32 %v4459_v15, %v15183_v38  ;;  %v15260_v42 = vld [vmem:[#allocation115_spill] sm:$0xff] }
 0x34e   :  { %8214 = vrcp.f32 %v11352_v37  ;;  %v11374_v24 = vmul.f32 %v15257_v36, %v1966_v23  ;;  %v11376_v51 = vpack.c.bf16 %v5160_v44, %v5156_v56  ;;  %v4575_v32 = vand.u32 2147483647, %v11240_v11 }
 0x34f   :  { %15259 = vst [vmem:[#allocation62_spill] sm:$0xff] %v11379_v60  ;;  %v7485_v48 = vmul.f32 -1.442695, %v15260_v42  ;;  %v7679_v17 = vor.u32 %v7961_v18, %v7678_v12  ;;  %v11384_v6 = vmul.f32 %v4504_v58, %v15185_v33  ;;  %vm4556_vm8 = vweird.f32 %v11226_v19  ;;  %v2054_v36 = vpop.f32.mrf.mxu2 }
 0x350   :  { %15258 = vst [vmem:[#allocation59_spill] sm:$0xff] %v11376_v51  ;;  %v11387_v13 = vor.u32 1.1754944e-38, %v4562_v59  ;;  %v4568_v34 = vsub.f32 1.0, %v4567_v61  ;;  %v7743_v23 = vor.u32 %v7977_v39, %v7742_v52  ;;  %v11390_v56 = vmul.f32 %v4519_v7, %v15192_v22  ;;  %v2143_v12 = vpop.f32.mrf.mxu3  ;;  %v15268_v51 = vld [vmem:[#allocation19_spill] sm:$0xff] }
 0x351   :  { %15261 = vst [vmem:[#allocation63_spill] sm:$0xff] %v11384_v6  ;;  %v4554_v38 = vmul.f32 %v11288_v28, %v4553_v43  ;;  %v11393_v15 = vor.u32 1.1754944e-38, %v4577_v21  ;;  %v4613_v44 = vsub.f32 1.0, %v4612_v31  ;;  %5918 = vmatpush.bf16.msra.mxu2 %v7679_v17  ;;  %v11395_v18 = vpop.eup %8210  ;;  %v4620_v33 = vand.u32 2147483647, %v11247_v55  ;;  %v15263_v43 = vld [vmem:[#allocation116_spill] sm:$0xff]  ;;  %v1878_v7 = vpop.f32.mrf.mxu0 }
 0x352   :  { %15262 = vst [vmem:[#allocation95_spill] sm:$0xff] %v11390_v56  ;;  %v4622_v58 = vand.u32 2147483648, %v11247_v55  ;;  %8216 = vrcp.f32 %v11368_v49  ;;  %v2144_v59 = vadd.f32 %v2143_v12, %v2054_v36  ;;  %6007 = vmatpush.bf16.msra.mxu3 %v7743_v23  ;;  %vm4571_vm9 = vweird.f32 %v11240_v11  ;;  %v1967_v52 = vpop.f32.mrf.mxu1  ;;  %v15266_v36 = vld [vmem:[#allocation88_spill] sm:$0xff]  ;;  %v15267_v21 = vld [vmem:[#allocation18_spill] sm:$0xff]  ;;  %v7945_v6 = vld [vmem:[#allocation9 + $0xe4] sm:$0xf0] }
 0x353   :  { %v11400_v22 = vpop.eup %8212  ;;  %v4637_v61 = vand.u32 2147483648, %v11328_v1  ;;  %8218 = vpow2.f32 %v7485_v48  ;;  %v7488_v31 = vmul.f32 -1.442695, %v15263_v43  ;;  %vm4557_vm10 = vweird.f32 %v11288_v28  ;;  %2196 = vmatmul.bf16.gmra.mxu0 %v15267_v21  ;;  %2285 = vmatmul.bf16.gmra.mxu1 %v15268_v51 }
 0x354   :  { %v11406_v17 = vpop.eup %8214  ;;  %vm11409_vm11 = vcmp.eq.f32.partialorder %v4560_v41, 8.507059e+37  ;;  %v4569_v23 = vmul.f32 %v11319_v57, %v4568_v34  ;;  %vm4616_vm12 = vweird.f32 %v11247_v55  ;;  %v11416_v12 = vmul.f32 %v15266_v36, %v2144_v59  ;;  %2374 = vmatmul.bf16.gmra.mxu2 %v15267_v21  ;;  %2463 = vmatmul.bf16.gmra.mxu3 %v15268_v51  ;;  %vm11452_vm0 = vmor %vm4556_vm8, %vm4557_vm10 }
 0x355   :  { %v1968_v48 = vadd.f32 %v1967_v52, %v1878_v7  ;;  %v4555_v41 = vadd.f32 %v11288_v28, %v4554_v38  ;;  %v4614_v47 = vmul.f32 %v11332_v20, %v4613_v44  ;;  %v4627_v34 = vmul.f32 %v11395_v18, %v11328_v1 }
 0x356   :  { %v7551_v56 = vor.u32 %v7929_v3, %v7550_v9  ;;  %vm4572_vm13 = vweird.f32 %v11319_v57  ;;  %v4672_v59 = vmul.f32 %v11400_v22, %v11339_v25  ;;  %v7615_v52 = vor.u32 %v7945_v6, %v7614_v8  ;;  %v15271_v9 = vld [vmem:[#allocation117_spill] sm:$0xff] }
 0x357   :  { %v5167_v7 = vmul.f32 %v10869_v53, %v1968_v48  ;;  %vm11430_vm14 = vcmp.eq.f32.partialorder %v4575_v32, 8.507059e+37  ;;  %v11434_v44 = vor.u32 1.1754944e-38, %v4622_v58  ;;  %v4687_v3 = vmul.f32 %v11406_v17, %v11352_v37  ;;  %vm11475_vm4 = vmor %vm4571_vm9, %vm4572_vm13 }
 0x358   :  { %8220 = vpow2.f32 %v7488_v31  ;;  %v7489_v36 = vmul.f32 -1.442695, %v15271_v9  ;;  %5740 = vmatpush.bf16.msra.mxu0 %v7551_v56  ;;  %v11439_v60 = vpop.eup %8216  ;;  %vm4617_vm15 = vweird.f32 %v11332_v20  ;;  %v11442_v53 = vor.u32 1.1754944e-38, %v4637_v61  ;;  %5829 = vmatpush.bf16.msra.mxu1 %v7615_v52  ;;  %v2056_v61 = vpop.f32.mrf.mxu2 }
 0x359   :  { %v4682_v8 = vand.u32 2147483648, %v11339_v25  ;;  %v11446_v51 = vpack.c.bf16 %v5167_v7, %v11374_v24  ;;  %v8219_v32 = vpop.eup %8218  ;;  %v4570_v56 = vadd.f32 %v11319_v57, %v4569_v23  ;;  %vm11457_vm1 = vcmp.eq.f32.partialorder %v4620_v33, 8.507059e+37  ;;  %v2145_v31 = vpop.f32.mrf.mxu3  ;;  %vm11494_vm5 = vmor %vm4616_vm12, %vm4617_vm15 }
 0x35a   :  { %v4628_v21 = vsub.f32 1.0, %v4627_v34  ;;  %vm4632_vm2 = vweird.f32 %v11395_v18  ;;  %v4680_v24 = vand.u32 2147483647, %v11339_v25  ;;  %v4559_v19 = vsel %vm11452_vm0, %v11288_v28, %v4555_v41  ;;  %v15277_v34 = vld [vmem:[#allocation118_spill] sm:$0xff]  ;;  %v1881_v9 = vpop.f32.mrf.mxu0  ;;  %v1970_v46 = vpop.f32.mrf.mxu1 }
 0x35b   :  { %15272 = vst [vmem:[#allocation98_spill] sm:$0xff] %v11446_v51  ;;  %v4615_v48 = vadd.f32 %v11332_v20, %v4614_v47  ;;  %v4673_v7 = vsub.f32 1.0, %v4672_v59  ;;  %v2146_v52 = vadd.f32 %v2145_v31, %v2056_v61  ;;  %vm4631_vm3 = vweird.f32 %v11328_v1 }
 0x35c   :  { %v4688_v33 = vsub.f32 1.0, %v4687_v3  ;;  %v4732_v23 = vmul.f32 %v11439_v60, %v11368_v49  ;;  %8222 = vpow2.f32 %v7489_v36  ;;  %v7492_v51 = vmul.f32 -1.442695, %v15277_v34 }
 0x35d   :  { %v11479_v47 = vor.u32 1.1754944e-38, %v4682_v8  ;;  %v11481_v41 = vadd.f32 1.0, %v8219_v32  ;;  %v5168_v59 = vmul.f32 %v10929_v16, %v2146_v52  ;;  %v1971_v3 = vadd.f32 %v1970_v46, %v1881_v9  ;;  %v15282_v46 = vld [vmem:[#allocation119_spill] sm:$0xff]  ;;  %v15292_v8 = vld [vmem:[#allocation20_spill] sm:$0xff]  ;;  %v15306_v52 = vld [vmem:[#allocation122_spill] sm:$0xff] }
 0x35e   :  { %v8221_v36 = vpop.eup %8220  ;;  %v4564_v6 = vsel %vm11409_vm11, %v11387_v13, %v4559_v19  ;;  %v4574_v11 = vsel %vm11475_vm4, %v11319_v57, %v4570_v56  ;;  %v4629_v16 = vmul.f32 %v11395_v18, %v4628_v21  ;;  %vm4676_vm6 = vweird.f32 %v11339_v25  ;;  %v15284_v21 = vld [vmem:[#allocation120_spill] sm:$0xff]  ;;  %vm11545_vm11 = vmor %vm4631_vm3, %vm4632_vm2 }
 0x35f   :  { %v7493_v9 = vmul.f32 -1.442695, %v15282_v46  ;;  %v4619_v13 = vsel %vm11494_vm5, %v11332_v20, %v4615_v48  ;;  %v4674_v57 = vmul.f32 %v11400_v22, %v4673_v7  ;;  %v5171_v39 = vmul.f32 %v10937_v54, %v1971_v3 }
 0x360   :  { %v11507_v55 = vpack.c.bf16 %v5168_v59, %v11416_v12  ;;  %v4689_v32 = vmul.f32 %v11406_v17, %v4688_v33  ;;  %v4733_v56 = vsub.f32 1.0, %v4732_v23  ;;  %8224 = vpow2.f32 %v7492_v51  ;;  %v2059_v38 = vpop.f32.mrf.mxu2 }
 0x361   :  { %v7496_v61 = vmul.f32 -1.442695, %v15284_v21  ;;  %v11512_v31 = vmul.f32 %v4564_v6, %v11087_v63  ;;  %v4579_v20 = vsel %vm11430_vm14, %v11393_v15, %v4574_v11  ;;  %v15285_v19 = vand.u32 2147483647, %v11328_v1  ;;  %v2148_v15 = vpop.f32.mrf.mxu3 }
 0x362   :  { %15283 = vst [vmem:[#allocation64_spill] sm:$0xff] %v11507_v55  ;;  %8226 = vrcp.f32 %v11481_v41  ;;  %v11524_v12 = vadd.f32 1.0, %v8221_v36  ;;  %v8223_v51 = vpop.eup %8222  ;;  %v4630_v48 = vadd.f32 %v11395_v18, %v4629_v16  ;;  %vm4677_vm8 = vweird.f32 %v11400_v22  ;;  %v1883_v36 = vpop.f32.mrf.mxu0  ;;  %v15293_v16 = vld [vmem:[#allocation21_spill] sm:$0xff] }
 0x363   :  { %vm11519_vm7 = vcmp.eq.f32.partialorder %v15285_v19, 8.507059e+37  ;;  %v4695_v63 = vand.u32 2147483647, %v11352_v37  ;;  %8228 = vpow2.f32 %v7493_v9  ;;  %v4624_v7 = vsel %vm11457_vm1, %v11434_v44, %v4619_v13  ;;  %v1972_v6 = vpop.f32.mrf.mxu1  ;;  %2201 = vmatmul.bf16.gmra.mxu0 %v15292_v8  ;;  %2290 = vmatmul.bf16.gmra.mxu1 %v15293_v16  ;;  %vm11569_vm13 = vmor %vm4676_vm6, %vm4677_vm8 }
 0x364   :  { %vm11532_vm9 = vcmp.eq.f32.partialorder %v4680_v24, 8.507059e+37  ;;  %vm4692_vm10 = vweird.f32 %v11406_v17  ;;  %v4697_v33 = vand.u32 2147483648, %v11352_v37  ;;  %v2149_v23 = vadd.f32 %v2148_v15, %v2059_v38  ;;  %2379 = vmatmul.bf16.gmra.mxu2 %v15292_v8  ;;  %2468 = vmatmul.bf16.gmra.mxu3 %v15293_v16 }
 0x365   :  { %v4675_v28 = vadd.f32 %v11400_v22, %v4674_v57  ;;  %v4690_v59 = vadd.f32 %v11406_v17, %v4689_v32  ;;  %v4734_v3 = vmul.f32 %v11439_v60, %v4733_v56  ;;  %8230 = vpow2.f32 %v7496_v61  ;;  %v15294_v57 = vld [vmem:[#allocation121_spill] sm:$0xff] }
 0x366   :  { %8232 = vrcp.f32 %v11524_v12  ;;  %v11550_v58 = vadd.f32 1.0, %v8223_v51  ;;  %v5172_v24 = vmul.f32 %v10946_v5, %v2149_v23  ;;  %v1973_v11 = vadd.f32 %v1972_v6, %v1883_v36  ;;  %v8225_v9 = vpop.eup %8224 }
 0x367   :  { %v11556_v13 = vmul.f32 %v4579_v20, %v15217_v2  ;;  %v4634_v1 = vsel %vm11545_vm11, %v11395_v18, %v4630_v48  ;;  %vm4691_vm12 = vweird.f32 %v11352_v37  ;;  %v7497_v32 = vmul.f32 -1.442695, %v15294_v57 }
 0x368   :  { %v11563_v56 = vpop.eup %8226  ;;  %vm11573_vm14 = vcmp.eq.f32.partialorder %v4695_v63, 8.507059e+37  ;;  %v4698_v61 = vor.u32 1.1754944e-38, %v4697_v33  ;;  %v4740_v18 = vand.u32 2147483647, %v11368_v49  ;;  %v5175_v37 = vmul.f32 %v10960_v4, %v1973_v11  ;;  %vm11589_vm15 = vmor %vm4691_vm12, %vm4692_vm10  ;;  %v2061_v33 = vpop.f32.mrf.mxu2 }
 0x369   :  { %v8229_v20 = vpop.eup %8228  ;;  %v11582_v25 = vmul.f32 %v4624_v7, %v15218_v10  ;;  %v4679_v19 = vsel %vm11569_vm13, %v11400_v22, %v4675_v28  ;;  %vm4737_vm0 = vweird.f32 %v11439_v60  ;;  %v4742_v4 = vand.u32 2147483648, %v11368_v49  ;;  %v2150_v23 = vpop.f32.mrf.mxu3 }
 0x36a   :  { %v4694_v48 = vsel %vm11589_vm15, %v11406_v17, %v4690_v59  ;;  %v4735_v10 = vadd.f32 %v11439_v60, %v4734_v3  ;;  %8234 = vrcp.f32 %v11550_v58  ;;  %v11600_v63 = vpack.c.bf16 %v5175_v37, %v5171_v39  ;;  %v1886_v6 = vpop.f32.mrf.mxu0 }
 0x36b   :  { %v8231_v22 = vpop.eup %8230  ;;  %v4639_v38 = vsel %vm11519_vm7, %v11442_v53, %v4634_v1  ;;  %v4747_v15 = vmul.f32 %v11563_v56, %v11481_v41  ;;  %v11607_v7 = vadd.f32 1.0, %v8225_v9  ;;  %8236 = vpow2.f32 %v7497_v32  ;;  %v1975_v44 = vpop.f32.mrf.mxu1 }
 0x36c   :  { %15301 = vst [vmem:[#allocation65_spill] sm:$0xff] %v11600_v63  ;;  %v11609_v17 = vpop.eup %8232  ;;  %vm4736_vm1 = vweird.f32 %v11368_v49  ;;  %vm11612_vm2 = vcmp.eq.f32.partialorder %v4740_v18, 8.507059e+37  ;;  %v11616_v28 = vadd.f32 1.0, %v8229_v20  ;;  %v2151_v54 = vadd.f32 %v2150_v23, %v2061_v33  ;;  %v7734_v18 = vld [vmem:[#allocation9 + $0x1d0] sm:$0xf]  ;;  %v15308_v23 = vld [vmem:[#allocation123_spill] sm:$0xff] }
 0x36d   :  { %v4684_v53 = vsel %vm11532_vm9, %v11479_v47, %v4679_v19  ;;  %v4699_v59 = vsel %vm11573_vm14, %v4698_v61, %v4694_v48  ;;  %vm11625_vm3 = vmor %vm4736_vm1, %vm4737_vm0  ;;  %v4743_v49 = vor.u32 1.1754944e-38, %v4742_v4  ;;  %v4757_v36 = vand.u32 2147483648, %v11481_v41  ;;  %v7959_v61 = vld [vmem:[#allocation9 + $0x154] sm:$0xf0] }
 0x36e   :  { %v4739_v11 = vsel %vm11625_vm3, %v11439_v60, %v4735_v10  ;;  %v7374_v47 = vmul.f32 -1.442695, %v15306_v52  ;;  %v5176_v8 = vmul.f32 %v11042_v0, %v2151_v54  ;;  %v1976_v16 = vadd.f32 %v1975_v44, %v1886_v6  ;;  %v7670_v0 = vld [vmem:[#allocation9 + $0x150] sm:$0xf]  ;;  %v7975_v48 = vld [vmem:[#allocation9 + $0x1d4] sm:$0xf0] }
 0x36f   :  { %v4748_v9 = vsub.f32 1.0, %v4747_v15  ;;  %v4792_v1 = vmul.f32 %v11609_v17, %v11524_v12  ;;  %8238 = vrcp.f32 %v11607_v7  ;;  %v11638_v32 = vadd.f32 1.0, %v8231_v22  ;;  %v15309_v54 = vld [vmem:[#allocation124_spill] sm:$0xff] }
 0x370   :  { %v11640_v5 = vpop.eup %8234  ;;  %v11643_v2 = vmul.f32 %v4639_v38, %v15226_v27  ;;  %8240 = vrcp.f32 %v11616_v28  ;;  %v11647_v60 = vmul.f32 %v11108_v45, %v1976_v16  ;;  %v11649_v37 = vpack.c.bf16 %v5176_v8, %v5172_v24  ;;  %v2064_v38 = vpop.f32.mrf.mxu2 }
 0x371   :  { %v8237_v20 = vpop.eup %8236  ;;  %v11652_v19 = vmul.f32 %v4684_v53, %v15227_v40  ;;  %v11655_v51 = vmul.f32 %v4699_v59, %v15233_v35  ;;  %v4755_v27 = vand.u32 2147483647, %v11481_v41  ;;  %v7671_v4 = vor.u32 %v7959_v61, %v7670_v0  ;;  %v2153_v15 = vpop.f32.mrf.mxu3  ;;  %v15312_v0 = vld [vmem:[#allocation22_spill] sm:$0xff]  ;;  %v15313_v61 = vld [vmem:[#allocation23_spill] sm:$0xff] }
 0x372   :  { %15307 = vst [vmem:[#allocation102_spill] sm:$0xff] %v11649_v37  ;;  %v4744_v45 = vsel %vm11612_vm2, %v4743_v49, %v4739_v11  ;;  %vm4751_vm4 = vweird.f32 %v11481_v41  ;;  %v11661_v10 = vor.u32 1.1754944e-38, %v4757_v36  ;;  %8242 = vpow2.f32 %v7374_v47  ;;  %v1888_v44 = vpop.f32.mrf.mxu0 }
 0x373   :  { %v7735_v24 = vor.u32 %v7975_v48, %v7734_v18  ;;  %v4749_v22 = vmul.f32 %v11563_v56, %v4748_v9  ;;  %v4793_v40 = vsub.f32 1.0, %v4792_v1  ;;  %v4807_v35 = vmul.f32 %v11640_v5, %v11550_v58  ;;  %5919 = vmatpush.bf16.msra.mxu2 %v7671_v4  ;;  %v1977_v11 = vpop.f32.mrf.mxu1  ;;  %2206 = vmatmul.bf16.gmra.mxu0 %v15312_v0  ;;  %v7542_v18 = vld [vmem:[#allocation9 + $0x50] sm:$0xf] }
 0x374   :  { %8244 = vrcp.f32 %v11638_v32  ;;  %v11667_v33 = vadd.f32 1.0, %v8237_v20  ;;  %v7375_v39 = vmul.f32 -1.442695, %v15308_v23  ;;  %v7378_v53 = vmul.f32 -1.442695, %v15309_v54  ;;  %2295 = vmatmul.bf16.gmra.mxu1 %v15313_v61  ;;  %2384 = vmatmul.bf16.gmra.mxu2 %v15312_v0 }
 0x375   :  { %v2154_v59 = vadd.f32 %v2153_v15, %v2064_v38  ;;  %6008 = vmatpush.bf16.msra.mxu3 %v7735_v24  ;;  %v11671_v3 = vpop.eup %8238  ;;  %vm4796_vm5 = vweird.f32 %v11524_v12  ;;  %v4800_v49 = vand.u32 2147483647, %v11524_v12  ;;  %v4802_v36 = vand.u32 2147483648, %v11524_v12  ;;  %v7927_v20 = vld [vmem:[#allocation9 + $0x54] sm:$0xf0] }
 0x376   :  { %v4817_v6 = vand.u32 2147483648, %v11550_v58  ;;  %v11677_v47 = vpop.eup %8240  ;;  %v11680_v8 = vmul.f32 %v4744_v45, %v15236_v50  ;;  %vm4752_vm6 = vweird.f32 %v11563_v56  ;;  %vm11683_vm7 = vcmp.eq.f32.partialorder %v4755_v27, 8.507059e+37  ;;  %v7606_v4 = vld [vmem:[#allocation9 + $0xd0] sm:$0xf]  ;;  %v7943_v24 = vld [vmem:[#allocation9 + $0xd4] sm:$0xf0]  ;;  %2473 = vmatmul.bf16.gmra.mxu3 %v15313_v61 }
 0x377   :  { %v11688_v9 = vmul.f32 %v11123_v62, %v2154_v59  ;;  %v1978_v1 = vadd.f32 %v1977_v11, %v1888_v44  ;;  %v4750_v50 = vadd.f32 %v11563_v56, %v4749_v22  ;;  %v4794_v48 = vmul.f32 %v11609_v17, %v4793_v40  ;;  %vm11721_vm10 = vmor %vm4751_vm4, %vm4752_vm6 }
 0x378   :  { %v4808_v45 = vsub.f32 1.0, %v4807_v35  ;;  %v7543_v27 = vor.u32 %v7927_v20, %v7542_v18  ;;  %v8243_v38 = vpop.eup %8242  ;;  %v4852_v62 = vmul.f32 %v11671_v3, %v11607_v7  ;;  %8246 = vrcp.f32 %v11667_v33  ;;  %v2066_v18 = vpop.f32.mrf.mxu2 }
 0x379   :  { %v5183_v15 = vmul.f32 %v11179_v14, %v1978_v1  ;;  %v7607_v59 = vor.u32 %v7943_v24, %v7606_v4  ;;  %v4803_v22 = vor.u32 1.1754944e-38, %v4802_v36  ;;  %v4815_v40 = vand.u32 2147483647, %v11550_v58  ;;  %v2155_v20 = vpop.f32.mrf.mxu3 }
 0x37a   :  { %v11700_v44 = vpop.eup %8244  ;;  %v4867_v35 = vmul.f32 %v11677_v47, %v11616_v28  ;;  %8248 = vpow2.f32 %v7375_v39  ;;  %5741 = vmatpush.bf16.msra.mxu0 %v7543_v27  ;;  %vm11705_vm8 = vcmp.eq.f32.partialorder %v4800_v49, 8.507059e+37  ;;  %vm4811_vm9 = vweird.f32 %v11550_v58 }
 0x37b   :  { %v11710_v14 = vor.u32 1.1754944e-38, %v4817_v6  ;;  %v4860_v1 = vand.u32 2147483647, %v11607_v7  ;;  %v4862_v0 = vand.u32 2147483648, %v11607_v7  ;;  %5830 = vmatpush.bf16.msra.mxu1 %v7607_v59  ;;  %v11715_v36 = vpack.c.bf16 %v5183_v15, %v11647_v60  ;;  %v1980_v15 = vpop.f32.mrf.mxu1 }
 0x37c   :  { %v4795_v49 = vadd.f32 %v11609_v17, %v4794_v48  ;;  %vm4797_vm11 = vweird.f32 %v11609_v17  ;;  %v4809_v6 = vmul.f32 %v11640_v5, %v4808_v45  ;;  %v4875_v61 = vand.u32 2147483647, %v11616_v28  ;;  %v1891_v45 = vpop.f32.mrf.mxu0 }
 0x37d   :  { %15316 = vst [vmem:[#allocation68_spill] sm:$0xff] %v11715_v36  ;;  %v4754_v60 = vsel %vm11721_vm10, %v11563_v56, %v4750_v50  ;;  %v4853_v4 = vsub.f32 1.0, %v4852_v62  ;;  %v4912_v41 = vmul.f32 %v11700_v44, %v11638_v32  ;;  %v2156_v27 = vadd.f32 %v2155_v20, %v2066_v18  ;;  %vm11743_vm13 = vmor %vm4796_vm5, %vm4797_vm11  ;;  %v15340_v50 = vld [vmem:[#allocation127_spill] sm:$0xff] }
 0x37e   :  { %vm4812_vm12 = vweird.f32 %v11640_v5  ;;  %v4868_v48 = vsub.f32 1.0, %v4867_v35  ;;  %v11735_v24 = vadd.f32 1.0, %v8243_v38  ;;  %8250 = vpow2.f32 %v7378_v53  ;;  %v11737_v59 = vpop.eup %8246  ;;  %v15323_v38 = vld [vmem:[#allocation125_spill] sm:$0xff] }
 0x37f   :  { %vm11747_vm14 = vcmp.eq.f32.partialorder %v4815_v40, 8.507059e+37  ;;  %vm4856_vm15 = vweird.f32 %v11607_v7  ;;  %v4877_v53 = vand.u32 2147483648, %v11616_v28  ;;  %v7379_v62 = vmul.f32 -1.442695, %v15323_v38  ;;  %vm11794_vm3 = vmor %vm4811_vm9, %vm4812_vm12 }
 0x380   :  { %v5184_v35 = vmul.f32 %v11191_v29, %v2156_v27  ;;  %v1981_v39 = vadd.f32 %v1980_v15, %v1891_v45  ;;  %v8249_v18 = vpop.eup %8248  ;;  %v4759_v12 = vsel %vm11683_vm7, %v11661_v10, %v4754_v60  ;;  %v4799_v40 = vsel %vm11743_vm13, %v11609_v17, %v4795_v49 }
 0x381   :  { %v4810_v20 = vadd.f32 %v11640_v5, %v4809_v6  ;;  %v11762_v36 = vor.u32 1.1754944e-38, %v4862_v0  ;;  %vm4871_vm0 = vweird.f32 %v11616_v28  ;;  %v4854_v37 = vmul.f32 %v11671_v3, %v4853_v4 }
 0x382   :  { %v4913_v63 = vsub.f32 1.0, %v4912_v41  ;;  %v5187_v29 = vmul.f32 %v11209_v30, %v1981_v39  ;;  %v11768_v27 = vpack.c.bf16 %v5184_v35, %v11688_v9  ;;  %v4869_v10 = vmul.f32 %v11677_v47, %v4868_v48  ;;  %v2158_v48 = vpop.f32.mrf.mxu3 }
 0x383   :  { %v4922_v16 = vand.u32 2147483648, %v11638_v32  ;;  %v4927_v17 = vmul.f32 %v11737_v59, %v11667_v33  ;;  %8252 = vrcp.f32 %v11735_v24  ;;  %vm11775_vm1 = vcmp.eq.f32.partialorder %v4860_v1, 8.507059e+37  ;;  %v1982_v39 = vpop.f32.mrf.mxu1 }
 0x384   :  { %15324 = vst [vmem:[#allocation76_spill] sm:$0xff] %v11768_v27  ;;  %v11779_v49 = vor.u32 1.1754944e-38, %v4877_v53  ;;  %vm4916_vm2 = vweird.f32 %v11638_v32  ;;  %v4920_v30 = vand.u32 2147483647, %v11638_v32  ;;  %v11783_v9 = vadd.f32 1.0, %v8249_v18  ;;  %v8251_v6 = vpop.eup %8250  ;;  %v1893_v35 = vpop.f32.mrf.mxu0 }
 0x385   :  { %8254 = vpow2.f32 %v7379_v62  ;;  %v11786_v60 = vmul.f32 %v4759_v12, %v15260_v42  ;;  %v4804_v4 = vsel %vm11705_vm8, %v4803_v22, %v4799_v40  ;;  %vm4857_vm4 = vweird.f32 %v11671_v3  ;;  %v2069_v42 = vpop.f32.mrf.mxu2  ;;  %v15331_v62 = vld [vmem:[#allocation126_spill] sm:$0xff]  ;;  %v15334_v12 = vld [vmem:[#allocation24_spill] sm:$0xff]  ;;  %v15335_v40 = vld [vmem:[#allocation25_spill] sm:$0xff] }
 0x386   :  { %vm4872_vm5 = vweird.f32 %v11677_v47  ;;  %vm11800_vm6 = vcmp.eq.f32.partialorder %v4875_v61, 8.507059e+37  ;;  %v4814_v22 = vsel %vm11794_vm3, %v11640_v5, %v4810_v20  ;;  %v4855_v58 = vadd.f32 %v11671_v3, %v4854_v37  ;;  %2211 = vmatmul.bf16.gmra.mxu0 %v15334_v12  ;;  %2300 = vmatmul.bf16.gmra.mxu1 %v15335_v40  ;;  %vm11834_vm9 = vmor %vm4856_vm15, %vm4857_vm4 }
 0x387   :  { %v4914_v11 = vmul.f32 %v11700_v44, %v4913_v63  ;;  %v2159_v45 = vadd.f32 %v2158_v48, %v2069_v42  ;;  %v4870_v15 = vadd.f32 %v11677_v47, %v4869_v10  ;;  %v4923_v56 = vor.u32 1.1754944e-38, %v4922_v16  ;;  %vm11847_vm11 = vmor %vm4871_vm0, %vm4872_vm5  ;;  %2389 = vmatmul.bf16.gmra.mxu2 %v15334_v12  ;;  %2478 = vmatmul.bf16.gmra.mxu3 %v15335_v40 }
 0x388   :  { %v4928_v53 = vsub.f32 1.0, %v4927_v17  ;;  %v7382_v61 = vmul.f32 -1.442695, %v15331_v62  ;;  %vm11811_vm7 = vcmp.eq.f32.partialorder %v4920_v30, 8.507059e+37  ;;  %vm4931_vm8 = vweird.f32 %v11667_v33 }
 0x389   :  { %8256 = vrcp.f32 %v11783_v9  ;;  %v11817_v5 = vadd.f32 1.0, %v8251_v6  ;;  %v5188_v63 = vmul.f32 %v11306_v26, %v2159_v45  ;;  %v1983_v37 = vadd.f32 %v1982_v39, %v1893_v35  ;;  %v11822_v20 = vpop.eup %8252 }
 0x38a   :  { %v11825_v10 = vmul.f32 %v4804_v4, %v15263_v43  ;;  %v4819_v16 = vsel %vm11747_vm14, %v11710_v14, %v4814_v22  ;;  %vm4917_vm10 = vweird.f32 %v11700_v44  ;;  %v4935_v17 = vand.u32 2147483647, %v11667_v33  ;;  %v15341_v4 = vld [vmem:[#allocation96_spill] sm:$0xff] }
 0x38b   :  { %v8255_v30 = vpop.eup %8254  ;;  %v4859_v43 = vsel %vm11834_vm9, %v11671_v3, %v4855_v58  ;;  %v4915_v7 = vadd.f32 %v11700_v44, %v4914_v11  ;;  %v7383_v6 = vmul.f32 -1.442695, %v15340_v50  ;;  %v5191_v1 = vmul.f32 %v15341_v4, %v1983_v37  ;;  %v15342_v22 = vld [vmem:[#allocation128_spill] sm:$0xff]  ;;  %vm11874_vm12 = vmor %vm4916_vm2, %vm4917_vm10  ;;  %v15351_v4 = vld [vmem:[#allocation129_spill] sm:$0xff] }
 0x38c   :  { %v4874_v3 = vsel %vm11847_vm11, %v11677_v47, %v4870_v15  ;;  %v4929_v28 = vmul.f32 %v11737_v59, %v4928_v53  ;;  %v4937_v42 = vand.u32 2147483648, %v11667_v33  ;;  %8258 = vpow2.f32 %v7382_v61  ;;  %v2160_v61 = vpop.f32.mrf.mxu3  ;;  %v1896_v26 = vpop.f32.mrf.mxu0  ;;  %v15353_v33 = vld [vmem:[#allocation63_spill] sm:$0xff]  ;;  %v7726_v47 = vld [vmem:[#allocation9 + $0x1c0] sm:$0xf] }
 0x38d   :  { %v3082_v48 = vmul.f32 %v11822_v20, %v11735_v24  ;;  %8260 = vrcp.f32 %v11817_v5  ;;  %v7386_v58 = vmul.f32 -1.442695, %v15342_v22  ;;  %v11865_v11 = vpack.c.bf16 %v5191_v1, %v5187_v29  ;;  %v2071_v53 = vpop.f32.mrf.mxu2  ;;  %v15358_v15 = vld [vmem:[#allocation131_spill] sm:$0xff] }
 0x38e   :  { %v4864_v45 = vsel %vm11775_vm1, %v11762_v36, %v4859_v43  ;;  %vm4932_vm13 = vweird.f32 %v11737_v59  ;;  %vm11879_vm14 = vcmp.eq.f32.partialorder %v4935_v17, 8.507059e+37  ;;  %v11883_v29 = vadd.f32 1.0, %v8255_v30  ;;  %v1985_v17 = vpop.f32.mrf.mxu1  ;;  %v15348_v43 = vld [vmem:[#allocation62_spill] sm:$0xff] }
 0x38f   :  { %15343 = vst [vmem:[#allocation104_spill] sm:$0xff] %v11865_v11  ;;  %v11885_v0 = vpop.eup %8256  ;;  %v4879_v32 = vsel %vm11800_vm6, %v11779_v49, %v4874_v3  ;;  %v4919_v36 = vsel %vm11874_vm12, %v11700_v44, %v4915_v7  ;;  %8262 = vpow2.f32 %v7383_v6  ;;  %v2161_v35 = vadd.f32 %v2160_v61, %v2071_v53  ;;  %vm11903_vm15 = vmor %vm4931_vm8, %vm4932_vm13 }
 0x390   :  { %v4930_v39 = vadd.f32 %v11737_v59, %v4929_v28  ;;  %v4938_v37 = vor.u32 1.1754944e-38, %v4937_v42  ;;  %v3090_v12 = vand.u32 2147483647, %v11735_v24  ;;  %v3092_v40 = vand.u32 2147483648, %v11735_v24  ;;  %v15352_v28 = vld [vmem:[#allocation117_spill] sm:$0xff] }
 0x391   :  { %v3083_v30 = vsub.f32 1.0, %v3082_v48  ;;  %8264 = vpow2.f32 %v7386_v58  ;;  %v5192_v41 = vmul.f32 %v15348_v43, %v2161_v35  ;;  %v1986_v49 = vadd.f32 %v1985_v17, %v1896_v26  ;;  %v7662_v48 = vld [vmem:[#allocation9 + $0x140] sm:$0xf]  ;;  %v7957_v58 = vld [vmem:[#allocation9 + $0x144] sm:$0xf0] }
 0x392   :  { %v8259_v14 = vpop.eup %8258  ;;  %v4924_v44 = vsel %vm11811_vm7, %v4923_v56, %v4919_v36  ;;  %v3097_v6 = vmul.f32 %v11885_v0, %v11783_v9  ;;  %8266 = vrcp.f32 %v11883_v29  ;;  %v7387_v1 = vmul.f32 -1.442695, %v15351_v4 }
 0x393   :  { %v11911_v3 = vpop.eup %8260  ;;  %v11914_v18 = vmul.f32 %v4819_v16, %v15352_v28  ;;  %v11917_v56 = vmul.f32 %v4864_v45, %v15277_v34  ;;  %v11920_v42 = vmul.f32 %v15353_v33, %v1986_v49  ;;  %v11922_v53 = vpack.c.bf16 %v5192_v41, %v5188_v63  ;;  %v15355_v16 = vld [vmem:[#allocation130_spill] sm:$0xff]  ;;  %v7973_v34 = vld [vmem:[#allocation9 + $0x1c4] sm:$0xf0] }
 0x394   :  { %v11925_v61 = vmul.f32 %v4879_v32, %v15282_v46  ;;  %v4934_v36 = vsel %vm11903_vm15, %v11737_v59, %v4930_v39  ;;  %v7390_v35 = vmul.f32 -1.442695, %v15355_v16  ;;  %v7663_v26 = vor.u32 %v7957_v58, %v7662_v48  ;;  %v2163_v49 = vpop.f32.mrf.mxu3 }
 0x395   :  { %15354 = vst [vmem:[#allocation172_spill] sm:$0xff] %v11922_v53  ;;  %v8263_v45 = vpop.eup %8262  ;;  %v11932_v17 = vmul.f32 %v4924_v44, %v15284_v21  ;;  %v3084_v43 = vmul.f32 %v11822_v20, %v3083_v30  ;;  %vm3086_vm0 = vweird.f32 %v11735_v24  ;;  %v7727_v63 = vor.u32 %v7973_v34, %v7726_v47  ;;  %v2074_v39 = vpop.f32.mrf.mxu2  ;;  %v7534_v34 = vld [vmem:[#allocation9 + $0x40] sm:$0xf]  ;;  %v7941_v53 = vld [vmem:[#allocation9 + $0xc4] sm:$0xf0] }
 0x396   :  { %v11936_v41 = vor.u32 1.1754944e-38, %v3092_v40  ;;  %v3098_v46 = vsub.f32 1.0, %v3097_v6  ;;  %v3142_v32 = vmul.f32 %v11911_v3, %v11817_v5  ;;  %v11940_v59 = vadd.f32 1.0, %v8259_v14  ;;  %5920 = vmatpush.bf16.msra.mxu2 %v7663_v26  ;;  %v1987_v33 = vpop.f32.mrf.mxu1  ;;  %v15361_v26 = vld [vmem:[#allocation27_spill] sm:$0xff] }
 0x397   :  { %v8265_v7 = vpop.eup %8264  ;;  %v4939_v21 = vsel %vm11879_vm14, %v4938_v37, %v4934_v36  ;;  %vm11944_vm1 = vcmp.eq.f32.partialorder %v3090_v12, 8.507059e+37  ;;  %v3105_v40 = vand.u32 2147483647, %v11783_v9  ;;  %8268 = vpow2.f32 %v7387_v1  ;;  %6009 = vmatpush.bf16.msra.mxu3 %v7727_v63  ;;  %v1898_v12 = vpop.f32.mrf.mxu0  ;;  %v15359_v1 = vld [vmem:[#allocation95_spill] sm:$0xff]  ;;  %v15360_v36 = vld [vmem:[#allocation26_spill] sm:$0xff]  ;;  %2305 = vmatmul.bf16.gmra.mxu1 %v15361_v26 }
 0x398   :  { %v2164_v44 = vadd.f32 %v2163_v49, %v2074_v39  ;;  %v11949_v6 = vpop.eup %8266  ;;  %vm3101_vm2 = vweird.f32 %v11783_v9  ;;  %v3107_v14 = vand.u32 2147483648, %v11783_v9  ;;  %v11953_v28 = vadd.f32 1.0, %v8263_v45  ;;  %2216 = vmatmul.bf16.gmra.mxu0 %v15360_v36  ;;  %v7925_v63 = vld [vmem:[#allocation9 + $0x44] sm:$0xf0]  ;;  %v7598_v45 = vld [vmem:[#allocation9 + $0xc0] sm:$0xf]  ;;  %2394 = vmatmul.bf16.gmra.mxu2 %v15360_v36 }
 0x399   :  { %8270 = vpow2.f32 %v7390_v35  ;;  %v7391_v37 = vmul.f32 -1.442695, %v15358_v15  ;;  %v3085_v48 = vadd.f32 %v11822_v20, %v3084_v43  ;;  %vm3087_vm3 = vweird.f32 %v11822_v20  ;;  %2483 = vmatmul.bf16.gmra.mxu3 %v15361_v26 }
 0x39a   :  { %v5196_v58 = vmul.f32 %v15359_v1, %v2164_v44  ;;  %v1988_v47 = vadd.f32 %v1987_v33, %v1898_v12  ;;  %v3099_v35 = vmul.f32 %v11885_v0, %v3098_v46  ;;  %v3143_v39 = vsub.f32 1.0, %v3142_v32  ;;  %vm11977_vm4 = vmor %vm3086_vm0, %vm3087_vm3 }
 0x39b   :  { %8272 = vrcp.f32 %v11940_v59  ;;  %v7535_v49 = vor.u32 %v7925_v63, %v7534_v34  ;;  %v3157_v43 = vmul.f32 %v11949_v6, %v11883_v29  ;;  %v11965_v11 = vadd.f32 1.0, %v8265_v7 }
 0x39c   :  { %v5199_v44 = vmul.f32 %v11512_v31, %v1988_v47  ;;  %v7599_v12 = vor.u32 %v7941_v53, %v7598_v45  ;;  %v11971_v33 = vmul.f32 %v4939_v21, %v15294_v57  ;;  %vm11981_vm5 = vcmp.eq.f32.partialorder %v3105_v40, 8.507059e+37  ;;  %v2165_v26 = vpop.f32.mrf.mxu3 }
 0x39d   :  { %v3150_v31 = vand.u32 2147483647, %v11817_v5  ;;  %8274 = vrcp.f32 %v11953_v28  ;;  %5742 = vmatpush.bf16.msra.mxu0 %v7535_v49  ;;  %v8269_v53 = vpop.eup %8268  ;;  %v3089_v57 = vsel %vm11977_vm4, %v11822_v20, %v3085_v48  ;;  %v3108_v7 = vor.u32 1.1754944e-38, %v3107_v14  ;;  %v2076_v36 = vpop.f32.mrf.mxu2 }
 0x39e   :  { %8276 = vpow2.f32 %v7391_v37  ;;  %5831 = vmatpush.bf16.msra.mxu1 %v7599_v12  ;;  %v11991_v24 = vpack.c.bf16 %v5199_v44, %v11920_v42  ;;  %v3100_v40 = vadd.f32 %v11885_v0, %v3099_v35  ;;  %vm3102_vm6 = vweird.f32 %v11885_v0  ;;  %v1990_v35 = vpop.f32.mrf.mxu1 }
 0x39f   :  { %v8271_v21 = vpop.eup %8270  ;;  %v3144_v1 = vmul.f32 %v11911_v3, %v3143_v39  ;;  %v3152_v47 = vand.u32 2147483648, %v11817_v5  ;;  %vm3146_vm7 = vweird.f32 %v11817_v5  ;;  %v3158_v20 = vsub.f32 1.0, %v3157_v43  ;;  %v1901_v45 = vpop.f32.mrf.mxu0  ;;  %vm12015_vm9 = vmor %vm3101_vm2, %vm3102_vm6 }
 0x3a0   :  { %15366 = vst [vmem:[#allocation99_spill] sm:$0xff] %v11991_v24  ;;  %8278 = vrcp.f32 %v11965_v11  ;;  %v2166_v14 = vadd.f32 %v2165_v26, %v2076_v36  ;;  %v3094_v42 = vsel %vm11944_vm1, %v11936_v41, %v3089_v57  ;;  %vm12004_vm8 = vcmp.eq.f32.partialorder %v3150_v31, 8.507059e+37 }
 0x3a1   :  { %v11999_v37 = vpop.eup %8272  ;;  %v3165_v34 = vand.u32 2147483647, %v11883_v29  ;;  %v12009_v63 = vadd.f32 1.0, %v8269_v53  ;;  %v3167_v41 = vand.u32 2147483648, %v11883_v29  ;;  %v12020_v30 = vadd.f32 1.0, %v8271_v21 }
 0x3a2   :  { %v5200_v49 = vmul.f32 %v11556_v13, %v2166_v14  ;;  %v1991_v43 = vadd.f32 %v1990_v35, %v1901_v45  ;;  %v3104_v12 = vsel %vm12015_vm9, %v11885_v0, %v3100_v40  ;;  %v3145_v46 = vadd.f32 %v11911_v3, %v3144_v1  ;;  %v15372_v0 = vld [vmem:[#allocation132_spill] sm:$0xff] }
 0x3a3   :  { %v12023_v44 = vpop.eup %8274  ;;  %vm3147_vm10 = vweird.f32 %v11911_v3  ;;  %v3153_v9 = vor.u32 1.1754944e-38, %v3152_v47  ;;  %v3159_v53 = vmul.f32 %v11949_v6, %v3158_v20  ;;  %v3202_v57 = vmul.f32 %v11999_v37, %v11940_v59 }
 0x3a4   :  { %v8277_v31 = vpop.eup %8276  ;;  %v5203_v13 = vmul.f32 %v11582_v25, %v1991_v43  ;;  %v12034_v21 = vpack.c.bf16 %v5200_v49, %v5196_v58  ;;  %v12037_v36 = vmul.f32 %v3094_v42, %v15306_v52  ;;  %vm3161_vm11 = vweird.f32 %v11883_v29  ;;  %vm12048_vm12 = vmor %vm3146_vm7, %vm3147_vm10  ;;  %v2168_v14 = vpop.f32.mrf.mxu3  ;;  %v15381_v29 = vld [vmem:[#allocation133_spill] sm:$0xff] }
 0x3a5   :  { %8280 = vrcp.f32 %v12009_v63  ;;  %v7394_v40 = vmul.f32 -1.442695, %v15372_v0  ;;  %v3109_v47 = vsel %vm11981_vm5, %v3108_v7, %v3104_v12  ;;  %vm12052_vm13 = vcmp.eq.f32.partialorder %v3165_v34, 8.507059e+37  ;;  %v2079_v20 = vpop.f32.mrf.mxu2 }
 0x3a6   :  { %15371 = vst [vmem:[#allocation101_spill] sm:$0xff] %v12034_v21  ;;  %v12042_v1 = vpop.eup %8278  ;;  %v3168_v58 = vor.u32 1.1754944e-38, %v3167_v41  ;;  %8282 = vrcp.f32 %v12020_v30  ;;  %v3149_v26 = vsel %vm12048_vm12, %v11911_v3, %v3145_v46  ;;  %v3212_v32 = vand.u32 2147483648, %v11940_v59  ;;  %v1992_v43 = vpop.f32.mrf.mxu1 }
 0x3a7   :  { %v3217_v5 = vmul.f32 %v12023_v44, %v11953_v28  ;;  %v12063_v7 = vadd.f32 1.0, %v8277_v31  ;;  %v3160_v42 = vadd.f32 %v11949_v6, %v3159_v53  ;;  %vm3162_vm14 = vweird.f32 %v11949_v6  ;;  %v1903_v49 = vpop.f32.mrf.mxu0  ;;  %v15377_v31 = vld [vmem:[#allocation28_spill] sm:$0xff]  ;;  %v15378_v53 = vld [vmem:[#allocation29_spill] sm:$0xff] }
 0x3a8   :  { %v3203_v34 = vsub.f32 1.0, %v3202_v57  ;;  %v2169_v45 = vadd.f32 %v2168_v14, %v2079_v20  ;;  %v12068_v35 = vmul.f32 %v3109_v47, %v15308_v23  ;;  %v3210_v3 = vand.u32 2147483647, %v11940_v59  ;;  %2221 = vmatmul.bf16.gmra.mxu0 %v15377_v31  ;;  %2310 = vmatmul.bf16.gmra.mxu1 %v15378_v53  ;;  %vm12088_vm0 = vmor %vm3161_vm11, %vm3162_vm14 }
 0x3a9   :  { %v3227_v39 = vand.u32 2147483648, %v11953_v28  ;;  %v3262_v41 = vmul.f32 %v12042_v1, %v11965_v11  ;;  %v3154_v12 = vsel %vm12004_vm8, %v3153_v9, %v3149_v26  ;;  %vm3206_vm15 = vweird.f32 %v11940_v59  ;;  %2399 = vmatmul.bf16.gmra.mxu2 %v15377_v31  ;;  %2488 = vmatmul.bf16.gmra.mxu3 %v15378_v53 }
 0x3aa   :  { %8284 = vpow2.f32 %v7394_v40  ;;  %v12078_v46 = vmul.f32 %v11643_v2, %v2169_v45  ;;  %v1993_v23 = vadd.f32 %v1992_v43, %v1903_v49  ;;  %v12092_v9 = vor.u32 1.1754944e-38, %v3212_v32 }
 0x3ab   :  { %v12082_v57 = vpop.eup %8280  ;;  %v3218_v40 = vsub.f32 1.0, %v3217_v5  ;;  %v3225_v2 = vand.u32 2147483647, %v11953_v28  ;;  %8286 = vrcp.f32 %v12063_v7  ;;  %v3164_v25 = vsel %vm12088_vm0, %v11949_v6, %v3160_v42 }
 0x3ac   :  { %v12096_v47 = vpop.eup %8282  ;;  %v3204_v26 = vmul.f32 %v11999_v37, %v3203_v34  ;;  %v7395_v20 = vmul.f32 -1.442695, %v15381_v29  ;;  %v5207_v14 = vmul.f32 %v11652_v19, %v1993_v23  ;;  %v12107_v32 = vmul.f32 %v3154_v12, %v15309_v54  ;;  %v2170_v12 = vpop.f32.mrf.mxu3 }
 0x3ad   :  { %vm3221_vm1 = vweird.f32 %v11953_v28  ;;  %v12110_v5 = vor.u32 1.1754944e-38, %v3227_v39  ;;  %v3263_v45 = vsub.f32 1.0, %v3262_v41  ;;  %v3272_v6 = vand.u32 2147483648, %v11965_v11  ;;  %v15385_v41 = vld [vmem:[#allocation134_spill] sm:$0xff]  ;;  %v2081_v43 = vpop.f32.mrf.mxu2 }
 0x3ae   :  { %vm3207_vm2 = vweird.f32 %v11999_v37  ;;  %vm12114_vm3 = vcmp.eq.f32.partialorder %v3210_v3, 8.507059e+37  ;;  %vm3222_vm4 = vweird.f32 %v12023_v44  ;;  %v3277_v19 = vmul.f32 %v12082_v57, %v12009_v63 }
 0x3af   :  { %v12121_v54 = vpack.c.bf16 %v5207_v14, %v5203_v13  ;;  %v3169_v34 = vsel %vm12052_vm13, %v3168_v58, %v3164_v25  ;;  %v3219_v39 = vmul.f32 %v12023_v44, %v3218_v40  ;;  %vm3266_vm5 = vweird.f32 %v11965_v11  ;;  %v1906_v14 = vpop.f32.mrf.mxu0  ;;  %vm12147_vm6 = vmor %vm3206_vm15, %vm3207_vm2 }
 0x3b0   :  { %v3322_v3 = vmul.f32 %v12096_v47, %v12020_v30  ;;  %v7398_v49 = vmul.f32 -1.442695, %v15385_v41  ;;  %v8285_v23 = vpop.eup %8284  ;;  %v3205_v31 = vadd.f32 %v11999_v37, %v3204_v26  ;;  %v3270_v13 = vand.u32 2147483647, %v11965_v11  ;;  %vm12182_vm11 = vmor %vm3221_vm1, %vm3222_vm4 }
 0x3b1   :  { %15384 = vst [vmem:[#allocation173_spill] sm:$0xff] %v12121_v54  ;;  %8288 = vpow2.f32 %v7395_v20  ;;  %v2171_v53 = vadd.f32 %v2170_v12, %v2081_v43  ;;  %v12132_v52 = vpop.eup %8286  ;;  %v3264_v58 = vmul.f32 %v12042_v1, %v3263_v45  ;;  %v12135_v48 = vor.u32 1.1754944e-38, %v3272_v6  ;;  %v1995_v54 = vpop.f32.mrf.mxu1 }
 0x3b2   :  { %v3285_v40 = vand.u32 2147483647, %v12009_v63  ;;  %v3287_v25 = vand.u32 2147483648, %v12009_v63  ;;  %v12140_v21 = vmul.f32 %v3169_v34, %v15323_v38  ;;  %v3278_v26 = vsub.f32 1.0, %v3277_v19  ;;  %v7955_v34 = vld [vmem:[#allocation9 + $0x134] sm:$0xf0] }
 0x3b3   :  { %v5208_v24 = vmul.f32 %v11655_v51, %v2171_v53  ;;  %v1996_v20 = vadd.f32 %v1995_v54, %v1906_v14  ;;  %v12152_v6 = vadd.f32 %v12023_v44, %v3219_v39  ;;  %v3323_v43 = vsub.f32 1.0, %v3322_v3  ;;  %v7654_v54 = vld [vmem:[#allocation9 + $0x130] sm:$0xf] }
 0x3b4   :  { %v12154_v12 = vadd.f32 1.0, %v8285_v23  ;;  %8290 = vpow2.f32 %v7398_v49  ;;  %v3209_v51 = vsel %vm12147_vm6, %v11999_v37, %v3205_v31  ;;  %vm12159_vm7 = vcmp.eq.f32.partialorder %v3225_v2, 8.507059e+37  ;;  %v7718_v39 = vld [vmem:[#allocation9 + $0x1b0] sm:$0xf]  ;;  %v15391_v2 = vld [vmem:[#allocation137_spill] sm:$0xff] }
 0x3b5   :  { %vm3281_vm8 = vweird.f32 %v12009_v63  ;;  %v3337_v59 = vmul.f32 %v12132_v52, %v12063_v7  ;;  %v12167_v19 = vmul.f32 %v11680_v8, %v1996_v20  ;;  %v12170_v3 = vpack.c.bf16 %v5208_v24, %v12078_v46  ;;  %v7971_v31 = vld [vmem:[#allocation9 + $0x1b4] sm:$0xf0] }
 0x3b6   :  { %v12173_v37 = vadd.f32 %v12042_v1, %v3264_v58  ;;  %vm3267_vm9 = vweird.f32 %v12042_v1  ;;  %vm3326_vm10 = vweird.f32 %v12020_v30  ;;  %v7399_v49 = vmul.f32 -1.442695, %v15391_v2 }
 0x3b7   :  { %15390 = vst [vmem:[#allocation105_spill] sm:$0xff] %v12170_v3  ;;  %v7655_v23 = vor.u32 %v7955_v34, %v7654_v54  ;;  %v8289_v53 = vpop.eup %8288  ;;  %vm12186_vm12 = vcmp.eq.f32.partialorder %v3270_v13, 8.507059e+37  ;;  %v3279_v46 = vmul.f32 %v12082_v57, %v3278_v26  ;;  %v12191_v58 = vor.u32 1.1754944e-38, %v3287_v25  ;;  %v15396_v54 = vld [vmem:[#allocation138_spill] sm:$0xff]  ;;  %v2084_v3 = vpop.f32.mrf.mxu2  ;;  %vm12207_vm13 = vmor %vm3266_vm5, %vm3267_vm9 }
 0x3b8   :  { %v3330_v14 = vand.u32 2147483647, %v12020_v30  ;;  %v7719_v20 = vor.u32 %v7971_v31, %v7718_v39  ;;  %v3214_v45 = vsel %vm12114_vm3, %v12092_v9, %v3209_v51  ;;  %v3224_v28 = vsel %vm12182_vm11, %v12023_v44, %v12152_v6  ;;  %v2173_v26 = vpop.f32.mrf.mxu3  ;;  %v15401_v51 = vld [vmem:[#allocation139_spill] sm:$0xff] }
 0x3b9   :  { %v3324_v13 = vmul.f32 %v12096_v47, %v3323_v43  ;;  %v7402_v34 = vmul.f32 -1.442695, %v15396_v54  ;;  %5921 = vmatpush.bf16.msra.mxu2 %v7655_v23  ;;  %vm3282_vm14 = vweird.f32 %v12082_v57  ;;  %v3338_v9 = vsub.f32 1.0, %v3337_v59  ;;  %v1908_v59 = vpop.f32.mrf.mxu0  ;;  %v1997_v23 = vpop.f32.mrf.mxu1 }
 0x3ba   :  { %8292 = vrcp.f32 %v12154_v12  ;;  %v2174_v44 = vadd.f32 %v2173_v26, %v2084_v3  ;;  %6010 = vmatpush.bf16.msra.mxu3 %v7719_v20  ;;  %v8291_v42 = vpop.eup %8290  ;;  %v3269_v6 = vsel %vm12207_vm13, %v12042_v1, %v12173_v37  ;;  %vm12217_vm15 = vcmp.eq.f32.partialorder %v3285_v40, 8.507059e+37  ;;  %v15402_v1 = vld [vmem:[#allocation30_spill] sm:$0xff]  ;;  %v15403_v40 = vld [vmem:[#allocation31_spill] sm:$0xff]  ;;  %v15404_v26 = vld [vmem:[#allocation140_spill] sm:$0xff] }
 0x3bb   :  { %v12221_v11 = vadd.f32 1.0, %v8289_v53  ;;  %8294 = vpow2.f32 %v7399_v49  ;;  %v7403_v39 = vmul.f32 -1.442695, %v15401_v51  ;;  %v3280_v3 = vadd.f32 %v12082_v57, %v3279_v46  ;;  %2226 = vmatmul.bf16.gmra.mxu0 %v15402_v1  ;;  %2315 = vmatmul.bf16.gmra.mxu1 %v15403_v40  ;;  %v7526_v37 = vld [vmem:[#allocation9 + $0x30] sm:$0xf]  ;;  %vm12249_vm1 = vmor %vm3281_vm8, %vm3282_vm14 }
 0x3bc   :  { %vm3327_vm0 = vweird.f32 %v12096_v47  ;;  %v12227_v31 = vmul.f32 %v11786_v60, %v2174_v44  ;;  %v1998_v8 = vadd.f32 %v1997_v23, %v1908_v59  ;;  %v7923_v53 = vld [vmem:[#allocation9 + $0x34] sm:$0xf0]  ;;  %v7590_v20 = vld [vmem:[#allocation9 + $0xb0] sm:$0xf]  ;;  %v3325_v49 = vadd.f32 %v12096_v47, %v3324_v13  ;;  %2404 = vmatmul.bf16.gmra.mxu2 %v15402_v1  ;;  %2493 = vmatmul.bf16.gmra.mxu3 %v15403_v40 }
 0x3bd   :  { %8296 = vpow2.f32 %v7402_v34  ;;  %v7406_v25 = vmul.f32 -1.442695, %v15404_v26  ;;  %v7527_v27 = vor.u32 %v7923_v53, %v7526_v37  ;;  %v7939_v46 = vld [vmem:[#allocation9 + $0xb4] sm:$0xf0]  ;;  %v3339_v55 = vmul.f32 %v12132_v52, %v3338_v9  ;;  %vm12260_vm2 = vmor %vm3326_vm10, %vm3327_vm0 }
 0x3be   :  { %v12234_v51 = vadd.f32 1.0, %v8291_v42  ;;  %v5215_v60 = vmul.f32 %v11825_v10, %v1998_v8  ;;  %v7591_v44 = vor.u32 %v7939_v46, %v7590_v20  ;;  %v12240_v59 = vmul.f32 %v3214_v45, %v15331_v62 }
 0x3bf   :  { %v3229_v13 = vsel %vm12159_vm7, %v12110_v5, %v3224_v28  ;;  %v3332_v10 = vand.u32 2147483648, %v12020_v30  ;;  %8298 = vpow2.f32 %v7403_v39  ;;  %5743 = vmatpush.bf16.msra.mxu0 %v7527_v27  ;;  %vm12264_vm3 = vcmp.eq.f32.partialorder %v3330_v14, 8.507059e+37  ;;  %v2086_v28 = vpop.f32.mrf.mxu2 }
 0x3c0   :  { %v12254_v9 = vpop.eup %8292  ;;  %v3345_v5 = vand.u32 2147483647, %v12063_v7  ;;  %8300 = vrcp.f32 %v12221_v11  ;;  %5832 = vmatpush.bf16.msra.mxu1 %v7591_v44  ;;  %v12271_v27 = vpack.c.bf16 %v5215_v60, %v12167_v19  ;;  %v3274_v30 = vsel %vm12186_vm12, %v12135_v48, %v3269_v6  ;;  %v2175_v42 = vpop.f32.mrf.mxu3 }
 0x3c1   :  { %v8295_v38 = vpop.eup %8294  ;;  %v3284_v14 = vsel %vm12249_vm1, %v12082_v57, %v3280_v3  ;;  %v3329_v45 = vsel %vm12260_vm2, %v12096_v47, %v3325_v49  ;;  %8302 = vpow2.f32 %v7406_v25  ;;  %v3340_v39 = vadd.f32 %v12132_v52, %v3339_v55  ;;  %v1911_v47 = vpop.f32.mrf.mxu0 }
 0x3c2   :  { %15411 = vst [vmem:[#allocation75_spill] sm:$0xff] %v12271_v27  ;;  %vm3342_vm4 = vweird.f32 %v12132_v52  ;;  %8304 = vrcp.f32 %v12234_v51  ;;  %v2176_v19 = vadd.f32 %v2175_v42, %v2086_v28  ;;  %v3333_v48 = vor.u32 1.1754944e-38, %v3332_v10  ;;  %v2000_v23 = vpop.f32.mrf.mxu1 }
 0x3c3   :  { %v8297_v24 = vpop.eup %8296  ;;  %vm3341_vm5 = vweird.f32 %v12063_v7  ;;  %v3347_v57 = vand.u32 2147483648, %v12063_v7  ;;  %v3382_v6 = vmul.f32 %v12254_v9, %v12154_v12  ;;  %v3289_v55 = vsel %vm12217_vm15, %v12191_v58, %v3284_v14  ;;  %v15421_v14 = vld [vmem:[#allocation142_spill] sm:$0xff] }
 0x3c4   :  { %v12292_v3 = vadd.f32 1.0, %v8295_v38  ;;  %v5216_v8 = vmul.f32 %v11914_v18, %v2176_v19  ;;  %v2001_v1 = vadd.f32 %v2000_v23, %v1911_v47  ;;  %v12296_v37 = vmul.f32 %v3229_v13, %v15340_v50  ;;  %vm12305_vm6 = vmor %vm3341_vm5, %vm3342_vm4 }
 0x3c5   :  { %v8299_v40 = vpop.eup %8298  ;;  %v12299_v7 = vmul.f32 %v3274_v30, %v15342_v22  ;;  %v3334_v53 = vsel %vm12264_vm3, %v3333_v48, %v3329_v45  ;;  %vm12309_vm7 = vcmp.eq.f32.partialorder %v3345_v5, 8.507059e+37  ;;  %v3344_v50 = vsel %vm12305_vm6, %v12132_v52, %v3340_v39  ;;  %v15419_v5 = vld [vmem:[#allocation143_spill] sm:$0xff]  ;;  %v15420_v30 = vld [vmem:[#allocation141_spill] sm:$0xff] }
 0x3c6   :  { %v12313_v18 = vpop.eup %8300  ;;  %v12318_v22 = vadd.f32 1.0, %v8297_v24  ;;  %v5219_v20 = vmul.f32 %v11917_v56, %v2001_v1  ;;  %v12322_v49 = vpack.c.bf16 %v5216_v8, %v12227_v31  ;;  %v12325_v46 = vmul.f32 %v3289_v55, %v15351_v4  ;;  %v15417_v56 = vld [vmem:[#allocation135_spill] sm:$0xff]  ;;  %v15418_v31 = vld [vmem:[#allocation136_spill] sm:$0xff] }
 0x3c7   :  { %v8303_v25 = vpop.eup %8302  ;;  %v3348_v60 = vor.u32 1.1754944e-38, %v3347_v57  ;;  %v3383_v44 = vsub.f32 1.0, %v3382_v6  ;;  %v3392_v13 = vand.u32 2147483648, %v12154_v12  ;;  %v12331_v10 = vmul.f32 %v3334_v53, %v15355_v16  ;;  %v2089_v16 = vpop.f32.mrf.mxu2  ;;  %v15423_v53 = vld [vmem:[#allocation33_spill] sm:$0xff] }
 0x3c8   :  { %15416 = vst [vmem:[#allocation106_spill] sm:$0xff] %v12322_v49  ;;  %v12328_v34 = vpop.eup %8304  ;;  %8306 = vrcp.f32 %v12292_v3  ;;  %v12334_v52 = vadd.f32 1.0, %v8299_v40  ;;  %v12338_v62 = vadd.f32 %v15418_v31, %v15417_v56  ;;  %v3390_v63 = vand.u32 2147483647, %v12154_v12  ;;  %v2178_v28 = vpop.f32.mrf.mxu3  ;;  %v15422_v40 = vld [vmem:[#allocation32_spill] sm:$0xff] }
 0x3c9   :  { %v3349_v4 = vsel %vm12309_vm7, %v3348_v60, %v3344_v50  ;;  %v7407_v38 = vmul.f32 -1.442695, %v15419_v5  ;;  %v12346_v45 = vadd.f32 %v15421_v14, %v15420_v30  ;;  %vm3386_vm8 = vweird.f32 %v12154_v12  ;;  %v1913_v47 = vpop.f32.mrf.mxu0 }
 0x3ca   :  { %v3397_v42 = vmul.f32 %v12313_v18, %v12221_v11  ;;  %8308 = vrcp.f32 %v12318_v22  ;;  %v12352_v39 = vadd.f32 1.0, %v8303_v25  ;;  %v2179_v19 = vadd.f32 %v2178_v28, %v2089_v16  ;;  %v2002_v23 = vpop.f32.mrf.mxu1  ;;  %v15429_v28 = vld [vmem:[#allocation146_spill] sm:$0xff] }
 0x3cb   :  { %v3384_v24 = vmul.f32 %v12254_v9, %v3383_v44  ;;  %v12355_v48 = vor.u32 1.1754944e-38, %v3392_v13  ;;  %v3407_v57 = vand.u32 2147483648, %v12221_v11  ;;  %v3442_v6 = vmul.f32 %v12328_v34, %v12234_v51  ;;  %2231 = vmatmul.bf16.gmra.mxu0 %v15422_v40  ;;  %2320 = vmatmul.bf16.gmra.mxu1 %v15423_v53 }
 0x3cc   :  { %8310 = vrcp.f32 %v12334_v52  ;;  %v7410_v55 = vmul.f32 -1.442695, %v12338_v62  ;;  %v12363_v8 = vmul.f32 %v11925_v61, %v2179_v19  ;;  %v2003_v1 = vadd.f32 %v2002_v23, %v1913_v47  ;;  %2409 = vmatmul.bf16.gmra.mxu2 %v15422_v40  ;;  %2498 = vmatmul.bf16.gmra.mxu3 %v15423_v53 }
 0x3cd   :  { %v12368_v43 = vmul.f32 %v3349_v4, %v15358_v15  ;;  %v3405_v58 = vand.u32 2147483647, %v12221_v11  ;;  %v3450_v50 = vand.u32 2147483647, %v12234_v51  ;;  %v3452_v25 = vand.u32 2147483648, %v12234_v51 }
 0x3ce   :  { %v12373_v60 = vpop.eup %8306  ;;  %vm12375_vm9 = vcmp.eq.f32.partialorder %v3390_v63, 8.507059e+37  ;;  %v3398_v61 = vsub.f32 1.0, %v3397_v42  ;;  %v3467_v13 = vand.u32 2147483648, %v12292_v3  ;;  %8312 = vrcp.f32 %v12352_v39 }
 0x3cf   :  { %v5223_v15 = vmul.f32 %v11932_v17, %v2003_v1  ;;  %vm3387_vm10 = vweird.f32 %v12254_v9  ;;  %v12385_v56 = vor.u32 1.1754944e-38, %v3407_v57  ;;  %v3512_v31 = vand.u32 2147483648, %v12318_v22 }
 0x3d0   :  { %8314 = vpow2.f32 %v7407_v38  ;;  %v12388_v4 = vpop.eup %8308  ;;  %v3385_v63 = vadd.f32 %v12254_v9, %v3384_v24  ;;  %vm3401_vm11 = vweird.f32 %v12221_v11  ;;  %v3443_v30 = vsub.f32 1.0, %v3442_v6  ;;  %v2091_v38 = vpop.f32.mrf.mxu2  ;;  %vm12411_vm14 = vmor %vm3386_vm8, %vm3387_vm10 }
 0x3d1   :  { %8316 = vpow2.f32 %v7410_v55  ;;  %v12392_v17 = vpack.c.bf16 %v5223_v15, %v5219_v20  ;;  %vm3402_vm12 = vweird.f32 %v12313_v18  ;;  %v12395_v14 = vor.u32 1.1754944e-38, %v3452_v25  ;;  %v2180_v42 = vpop.f32.mrf.mxu3  ;;  %v2192_v40 = vpop.f32.mrf.mxu0 }
 0x3d2   :  { %v3457_v16 = vmul.f32 %v12373_v60, %v12292_v3  ;;  %v12400_v19 = vpop.eup %8310  ;;  %v3399_v24 = vmul.f32 %v12313_v18, %v3398_v61  ;;  %vm3446_vm13 = vweird.f32 %v12234_v51  ;;  %v12404_v57 = vor.u32 1.1754944e-38, %v3467_v13  ;;  %v2281_v53 = vpop.f32.mrf.mxu1  ;;  %vm12466_vm4 = vmor %vm3401_vm11, %vm3402_vm12 }
 0x3d3   :  { %15426 = vst [vmem:[#allocation81_spill] sm:$0xff] %v12392_v17  ;;  %v7411_v20 = vmul.f32 -1.442695, %v12346_v45  ;;  %v2181_v6 = vadd.f32 %v2180_v42, %v2091_v38  ;;  %vm3447_vm15 = vweird.f32 %v12328_v34  ;;  %v3502_v23 = vmul.f32 %v12388_v4, %v12318_v22 }
 0x3d4   :  { %v12419_v1 = vor.u32 1.1754944e-38, %v3512_v31  ;;  %v12421_v25 = vpop.eup %8312  ;;  %v3389_v12 = vsel %vm12411_vm14, %v12254_v9, %v3385_v63  ;;  %v3444_v61 = vmul.f32 %v12328_v34, %v3443_v30  ;;  %v2282_v15 = vadd.f32 %v2281_v53, %v2192_v40  ;;  %v7646_v63 = vld [vmem:[#allocation9 + $0x120] sm:$0xf]  ;;  %v7953_v30 = vld [vmem:[#allocation9 + $0x124] sm:$0xf0]  ;;  %vm12489_vm6 = vmor %vm3446_vm13, %vm3447_vm15 }
 0x3d5   :  { %v5224_v13 = vmul.f32 %v11971_v33, %v2181_v6  ;;  %v3458_v42 = vsub.f32 1.0, %v3457_v16  ;;  %v3517_v55 = vmul.f32 %v12400_v19, %v12334_v52  ;;  %v7414_v17 = vmul.f32 -1.442695, %v15429_v28  ;;  %v7710_v16 = vld [vmem:[#allocation9 + $0x1a0] sm:$0xf] }
 0x3d6   :  { %v8315_v38 = vpop.eup %8314  ;;  %v12433_v27 = vadd.f32 %v12313_v18, %v3399_v24  ;;  %vm12435_vm0 = vcmp.eq.f32.partialorder %v3405_v58, 8.507059e+37  ;;  %vm3462_vm1 = vweird.f32 %v12373_v60  ;;  %8318 = vpow2.f32 %v7411_v20  ;;  %v7969_v40 = vld [vmem:[#allocation9 + $0x1a4] sm:$0xf0] }
 0x3d7   :  { %v8317_v49 = vpop.eup %8316  ;;  %v12441_v33 = vmul.f32 %v12037_v36, %v2282_v15  ;;  %v12444_v6 = vpack.c.bf16 %v5224_v13, %v12363_v8  ;;  %v3394_v24 = vsel %vm12375_vm9, %v12355_v48, %v3389_v12  ;;  %vm12449_vm2 = vcmp.eq.f32.partialorder %v3450_v50, 8.507059e+37  ;;  %v15437_v12 = vld [vmem:[#allocation144_spill] sm:$0xff]  ;;  %v15445_v50 = vld [vmem:[#allocation34_spill] sm:$0xff] }
 0x3d8   :  { %v3503_v47 = vsub.f32 1.0, %v3502_v23  ;;  %v12455_v20 = vmul.f32 %v12421_v25, %v12352_v39  ;;  %v7647_v36 = vor.u32 %v7953_v30, %v7646_v63  ;;  %v3445_v53 = vadd.f32 %v12328_v34, %v3444_v61  ;;  %v15438_v61 = vld [vmem:[#allocation145_spill] sm:$0xff] }
 0x3d9   :  { %15432 = vst [vmem:[#allocation108_spill] sm:$0xff] %v12444_v6  ;;  %vm3461_vm3 = vweird.f32 %v12292_v3  ;;  %v3527_v8 = vand.u32 2147483648, %v12334_v52  ;;  %v12460_v13 = vadd.f32 1.0, %v8315_v38  ;;  %v7711_v48 = vor.u32 %v7969_v40, %v7710_v16  ;;  %v2370_v38 = vpop.f32.mrf.mxu2  ;;  %v2459_v63 = vpop.f32.mrf.mxu3 }
 0x3da   :  { %vm3506_vm5 = vweird.f32 %v12318_v22  ;;  %v3518_v44 = vsub.f32 1.0, %v3517_v55  ;;  %v12471_v23 = vadd.f32 1.0, %v8317_v49  ;;  %8320 = vpow2.f32 %v7414_v17  ;;  %5922 = vmatpush.bf16.msra.mxu2 %v7647_v36  ;;  %v2194_v16 = vpop.f32.mrf.mxu0  ;;  %vm12550_vm13 = vmor %vm3461_vm3, %vm3462_vm1 }
 0x3db   :  { %v12475_v15 = vadd.f32 %v15438_v61, %v15437_v12  ;;  %v12478_v30 = vmul.f32 %v3394_v24, %v15372_v0  ;;  %v3404_v11 = vsel %vm12466_vm4, %v12313_v18, %v12433_v27  ;;  %v3459_v55 = vmul.f32 %v12373_v60, %v3458_v42  ;;  %6011 = vmatpush.bf16.msra.mxu3 %v7711_v48  ;;  %v15441_v18 = vld [vmem:[#allocation147_spill] sm:$0xff]  ;;  %v2283_v24 = vpop.f32.mrf.mxu1  ;;  %v7518_v61 = vld [vmem:[#allocation9 + $0x20] sm:$0xf] }
 0x3dc   :  { %v2460_v49 = vadd.f32 %v2459_v63, %v2370_v38  ;;  %v3504_v0 = vmul.f32 %v12388_v4, %v3503_v47  ;;  %vm3507_vm7 = vweird.f32 %v12388_v4  ;;  %vm3521_vm8 = vweird.f32 %v12334_v52  ;;  %v8319_v36 = vpop.eup %8318  ;;  %2236 = vmatmul.bf16.gmra.mxu0 %v15445_v50  ;;  %v15446_v12 = vld [vmem:[#allocation35_spill] sm:$0xff]  ;;  %v7921_v38 = vld [vmem:[#allocation9 + $0x24] sm:$0xf0]  ;;  %v7582_v63 = vld [vmem:[#allocation9 + $0xa0] sm:$0xf]  ;;  %2414 = vmatmul.bf16.gmra.mxu2 %v15445_v50 }
 0x3dd   :  { %v3563_v27 = vsub.f32 1.0, %v12455_v20  ;;  %v7415_v42 = vmul.f32 -1.442695, %v15441_v18  ;;  %v3449_v51 = vsel %vm12489_vm6, %v12328_v34, %v3445_v53  ;;  %v15442_v40 = vand.u32 2147483647, %v12292_v3  ;;  %2325 = vmatmul.bf16.gmra.mxu1 %v15446_v12  ;;  %2503 = vmatmul.bf16.gmra.mxu3 %v15446_v12  ;;  %vm12566_vm15 = vmor %vm3506_vm5, %vm3507_vm7 }
 0x3de   :  { %8322 = vrcp.f32 %v12460_v13  ;;  %v12509_v47 = vmul.f32 %v12068_v35, %v2460_v49  ;;  %v2284_v20 = vadd.f32 %v2283_v24, %v2194_v16  ;;  %v3519_v34 = vmul.f32 %v12400_v19, %v3518_v44 }
 0x3df   :  { %vm12503_vm9 = vcmp.eq.f32.partialorder %v15442_v40, 8.507059e+37  ;;  %8324 = vrcp.f32 %v12471_v23  ;;  %v7418_v53 = vmul.f32 -1.442695, %v12475_v15  ;;  %v7519_v17 = vor.u32 %v7921_v38, %v7518_v61  ;;  %v7937_v40 = vld [vmem:[#allocation9 + $0xa4] sm:$0xf0] }
 0x3e0   :  { %v3460_v31 = vadd.f32 %v12373_v60, %v3459_v55  ;;  %v15447_v35 = vand.u32 2147483647, %v12318_v22  ;;  %v3528_v16 = vor.u32 1.1754944e-38, %v3527_v8  ;;  %v5105_v24 = vmul.f32 %v12107_v32, %v2284_v20  ;;  %v8321_v6 = vpop.eup %8320  ;;  %v15459_v22 = vld [vmem:[#allocation149_spill] sm:$0xff] }
 0x3e1   :  { %v7583_v44 = vor.u32 %v7937_v40, %v7582_v63  ;;  %v3409_v61 = vsel %vm12435_vm0, %v12385_v56, %v3404_v11  ;;  %v3505_v55 = vadd.f32 %v12388_v4, %v3504_v0  ;;  %v15450_v38 = vand.u32 2147483647, %v12334_v52  ;;  %5744 = vmatpush.bf16.msra.mxu0 %v7519_v17 }
 0x3e2   :  { %vm12519_vm10 = vcmp.eq.f32.partialorder %v15447_v35, 8.507059e+37  ;;  %v12536_v8 = vadd.f32 1.0, %v8319_v36  ;;  %8326 = vpow2.f32 %v7415_v42  ;;  %v3454_v32 = vsel %vm12449_vm2, %v12395_v14, %v3449_v51  ;;  %v15456_v14 = vld [vmem:[#allocation148_spill] sm:$0xff]  ;;  %v2461_v42 = vpop.f32.mrf.mxu3 }
 0x3e3   :  { %vm12532_vm11 = vcmp.eq.f32.partialorder %v15450_v38, 8.507059e+37  ;;  %vm3522_vm12 = vweird.f32 %v12400_v19  ;;  %v3564_v56 = vmul.f32 %v12421_v25, %v3563_v27  ;;  %v12544_v9 = vpack.c.bf16 %v5105_v24, %v12441_v33  ;;  %5833 = vmatpush.bf16.msra.mxu1 %v7583_v44  ;;  %v2372_v27 = vpop.f32.mrf.mxu2 }
 0x3e4   :  { %v3520_v0 = vadd.f32 %v12400_v19, %v3519_v34  ;;  %vm3566_vm14 = vweird.f32 %v12352_v39  ;;  %8328 = vpow2.f32 %v7418_v53  ;;  %v7419_v58 = vmul.f32 -1.442695, %v15456_v14  ;;  %v12557_v33 = vpop.eup %8322  ;;  %v2197_v34 = vpop.f32.mrf.mxu0  ;;  %vm12585_vm0 = vmor %vm3521_vm8, %vm3522_vm12 }
 0x3e5   :  { %15453 = vst [vmem:[#allocation77_spill] sm:$0xff] %v12544_v9  ;;  %v3464_v36 = vsel %vm12550_vm13, %v12373_v60, %v3460_v31  ;;  %v3570_v51 = vand.u32 2147483647, %v12352_v39  ;;  %v12571_v20 = vadd.f32 1.0, %v8321_v6  ;;  %v2462_v50 = vadd.f32 %v2461_v42, %v2372_v27  ;;  %v12573_v12 = vpop.eup %8324  ;;  %v2286_v53 = vpop.f32.mrf.mxu1  ;;  %v15467_v6 = vld [vmem:[#allocation37_spill] sm:$0xff] }
 0x3e6   :  { %v3509_v63 = vsel %vm12566_vm15, %v12388_v4, %v3505_v55  ;;  %v3572_v60 = vand.u32 2147483648, %v12352_v39  ;;  %8330 = vrcp.f32 %v12536_v8  ;;  %v7422_v31 = vmul.f32 -1.442695, %v15459_v22 }
 0x3e7   :  { %v3565_v17 = vadd.f32 %v12421_v25, %v3564_v56  ;;  %vm3567_vm1 = vweird.f32 %v12421_v25  ;;  %v5106_v4 = vmul.f32 %v12140_v21, %v2462_v50  ;;  %v2287_v40 = vadd.f32 %v2286_v53, %v2197_v34  ;;  %v15466_v53 = vld [vmem:[#allocation36_spill] sm:$0xff] }
 0x3e8   :  { %v8327_v24 = vpop.eup %8326  ;;  %v3469_v44 = vsel %vm12503_vm9, %v12404_v57, %v3464_v36  ;;  %v3524_v52 = vsel %vm12585_vm0, %v12400_v19, %v3520_v0  ;;  %v3577_v55 = vmul.f32 %v12557_v33, %v12460_v13  ;;  %8332 = vpow2.f32 %v7419_v58  ;;  %vm12620_vm2 = vmor %vm3566_vm14, %vm3567_vm1  ;;  %v15465_v36 = vld [vmem:[#allocation139_spill] sm:$0xff] }
 0x3e9   :  { %v3622_v38 = vmul.f32 %v12573_v12, %v12471_v23  ;;  %8334 = vrcp.f32 %v12571_v20  ;;  %v12604_v21 = vpack.c.bf16 %v5106_v4, %v12509_v47  ;;  %v5109_v56 = vmul.f32 %v12240_v59, %v2287_v40 }
 0x3ea   :  { %v8329_v48 = vpop.eup %8328  ;;  %v12608_v57 = vmul.f32 %v3409_v61, %v15381_v29  ;;  %v12611_v19 = vmul.f32 %v3454_v32, %v15385_v41  ;;  %v3514_v11 = vsel %vm12519_vm10, %v12419_v1, %v3509_v63  ;;  %8336 = vpow2.f32 %v7422_v31  ;;  %v2464_v58 = vpop.f32.mrf.mxu3 }
 0x3eb   :  { %15462 = vst [vmem:[#allocation78_spill] sm:$0xff] %v12604_v21  ;;  %v3529_v29 = vsel %vm12532_vm11, %v3528_v16, %v3524_v52  ;;  %v3569_v41 = vsel %vm12620_vm2, %v12421_v25, %v3565_v17  ;;  %vm3571_vm3 = vcmp.eq.f32.partialorder %v3570_v51, 8.507059e+37  ;;  %v12629_v59 = vadd.f32 1.0, %v8327_v24  ;;  %v2375_v0 = vpop.f32.mrf.mxu2 }
 0x3ec   :  { %v12631_v1 = vpop.eup %8330  ;;  %v12634_v49 = vmul.f32 %v3469_v44, %v15391_v2  ;;  %v3573_v39 = vor.u32 1.1754944e-38, %v3572_v60  ;;  %v3578_v61 = vsub.f32 1.0, %v3577_v55  ;;  %v3587_v32 = vand.u32 2147483648, %v12460_v13  ;;  %v2199_v50 = vpop.f32.mrf.mxu0  ;;  %2241 = vmatmul.bf16.gmra.mxu0 %v15466_v53  ;;  %2419 = vmatmul.bf16.gmra.mxu2 %v15466_v53 }
 0x3ed   :  { %v12638_v16 = vmul.f32 %v3514_v11, %v15396_v54  ;;  %v3623_v35 = vsub.f32 1.0, %v3622_v38  ;;  %v12640_v27 = vadd.f32 1.0, %v8329_v48  ;;  %v2465_v25 = vadd.f32 %v2464_v58, %v2375_v0  ;;  %v2288_v63 = vpop.f32.mrf.mxu1  ;;  %2330 = vmatmul.bf16.gmra.mxu1 %v15467_v6  ;;  %2508 = vmatmul.bf16.gmra.mxu3 %v15467_v6 }
 0x3ee   :  { %v8333_v42 = vpop.eup %8332  ;;  %v12643_v3 = vmul.f32 %v3529_v29, %v15465_v36  ;;  %v3574_v51 = vsel %vm3571_vm3, %v3573_v39, %v3569_v41  ;;  %vm3581_vm4 = vweird.f32 %v12460_v13  ;;  %v3585_v2 = vand.u32 2147483647, %v12460_v13  ;;  %v15470_v41 = vld [vmem:[#allocation150_spill] sm:$0xff] }
 0x3ef   :  { %v12647_v60 = vpop.eup %8334  ;;  %v3637_v54 = vmul.f32 %v12631_v1, %v12536_v8  ;;  %8338 = vrcp.f32 %v12629_v59  ;;  %v5110_v31 = vmul.f32 %v12296_v37, %v2465_v25  ;;  %v2289_v34 = vadd.f32 %v2288_v63, %v2199_v50 }
 0x3f0   :  { %v8337_v17 = vpop.eup %8336  ;;  %v3579_v4 = vmul.f32 %v12557_v33, %v3578_v61  ;;  %v12656_v40 = vor.u32 1.1754944e-38, %v3587_v32  ;;  %v3630_v24 = vand.u32 2147483647, %v12471_v23  ;;  %v3632_v44 = vand.u32 2147483648, %v12471_v23 }
 0x3f1   :  { %v3624_v52 = vmul.f32 %v12573_v12, %v3623_v35  ;;  %8340 = vrcp.f32 %v12640_v27  ;;  %v12662_v55 = vadd.f32 1.0, %v8333_v42  ;;  %v5113_v37 = vmul.f32 %v12299_v7, %v2289_v34 }
 0x3f2   :  { %v12668_v38 = vmul.f32 %v3574_v51, %v15404_v26  ;;  %vm3626_vm5 = vweird.f32 %v12471_v23  ;;  %v3647_v48 = vand.u32 2147483648, %v12536_v8  ;;  %v3682_v11 = vmul.f32 %v12647_v60, %v12571_v20  ;;  %v2466_v35 = vpop.f32.mrf.mxu3 }
 0x3f3   :  { %vm12674_vm6 = vcmp.eq.f32.partialorder %v3585_v2, 8.507059e+37  ;;  %v3638_v29 = vsub.f32 1.0, %v3637_v54  ;;  %v12678_v7 = vadd.f32 1.0, %v8337_v17  ;;  %v7423_v39 = vmul.f32 -1.442695, %v15470_v41  ;;  %v2377_v58 = vpop.f32.mrf.mxu2 }
 0x3f4   :  { %v12681_v61 = vpack.c.bf16 %v5113_v37, %v5109_v56  ;;  %vm3582_vm7 = vweird.f32 %v12557_v33  ;;  %vm3627_vm8 = vweird.f32 %v12573_v12  ;;  %vm12685_vm9 = vcmp.eq.f32.partialorder %v3630_v24, 8.507059e+37  ;;  %v2202_v54 = vpop.f32.mrf.mxu0 }
 0x3f5   :  { %v3633_v32 = vor.u32 1.1754944e-38, %v3632_v44  ;;  %v3692_v0 = vand.u32 2147483648, %v12571_v20  ;;  %v12690_v25 = vpop.eup %8338  ;;  %v3580_v42 = vadd.f32 %v12557_v33, %v3579_v4  ;;  %v3625_v56 = vadd.f32 %v12573_v12, %v3624_v52  ;;  %v2291_v34 = vpop.f32.mrf.mxu1  ;;  %vm12706_vm11 = vmor %vm3581_vm4, %vm3582_vm7 }
 0x3f6   :  { %15471 = vst [vmem:[#allocation103_spill] sm:$0xff] %v12681_v61  ;;  %vm3641_vm10 = vweird.f32 %v12536_v8  ;;  %8342 = vrcp.f32 %v12662_v55  ;;  %v2467_v36 = vadd.f32 %v2466_v35, %v2377_v58  ;;  %v3645_v51 = vand.u32 2147483647, %v12536_v8  ;;  %vm12717_vm12 = vmor %vm3626_vm5, %vm3627_vm8  ;;  %v7935_v61 = vld [vmem:[#allocation9 + $0x94] sm:$0xf0] }
 0x3f7   :  { %v12697_v2 = vor.u32 1.1754944e-38, %v3647_v48  ;;  %v3683_v50 = vsub.f32 1.0, %v3682_v11  ;;  %v3690_v63 = vand.u32 2147483647, %v12571_v20  ;;  %v12700_v53 = vpop.eup %8340  ;;  %v3639_v17 = vmul.f32 %v12631_v1, %v3638_v29  ;;  %v7638_v11 = vld [vmem:[#allocation9 + $0x110] sm:$0xf] }
 0x3f8   :  { %8344 = vrcp.f32 %v12678_v7  ;;  %v5114_v4 = vmul.f32 %v12325_v46, %v2467_v36  ;;  %v2292_v24 = vadd.f32 %v2291_v34, %v2202_v54  ;;  %v12721_v13 = vor.u32 1.1754944e-38, %v3692_v0  ;;  %v7951_v29 = vld [vmem:[#allocation9 + $0x114] sm:$0xf0]  ;;  %v7702_v0 = vld [vmem:[#allocation9 + $0x190] sm:$0xf] }
 0x3f9   :  { %v3697_v52 = vmul.f32 %v12690_v25, %v12629_v59  ;;  %v3707_v37 = vand.u32 2147483648, %v12629_v59  ;;  %8346 = vpow2.f32 %v7423_v39  ;;  %v3584_v46 = vsel %vm12706_vm11, %v12557_v33, %v3580_v42  ;;  %v15479_v36 = vld [vmem:[#allocation151_spill] sm:$0xff] }
 0x3fa   :  { %v3629_v23 = vsel %vm12717_vm12, %v12573_v12, %v3625_v56  ;;  %v12733_v48 = vmul.f32 %v12331_v10, %v2292_v24  ;;  %v12735_v58 = vpack.c.bf16 %v5114_v4, %v5110_v31  ;;  %v3684_v35 = vmul.f32 %v12647_v60, %v3683_v50  ;;  %v7967_v54 = vld [vmem:[#allocation9 + $0x194] sm:$0xf0]  ;;  %v2469_v44 = vpop.f32.mrf.mxu3 }
 0x3fb   :  { %v12740_v39 = vmul.f32 %v12700_v53, %v12640_v27  ;;  %v7426_v33 = vmul.f32 -1.442695, %v15479_v36  ;;  %v7639_v42 = vor.u32 %v7951_v29, %v7638_v11  ;;  %v12746_v10 = vadd.f32 %v12631_v1, %v3639_v17  ;;  %v2380_v24 = vpop.f32.mrf.mxu2 }
 0x3fc   :  { %15478 = vst [vmem:[#allocation107_spill] sm:$0xff] %v12735_v58  ;;  %v12743_v34 = vpop.eup %8342  ;;  %vm3642_vm13 = vweird.f32 %v12631_v1  ;;  %vm12749_vm14 = vcmp.eq.f32.partialorder %v3645_v51, 8.507059e+37  ;;  %vm3686_vm15 = vweird.f32 %v12571_v20  ;;  %v3705_v31 = vand.u32 2147483647, %v12629_v59 }
 0x3fd   :  { %v7703_v56 = vor.u32 %v7967_v54, %v7702_v0  ;;  %v3589_v50 = vsel %vm12674_vm6, %v12656_v40, %v3584_v46  ;;  %v3698_v6 = vsub.f32 1.0, %v3697_v52  ;;  %v12758_v4 = vor.u32 1.1754944e-38, %v3707_v37  ;;  %5923 = vmatpush.bf16.msra.mxu2 %v7639_v42  ;;  %v15482_v0 = vld [vmem:[#allocation152_spill] sm:$0xff]  ;;  %vm12771_vm0 = vmor %vm3641_vm10, %vm3642_vm13  ;;  %v2204_v37 = vpop.f32.mrf.mxu0  ;;  %v2293_v46 = vpop.f32.mrf.mxu1  ;;  %v15488_v42 = vld [vmem:[#allocation43_spill] sm:$0xff] }
 0x3fe   :  { %v12761_v51 = vpop.eup %8344  ;;  %v3634_v11 = vsel %vm12685_vm9, %v3633_v32, %v3629_v23  ;;  %v3752_v29 = vand.u32 2147483648, %v12640_v27  ;;  %v7427_v54 = vmul.f32 -1.442695, %v15482_v0  ;;  %v2470_v58 = vadd.f32 %v2469_v44, %v2380_v24  ;;  %2335 = vmatmul.bf16.gmra.mxu1 %v15488_v42  ;;  %v7919_v24 = vld [vmem:[#allocation9 + $0x14] sm:$0xf0]  ;;  %2513 = vmatmul.bf16.gmra.mxu3 %v15488_v42 }
 0x3ff   :  { %6012 = vmatpush.bf16.msra.mxu3 %v7703_v56  ;;  %v8347_v40 = vpop.eup %8346  ;;  %v12776_v52 = vadd.f32 %v12647_v60, %v3684_v35  ;;  %v3743_v26 = vsub.f32 1.0, %v12740_v39  ;;  %v3757_v32 = vmul.f32 %v12743_v34, %v12662_v55  ;;  %8348 = vpow2.f32 %v7426_v33  ;;  %v15487_v33 = vld [vmem:[#allocation41_spill] sm:$0xff]  ;;  %v7510_v56 = vld [vmem:[#allocation9 + $0x10] sm:$0xf] }
 0x400   :  { %v3644_v8 = vsel %vm12771_vm0, %v12631_v1, %v12746_v10  ;;  %vm3687_vm1 = vweird.f32 %v12647_v60  ;;  %vm12786_vm2 = vcmp.eq.f32.partialorder %v3690_v63, 8.507059e+37  ;;  %vm3701_vm3 = vweird.f32 %v12629_v59  ;;  %2246 = vmatmul.bf16.gmra.mxu0 %v15487_v33  ;;  %v7574_v44 = vld [vmem:[#allocation9 + $0x90] sm:$0xf]  ;;  %v15489_v10 = vld [vmem:[#allocation153_spill] sm:$0xff]  ;;  %2424 = vmatmul.bf16.gmra.mxu2 %v15487_v33 }
 0x401   :  { %v12792_v35 = vmul.f32 %v12368_v43, %v2470_v58  ;;  %v2294_v39 = vadd.f32 %v2293_v46, %v2204_v37  ;;  %v3699_v1 = vmul.f32 %v12690_v25, %v3698_v6  ;;  %v3802_v63 = vmul.f32 %v12761_v51, %v12678_v7  ;;  %v15490_v46 = vld [vmem:[#allocation154_spill] sm:$0xff]  ;;  %vm12827_vm7 = vmor %vm3686_vm15, %vm3687_vm1 }
 0x402   :  { %v7430_v47 = vmul.f32 -1.442695, %v15489_v10  ;;  %v7511_v17 = vor.u32 %v7919_v24, %v7510_v56  ;;  %v12800_v21 = vadd.f32 1.0, %v8347_v40  ;;  %8350 = vpow2.f32 %v7427_v54 }
 0x403   :  { %v5121_v43 = vmul.f32 %v12478_v30, %v2294_v39  ;;  %v7575_v58 = vor.u32 %v7935_v61, %v7574_v44  ;;  %v12806_v37 = vmul.f32 %v3589_v50, %v15419_v5  ;;  %vm3702_vm4 = vweird.f32 %v12690_v25  ;;  %v2382_v12 = vpop.f32.mrf.mxu2  ;;  %v15499_v39 = vld [vmem:[#allocation155_spill] sm:$0xff] }
 0x404   :  { %vm3746_vm5 = vweird.f32 %v12640_v27  ;;  %v3758_v6 = vsub.f32 1.0, %v3757_v32  ;;  %v7431_v56 = vmul.f32 -1.442695, %v15490_v46  ;;  %5745 = vmatpush.bf16.msra.mxu0 %v7511_v17  ;;  %v12812_v54 = vmul.f32 %v3634_v11, %v12338_v62  ;;  %vm12863_vm11 = vmor %vm3701_vm3, %vm3702_vm4 }
 0x405   :  { %vm3747_vm6 = vweird.f32 %v12700_v53  ;;  %v12815_v30 = vor.u32 1.1754944e-38, %v3752_v29  ;;  %5834 = vmatpush.bf16.msra.mxu1 %v7575_v58  ;;  %v12818_v61 = vpack.c.bf16 %v5121_v43, %v12733_v48  ;;  %v8349_v5 = vpop.eup %8348  ;;  %v3649_v50 = vsel %vm12749_vm14, %v12697_v2, %v3644_v8  ;;  %v2471_v2 = vpop.f32.mrf.mxu3 }
 0x406   :  { %vm12831_vm8 = vcmp.eq.f32.partialorder %v3705_v31, 8.507059e+37  ;;  %v3744_v48 = vmul.f32 %v12700_v53, %v3743_v26  ;;  %vm3761_vm9 = vweird.f32 %v12662_v55  ;;  %v3803_v11 = vsub.f32 1.0, %v3802_v63  ;;  %v2207_v42 = vpop.f32.mrf.mxu0  ;;  %vm12893_vm13 = vmor %vm3746_vm5, %vm3747_vm6  ;;  %v15512_v26 = vld [vmem:[#allocation157_spill] sm:$0xff] }
 0x407   :  { %15491 = vst [vmem:[#allocation109_spill] sm:$0xff] %v12818_v61  ;;  %8352 = vpow2.f32 %v7430_v47  ;;  %v3689_v20 = vsel %vm12827_vm7, %v12647_v60, %v12776_v52  ;;  %v3700_v29 = vadd.f32 %v12690_v25, %v3699_v1  ;;  %v2472_v31 = vadd.f32 %v2471_v2, %v2382_v12  ;;  %v2296_v60 = vpop.f32.mrf.mxu1  ;;  %v7933_v61 = vld [vmem:[#allocation9 + $0x84] sm:$0xf0] }
 0x408   :  { %8354 = vrcp.f32 %v12800_v21  ;;  %v15496_v40 = vand.u32 2147483647, %v12640_v27  ;;  %v3759_v32 = vmul.f32 %v12743_v34, %v3758_v6  ;;  %v3765_v8 = vand.u32 2147483647, %v12662_v55  ;;  %v8351_v52 = vpop.eup %8350 }
 0x409   :  { %8356 = vpow2.f32 %v7431_v56  ;;  %v7434_v33 = vmul.f32 -1.442695, %v15499_v39  ;;  %v3767_v24 = vand.u32 2147483648, %v12662_v55  ;;  %v12853_v44 = vadd.f32 1.0, %v8349_v5  ;;  %v15502_v56 = vld [vmem:[#allocation156_spill] sm:$0xff] }
 0x40a   :  { %vm12845_vm10 = vcmp.eq.f32.partialorder %v15496_v40, 8.507059e+37  ;;  %v5122_v1 = vmul.f32 %v12608_v57, %v2472_v31  ;;  %v2297_v63 = vadd.f32 %v2296_v60, %v2207_v42  ;;  %v3694_v47 = vsel %vm12786_vm2, %v12721_v13, %v3689_v20 }
 0x40b   :  { %v3745_v58 = vadd.f32 %v12700_v53, %v3744_v48  ;;  %v3804_v6 = vmul.f32 %v12761_v51, %v3803_v11  ;;  %v7435_v5 = vmul.f32 -1.442695, %v15502_v56  ;;  %v12871_v57 = vmul.f32 %v3649_v50, %v12346_v45  ;;  %v2385_v27 = vpop.f32.mrf.mxu2 }
 0x40c   :  { %v3704_v13 = vsel %vm12863_vm11, %v12690_v25, %v3700_v29  ;;  %v5125_v23 = vmul.f32 %v12611_v19, %v2297_v63  ;;  %v12878_v59 = vpack.c.bf16 %v5122_v1, %v12792_v35  ;;  %v3760_v12 = vadd.f32 %v12743_v34, %v3759_v32  ;;  %v15511_v1 = vld [vmem:[#allocation51_spill] sm:$0xff] }
 0x40d   :  { %v8353_v62 = vpop.eup %8352  ;;  %vm3762_vm12 = vweird.f32 %v12743_v34  ;;  %v12882_v48 = vadd.f32 1.0, %v8351_v52  ;;  %8358 = vpow2.f32 %v7434_v33  ;;  %v12887_v45 = vmul.f32 %v3694_v47, %v15429_v28  ;;  %v2474_v20 = vpop.f32.mrf.mxu3 }
 0x40e   :  { %15503 = vst [vmem:[#allocation110_spill] sm:$0xff] %v12878_v59  ;;  %v12884_v11 = vpop.eup %8354  ;;  %v3768_v25 = vor.u32 1.1754944e-38, %v3767_v24  ;;  %v3810_v35 = vand.u32 2147483647, %v12678_v7  ;;  %8360 = vrcp.f32 %v12853_v44  ;;  %v3749_v2 = vsel %vm12893_vm13, %v12700_v53, %v3745_v58  ;;  %vm12911_vm15 = vmor %vm3761_vm9, %vm3762_vm12  ;;  %v2209_v55 = vpop.f32.mrf.mxu0  ;;  %v15510_v24 = vld [vmem:[#allocation49_spill] sm:$0xff]  ;;  %2340 = vmatmul.bf16.gmra.mxu1 %v15511_v1  ;;  %2518 = vmatmul.bf16.gmra.mxu3 %v15511_v1 }
 0x40f   :  { %v8357_v50 = vpop.eup %8356  ;;  %v3805_v28 = vadd.f32 %v12761_v51, %v3804_v6  ;;  %vm3807_vm14 = vweird.f32 %v12761_v51  ;;  %8362 = vpow2.f32 %v7435_v5  ;;  %v3709_v29 = vsel %vm12831_vm8, %v12758_v4, %v3704_v13  ;;  %v2298_v33 = vpop.f32.mrf.mxu1 }
 0x410   :  { %vm3806_vm0 = vweird.f32 %v12678_v7  ;;  %v3812_v53 = vand.u32 2147483648, %v12678_v7  ;;  %v2475_v40 = vadd.f32 %v2474_v20, %v2385_v27  ;;  %v3764_v32 = vsel %vm12911_vm15, %v12743_v34, %v3760_v12  ;;  %2251 = vmatmul.bf16.gmra.mxu0 %v15510_v24  ;;  %2429 = vmatmul.bf16.gmra.mxu2 %v15510_v24 }
 0x411   :  { %v3817_v4 = vmul.f32 %v12884_v11, %v12800_v21  ;;  %8364 = vrcp.f32 %v12882_v48  ;;  %v12923_v17 = vadd.f32 1.0, %v8353_v62  ;;  %v3754_v42 = vsel %vm12845_vm10, %v12815_v30, %v3749_v2  ;;  %vm12930_vm1 = vmor %vm3806_vm0, %vm3807_vm14 }
 0x412   :  { %v12934_v34 = vadd.f32 1.0, %v8357_v50  ;;  %v5126_v60 = vmul.f32 %v12634_v49, %v2475_v40  ;;  %v2299_v52 = vadd.f32 %v2298_v33, %v2209_v55  ;;  %vm3766_vm2 = vcmp.eq.f32.partialorder %v3765_v8, 8.507059e+37 }
 0x413   :  { %v8359_v63 = vpop.eup %8358  ;;  %v3809_v30 = vsel %vm12930_vm1, %v12761_v51, %v3805_v28  ;;  %vm3811_vm3 = vcmp.eq.f32.partialorder %v3810_v35, 8.507059e+37  ;;  %v7438_v47 = vmul.f32 -1.442695, %v15512_v26  ;;  %v3769_v58 = vsel %vm3766_vm2, %v3768_v25, %v3764_v32  ;;  %v2387_v50 = vpop.f32.mrf.mxu2 }
 0x414   :  { %v12943_v43 = vpop.eup %8360  ;;  %v3813_v6 = vor.u32 1.1754944e-38, %v3812_v53  ;;  %v3827_v49 = vand.u32 2147483648, %v12800_v21  ;;  %v5129_v5 = vmul.f32 %v12638_v16, %v2299_v52  ;;  %v12950_v13 = vmul.f32 %v3709_v29, %v15441_v18 }
 0x415   :  { %v8363_v8 = vpop.eup %8362  ;;  %v12953_v51 = vmul.f32 %v3754_v42, %v12475_v15  ;;  %v3818_v62 = vsub.f32 1.0, %v3817_v4  ;;  %8366 = vrcp.f32 %v12923_v17  ;;  %v3825_v19 = vand.u32 2147483647, %v12800_v21  ;;  %v2476_v2 = vpop.f32.mrf.mxu3 }
 0x416   :  { %v3814_v12 = vsel %vm3811_vm3, %v3813_v6, %v3809_v30  ;;  %8368 = vrcp.f32 %v12934_v34  ;;  %v12958_v16 = vpack.c.bf16 %v5129_v5, %v5125_v23  ;;  %v12963_v35 = vmul.f32 %v3769_v58, %v15456_v14  ;;  %v15514_v23 = vld [vmem:[#allocation158_spill] sm:$0xff]  ;;  %v2212_v32 = vpop.f32.mrf.mxu0  ;;  %v7949_v58 = vld [vmem:[#allocation9 + $0x104] sm:$0xf0]  ;;  %v7694_v6 = vld [vmem:[#allocation9 + $0x180] sm:$0xf] }
 0x417   :  { %v12960_v25 = vpop.eup %8364  ;;  %vm3821_vm4 = vweird.f32 %v12800_v21  ;;  %v3862_v15 = vmul.f32 %v12943_v43, %v12853_v44  ;;  %v12968_v18 = vadd.f32 1.0, %v8359_v63  ;;  %8370 = vpow2.f32 %v7438_v47  ;;  %v2301_v4 = vpop.f32.mrf.mxu1  ;;  %v7630_v47 = vld [vmem:[#allocation9 + $0x100] sm:$0xf] }
 0x418   :  { %15513 = vst [vmem:[#allocation111_spill] sm:$0xff] %v12958_v16  ;;  %v12970_v28 = vor.u32 1.1754944e-38, %v3827_v49  ;;  %v12972_v27 = vadd.f32 1.0, %v8363_v8  ;;  %v7439_v20 = vmul.f32 -1.442695, %v15514_v23  ;;  %v2477_v29 = vadd.f32 %v2476_v2, %v2387_v50 }
 0x419   :  { %v12976_v14 = vmul.f32 %v3814_v12, %v15459_v22  ;;  %v3819_v31 = vmul.f32 %v12884_v11, %v3818_v62  ;;  %v3872_v53 = vand.u32 2147483648, %v12853_v44  ;;  %v3887_v40 = vand.u32 2147483648, %v12882_v48  ;;  %v7917_v2 = vld [vmem:[#allocation9 + $0x4] sm:$0xf0] }
 0x41a   :  { %v3870_v55 = vand.u32 2147483647, %v12853_v44  ;;  %v3877_v33 = vmul.f32 %v12960_v25, %v12882_v48  ;;  %v5130_v42 = vmul.f32 %v12643_v3, %v2477_v29  ;;  %v2302_v7 = vadd.f32 %v2301_v4, %v2212_v32  ;;  %v7502_v4 = vld [vmem:[#allocation9] sm:$0xf] }
 0x41b   :  { %v12985_v52 = vpop.eup %8366  ;;  %v3863_v22 = vsub.f32 1.0, %v3862_v15  ;;  %v3932_v1 = vand.u32 2147483648, %v12923_v17  ;;  %8372 = vrcp.f32 %v12968_v18  ;;  %vm3822_vm5 = vweird.f32 %v12884_v11  ;;  %v7965_v15 = vld [vmem:[#allocation9 + $0x184] sm:$0xf0] }
 0x41c   :  { %v12990_v63 = vpop.eup %8368  ;;  %vm12993_vm6 = vcmp.eq.f32.partialorder %v3825_v19, 8.507059e+37  ;;  %8374 = vrcp.f32 %v12972_v27  ;;  %v12999_v3 = vmul.f32 %v12668_v38, %v2302_v7  ;;  %v13001_v49 = vpack.c.bf16 %v5130_v42, %v5126_v60  ;;  %vm13021_vm9 = vmor %vm3821_vm4, %vm3822_vm5  ;;  %v7566_v38 = vld [vmem:[#allocation9 + $0x80] sm:$0xf] }
 0x41d   :  { %v8371_v5 = vpop.eup %8370  ;;  %v3820_v8 = vadd.f32 %v12884_v11, %v3819_v31  ;;  %vm3866_vm7 = vweird.f32 %v12853_v44  ;;  %v13005_v62 = vor.u32 1.1754944e-38, %v3872_v53  ;;  %v13007_v12 = vor.u32 1.1754944e-38, %v3887_v40  ;;  %v2390_v40 = vpop.f32.mrf.mxu2 }
 0x41e   :  { %15517 = vst [vmem:[#allocation112_spill] sm:$0xff] %v13001_v49  ;;  %v7631_v19 = vor.u32 %v7949_v58, %v7630_v47  ;;  %v3878_v50 = vsub.f32 1.0, %v3877_v33  ;;  %v7695_v29 = vor.u32 %v7965_v15, %v7694_v6  ;;  %v3864_v60 = vmul.f32 %v12943_v43, %v3863_v22  ;;  %v2479_v32 = vpop.f32.mrf.mxu3 }
 0x41f   :  { %vm3867_vm8 = vweird.f32 %v12943_v43  ;;  %v3922_v31 = vmul.f32 %v12985_v52, %v12923_v17  ;;  %v3937_v53 = vmul.f32 %v12990_v63, %v12934_v34  ;;  %vm3881_vm10 = vweird.f32 %v12882_v48  ;;  %v2303_v15 = vpop.f32.mrf.mxu1 }
 0x420   :  { %5924 = vmatpush.bf16.msra.mxu2 %v7631_v19  ;;  %vm3882_vm11 = vweird.f32 %v12960_v25  ;;  %v13027_v33 = vor.u32 1.1754944e-38, %v3932_v1  ;;  %v13029_v42 = vadd.f32 1.0, %v8371_v5  ;;  %v2480_v7 = vadd.f32 %v2479_v32, %v2390_v40  ;;  %6013 = vmatpush.bf16.msra.mxu3 %v7695_v29  ;;  %v15522_v1 = vld [vmem:[#allocation159_spill] sm:$0xff]  ;;  %v2214_v5 = vpop.f32.mrf.mxu0  ;;  %vm13069_vm14 = vmor %vm3866_vm7, %vm3867_vm8 }
 0x421   :  { %v13031_v22 = vpop.eup %8372  ;;  %v3824_v21 = vsel %vm13021_vm9, %v12884_v11, %v3820_v8  ;;  %vm13036_vm12 = vcmp.eq.f32.partialorder %v3870_v55, 8.507059e+37  ;;  %v3947_v58 = vand.u32 2147483648, %v12934_v34  ;;  %v3992_v6 = vand.u32 2147483648, %v12968_v18  ;;  %v15523_v55 = vld [vmem:[#allocation60_spill] sm:$0xff]  ;;  %v15524_v8 = vld [vmem:[#allocation61_spill] sm:$0xff]  ;;  %vm13101_vm2 = vmor %vm3881_vm10, %vm3882_vm11 }
 0x422   :  { %v7442_v19 = vmul.f32 -1.442695, %v15522_v1  ;;  %v13043_v40 = vpop.eup %8374  ;;  %v3879_v29 = vmul.f32 %v12960_v25, %v3878_v50  ;;  %8376 = vpow2.f32 %v7439_v20  ;;  %v13047_v32 = vmul.f32 %v12806_v37, %v2480_v7  ;;  %2256 = vmatmul.bf16.gmra.mxu0 %v15523_v55  ;;  %2345 = vmatmul.bf16.gmra.mxu1 %v15524_v8 }
 0x423   :  { %v2304_v11 = vadd.f32 %v2303_v15, %v2214_v5  ;;  %v3865_v24 = vadd.f32 %v12943_v43, %v3864_v60  ;;  %v3923_v49 = vsub.f32 1.0, %v3922_v31  ;;  %v3938_v16 = vsub.f32 1.0, %v3937_v53  ;;  %2434 = vmatmul.bf16.gmra.mxu2 %v15523_v55  ;;  %2523 = vmatmul.bf16.gmra.mxu3 %v15524_v8  ;;  %v15525_v31 = vld [vmem:[#allocation38_spill] sm:$0xff]  ;;  %v15532_v5 = vld [vmem:[#allocation39_spill] sm:$0xff] }
 0x424   :  { %v7503_v59 = vor.u32 %v7917_v2, %v7502_v4  ;;  %v3982_v20 = vmul.f32 %v13031_v22, %v12968_v18  ;;  %8378 = vrcp.f32 %v13029_v42  ;;  %v7567_v50 = vor.u32 %v7933_v61, %v7566_v38 }
 0x425   :  { %v5137_v37 = vmul.f32 %v12812_v54, %v2304_v11  ;;  %v3829_v60 = vsel %vm12993_vm6, %v12970_v28, %v3824_v21  ;;  %vm3926_vm13 = vweird.f32 %v12923_v17  ;;  %v3997_v2 = vmul.f32 %v13043_v40, %v12972_v27 }
 0x426   :  { %8380 = vpow2.f32 %v7442_v19  ;;  %v7443_v53 = vmul.f32 -1.442695, %v15525_v31  ;;  %5746 = vmatpush.bf16.msra.mxu0 %v7503_v59  ;;  %v3880_v61 = vadd.f32 %v12960_v25, %v3879_v29  ;;  %v15528_v28 = vand.u32 2147483647, %v12882_v48  ;;  %5835 = vmatpush.bf16.msra.mxu1 %v7567_v50  ;;  %v2392_v29 = vpop.f32.mrf.mxu2  ;;  %v2481_v11 = vpop.f32.mrf.mxu3 }
 0x427   :  { %vm3941_vm0 = vweird.f32 %v12934_v34  ;;  %v13081_v38 = vor.u32 1.1754944e-38, %v3947_v58  ;;  %v3990_v59 = vand.u32 2147483647, %v12968_v18  ;;  %v13085_v44 = vpack.c.bf16 %v5137_v37, %v12999_v3 }
 0x428   :  { %vm13076_vm15 = vcmp.eq.f32.partialorder %v15528_v28, 8.507059e+37  ;;  %v3869_v7 = vsel %vm13069_vm14, %v12943_v43, %v3865_v24  ;;  %v3924_v21 = vmul.f32 %v12985_v52, %v3923_v49  ;;  %v3939_v19 = vmul.f32 %v12990_v63, %v3938_v16  ;;  %v8377_v58 = vpop.eup %8376  ;;  %v2306_v49 = vpop.f32.mrf.mxu1  ;;  %v15541_v28 = vld [vmem:[#allocation160_spill] sm:$0xff] }
 0x429   :  { %15531 = vst [vmem:[#allocation85_spill] sm:$0xff] %v13085_v44  ;;  %v7446_v15 = vmul.f32 -1.442695, %v15532_v5  ;;  %v13094_v55 = vmul.f32 %v3829_v60, %v15470_v41  ;;  %vm3927_vm1 = vweird.f32 %v12985_v52  ;;  %v3983_v3 = vsub.f32 1.0, %v3982_v20  ;;  %v2217_v41 = vpop.f32.mrf.mxu0 }
 0x42a   :  { %v2482_v8 = vadd.f32 %v2481_v11, %v2392_v29  ;;  %vm3942_vm3 = vweird.f32 %v12990_v63  ;;  %v13106_v16 = vor.u32 1.1754944e-38, %v3992_v6  ;;  %v3998_v24 = vsub.f32 1.0, %v3997_v2  ;;  %v13108_v4 = vpop.eup %8378  ;;  %vm13152_vm8 = vmor %vm3926_vm13, %vm3927_vm1 }
 0x42b   :  { %8382 = vpow2.f32 %v7443_v53  ;;  %v3874_v20 = vsel %vm13036_vm12, %v13005_v62, %v3869_v7  ;;  %v3884_v48 = vsel %vm13101_vm2, %v12960_v25, %v3880_v61  ;;  %v15535_v37 = vand.u32 2147483647, %v12923_v17  ;;  %vm13174_vm10 = vmor %vm3941_vm0, %vm3942_vm3 }
 0x42c   :  { %v15538_v6 = vand.u32 2147483647, %v12934_v34  ;;  %vm3986_vm6 = vweird.f32 %v12968_v18  ;;  %v5138_v62 = vmul.f32 %v12871_v57, %v2482_v8  ;;  %v2307_v47 = vadd.f32 %v2306_v49, %v2217_v41  ;;  %v8381_v2 = vpop.eup %8380 }
 0x42d   :  { %vm13118_vm4 = vcmp.eq.f32.partialorder %v15535_v37, 8.507059e+37  ;;  %v3925_v25 = vadd.f32 %v12985_v52, %v3924_v21  ;;  %v3940_v53 = vadd.f32 %v12990_v63, %v3939_v19  ;;  %v13132_v54 = vadd.f32 1.0, %v8377_v58  ;;  %v15543_v19 = vld [vmem:[#allocation161_spill] sm:$0xff] }
 0x42e   :  { %vm13124_vm5 = vcmp.eq.f32.partialorder %v15538_v6, 8.507059e+37  ;;  %8384 = vpow2.f32 %v7446_v15  ;;  %v3984_v61 = vmul.f32 %v13031_v22, %v3983_v3  ;;  %v7447_v7 = vmul.f32 -1.442695, %v15541_v28  ;;  %v2395_v41 = vpop.f32.mrf.mxu2  ;;  %v2484_v49 = vpop.f32.mrf.mxu3 }
 0x42f   :  { %v5141_v29 = vmul.f32 %v12887_v45, %v2307_v47  ;;  %v13138_v11 = vpack.c.bf16 %v5138_v62, %v13047_v32  ;;  %v3999_v57 = vmul.f32 %v13043_v40, %v3998_v24  ;;  %vm4001_vm7 = vweird.f32 %v12972_v27 }
 0x430   :  { %v4042_v21 = vmul.f32 %v13108_v4, %v13029_v42  ;;  %v7450_v58 = vmul.f32 -1.442695, %v15543_v19  ;;  %v13146_v15 = vmul.f32 %v3874_v20, %v15479_v36  ;;  %vm13156_vm9 = vcmp.eq.f32.partialorder %v3990_v59, 8.507059e+37  ;;  %v2308_v6 = vpop.f32.mrf.mxu1 }
 0x431   :  { %15542 = vst [vmem:[#allocation113_spill] sm:$0xff] %v13138_v11  ;;  %v4005_v3 = vand.u32 2147483647, %v12972_v27  ;;  %v4007_v8 = vand.u32 2147483648, %v12972_v27  ;;  %v13162_v43 = vadd.f32 1.0, %v8381_v2  ;;  %v8383_v36 = vpop.eup %8382  ;;  %v3889_v24 = vsel %vm13076_vm15, %v13007_v12, %v3884_v48  ;;  %v2219_v37 = vpop.f32.mrf.mxu0  ;;  %v15550_v2 = vld [vmem:[#allocation66_spill] sm:$0xff] }
 0x432   :  { %v3929_v17 = vsel %vm13152_vm8, %v12985_v52, %v3925_v25  ;;  %vm3987_vm11 = vweird.f32 %v13031_v22  ;;  %8386 = vrcp.f32 %v13132_v54  ;;  %v3944_v12 = vsel %vm13174_vm10, %v12990_v63, %v3940_v53  ;;  %2261 = vmatmul.bf16.gmra.mxu0 %v15550_v2  ;;  %v15551_v25 = vld [vmem:[#allocation72_spill] sm:$0xff] }
 0x433   :  { %v3985_v52 = vadd.f32 %v13031_v22, %v3984_v61  ;;  %8388 = vpow2.f32 %v7447_v7  ;;  %v2485_v30 = vadd.f32 %v2484_v49, %v2395_v41  ;;  %v4000_v34 = vadd.f32 %v13043_v40, %v3999_v57  ;;  %2350 = vmatmul.bf16.gmra.mxu1 %v15551_v25  ;;  %vm13202_vm13 = vmor %vm3986_vm6, %vm3987_vm11  ;;  %v15554_v57 = vld [vmem:[#allocation40_spill] sm:$0xff]  ;;  %2439 = vmatmul.bf16.gmra.mxu2 %v15550_v2 }
 0x434   :  { %v8385_v20 = vpop.eup %8384  ;;  %vm4002_vm12 = vweird.f32 %v13043_v40  ;;  %v4043_v48 = vsub.f32 1.0, %v4042_v21  ;;  %8390 = vpow2.f32 %v7450_v58  ;;  %v13187_v62 = vadd.f32 1.0, %v8383_v36  ;;  %2528 = vmatmul.bf16.gmra.mxu3 %v15551_v25 }
 0x435   :  { %8392 = vrcp.f32 %v13162_v43  ;;  %v5142_v47 = vmul.f32 %v12950_v13, %v2485_v30  ;;  %v2309_v63 = vadd.f32 %v2308_v6, %v2219_v37  ;;  %v3934_v53 = vsel %vm13118_vm4, %v13027_v33, %v3929_v17  ;;  %vm13226_vm14 = vmor %vm4001_vm7, %vm4002_vm12  ;;  %v15569_v30 = vld [vmem:[#allocation80_spill] sm:$0xff] }
 0x436   :  { %v3949_v61 = vsel %vm13124_vm5, %v13081_v38, %v3944_v12  ;;  %v4050_v13 = vand.u32 2147483647, %v13029_v42  ;;  %v7451_v21 = vmul.f32 -1.442695, %v15554_v57  ;;  %v3989_v33 = vsel %vm13202_vm13, %v13031_v22, %v3985_v52  ;;  %v2397_v12 = vpop.f32.mrf.mxu2 }
 0x437   :  { %v4052_v50 = vand.u32 2147483648, %v13029_v42  ;;  %v13212_v60 = vadd.f32 1.0, %v8385_v20  ;;  %v5145_v38 = vmul.f32 %v12953_v51, %v2309_v63  ;;  %v13220_v58 = vmul.f32 %v3889_v24, %v15482_v0  ;;  %v15559_v24 = vld [vmem:[#allocation42_spill] sm:$0xff] }
 0x438   :  { %v13217_v18 = vpop.eup %8386  ;;  %vm13230_vm15 = vcmp.eq.f32.partialorder %v4005_v3, 8.507059e+37  ;;  %v4008_v51 = vor.u32 1.1754944e-38, %v4007_v8  ;;  %v4044_v36 = vmul.f32 %v13108_v4, %v4043_v48  ;;  %v4004_v0 = vsel %vm13226_vm14, %v13043_v40, %v4000_v34  ;;  %v2486_v40 = vpop.f32.mrf.mxu3 }
 0x439   :  { %v8389_v17 = vpop.eup %8388  ;;  %8394 = vrcp.f32 %v13187_v62  ;;  %v7454_v27 = vmul.f32 -1.442695, %v15559_v24  ;;  %v13240_v59 = vpack.c.bf16 %v5145_v38, %v5141_v29  ;;  %v13243_v3 = vmul.f32 %v3934_v53, %v15489_v10  ;;  %v2222_v32 = vpop.f32.mrf.mxu0 }
 0x43a   :  { %v8391_v41 = vpop.eup %8390  ;;  %v13246_v49 = vmul.f32 %v3949_v61, %v15490_v46  ;;  %v3994_v8 = vsel %vm13156_vm9, %v13106_v16, %v3989_v33  ;;  %8396 = vpow2.f32 %v7451_v21  ;;  %vm13253_vm0 = vcmp.eq.f32.partialorder %v4050_v13, 8.507059e+37  ;;  %v2311_v34 = vpop.f32.mrf.mxu1  ;;  %v7688_v21 = vld [vmem:[#allocation9 + $0x178] sm:$0xf0]  ;;  %v7978_v33 = vld [vmem:[#allocation9 + $0x1f4] sm:$0xf] }
 0x43b   :  { %v13251_v52 = vpop.eup %8392  ;;  %v4053_v29 = vor.u32 1.1754944e-38, %v4052_v50  ;;  %8398 = vrcp.f32 %v13212_v60  ;;  %v2487_v10 = vadd.f32 %v2486_v40, %v2397_v12  ;;  %v4009_v46 = vsel %vm13230_vm15, %v4008_v51, %v4004_v0  ;;  %v15566_v0 = vld [vmem:[#allocation163_spill] sm:$0xff] }
 0x43c   :  { %v4045_v20 = vadd.f32 %v13108_v4, %v4044_v36  ;;  %vm4047_vm1 = vweird.f32 %v13108_v4  ;;  %v4065_v16 = vand.u32 2147483647, %v13132_v54  ;;  %v4057_v48 = vmul.f32 %v13217_v18, %v13132_v54  ;;  %v7752_v36 = vld [vmem:[#allocation9 + $0x1f8] sm:$0xf0] }
 0x43d   :  { %8400 = vpow2.f32 %v7454_v27  ;;  %v5146_v37 = vmul.f32 %v12963_v35, %v2487_v10  ;;  %v2312_v6 = vadd.f32 %v2311_v34, %v2222_v32  ;;  %v4067_v63 = vand.u32 2147483648, %v13132_v54  ;;  %v7962_v35 = vld [vmem:[#allocation9 + $0x174] sm:$0xf] }
 0x43e   :  { %v4102_v2 = vmul.f32 %v13251_v52, %v13162_v43  ;;  %v13269_v25 = vadd.f32 1.0, %v8389_v17  ;;  %v13271_v53 = vadd.f32 1.0, %v8391_v41  ;;  %v13276_v7 = vmul.f32 %v3994_v8, %v15499_v39  ;;  %v2400_v10 = vpop.f32.mrf.mxu2 }
 0x43f   :  { %v13273_v61 = vpop.eup %8394  ;;  %vm4046_vm2 = vweird.f32 %v13029_v42  ;;  %v13280_v13 = vmul.f32 %v12976_v14, %v2312_v6  ;;  %v13282_v50 = vpack.c.bf16 %v5146_v37, %v5142_v47  ;;  %v13285_v22 = vmul.f32 %v4009_v46, %v15502_v56  ;;  %v15565_v42 = vld [vmem:[#allocation162_spill] sm:$0xff] }
 0x440   :  { %v8397_v38 = vpop.eup %8396  ;;  %vm13289_vm3 = vmor %vm4046_vm2, %vm4047_vm1  ;;  %v4112_v39 = vand.u32 2147483648, %v13162_v43  ;;  %v13295_v14 = vmul.f32 -1.442695, %v15565_v42  ;;  %v7691_v51 = vor.u32 %v7962_v35, %v7688_v21  ;;  %v4058_v47 = vsub.f32 1.0, %v4057_v48  ;;  %v2489_v46 = vpop.f32.mrf.mxu3 }
 0x441   :  { %15562 = vst [vmem:[#allocation164_spill] sm:$0xff] %v13282_v50  ;;  %v13297_v17 = vpop.eup %8398  ;;  %v4049_v56 = vsel %vm13289_vm3, %v13108_v4, %v4045_v20  ;;  %v13303_v27 = vmul.f32 -1.442695, %v15566_v0  ;;  %v7755_v41 = vor.u32 %v7978_v33, %v7752_v36  ;;  %v13305_v8 = vor.u32 1.1754944e-38, %v4067_v63  ;;  %v15567_v20 = vld [vmem:[#allocation44_spill] sm:$0xff]  ;;  %v2224_v35 = vpop.f32.mrf.mxu0  ;;  %v15568_v36 = vld [vmem:[#allocation79_spill] sm:$0xff] }
 0x442   :  { %v4103_v12 = vsub.f32 1.0, %v4102_v2  ;;  %v4117_v40 = vmul.f32 %v13273_v61, %v13187_v62  ;;  %8402 = vrcp.f32 %v13269_v25  ;;  %6273 = vmatpush.bf16.msrb.mxu2 %v7691_v51  ;;  %vm4061_vm4 = vweird.f32 %v13132_v54  ;;  %v2313_v21 = vpop.f32.mrf.mxu1  ;;  %2266 = vmatmul.bf16.gmra.mxu0 %v15568_v36 }
 0x443   :  { %v8401_v32 = vpop.eup %8400  ;;  %v4110_v4 = vand.u32 2147483647, %v13162_v43  ;;  %8404 = vrcp.f32 %v13271_v53  ;;  %v13314_v34 = vmul.f32 -1.442695, %v15567_v20  ;;  %v2490_v48 = vadd.f32 %v2489_v46, %v2400_v10  ;;  %6362 = vmatpush.bf16.msrb.mxu3 %v7755_v41  ;;  %2355 = vmatmul.bf16.gmra.mxu1 %v15569_v30 }
 0x444   :  { %v4054_v37 = vsel %vm13253_vm0, %v4053_v29, %v4049_v56  ;;  %v13318_v6 = vor.u32 1.1754944e-38, %v4112_v39  ;;  %v4162_v63 = vmul.f32 %v13297_v17, %v13212_v60  ;;  %v13322_v2 = vadd.f32 1.0, %v8397_v38  ;;  %v7930_v29 = vld [vmem:[#allocation9 + $0x74] sm:$0xf]  ;;  %v7560_v39 = vld [vmem:[#allocation9 + $0x78] sm:$0xf0]  ;;  %2444 = vmatmul.bf16.gmra.mxu2 %v15568_v36  ;;  %2533 = vmatmul.bf16.gmra.mxu3 %v15569_v30 }
 0x445   :  { %v4059_v33 = vmul.f32 %v13217_v18, %v4058_v47  ;;  %vm4106_vm5 = vweird.f32 %v13162_v43  ;;  %v13327_v45 = vmul.f32 %v13094_v55, %v2490_v48  ;;  %v2314_v51 = vadd.f32 %v2313_v21, %v2224_v35  ;;  %v7946_v56 = vld [vmem:[#allocation9 + $0xf4] sm:$0xf]  ;;  %v7624_v47 = vld [vmem:[#allocation9 + $0xf8] sm:$0xf0] }
 0x446   :  { %v4104_v38 = vmul.f32 %v13251_v52, %v4103_v12  ;;  %v4118_v41 = vsub.f32 1.0, %v4117_v40  ;;  %v13332_v10 = vadd.f32 1.0, %v8401_v32  ;;  %v7563_v46 = vor.u32 %v7930_v29, %v7560_v39 }
 0x447   :  { %vm13336_vm6 = vcmp.eq.f32.partialorder %v4065_v16, 8.507059e+37  ;;  %v4127_v48 = vand.u32 2147483648, %v13187_v62  ;;  %v4172_v35 = vand.u32 2147483648, %v13212_v60  ;;  %v5153_v21 = vmul.f32 %v13146_v15, %v2314_v51 }
 0x448   :  { %v7627_v12 = vor.u32 %v7946_v56, %v7624_v47  ;;  %v13345_v40 = vpop.eup %8402  ;;  %v13348_v32 = vmul.f32 %v4054_v37, %v15512_v26  ;;  %vm4062_vm7 = vweird.f32 %v13217_v18  ;;  %v4125_v16 = vand.u32 2147483647, %v13187_v62  ;;  %6095 = vmatpush.bf16.msrb.mxu0 %v7563_v46 }
 0x449   :  { %v4163_v29 = vsub.f32 1.0, %v4162_v63  ;;  %v13352_v39 = vpop.eup %8404  ;;  %v4060_v15 = vadd.f32 %v13217_v18, %v4059_v33  ;;  %vm13355_vm8 = vcmp.eq.f32.partialorder %v4110_v4, 8.507059e+37  ;;  %vm4121_vm9 = vweird.f32 %v13187_v62  ;;  %v2402_v4 = vpop.f32.mrf.mxu2  ;;  %vm13380_vm12 = vmor %vm4061_vm4, %vm4062_vm7 }
 0x44a   :  { %v4170_v36 = vand.u32 2147483647, %v13212_v60  ;;  %8406 = vrcp.f32 %v13322_v2  ;;  %6184 = vmatpush.bf16.msrb.mxu1 %v7627_v12  ;;  %v13363_v26 = vpack.c.bf16 %v5153_v21, %v13280_v13  ;;  %v4105_v37 = vadd.f32 %v13251_v52, %v4104_v38  ;;  %v2491_v33 = vpop.f32.mrf.mxu3  ;;  %v2227_v21 = vpop.f32.mrf.mxu0  ;;  %v15583_v38 = vld [vmem:[#allocation53_spill] sm:$0xff] }
 0x44b   :  { %vm4107_vm10 = vweird.f32 %v13251_v52  ;;  %v4119_v63 = vmul.f32 %v13273_v61, %v4118_v41  ;;  %vm4166_vm11 = vweird.f32 %v13212_v60  ;;  %8408 = vrcp.f32 %v13332_v10  ;;  %v2316_v12 = vpop.f32.mrf.mxu1 }
 0x44c   :  { %15574 = vst [vmem:[#allocation114_spill] sm:$0xff] %v13363_v26  ;;  %v13370_v30 = vor.u32 1.1754944e-38, %v4127_v48  ;;  %v13372_v56 = vor.u32 1.1754944e-38, %v4172_v35  ;;  %v4177_v13 = vmul.f32 %v13345_v40, %v13269_v25  ;;  %v2492_v46 = vadd.f32 %v2491_v33, %v2402_v4  ;;  %vm13396_vm13 = vmor %vm4106_vm5, %vm4107_vm10 }
 0x44d   :  { %v4164_v41 = vmul.f32 %v13297_v17, %v4163_v29  ;;  %v4187_v48 = vand.u32 2147483648, %v13269_v25  ;;  %v4222_v35 = vmul.f32 %v13352_v39, %v13271_v53  ;;  %v4064_v4 = vsel %vm13380_vm12, %v13217_v18, %v4060_v15 }
 0x44e   :  { %vm4122_vm14 = vweird.f32 %v13273_v61  ;;  %vm13401_vm15 = vcmp.eq.f32.partialorder %v4125_v16, 8.507059e+37  ;;  %v5154_v33 = vmul.f32 %v13220_v58, %v2492_v46  ;;  %v2317_v47 = vadd.f32 %v2316_v12, %v2227_v21 }
 0x44f   :  { %v4109_v18 = vsel %vm13396_vm13, %v13251_v52, %v4105_v37  ;;  %v4120_v15 = vadd.f32 %v13273_v61, %v4119_v63  ;;  %vm4167_vm0 = vweird.f32 %v13297_v17  ;;  %vm13411_vm1 = vcmp.eq.f32.partialorder %v4170_v36, 8.507059e+37  ;;  %vm13443_vm3 = vmor %vm4121_vm9, %vm4122_vm14 }
 0x450   :  { %v7462_v16 = vmul.f32 -1.442695, %v15583_v38  ;;  %v13416_v26 = vpop.eup %8406  ;;  %v4178_v50 = vsub.f32 1.0, %v4177_v13  ;;  %8410 = vpow2.f32 %v13295_v14  ;;  %v5157_v58 = vmul.f32 %v13243_v3, %v2317_v47  ;;  %v15584_v14 = vld [vmem:[#allocation55_spill] sm:$0xff]  ;;  %vm13458_vm5 = vmor %vm4166_vm11, %vm4167_vm0 }
 0x451   :  { %v13421_v46 = vpack.c.bf16 %v5154_v33, %v13327_v45  ;;  %v13423_v52 = vpop.eup %8408  ;;  %v4069_v36 = vsel %vm13336_vm6, %v13305_v8, %v4064_v4  ;;  %v4165_v37 = vadd.f32 %v13297_v17, %v4164_v41  ;;  %v4223_v63 = vsub.f32 1.0, %v4222_v35  ;;  %v2405_v41 = vpop.f32.mrf.mxu2 }
 0x452   :  { %8412 = vpow2.f32 %v13303_v27  ;;  %vm4181_vm2 = vweird.f32 %v13269_v25  ;;  %v13431_v13 = vor.u32 1.1754944e-38, %v4187_v48  ;;  %v4230_v3 = vand.u32 2147483647, %v13271_v53  ;;  %v2494_v47 = vpop.f32.mrf.mxu3  ;;  %v2229_v12 = vpop.f32.mrf.mxu0 }
 0x453   :  { %8414 = vpow2.f32 %v13314_v34  ;;  %v7463_v45 = vmul.f32 -1.442695, %v15584_v14  ;;  %v4114_v55 = vsel %vm13355_vm8, %v13318_v6, %v4109_v18  ;;  %vm4226_vm4 = vweird.f32 %v13271_v53  ;;  %v2318_v4 = vpop.f32.mrf.mxu1  ;;  %v15589_v18 = vld [vmem:[#allocation84_spill] sm:$0xff] }
 0x454   :  { %v4232_v8 = vand.u32 2147483648, %v13271_v53  ;;  %v4237_v34 = vmul.f32 %v13416_v26, %v13322_v2  ;;  %8416 = vpow2.f32 %v7462_v16  ;;  %v4124_v6 = vsel %vm13443_vm3, %v13273_v61, %v4120_v15  ;;  %5747 = vmatmul.bf16.vlgmr.msra.gmra.mxu0 %v15589_v18  ;;  %5925 = vmatmul.bf16.vlgmr.msra.gmra.mxu2 %v12544_v9 }
 0x455   :  { %v4179_v51 = vmul.f32 %v13345_v40, %v4178_v50  ;;  %v4282_v48 = vmul.f32 %v13423_v52, %v13332_v10  ;;  %v2495_v35 = vadd.f32 %v2494_v47, %v2405_v41  ;;  %v13466_v21 = vmul.f32 %v4069_v36, %v15514_v23  ;;  %v15590_v23 = vld [vmem:[#allocation89_spill] sm:$0xff] }
 0x456   :  { %v4169_v61 = vsel %vm13458_vm5, %v13297_v17, %v4165_v37  ;;  %vm4182_vm6 = vweird.f32 %v13345_v40  ;;  %v4224_v60 = vmul.f32 %v13352_v39, %v4223_v63  ;;  %v8411_v54 = vpop.eup %8410  ;;  %vm4227_vm7 = vweird.f32 %v13352_v39  ;;  %5836 = vmatmul.bf16.vlgmr.msra.gmra.mxu1 %v15590_v23 }
 0x457   :  { %8418 = vpow2.f32 %v7463_v45  ;;  %v5158_v50 = vmul.f32 %v13246_v49, %v2495_v35  ;;  %v2319_v33 = vadd.f32 %v2318_v4, %v2229_v12  ;;  %v13478_v17 = vmul.f32 %v4114_v55, %v15522_v1  ;;  %v15591_v1 = vld [vmem:[#allocation78_spill] sm:$0xff]  ;;  %vm13522_vm11 = vmor %vm4181_vm2, %vm4182_vm6 }
 0x458   :  { %v8413_v15 = vpop.eup %8412  ;;  %v4129_v16 = vsel %vm13401_vm15, %v13370_v30, %v4124_v6  ;;  %v13483_v36 = vor.u32 1.1754944e-38, %v4232_v8  ;;  %v4238_v37 = vsub.f32 1.0, %v4237_v34  ;;  %v4174_v49 = vsel %vm13411_vm1, %v13372_v56, %v4169_v61  ;;  %6014 = vmatmul.bf16.vlgmr.msra.gmra.mxu3 %v15591_v1  ;;  %vm13537_vm12 = vmor %vm4226_vm4, %vm4227_vm7 }
 0x459   :  { %v8415_v63 = vpop.eup %8414  ;;  %v4180_v45 = vadd.f32 %v13345_v40, %v4179_v51  ;;  %v4283_v27 = vsub.f32 1.0, %v4282_v48  ;;  %v5161_v41 = vmul.f32 %v13276_v7, %v2319_v33  ;;  %v15592_v30 = vand.u32 2147483647, %v13269_v25  ;;  %v2407_v61 = vpop.f32.mrf.mxu2 }
 0x45a   :  { %v8417_v55 = vpop.eup %8416  ;;  %v4225_v8 = vadd.f32 %v13352_v39, %v4224_v60  ;;  %vm4241_vm9 = vweird.f32 %v13322_v2  ;;  %v4245_v56 = vand.u32 2147483647, %v13322_v2  ;;  %v13501_v43 = vadd.f32 1.0, %v8411_v54  ;;  %v2232_v53 = vpop.f32.mrf.mxu0 }
 0x45b   :  { %vm13494_vm8 = vcmp.eq.f32.partialorder %v15592_v30, 8.507059e+37  ;;  %v13504_v7 = vmul.f32 %v4129_v16, %v15525_v31  ;;  %vm13506_vm10 = vcmp.eq.f32.partialorder %v4230_v3, 8.507059e+37  ;;  %v4247_v47 = vand.u32 2147483648, %v13322_v2  ;;  %v7960_v30 = vld [vmem:[#allocation9 + $0x164] sm:$0xf] }
 0x45c   :  { %v13511_v6 = vadd.f32 1.0, %v8413_v15  ;;  %v13513_v62 = vpack.c.bf16 %v5161_v41, %v5157_v58  ;;  %v13516_v51 = vmul.f32 %v4174_v49, %v15532_v5  ;;  %v4239_v3 = vmul.f32 %v13416_v26, %v4238_v37  ;;  %v2496_v58 = vpop.f32.mrf.mxu3  ;;  %v15601_v15 = vld [vmem:[#allocation56_spill] sm:$0xff] }
 0x45d   :  { %v4290_v48 = vand.u32 2147483647, %v13332_v10  ;;  %v13528_v35 = vadd.f32 1.0, %v8415_v63  ;;  %v8419_v60 = vpop.eup %8418  ;;  %v4184_v5 = vsel %vm13522_vm11, %v13345_v40, %v4180_v45  ;;  %v4284_v12 = vmul.f32 %v13423_v52, %v4283_v27  ;;  %v2321_v40 = vpop.f32.mrf.mxu1  ;;  %v15602_v45 = vld [vmem:[#allocation57_spill] sm:$0xff]  ;;  %v7976_v31 = vld [vmem:[#allocation9 + $0x1e4] sm:$0xf] }
 0x45e   :  { %v13542_v4 = vadd.f32 1.0, %v8417_v55  ;;  %v2497_v54 = vadd.f32 %v2496_v58, %v2407_v61  ;;  %v4229_v33 = vsel %vm13537_vm12, %v13352_v39, %v4225_v8  ;;  %vm4242_vm13 = vweird.f32 %v13416_v26  ;;  %v7680_v8 = vld [vmem:[#allocation9 + $0x168] sm:$0xf0] }
 0x45f   :  { %vm4287_vm14 = vweird.f32 %v13423_v52  ;;  %8420 = vrcp.f32 %v13501_v43  ;;  %v7466_v16 = vmul.f32 -1.442695, %v15601_v15  ;;  %v2322_v63 = vadd.f32 %v2321_v40, %v2232_v53  ;;  %v15605_v58 = vld [vmem:[#allocation165_spill] sm:$0xff]  ;;  %vm13578_vm0 = vmor %vm4241_vm9, %vm4242_vm13 }
 0x460   :  { %8422 = vrcp.f32 %v13511_v6  ;;  %v5162_v37 = vmul.f32 %v13285_v22, %v2497_v54  ;;  %v4240_v49 = vadd.f32 %v13416_v26, %v4239_v3  ;;  %v13555_v39 = vadd.f32 1.0, %v8419_v60 }
 0x461   :  { %8424 = vrcp.f32 %v13528_v35  ;;  %v7467_v27 = vmul.f32 -1.442695, %v15602_v45  ;;  %v4285_v41 = vadd.f32 %v13423_v52, %v4284_v12  ;;  %v13561_v55 = vmul.f32 %v13348_v32, %v2322_v63  ;;  %v7744_v12 = vld [vmem:[#allocation9 + $0x1e8] sm:$0xf0] }
 0x462   :  { %8426 = vrcp.f32 %v13542_v4  ;;  %v13563_v22 = vpack.c.bf16 %v5162_v37, %v5158_v50  ;;  %vm13565_vm15 = vcmp.eq.f32.partialorder %v4245_v56, 8.507059e+37  ;;  %v4292_v61 = vand.u32 2147483648, %v13332_v10  ;;  %v2234_v63 = vpop.f32.mrf.mxu0 }
 0x463   :  { %v7470_v60 = vmul.f32 -1.442695, %v15605_v58  ;;  %v7683_v25 = vor.u32 %v7960_v30, %v7680_v8  ;;  %v4189_v32 = vsel %vm13494_vm8, %v13431_v13, %v4184_v5  ;;  %vm4286_vm1 = vweird.f32 %v13332_v10  ;;  %v2410_v10 = vpop.f32.mrf.mxu2  ;;  %v15615_v13 = vld [vmem:[#allocation107_spill] sm:$0xff] }
 0x464   :  { %8428 = vpow2.f32 %v7466_v16  ;;  %v7747_v56 = vor.u32 %v7976_v31, %v7744_v12  ;;  %v4234_v53 = vsel %vm13506_vm10, %v13483_v36, %v4229_v33  ;;  %v4248_v29 = vor.u32 1.1754944e-38, %v4247_v47  ;;  %vm13590_vm2 = vmor %vm4286_vm1, %vm4287_vm14  ;;  %v2499_v5 = vpop.f32.mrf.mxu3  ;;  %v7552_v31 = vld [vmem:[#allocation9 + $0x68] sm:$0xf0] }
 0x465   :  { %v13583_v54 = vpop.eup %8420  ;;  %vm13594_vm3 = vcmp.eq.f32.partialorder %v4290_v48, 8.507059e+37  ;;  %8430 = vrcp.f32 %v13555_v39  ;;  %6274 = vmatpush.bf16.msrb.mxu2 %v7683_v25  ;;  %v4244_v36 = vsel %vm13578_vm0, %v13416_v26, %v4240_v49  ;;  %v4289_v34 = vsel %vm13590_vm2, %v13423_v52, %v4285_v41  ;;  %v2323_v30 = vpop.f32.mrf.mxu1  ;;  %v15613_v41 = vld [vmem:[#allocation90_spill] sm:$0xff] }
 0x466   :  { %v13599_v40 = vpop.eup %8422  ;;  %8432 = vpow2.f32 %v7467_v27  ;;  %v2500_v47 = vadd.f32 %v2499_v5, %v2410_v10  ;;  %6363 = vmatpush.bf16.msrb.mxu3 %v7747_v56  ;;  %v13610_v33 = vmul.f32 %v4189_v32, %v15541_v28  ;;  %v4293_v16 = vor.u32 1.1754944e-38, %v4292_v61  ;;  %v15612_v27 = vld [vmem:[#allocation93_spill] sm:$0xff]  ;;  %5841 = vmatmul.bf16.gmra.mxu1 %v15613_v41  ;;  %v7928_v28 = vld [vmem:[#allocation9 + $0x64] sm:$0xf] }
 0x467   :  { %v13607_v48 = vpop.eup %8424  ;;  %v4307_v37 = vand.u32 2147483648, %v13501_v43  ;;  %8434 = vpow2.f32 %v7470_v60  ;;  %v13616_v26 = vmul.f32 %v4234_v53, %v15543_v19  ;;  %v2324_v49 = vadd.f32 %v2323_v30, %v2234_v63  ;;  %5752 = vmatmul.bf16.gmra.mxu0 %v15612_v27  ;;  %v7944_v61 = vld [vmem:[#allocation9 + $0xe4] sm:$0xf]  ;;  %v7616_v32 = vld [vmem:[#allocation9 + $0xe8] sm:$0xf0]  ;;  %v15614_v53 = vld [vmem:[#allocation103_spill] sm:$0xff] }
 0x468   :  { %v13613_v8 = vpop.eup %8426  ;;  %v5166_v52 = vmul.f32 %v13466_v21, %v2500_v47  ;;  %v4249_v60 = vsel %vm13565_vm15, %v4248_v29, %v4244_v36  ;;  %v4294_v25 = vsel %vm13594_vm3, %v4293_v16, %v4289_v34  ;;  %v4297_v19 = vmul.f32 %v13583_v54, %v13501_v43  ;;  %5930 = vmatmul.bf16.gmra.mxu2 %v15614_v53  ;;  %v15616_v36 = vld [vmem:[#allocation166_spill] sm:$0xff] }
 0x469   :  { %v7555_v12 = vor.u32 %v7928_v28, %v7552_v31  ;;  %v4342_v50 = vmul.f32 %v13599_v40, %v13511_v6  ;;  %v5169_v56 = vmul.f32 %v13478_v17, %v2324_v49  ;;  %6019 = vmatmul.bf16.gmra.mxu3 %v15615_v13  ;;  %v7619_v3 = vor.u32 %v7944_v61, %v7616_v32 }
 0x46a   :  { %v8429_v21 = vpop.eup %8428  ;;  %v4305_v2 = vand.u32 2147483647, %v13501_v43  ;;  %v4357_v10 = vmul.f32 %v13607_v48, %v13528_v35  ;;  %v4402_v5 = vmul.f32 %v13613_v8, %v13542_v4  ;;  %v7471_v34 = vmul.f32 -1.442695, %v15616_v36 }
 0x46b   :  { %v13632_v29 = vpop.eup %8430  ;;  %6096 = vmatpush.bf16.msrb.mxu0 %v7555_v12  ;;  %v13641_v17 = vmul.f32 %v4249_v60, %v15554_v57  ;;  %v13643_v16 = vor.u32 1.1754944e-38, %v4307_v37  ;;  %v4350_v63 = vand.u32 2147483647, %v13511_v6  ;;  %6185 = vmatpush.bf16.msrb.mxu1 %v7619_v3  ;;  %v13647_v30 = vpack.c.bf16 %v5169_v56, %v13561_v55  ;;  %v2412_v32 = vpop.f32.mrf.mxu2 }
 0x46c   :  { %v8433_v47 = vpop.eup %8432  ;;  %v13650_v28 = vmul.f32 %v4294_v25, %v15559_v24  ;;  %v4298_v31 = vsub.f32 1.0, %v4297_v19  ;;  %v4352_v61 = vand.u32 2147483648, %v13511_v6  ;;  %v4367_v12 = vand.u32 2147483648, %v13528_v35  ;;  %v2501_v57 = vpop.f32.mrf.mxu3 }
 0x46d   :  { %v8435_v49 = vpop.eup %8434  ;;  %v4343_v60 = vsub.f32 1.0, %v4342_v50  ;;  %v4365_v37 = vand.u32 2147483647, %v13528_v35  ;;  %v13655_v13 = vadd.f32 1.0, %v8429_v21  ;;  %v2502_v3 = vadd.f32 %v2501_v57, %v2412_v32  ;;  %v2237_v19 = vpop.f32.mrf.mxu0 }
 0x46e   :  { %vm4301_vm4 = vweird.f32 %v13501_v43  ;;  %v4358_v55 = vsub.f32 1.0, %v4357_v10  ;;  %v4403_v56 = vsub.f32 1.0, %v4402_v5  ;;  %v4417_v24 = vmul.f32 %v13632_v29, %v13555_v39  ;;  %v2326_v53 = vpop.f32.mrf.mxu1  ;;  %v15641_v43 = vld [vmem:[#allocation67_spill] sm:$0xff] }
 0x46f   :  { %v13660_v25 = vadd.f32 1.0, %v8433_v47  ;;  %vm4346_vm5 = vweird.f32 %v13511_v6  ;;  %v13663_v41 = vadd.f32 1.0, %v8435_v49  ;;  %8436 = vpow2.f32 %v7471_v34 }
 0x470   :  { %v5170_v21 = vmul.f32 %v13504_v7, %v2502_v3  ;;  %v2327_v50 = vadd.f32 %v2326_v53, %v2237_v19  ;;  %v4299_v32 = vmul.f32 %v13583_v54, %v4298_v31  ;;  %vm4302_vm6 = vweird.f32 %v13583_v54 }
 0x471   :  { %v13668_v10 = vor.u32 1.1754944e-38, %v4352_v61  ;;  %vm4361_vm7 = vweird.f32 %v13528_v35  ;;  %v13671_v5 = vor.u32 1.1754944e-38, %v4367_v12  ;;  %v4344_v47 = vmul.f32 %v13599_v40, %v4343_v60  ;;  %vm13714_vm0 = vmor %vm4301_vm4, %vm4302_vm6 }
 0x472   :  { %8438 = vrcp.f32 %v13655_v13  ;;  %v5173_v49 = vmul.f32 %v13516_v51, %v2327_v50  ;;  %v13676_v34 = vpack.c.bf16 %v5170_v21, %v5166_v52  ;;  %v4359_v7 = vmul.f32 %v13607_v48, %v4358_v55  ;;  %v15619_v51 = vld [vmem:[#allocation71_spill] sm:$0xff] }
 0x473   :  { %vm4406_vm8 = vweird.f32 %v13542_v4  ;;  %v4418_v53 = vsub.f32 1.0, %v4417_v24  ;;  %8440 = vrcp.f32 %v13660_v25  ;;  %vm13681_vm9 = vcmp.eq.f32.partialorder %v4305_v2, 8.507059e+37 }
 0x474   :  { %v4404_v61 = vmul.f32 %v13613_v8, %v4403_v56  ;;  %v4410_v12 = vand.u32 2147483647, %v13542_v4  ;;  %8442 = vrcp.f32 %v13663_v41  ;;  %v7474_v52 = vmul.f32 -1.442695, %v15619_v51  ;;  %v2415_v56 = vpop.f32.mrf.mxu2  ;;  %v2504_v24 = vpop.f32.mrf.mxu3 }
 0x475   :  { %vm13689_vm10 = vcmp.eq.f32.partialorder %v4350_v63, 8.507059e+37  ;;  %vm13693_vm11 = vcmp.eq.f32.partialorder %v4365_v37, 8.507059e+37  ;;  %v4412_v2 = vand.u32 2147483648, %v13542_v4  ;;  %vm4421_vm12 = vweird.f32 %v13555_v39  ;;  %v8437_v19 = vpop.eup %8436  ;;  %v2239_v1 = vpop.f32.mrf.mxu0 }
 0x476   :  { %v4425_v3 = vand.u32 2147483647, %v13555_v39  ;;  %v4427_v55 = vand.u32 2147483648, %v13555_v39  ;;  %v4300_v63 = vadd.f32 %v13583_v54, %v4299_v32  ;;  %v4345_v21 = vadd.f32 %v13599_v40, %v4344_v47  ;;  %v2328_v9 = vpop.f32.mrf.mxu1 }
 0x477   :  { %vm4347_vm13 = vweird.f32 %v13599_v40  ;;  %v2505_v37 = vadd.f32 %v2504_v24, %v2415_v56  ;;  %v4360_v50 = vadd.f32 %v13607_v48, %v4359_v7  ;;  %vm4362_vm14 = vweird.f32 %v13607_v48  ;;  %v15626_v24 = vld [vmem:[#allocation91_spill] sm:$0xff] }
 0x478   :  { %vm4407_vm15 = vweird.f32 %v13613_v8  ;;  %v4419_v27 = vmul.f32 %v13632_v29, %v4418_v53  ;;  %v13708_v23 = vpop.eup %8438  ;;  %v4405_v47 = vadd.f32 %v13613_v8, %v4404_v61  ;;  %8444 = vpow2.f32 %v7474_v52  ;;  %5757 = vmatmul.bf16.gmra.mxu0 %v15626_v24  ;;  %v15627_v53 = vld [vmem:[#allocation47_spill] sm:$0xff]  ;;  %vm13728_vm1 = vmor %vm4346_vm5, %vm4347_vm13  ;;  %v15644_v61 = vld [vmem:[#allocation69_spill] sm:$0xff] }
 0x479   :  { %v5174_v7 = vmul.f32 %v13610_v33, %v2505_v37  ;;  %v2329_v56 = vadd.f32 %v2328_v9, %v2239_v1  ;;  %5846 = vmatmul.bf16.gmra.mxu1 %v15627_v53  ;;  %v13722_v18 = vpop.eup %8440  ;;  %vm13732_vm2 = vcmp.eq.f32.partialorder %v4410_v12, 8.507059e+37  ;;  %v4413_v33 = vor.u32 1.1754944e-38, %v4412_v2  ;;  %vm13750_vm3 = vmor %vm4361_vm7, %vm4362_vm14  ;;  %v7608_v24 = vld [vmem:[#allocation9 + $0xd8] sm:$0xf0] }
 0x47a   :  { %v4428_v9 = vor.u32 1.1754944e-38, %v4427_v55  ;;  %v13736_v1 = vadd.f32 1.0, %v8437_v19  ;;  %v13738_v52 = vpop.eup %8442  ;;  %v4304_v37 = vsel %vm13714_vm0, %v13583_v54, %v4300_v63  ;;  %v4349_v6 = vsel %vm13728_vm1, %v13599_v40, %v4345_v21  ;;  %v15634_v55 = vld [vmem:[#allocation109_spill] sm:$0xff]  ;;  %v15635_v19 = vld [vmem:[#allocation110_spill] sm:$0xff]  ;;  %vm13765_vm5 = vmor %vm4406_vm8, %vm4407_vm15 }
 0x47b   :  { %vm4422_vm4 = vweird.f32 %v13632_v29  ;;  %v5177_v2 = vmul.f32 %v13616_v26, %v2329_v56  ;;  %5935 = vmatmul.bf16.gmra.mxu2 %v15634_v55  ;;  %6024 = vmatmul.bf16.gmra.mxu3 %v15635_v19  ;;  %v4364_v54 = vsel %vm13750_vm3, %v13607_v48, %v4360_v50  ;;  %v4420_v40 = vadd.f32 %v13632_v29, %v4419_v27  ;;  %v15640_v50 = vld [vmem:[#allocation73_spill] sm:$0xff] }
 0x47c   :  { %vm13770_vm6 = vcmp.eq.f32.partialorder %v4425_v3, 8.507059e+37  ;;  %v4462_v63 = vmul.f32 %v13708_v23, %v13655_v13  ;;  %v4472_v21 = vand.u32 2147483648, %v13655_v13  ;;  %v4409_v48 = vsel %vm13765_vm5, %v13613_v8, %v4405_v47  ;;  %v2417_v35 = vpop.f32.mrf.mxu2  ;;  %v2506_v8 = vpop.f32.mrf.mxu3  ;;  %vm13802_vm7 = vmor %vm4421_vm12, %vm4422_vm4 }
 0x47d   :  { %v4477_v4 = vmul.f32 %v13722_v18, %v13660_v25  ;;  %v7475_v32 = vmul.f32 -1.442695, %v15640_v50  ;;  %v13783_v56 = vpack.c.bf16 %v5177_v2, %v5173_v49  ;;  %v4309_v27 = vsel %vm13681_vm9, %v13643_v16, %v4304_v37  ;;  %v2242_v60 = vpop.f32.mrf.mxu0 }
 0x47e   :  { %v4522_v3 = vmul.f32 %v13738_v52, %v13663_v41  ;;  %8446 = vrcp.f32 %v13736_v1  ;;  %v7478_v12 = vmul.f32 -1.442695, %v15641_v43  ;;  %v8445_v47 = vpop.eup %8444  ;;  %v4354_v19 = vsel %vm13689_vm10, %v13668_v10, %v4349_v6  ;;  %v2331_v6 = vpop.f32.mrf.mxu1 }
 0x47f   :  { %v4369_v49 = vsel %vm13693_vm11, %v13671_v5, %v4364_v54  ;;  %v4470_v31 = vand.u32 2147483647, %v13655_v13  ;;  %v2507_v37 = vadd.f32 %v2506_v8, %v2417_v35  ;;  %v4414_v2 = vsel %vm13732_vm2, %v4413_v33, %v4409_v48  ;;  %v7672_v48 = vld [vmem:[#allocation9 + $0x158] sm:$0xf0] }
 0x480   :  { %v4424_v10 = vsel %vm13802_vm7, %v13632_v29, %v4420_v40  ;;  %v4463_v57 = vsub.f32 1.0, %v4462_v63  ;;  %v13812_v5 = vor.u32 1.1754944e-38, %v4472_v21  ;;  %v4478_v39 = vsub.f32 1.0, %v4477_v4  ;;  %v7958_v21 = vld [vmem:[#allocation9 + $0x154] sm:$0xf] }
 0x481   :  { %8448 = vpow2.f32 %v7475_v32  ;;  %v5178_v54 = vmul.f32 %v13641_v17, %v2507_v37  ;;  %v2332_v55 = vadd.f32 %v2331_v6, %v2242_v60  ;;  %vm4466_vm8 = vweird.f32 %v13655_v13  ;;  %v7974_v4 = vld [vmem:[#allocation9 + $0x1d4] sm:$0xf] }
 0x482   :  { %v4523_v35 = vsub.f32 1.0, %v4522_v3  ;;  %v13816_v8 = vadd.f32 1.0, %v8445_v47  ;;  %8450 = vpow2.f32 %v7478_v12  ;;  %v7479_v33 = vmul.f32 -1.442695, %v15644_v61  ;;  %v15647_v60 = vld [vmem:[#allocation70_spill] sm:$0xff] }
 0x483   :  { %v5054_v29 = vmul.f32 %v4309_v27, %v15565_v42  ;;  %v5057_v40 = vmul.f32 %v4354_v19, %v15566_v0  ;;  %v13822_v63 = vmul.f32 %v13650_v28, %v2332_v55  ;;  %v13824_v17 = vpack.c.bf16 %v5178_v54, %v5174_v7  ;;  %v7736_v27 = vld [vmem:[#allocation9 + $0x1d8] sm:$0xf0] }
 0x484   :  { %v13826_v32 = vpop.eup %8446  ;;  %v13829_v3 = vmul.f32 %v4369_v49, %v15567_v20  ;;  %v4464_v12 = vmul.f32 %v13708_v23, %v4463_v57  ;;  %vm4467_vm9 = vweird.f32 %v13708_v23  ;;  %v7675_v42 = vor.u32 %v7958_v21, %v7672_v48  ;;  %v2420_v47 = vpop.f32.mrf.mxu2  ;;  %v15649_v48 = vld [vmem:[#allocation48_spill] sm:$0xff] }
 0x485   :  { %v13834_v0 = vmul.f32 %v4414_v2, %v15583_v38  ;;  %v13838_v28 = vsel %vm13770_vm6, %v4428_v9, %v4424_v10  ;;  %vm4481_vm10 = vweird.f32 %v13660_v25  ;;  %v7739_v7 = vor.u32 %v7974_v4, %v7736_v27  ;;  %v2509_v49 = vpop.f32.mrf.mxu3  ;;  %v2244_v54 = vpop.f32.mrf.mxu0  ;;  %v15650_v4 = vld [vmem:[#allocation50_spill] sm:$0xff]  ;;  %vm13868_vm14 = vmor %vm4466_vm8, %vm4467_vm9 }
 0x486   :  { %v4479_v55 = vmul.f32 %v13722_v18, %v4478_v39  ;;  %v4485_v20 = vand.u32 2147483647, %v13660_v25  ;;  %v4524_v19 = vmul.f32 %v13738_v52, %v4523_v35  ;;  %8452 = vpow2.f32 %v7479_v33  ;;  %6275 = vmatpush.bf16.msrb.mxu2 %v7675_v42  ;;  %v2333_v35 = vpop.f32.mrf.mxu1  ;;  %v7926_v42 = vld [vmem:[#allocation9 + $0x54] sm:$0xf] }
 0x487   :  { %v8449_v16 = vpop.eup %8448  ;;  %vm13844_vm11 = vcmp.eq.f32.partialorder %v4470_v31, 8.507059e+37  ;;  %v4487_v9 = vand.u32 2147483648, %v13660_v25  ;;  %v4537_v26 = vmul.f32 %v13826_v32, %v13736_v1  ;;  %8454 = vrcp.f32 %v13816_v8  ;;  %6364 = vmatpush.bf16.msrb.mxu3 %v7739_v7  ;;  %v15648_v31 = vld [vmem:[#allocation168_spill] sm:$0xff]  ;;  %v7942_v27 = vld [vmem:[#allocation9 + $0xd4] sm:$0xf] }
 0x488   :  { %v2510_v37 = vadd.f32 %v2509_v49, %v2420_v47  ;;  %v8451_v2 = vpop.eup %8450  ;;  %v4465_v10 = vadd.f32 %v13708_v23, %v4464_v12  ;;  %v4530_v57 = vand.u32 2147483647, %v13663_v41  ;;  %v7482_v6 = vmul.f32 -1.442695, %v15647_v60  ;;  %5762 = vmatmul.bf16.gmra.mxu0 %v15649_v48  ;;  %v7544_v12 = vld [vmem:[#allocation9 + $0x58] sm:$0xf0] }
 0x489   :  { %v7483_v39 = vmul.f32 -1.442695, %v15648_v31  ;;  %vm4482_vm12 = vweird.f32 %v13722_v18  ;;  %vm4527_vm13 = vweird.f32 %v13738_v52  ;;  %v2334_v21 = vadd.f32 %v2333_v35, %v2244_v54  ;;  %5851 = vmatmul.bf16.gmra.mxu1 %v15650_v4  ;;  %v15653_v4 = vld [vmem:[#allocation111_spill] sm:$0xff] }
 0x48a   :  { %v5182_v33 = vmul.f32 %v5054_v29, %v2510_v37  ;;  %v4480_v7 = vadd.f32 %v13722_v18, %v4479_v55  ;;  %v4525_v47 = vadd.f32 %v13738_v52, %v4524_v19  ;;  %v13862_v49 = vadd.f32 1.0, %v8449_v16  ;;  %v15654_v55 = vld [vmem:[#allocation112_spill] sm:$0xff]  ;;  %vm13880_vm15 = vmor %vm4481_vm10, %vm4482_vm12 }
 0x48b   :  { %v7547_v53 = vor.u32 %v7926_v42, %v7544_v12  ;;  %v4538_v37 = vsub.f32 1.0, %v4537_v26  ;;  %v13872_v54 = vadd.f32 1.0, %v8451_v2  ;;  %v5185_v35 = vmul.f32 %v5057_v40, %v2334_v21  ;;  %5940 = vmatmul.bf16.gmra.mxu2 %v15653_v4  ;;  %6029 = vmatmul.bf16.gmra.mxu3 %v15654_v55  ;;  %v15664_v21 = vld [vmem:[#allocation169_spill] sm:$0xff]  ;;  %v7972_v55 = vld [vmem:[#allocation9 + $0x1c4] sm:$0xf] }
 0x48c   :  { %v7611_v19 = vor.u32 %v7942_v27, %v7608_v24  ;;  %v8453_v16 = vpop.eup %8452  ;;  %vm13884_vm0 = vcmp.eq.f32.partialorder %v4485_v20, 8.507059e+37  ;;  %vm4526_vm1 = vweird.f32 %v13663_v41  ;;  %v4532_v40 = vand.u32 2147483648, %v13663_v41  ;;  %v7940_v4 = vld [vmem:[#allocation9 + $0xc4] sm:$0xf] }
 0x48d   :  { %8456 = vpow2.f32 %v7482_v6  ;;  %6097 = vmatpush.bf16.msrb.mxu0 %v7547_v53  ;;  %v13890_v24 = vpop.eup %8454  ;;  %v4469_v25 = vsel %vm13868_vm14, %v13708_v23, %v4465_v10  ;;  %v4488_v26 = vor.u32 1.1754944e-38, %v4487_v9  ;;  %vm13897_vm2 = vmor %vm4526_vm1, %vm4527_vm13  ;;  %v13902_v2 = vpack.c.bf16 %v5185_v35, %v13822_v63  ;;  %v2422_v9 = vpop.f32.mrf.mxu2 }
 0x48e   :  { %8458 = vpow2.f32 %v7483_v39  ;;  %6186 = vmatpush.bf16.msrb.mxu1 %v7611_v19  ;;  %v4484_v41 = vsel %vm13880_vm15, %v13722_v18, %v4480_v7  ;;  %v4529_v23 = vsel %vm13897_vm2, %v13738_v52, %v4525_v47  ;;  %vm13910_vm3 = vcmp.eq.f32.partialorder %v4530_v57, 8.507059e+37  ;;  %v2511_v10 = vpop.f32.mrf.mxu3  ;;  %v2247_v27 = vpop.f32.mrf.mxu0 }
 0x48f   :  { %15661 = vst [vmem:[#allocation16_spill] sm:$0xff] %v13902_v2  ;;  %8460 = vrcp.f32 %v13862_v49  ;;  %v4539_v6 = vmul.f32 %v13826_v32, %v4538_v37  ;;  %v13917_v63 = vadd.f32 1.0, %v8453_v16  ;;  %v2512_v39 = vadd.f32 %v2511_v10, %v2422_v9  ;;  %v2336_v7 = vpop.f32.mrf.mxu1 }
 0x490   :  { %8462 = vrcp.f32 %v13872_v54  ;;  %v4474_v18 = vsel %vm13844_vm11, %v13812_v5, %v4469_v25  ;;  %v4533_v52 = vor.u32 1.1754944e-38, %v4532_v40  ;;  %v4582_v57 = vmul.f32 %v13890_v24, %v13816_v8 }
 0x491   :  { %v7486_v12 = vmul.f32 -1.442695, %v15664_v21  ;;  %v4545_v47 = vand.u32 2147483647, %v13736_v1  ;;  %v4547_v29 = vand.u32 2147483648, %v13736_v1  ;;  %v5186_v37 = vmul.f32 %v13829_v3, %v2512_v39  ;;  %v15670_v39 = vld [vmem:[#allocation170_spill] sm:$0xff] }
 0x492   :  { %v2337_v35 = vadd.f32 %v2336_v7, %v2247_v27  ;;  %v5062_v38 = vmul.f32 %v13838_v28, %v15584_v14  ;;  %v4489_v5 = vsel %vm13884_vm0, %v4488_v26, %v4484_v41  ;;  %v4534_v16 = vsel %vm13910_vm3, %v4533_v52, %v4529_v23  ;;  %v15671_v7 = vld [vmem:[#allocation171_spill] sm:$0xff] }
 0x493   :  { %v8457_v19 = vpop.eup %8456  ;;  %vm4542_vm4 = vweird.f32 %v13826_v32  ;;  %v4540_v40 = vadd.f32 %v13826_v32, %v4539_v6  ;;  %8464 = vrcp.f32 %v13917_v63  ;;  %v13938_v25 = vpack.c.bf16 %v5186_v37, %v5182_v33 }
 0x494   :  { %v8459_v13 = vpop.eup %8458  ;;  %v5189_v3 = vmul.f32 %v13834_v0, %v2337_v35  ;;  %v5065_v14 = vmul.f32 %v4474_v18, %v15601_v15  ;;  %vm4541_vm5 = vweird.f32 %v13736_v1  ;;  %v4583_v28 = vsub.f32 1.0, %v4582_v57 }
 0x495   :  { %15665 = vst [vmem:[#allocation17_spill] sm:$0xff] %v13938_v25  ;;  %v13940_v20 = vpop.eup %8460  ;;  %8466 = vpow2.f32 %v7486_v12  ;;  %v13947_v26 = vmul.f32 %v4489_v5, %v15602_v45  ;;  %vm13949_vm6 = vcmp.eq.f32.partialorder %v4545_v47, 8.507059e+37  ;;  %v4548_v0 = vor.u32 1.1754944e-38, %v4547_v29  ;;  %vm13960_vm7 = vmor %vm4541_vm5, %vm4542_vm4  ;;  %v2425_v9 = vpop.f32.mrf.mxu2 }
 0x496   :  { %v13944_v42 = vpop.eup %8462  ;;  %v13953_v33 = vadd.f32 1.0, %v8457_v19  ;;  %v13956_v23 = vmul.f32 %v4534_v16, %v15605_v58  ;;  %vm4586_vm8 = vweird.f32 %v13816_v8  ;;  %v4590_v45 = vand.u32 2147483647, %v13816_v8  ;;  %v2514_v10 = vpop.f32.mrf.mxu3  ;;  %v15672_v16 = vld [vmem:[#allocation97_spill] sm:$0xff] }
 0x497   :  { %v4592_v1 = vand.u32 2147483648, %v13816_v8  ;;  %v13967_v53 = vadd.f32 1.0, %v8459_v13  ;;  %v4544_v58 = vsel %vm13960_vm7, %v13826_v32, %v4540_v40  ;;  %v4597_v6 = vmul.f32 %v13940_v20, %v13862_v49  ;;  %v2249_v29 = vpop.f32.mrf.mxu0  ;;  %v2338_v37 = vpop.f32.mrf.mxu1  ;;  %v15673_v13 = vld [vmem:[#allocation100_spill] sm:$0xff] }
 0x498   :  { %v7487_v18 = vmul.f32 -1.442695, %v15670_v39  ;;  %v2515_v52 = vadd.f32 %v2514_v10, %v2425_v9  ;;  %v4584_v57 = vmul.f32 %v13890_v24, %v4583_v28  ;;  %v4642_v27 = vmul.f32 %v13944_v42, %v13872_v54  ;;  %5767 = vmatmul.bf16.gmra.mxu0 %v15672_v16 }
 0x499   :  { %v7490_v47 = vmul.f32 -1.442695, %v15671_v7  ;;  %v13980_v35 = vpop.eup %8464  ;;  %v4607_v32 = vand.u32 2147483648, %v13862_v49  ;;  %8468 = vrcp.f32 %v13953_v33  ;;  %v2339_v5 = vadd.f32 %v2338_v37, %v2249_v29  ;;  %5856 = vmatmul.bf16.gmra.mxu1 %v15673_v13  ;;  %v15677_v29 = vld [vmem:[#allocation74_spill] sm:$0xff] }
 0x49a   :  { %v5190_v19 = vmul.f32 %v5062_v38, %v2515_v52  ;;  %v4549_v28 = vsel %vm13949_vm6, %v4548_v0, %v4544_v58  ;;  %vm4587_vm9 = vweird.f32 %v13890_v24  ;;  %vm13989_vm10 = vcmp.eq.f32.partialorder %v4590_v45, 8.507059e+37 }
 0x49b   :  { %v8467_v40 = vpop.eup %8466  ;;  %8470 = vrcp.f32 %v13967_v53  ;;  %v4598_v9 = vsub.f32 1.0, %v4597_v6  ;;  %v4652_v38 = vand.u32 2147483648, %v13872_v54  ;;  %v5193_v10 = vmul.f32 %v5065_v14, %v2339_v5  ;;  %5945 = vmatmul.bf16.gmra.mxu2 %v13085_v44  ;;  %6034 = vmatmul.bf16.gmra.mxu3 %v13138_v11  ;;  %vm14020_vm13 = vmor %vm4586_vm8, %vm4587_vm9 }
 0x49c   :  { %8472 = vpow2.f32 %v7487_v18  ;;  %v4585_v41 = vadd.f32 %v13890_v24, %v4584_v57  ;;  %v4643_v0 = vsub.f32 1.0, %v4642_v27  ;;  %v4657_v45 = vmul.f32 %v13980_v35, %v13917_v63 }
 0x49d   :  { %8474 = vpow2.f32 %v7490_v47  ;;  %v4593_v58 = vor.u32 1.1754944e-38, %v4592_v1  ;;  %vm4601_vm11 = vweird.f32 %v13862_v49  ;;  %v14001_v52 = vor.u32 1.1754944e-38, %v4607_v32  ;;  %v2427_v1 = vpop.f32.mrf.mxu2 }
 0x49e   :  { %v14003_v6 = vadd.f32 1.0, %v8467_v40  ;;  %v14005_v18 = vpack.c.bf16 %v5193_v10, %v5189_v3  ;;  %v14008_v14 = vmul.f32 %v4549_v28, %v15616_v36  ;;  %vm4646_vm12 = vweird.f32 %v13872_v54  ;;  %v2516_v37 = vpop.f32.mrf.mxu3 }
 0x49f   :  { %v4650_v57 = vand.u32 2147483647, %v13872_v54  ;;  %v7491_v47 = vmul.f32 -1.442695, %v15677_v29  ;;  %v14014_v5 = vpop.eup %8468  ;;  %v4599_v36 = vmul.f32 %v13940_v20, %v4598_v9  ;;  %vm4602_vm14 = vweird.f32 %v13940_v20  ;;  %v2252_v11 = vpop.f32.mrf.mxu0  ;;  %v15680_v9 = vld [vmem:[#allocation86_spill] sm:$0xff] }
 0x4a0   :  { %15676 = vst [vmem:[#allocation45_spill] sm:$0xff] %v14005_v18  ;;  %v14026_v32 = vor.u32 1.1754944e-38, %v4652_v38  ;;  %v2517_v40 = vadd.f32 %v2516_v37, %v2427_v1  ;;  %v4589_v10 = vsel %vm14020_vm13, %v13890_v24, %v4585_v41  ;;  %v4644_v27 = vmul.f32 %v13944_v42, %v4643_v0  ;;  %v2341_v44 = vpop.f32.mrf.mxu1  ;;  %vm14077_vm3 = vmor %vm4601_vm11, %vm4602_vm14  ;;  %v7600_v18 = vld [vmem:[#allocation9 + $0xc8] sm:$0xf0] }
 0x4a1   :  { %v14028_v28 = vpop.eup %8470  ;;  %v4658_v8 = vsub.f32 1.0, %v4657_v45  ;;  %v4667_v12 = vand.u32 2147483648, %v13917_v63  ;;  %8476 = vrcp.f32 %v14003_v6  ;;  %v7494_v38 = vmul.f32 -1.442695, %v15680_v9 }
 0x4a2   :  { %v8473_v13 = vpop.eup %8472  ;;  %v5194_v1 = vmul.f32 %v13947_v26, %v2517_v40  ;;  %v2342_v37 = vadd.f32 %v2341_v44, %v2252_v11  ;;  %vm4647_vm15 = vweird.f32 %v13944_v42  ;;  %v4702_v24 = vmul.f32 %v14014_v5, %v13953_v33  ;;  %v7956_v11 = vld [vmem:[#allocation9 + $0x144] sm:$0xf]  ;;  %v7664_v40 = vld [vmem:[#allocation9 + $0x148] sm:$0xf0] }
 0x4a3   :  { %v8475_v16 = vpop.eup %8474  ;;  %8478 = vpow2.f32 %v7491_v47  ;;  %v4594_v0 = vsel %vm13989_vm10, %v4593_v58, %v4589_v10  ;;  %v14045_v45 = vadd.f32 %v13940_v20, %v4599_v36  ;;  %v15681_v3 = vand.u32 2147483647, %v13862_v49  ;;  %v7728_v10 = vld [vmem:[#allocation9 + $0x1c8] sm:$0xf0]  ;;  %vm14096_vm4 = vmor %vm4646_vm12, %vm4647_vm15 }
 0x4a4   :  { %v14054_v44 = vmul.f32 %v13956_v23, %v2342_v37  ;;  %v14056_v41 = vpack.c.bf16 %v5194_v1, %v5190_v19  ;;  %v14059_v15 = vadd.f32 %v13944_v42, %v4644_v27  ;;  %vm14061_vm1 = vcmp.eq.f32.partialorder %v4650_v57, 8.507059e+37 }
 0x4a5   :  { %vm14049_vm0 = vcmp.eq.f32.partialorder %v15681_v3, 8.507059e+37  ;;  %vm4661_vm2 = vweird.f32 %v13917_v63  ;;  %v4717_v47 = vmul.f32 %v14028_v28, %v13967_v53  ;;  %v14068_v36 = vadd.f32 1.0, %v8473_v13 }
 0x4a6   :  { %15684 = vst [vmem:[#allocation46_spill] sm:$0xff] %v14056_v41  ;;  %v7667_v23 = vor.u32 %v7956_v11, %v7664_v40  ;;  %v4659_v37 = vmul.f32 %v13980_v35, %v4658_v8  ;;  %v14071_v19 = vadd.f32 1.0, %v8475_v16  ;;  %8480 = vpow2.f32 %v7494_v38  ;;  %v15689_v11 = vld [vmem:[#allocation87_spill] sm:$0xff]  ;;  %v2430_v8 = vpop.f32.mrf.mxu2  ;;  %v2519_v16 = vpop.f32.mrf.mxu3 }
 0x4a7   :  { %v7731_v27 = vor.u32 %v7972_v55, %v7728_v10  ;;  %v14081_v1 = vor.u32 1.1754944e-38, %v4667_v12  ;;  %v4703_v13 = vsub.f32 1.0, %v4702_v24  ;;  %v4712_v3 = vand.u32 2147483648, %v13953_v33  ;;  %v14085_v38 = vpop.eup %8476  ;;  %v15697_v12 = vld [vmem:[#allocation58_spill] sm:$0xff] }
 0x4a8   :  { %v7495_v40 = vmul.f32 -1.442695, %v15689_v11  ;;  %6276 = vmatpush.bf16.msrb.mxu2 %v7667_v23  ;;  %v5073_v55 = vmul.f32 %v4594_v0, %v15619_v51  ;;  %v4604_v49 = vsel %vm14077_vm3, %v13940_v20, %v14045_v45  ;;  %vm4662_vm5 = vweird.f32 %v13980_v35  ;;  %v15695_v45 = vld [vmem:[#allocation82_spill] sm:$0xff]  ;;  %v2343_v57 = vpop.f32.mrf.mxu1 }
 0x4a9   :  { %v2520_v24 = vadd.f32 %v2519_v16, %v2430_v8  ;;  %6365 = vmatpush.bf16.msrb.mxu3 %v7731_v27  ;;  %v8479_v23 = vpop.eup %8478  ;;  %v4649_v51 = vsel %vm14096_vm4, %v13944_v42, %v14059_v15  ;;  %v15692_v20 = vand.u32 2147483647, %v13917_v63  ;;  %vm4706_vm7 = vweird.f32 %v13953_v33  ;;  %v2254_v27 = vpop.f32.mrf.mxu0  ;;  %v15696_v16 = vld [vmem:[#allocation52_spill] sm:$0xff]  ;;  %5861 = vmatmul.bf16.gmra.mxu1 %v15697_v12  ;;  %vm14140_vm9 = vmor %vm4661_vm2, %vm4662_vm5 }
 0x4aa   :  { %v4718_v54 = vsub.f32 1.0, %v4717_v47  ;;  %8482 = vrcp.f32 %v14068_v36  ;;  %v7498_v10 = vmul.f32 -1.442695, %v15695_v45  ;;  %v4660_v8 = vadd.f32 %v13980_v35, %v4659_v37  ;;  %5772 = vmatmul.bf16.gmra.mxu0 %v15696_v16  ;;  %v7536_v47 = vld [vmem:[#allocation9 + $0x48] sm:$0xf0] }
 0x4ab   :  { %vm14107_vm6 = vcmp.eq.f32.partialorder %v15692_v20, 8.507059e+37  ;;  %8484 = vrcp.f32 %v14071_v19  ;;  %v14117_v42 = vmul.f32 %v14008_v14, %v2520_v24  ;;  %v2344_v15 = vadd.f32 %v2343_v57, %v2254_v27  ;;  %v7924_v20 = vld [vmem:[#allocation9 + $0x44] sm:$0xf]  ;;  %5950 = vmatmul.bf16.gmra.mxu2 %v13240_v59 }
 0x4ac   :  { %v4704_v48 = vmul.f32 %v14014_v5, %v4703_v13  ;;  %v4762_v41 = vmul.f32 %v14085_v38, %v14003_v6  ;;  %8486 = vpow2.f32 %v7495_v40  ;;  %v7539_v37 = vor.u32 %v7924_v20, %v7536_v47  ;;  %v8481_v25 = vpop.eup %8480  ;;  %v15698_v27 = vld [vmem:[#allocation164_spill] sm:$0xff] }
 0x4ad   :  { %v4713_v2 = vor.u32 1.1754944e-38, %v4712_v3  ;;  %v14124_v14 = vadd.f32 1.0, %v8479_v23  ;;  %v5201_v24 = vmul.f32 %v5073_v55, %v2344_v15  ;;  %6039 = vmatmul.bf16.gmra.mxu3 %v15698_v27  ;;  %v7603_v57 = vor.u32 %v7940_v4, %v7600_v18 }
 0x4ae   :  { %v4609_v13 = vsel %vm14049_vm0, %v14001_v52, %v4604_v49  ;;  %v4719_v12 = vmul.f32 %v14028_v28, %v4718_v54  ;;  %vm4721_vm8 = vweird.f32 %v13967_v53  ;;  %8488 = vpow2.f32 %v7498_v10  ;;  %6098 = vmatpush.bf16.msrb.mxu0 %v7539_v37  ;;  %v2432_v55 = vpop.f32.mrf.mxu2  ;;  %v2521_v49 = vpop.f32.mrf.mxu3 }
 0x4af   :  { %v4654_v3 = vsel %vm14061_vm1, %v14026_v32, %v4649_v51  ;;  %vm4707_vm10 = vweird.f32 %v14014_v5  ;;  %v4725_v52 = vand.u32 2147483647, %v13967_v53  ;;  %6187 = vmatpush.bf16.msrb.mxu1 %v7603_v57  ;;  %v14147_v18 = vpack.c.bf16 %v5201_v24, %v14054_v44  ;;  %v15701_v44 = vld [vmem:[#allocation83_spill] sm:$0xff] }
 0x4b0   :  { %v14149_v26 = vpop.eup %8482  ;;  %v4664_v32 = vsel %vm14140_vm9, %v13980_v35, %v4660_v8  ;;  %v4705_v63 = vadd.f32 %v14014_v5, %v4704_v48  ;;  %v4763_v58 = vsub.f32 1.0, %v4762_v41  ;;  %v14155_v40 = vadd.f32 1.0, %v8481_v25  ;;  %v2346_v41 = vpop.f32.mrf.mxu1  ;;  %vm14173_vm12 = vmor %vm4706_vm7, %vm4707_vm10 }
 0x4b1   :  { %v14157_v23 = vpop.eup %8484  ;;  %v5074_v51 = vmul.f32 %v4609_v13, %v15640_v50  ;;  %8490 = vrcp.f32 %v14124_v14  ;;  %v7499_v54 = vmul.f32 -1.442695, %v15701_v44  ;;  %v2522_v10 = vadd.f32 %v2521_v49, %v2432_v55  ;;  %v2257_v25 = vpop.f32.mrf.mxu0 }
 0x4b2   :  { %v8487_v15 = vpop.eup %8486  ;;  %v5077_v20 = vmul.f32 %v4654_v3, %v15641_v43  ;;  %v4720_v35 = vadd.f32 %v14028_v28, %v4719_v12  ;;  %vm4722_vm11 = vweird.f32 %v14028_v28  ;;  %v4727_v48 = vand.u32 2147483648, %v13967_v53 }
 0x4b3   :  { %v4669_v50 = vsel %vm14107_vm6, %v14081_v1, %v4664_v32  ;;  %v4777_v43 = vmul.f32 %v14149_v26, %v14068_v36  ;;  %v5202_v12 = vmul.f32 %v5074_v51, %v2522_v10  ;;  %v2347_v47 = vadd.f32 %v2346_v41, %v2257_v25  ;;  %vm14188_vm13 = vmor %vm4721_vm8, %vm4722_vm11 }
 0x4b4   :  { %v8489_v37 = vpop.eup %8488  ;;  %v4709_v24 = vsel %vm14173_vm12, %v14014_v5, %v4705_v63  ;;  %v4764_v1 = vmul.f32 %v14085_v38, %v4763_v58  ;;  %v4822_v0 = vmul.f32 %v14157_v23, %v14071_v19  ;;  %8492 = vrcp.f32 %v14155_v40 }
 0x4b5   :  { %v14192_v13 = vadd.f32 1.0, %v8487_v15  ;;  %8494 = vpow2.f32 %v7499_v54  ;;  %v5205_v3 = vmul.f32 %v5077_v20, %v2347_v47  ;;  %v14195_v4 = vpack.c.bf16 %v5202_v12, %v14117_v42  ;;  %v15709_v47 = vld [vmem:[#allocation54_spill] sm:$0xff] }
 0x4b6   :  { %v15706_v5 = vand.u32 2147483647, %v13953_v33  ;;  %v4724_v32 = vsel %vm14188_vm13, %v14028_v28, %v4720_v35  ;;  %vm4726_vm15 = vcmp.eq.f32.partialorder %v4725_v52, 8.507059e+37  ;;  %v4770_v53 = vand.u32 2147483647, %v14003_v6  ;;  %v2435_v10 = vpop.f32.mrf.mxu2  ;;  %v2524_v15 = vpop.f32.mrf.mxu3 }
 0x4b7   :  { %v14203_v63 = vpop.eup %8490  ;;  %v4728_v55 = vor.u32 1.1754944e-38, %v4727_v48  ;;  %v4778_v49 = vsub.f32 1.0, %v4777_v43  ;;  %v14205_v51 = vadd.f32 1.0, %v8489_v37  ;;  %v5078_v42 = vmul.f32 %v4669_v50, %v15644_v61 }
 0x4b8   :  { %vm4711_vm14 = vcmp.eq.f32.partialorder %v15706_v5, 8.507059e+37  ;;  %vm4767_vm0 = vweird.f32 %v14085_v38  ;;  %v4772_v33 = vand.u32 2147483648, %v14003_v6  ;;  %v4823_v54 = vsub.f32 1.0, %v4822_v0  ;;  %v2348_v41 = vpop.f32.mrf.mxu1 }
 0x4b9   :  { %v4714_v58 = vsel %vm4711_vm14, %v4713_v2, %v4709_v24  ;;  %v4729_v28 = vsel %vm4726_vm15, %v4728_v55, %v4724_v32  ;;  %v4765_v52 = vadd.f32 %v14085_v38, %v4764_v1  ;;  %8496 = vrcp.f32 %v14192_v13  ;;  %v2259_v25 = vpop.f32.mrf.mxu0 }
 0x4ba   :  { %v2525_v20 = vadd.f32 %v2524_v15, %v2435_v10  ;;  %v14212_v2 = vpop.eup %8492  ;;  %v5081_v35 = vmul.f32 %v4714_v58, %v15647_v60  ;;  %vm4766_vm1 = vweird.f32 %v14003_v6  ;;  %vm14216_vm2 = vcmp.eq.f32.partialorder %v4770_v53, 8.507059e+37  ;;  %5777 = vmatmul.bf16.gmra.mxu0 %v15709_v47  ;;  %v15710_v60 = vld [vmem:[#allocation167_spill] sm:$0xff]  ;;  %v15713_v53 = vld [vmem:[#allocation114_spill] sm:$0xff] }
 0x4bb   :  { %v4837_v48 = vmul.f32 %v14203_v63, %v14124_v14  ;;  %v8495_v50 = vpop.eup %8494  ;;  %v4779_v8 = vmul.f32 %v14149_v26, %v4778_v49  ;;  %8498 = vrcp.f32 %v14205_v51  ;;  %v2349_v12 = vadd.f32 %v2348_v41, %v2259_v25  ;;  %5866 = vmatmul.bf16.gmra.mxu1 %v15710_v60  ;;  %vm14229_vm3 = vmor %vm4766_vm1, %vm4767_vm0  ;;  %5955 = vmatmul.bf16.gmra.mxu2 %v15713_v53 }
 0x4bc   :  { %v5206_v43 = vmul.f32 %v5078_v42, %v2525_v20  ;;  %v5082_v6 = vmul.f32 %v4729_v28, %v15648_v31  ;;  %v4773_v24 = vor.u32 1.1754944e-38, %v4772_v33  ;;  %v4785_v1 = vand.u32 2147483647, %v14068_v36 }
 0x4bd   :  { %v4824_v0 = vmul.f32 %v14157_v23, %v4823_v54  ;;  %v4769_v57 = vsel %vm14229_vm3, %v14085_v38, %v4765_v52  ;;  %v4787_v5 = vand.u32 2147483648, %v14068_v36  ;;  %v4882_v31 = vmul.f32 %v14212_v2, %v14155_v40  ;;  %6044 = vmatmul.bf16.gmra.mxu3 %v13421_v46 }
 0x4be   :  { %v5209_v32 = vmul.f32 %v5081_v35, %v2349_v12  ;;  %vm4782_vm4 = vweird.f32 %v14149_v26  ;;  %v4830_v58 = vand.u32 2147483647, %v14071_v19  ;;  %v4838_v55 = vsub.f32 1.0, %v4837_v48  ;;  %v2437_v52 = vpop.f32.mrf.mxu2  ;;  %v2526_v20 = vpop.f32.mrf.mxu3 }
 0x4bf   :  { %v14245_v49 = vadd.f32 1.0, %v8495_v50  ;;  %v14247_v42 = vpop.eup %8496  ;;  %v4780_v38 = vadd.f32 %v14149_v26, %v4779_v8  ;;  %vm4781_vm5 = vweird.f32 %v14068_v36  ;;  %vm4827_vm6 = vweird.f32 %v14157_v23 }
 0x4c0   :  { %v14252_v33 = vpack.c.bf16 %v5209_v32, %v5205_v3  ;;  %v4774_v54 = vsel %vm14216_vm2, %v4773_v24, %v4769_v57  ;;  %vm14256_vm7 = vcmp.eq.f32.partialorder %v4785_v1, 8.507059e+37  ;;  %v4825_v15 = vadd.f32 %v14157_v23, %v4824_v0  ;;  %vm14266_vm8 = vmor %vm4781_vm5, %vm4782_vm4  ;;  %v2351_v37 = vpop.f32.mrf.mxu1  ;;  %v7954_v57 = vld [vmem:[#allocation9 + $0x134] sm:$0xf] }
 0x4c1   :  { %v4832_v28 = vand.u32 2147483648, %v14071_v19  ;;  %v14262_v35 = vpop.eup %8498  ;;  %v4788_v3 = vor.u32 1.1754944e-38, %v4787_v5  ;;  %vm4826_vm9 = vweird.f32 %v14071_v19  ;;  %v4883_v61 = vsub.f32 1.0, %v4882_v31  ;;  %v2262_v12 = vpop.f32.mrf.mxu0  ;;  %v7656_v5 = vld [vmem:[#allocation9 + $0x138] sm:$0xf0] }
 0x4c2   :  { %v2527_v48 = vadd.f32 %v2526_v20, %v2437_v52  ;;  %vm14271_vm10 = vmor %vm4826_vm9, %vm4827_vm6  ;;  %vm14275_vm11 = vcmp.eq.f32.partialorder %v4830_v58, 8.507059e+37  ;;  %v4839_v50 = vmul.f32 %v14203_v63, %v4838_v55  ;;  %v4897_v8 = vmul.f32 %v14247_v42, %v14192_v13  ;;  %v7970_v31 = vld [vmem:[#allocation9 + $0x1b4] sm:$0xf]  ;;  %v7720_v20 = vld [vmem:[#allocation9 + $0x1b8] sm:$0xf0] }
 0x4c3   :  { %8500 = vrcp.f32 %v14245_v49  ;;  %v5085_v19 = vmul.f32 %v4774_v54, %v15664_v21  ;;  %v4784_v24 = vsel %vm14266_vm8, %v14149_v26, %v4780_v38  ;;  %v2352_v0 = vadd.f32 %v2351_v37, %v2262_v12 }
 0x4c4   :  { %v5210_v1 = vmul.f32 %v5082_v6, %v2527_v48  ;;  %v4829_v32 = vsel %vm14271_vm10, %v14157_v23, %v4825_v15  ;;  %v4833_v58 = vor.u32 1.1754944e-38, %v4832_v28  ;;  %v4942_v55 = vmul.f32 %v14262_v35, %v14205_v51 }
 0x4c5   :  { %v7659_v52 = vor.u32 %v7954_v57, %v7656_v5  ;;  %v4884_v21 = vmul.f32 %v14212_v2, %v4883_v61  ;;  %v5213_v54 = vmul.f32 %v5085_v19, %v2352_v0  ;;  %v7723_v36 = vor.u32 %v7970_v31, %v7720_v20  ;;  %v15724_v31 = vld [vmem:[#allocation94_spill] sm:$0xff] }
 0x4c6   :  { %v14293_v26 = vpack.c.bf16 %v5210_v1, %v5206_v43  ;;  %v4789_v6 = vsel %vm14256_vm7, %v4788_v3, %v4784_v24  ;;  %v4840_v38 = vadd.f32 %v14203_v63, %v4839_v50  ;;  %vm4842_vm12 = vweird.f32 %v14203_v63  ;;  %v2440_v48 = vpop.f32.mrf.mxu2  ;;  %v2529_v25 = vpop.f32.mrf.mxu3  ;;  %v7922_v20 = vld [vmem:[#allocation9 + $0x34] sm:$0xf] }
 0x4c7   :  { %v4898_v23 = vsub.f32 1.0, %v4897_v8  ;;  %6277 = vmatpush.bf16.msrb.mxu2 %v7659_v52  ;;  %v4834_v15 = vsel %vm14275_vm11, %v4833_v58, %v4829_v32  ;;  %vm4841_vm13 = vweird.f32 %v14124_v14  ;;  %6366 = vmatpush.bf16.msrb.mxu3 %v7723_v36  ;;  %v4845_v43 = vand.u32 2147483647, %v14124_v14  ;;  %v7938_v36 = vld [vmem:[#allocation9 + $0xb4] sm:$0xf] }
 0x4c8   :  { %v4847_v61 = vand.u32 2147483648, %v14124_v14  ;;  %v4892_v10 = vand.u32 2147483648, %v14155_v40  ;;  %v4943_v3 = vsub.f32 1.0, %v4942_v55  ;;  %v5086_v50 = vmul.f32 %v4789_v6, %v15670_v39  ;;  %vm14308_vm14 = vmor %vm4841_vm13, %vm4842_vm12  ;;  %v2353_v24 = vpop.f32.mrf.mxu1 }
 0x4c9   :  { %v14302_v28 = vpop.eup %8500  ;;  %v4885_v41 = vadd.f32 %v14212_v2, %v4884_v21  ;;  %vm4887_vm15 = vweird.f32 %v14212_v2  ;;  %v2530_v12 = vadd.f32 %v2529_v25, %v2440_v48  ;;  %v5089_v37 = vmul.f32 %v4834_v15, %v15671_v7  ;;  %v2264_v39 = vpop.f32.mrf.mxu0  ;;  %v15725_v7 = vld [vmem:[#allocation59_spill] sm:$0xff] }
 0x4ca   :  { %v4844_v14 = vsel %vm14308_vm14, %v14203_v63, %v4840_v38  ;;  %vm4886_vm0 = vweird.f32 %v14155_v40  ;;  %v4899_v19 = vmul.f32 %v14247_v42, %v4898_v23  ;;  %v4890_v1 = vand.u32 2147483647, %v14155_v40  ;;  %5782 = vmatmul.bf16.gmra.mxu0 %v15724_v31  ;;  %v7528_v21 = vld [vmem:[#allocation9 + $0x38] sm:$0xf0] }
 0x4cb   :  { %v4957_v0 = vmul.f32 %v14302_v28, %v14245_v49  ;;  %v5214_v57 = vmul.f32 %v5086_v50, %v2530_v12  ;;  %v2354_v5 = vadd.f32 %v2353_v24, %v2264_v39  ;;  %5871 = vmatmul.bf16.gmra.mxu1 %v15725_v7  ;;  %vm4846_vm1 = vcmp.eq.f32.partialorder %v4845_v43, 8.507059e+37  ;;  %vm14327_vm2 = vmor %vm4886_vm0, %vm4887_vm15  ;;  %5960 = vmatmul.bf16.gmra.mxu2 %v13513_v62  ;;  %v7592_v15 = vld [vmem:[#allocation9 + $0xb8] sm:$0xf0] }
 0x4cc   :  { %v4848_v32 = vor.u32 1.1754944e-38, %v4847_v61  ;;  %v4893_v58 = vor.u32 1.1754944e-38, %v4892_v10  ;;  %v4944_v40 = vmul.f32 %v14262_v35, %v4943_v3  ;;  %v4889_v55 = vsel %vm14327_vm2, %v14212_v2, %v4885_v41 }
 0x4cd   :  { %vm4901_vm3 = vweird.f32 %v14192_v13  ;;  %v5217_v52 = vmul.f32 %v5089_v37, %v2354_v5  ;;  %6049 = vmatmul.bf16.gmra.mxu3 %v13563_v22  ;;  %v4900_v38 = vadd.f32 %v14247_v42, %v4899_v19  ;;  %vm4902_vm4 = vweird.f32 %v14247_v42 }
 0x4ce   :  { %v4849_v6 = vsel %vm4846_vm1, %v4848_v32, %v4844_v14  ;;  %v7531_v23 = vor.u32 %v7922_v20, %v7528_v21  ;;  %vm4891_vm5 = vcmp.eq.f32.partialorder %v4890_v1, 8.507059e+37  ;;  %v4958_v43 = vsub.f32 1.0, %v4957_v0  ;;  %v2442_v25 = vpop.f32.mrf.mxu2  ;;  %v2531_v50 = vpop.f32.mrf.mxu3  ;;  %vm14350_vm7 = vmor %vm4901_vm3, %vm4902_vm4 }
 0x4cf   :  { %v7595_v2 = vor.u32 %v7938_v36, %v7592_v15  ;;  %v14340_v61 = vpack.c.bf16 %v5217_v52, %v5213_v54  ;;  %v4894_v10 = vsel %vm4891_vm5, %v4893_v58, %v4889_v55  ;;  %v4907_v3 = vand.u32 2147483648, %v14192_v13 }
 0x4d0   :  { %v4945_v48 = vadd.f32 %v14262_v35, %v4944_v40  ;;  %vm4947_vm6 = vweird.f32 %v14262_v35  ;;  %6099 = vmatpush.bf16.msrb.mxu0 %v7531_v23  ;;  %v5090_v8 = vmul.f32 %v4849_v6, %v15677_v29  ;;  %v4905_v54 = vand.u32 2147483647, %v14192_v13  ;;  %v2356_v39 = vpop.f32.mrf.mxu1 }
 0x4d1   :  { %v4952_v12 = vand.u32 2147483648, %v14205_v51  ;;  %v2532_v37 = vadd.f32 %v2531_v50, %v2442_v25  ;;  %6188 = vmatpush.bf16.msrb.mxu1 %v7595_v2  ;;  %v4904_v14 = vsel %vm14350_vm7, %v14247_v42, %v4900_v38  ;;  %vm4946_vm8 = vweird.f32 %v14205_v51  ;;  %v2267_v19 = vpop.f32.mrf.mxu0  ;;  %v15730_v2 = vld [vmem:[#allocation98_spill] sm:$0xff] }
 0x4d2   :  { %v4950_v29 = vand.u32 2147483647, %v14205_v51  ;;  %v5093_v24 = vmul.f32 %v4894_v10, %v15680_v9  ;;  %vm4948_vm9 = vmor %vm4946_vm8, %vm4947_vm6  ;;  %v4959_v13 = vmul.f32 %v14302_v28, %v4958_v43  ;;  %v2357_v0 = vadd.f32 %v2356_v39, %v2267_v19  ;;  %v15731_v10 = vld [vmem:[#allocation64_spill] sm:$0xff]  ;;  %v7712_v39 = vld [vmem:[#allocation9 + $0x1a8] sm:$0xf0] }
 0x4d3   :  { %v5218_v1 = vmul.f32 %v5090_v8, %v2532_v37  ;;  %v4908_v5 = vor.u32 1.1754944e-38, %v4907_v3  ;;  %v4949_v32 = vsel %vm4948_vm9, %v14262_v35, %v4945_v48  ;;  %vm4906_vm10 = vcmp.eq.f32.partialorder %v4905_v54, 8.507059e+37  ;;  %v7648_v37 = vld [vmem:[#allocation9 + $0x128] sm:$0xf0] }
 0x4d4   :  { %v4953_v42 = vor.u32 1.1754944e-38, %v4952_v12  ;;  %v5221_v63 = vmul.f32 %v5093_v24, %v2357_v0  ;;  %vm4951_vm11 = vcmp.eq.f32.partialorder %v4950_v29, 8.507059e+37  ;;  %v4960_v9 = vadd.f32 %v14302_v28, %v4959_v13  ;;  %v7952_v12 = vld [vmem:[#allocation9 + $0x124] sm:$0xf] }
 0x4d5   :  { %v14366_v58 = vpack.c.bf16 %v5218_v1, %v5214_v57  ;;  %v4909_v51 = vsel %vm4906_vm10, %v4908_v5, %v4904_v14  ;;  %vm4962_vm12 = vweird.f32 %v14302_v28  ;;  %v4967_v55 = vand.u32 2147483648, %v14245_v49  ;;  %v7968_v14 = vld [vmem:[#allocation9 + $0x1a4] sm:$0xf] }
 0x4d6   :  { %v4954_v40 = vsel %vm4951_vm11, %v4953_v42, %v4949_v32  ;;  %v2445_v52 = vpop.f32.mrf.mxu2  ;;  %v2534_v20 = vpop.f32.mrf.mxu3  ;;  %v5094_v21 = vmul.f32 %v4909_v51, %v15689_v11  ;;  %vm4961_vm13 = vweird.f32 %v14245_v49  ;;  %v4965_v35 = vand.u32 2147483647, %v14245_v49  ;;  %v15733_v51 = vld [vmem:[#allocation102_spill] sm:$0xff] }
 0x4d7   :  { %v2535_v36 = vadd.f32 %v2534_v20, %v2445_v52  ;;  %v5097_v57 = vmul.f32 %v4954_v40, %v15695_v45  ;;  %vm4963_vm14 = vmor %vm4961_vm13, %vm4962_vm12  ;;  %v4968_v3 = vor.u32 1.1754944e-38, %v4967_v55  ;;  %v7651_v19 = vor.u32 %v7952_v12, %v7648_v37  ;;  %v7920_v40 = vld [vmem:[#allocation9 + $0x24] sm:$0xf]  ;;  %v7584_v20 = vld [vmem:[#allocation9 + $0xa8] sm:$0xf0] }
 0x4d8   :  { %v2358_v38 = vpop.f32.mrf.mxu1  ;;  %v4964_v23 = vsel %vm4963_vm14, %v14302_v28, %v4960_v9  ;;  %vm4966_vm15 = vcmp.eq.f32.partialorder %v4965_v35, 8.507059e+37  ;;  %v7715_v13 = vor.u32 %v7968_v14, %v7712_v39  ;;  %v7520_v9 = vld [vmem:[#allocation9 + $0x28] sm:$0xf0]  ;;  %v7936_v52 = vld [vmem:[#allocation9 + $0xa4] sm:$0xf] }
 0x4d9   :  { %v2269_v6 = vpop.f32.mrf.mxu0  ;;  %v5222_v15 = vmul.f32 %v5094_v21, %v2535_v36  ;;  %v4969_v49 = vsel %vm4966_vm15, %v4968_v3, %v4964_v23  ;;  %6278 = vmatpush.bf16.msrb.mxu2 %v7651_v19  ;;  %v7523_v55 = vor.u32 %v7920_v40, %v7520_v9  ;;  %v7587_v35 = vor.u32 %v7936_v52, %v7584_v20 }
 0x4da   :  { %v2359_v43 = vadd.f32 %v2358_v38, %v2269_v6  ;;  %5787 = vmatmul.bf16.gmra.mxu0 %v15730_v2  ;;  %v5098_v28 = vmul.f32 %v4969_v49, %v15701_v44  ;;  %6367 = vmatpush.bf16.msrb.mxu3 %v7715_v13 }
 0x4db   :  { %5876 = vmatmul.bf16.gmra.mxu1 %v15731_v10  ;;  %5965 = vmatmul.bf16.gmra.mxu2 %v13647_v30 }
 0x4dc   :  { %v5225_v11 = vmul.f32 %v5097_v57, %v2359_v43  ;;  %6100 = vmatpush.bf16.msrb.mxu0 %v7523_v55  ;;  %6189 = vmatpush.bf16.msrb.mxu1 %v7587_v35 }
 0x4dd   :  { %6054 = vmatmul.bf16.gmra.mxu3 %v13676_v34 }
 0x4de   :  { %v14380_v45 = vpack.c.bf16 %v5225_v11, %v5221_v63  ;;  %v2447_v48 = vpop.f32.mrf.mxu2  ;;  %v2536_v25 = vpop.f32.mrf.mxu3  ;;  %v15732_v63 = vld [vmem:[#allocation65_spill] sm:$0xff] }
 0x4df   :  { %v2537_v50 = vadd.f32 %v2536_v25, %v2447_v48 }
 0x4e0   :  { %v5837_v41 = vpop.f32.mrf.mxu1 }
 0x4e1   :  { %v5748_v8 = vpop.f32.mrf.mxu0  ;;  %v5226_v54 = vmul.f32 %v5098_v28, %v2537_v50  ;;  %v15734_v50 = vld [vmem:[#allocation68_spill] sm:$0xff] }
 0x4e2   :  { %v5838_v24 = vadd.f32 %v5837_v41, %v5748_v8  ;;  %v15735_v8 = vld [vmem:[#allocation76_spill] sm:$0xff] }
 0x4e3   :  { %v14383_v29 = vpack.c.bf16 %v5226_v54, %v5222_v15  ;;  %v15736_v41 = vld [vmem:[#allocation16_spill] sm:$0xff]  ;;  %v15737_v54 = vld [vmem:[#allocation17_spill] sm:$0xff] }
 0x4e6   :  { %v5926_v1 = vpop.f32.mrf.mxu2  ;;  %v6015_v0 = vpop.f32.mrf.mxu3 }
 0x4e7   :  { %v5927_v5 = vadd.f32 %v5926_v1, %v5838_v24  ;;  %v7950_v1 = vld [vmem:[#allocation9 + $0x114] sm:$0xf] }
 0x4e8   :  { %v5839_v44 = vpop.f32.mrf.mxu1 }
 0x4e9   :  { %v5750_v32 = vpop.f32.mrf.mxu0  ;;  %v6016_v42 = vadd.f32 %v6015_v0, %v5927_v5  ;;  %v7640_v0 = vld [vmem:[#allocation9 + $0x118] sm:$0xf0] }
 0x4ea   :  { %5792 = vmatmul.bf16.gmra.mxu0 %v15732_v63  ;;  %v5840_v21 = vadd.f32 %v5839_v44, %v5750_v32  ;;  %v7643_v5 = vor.u32 %v7950_v1, %v7640_v0  ;;  %v7966_v32 = vld [vmem:[#allocation9 + $0x194] sm:$0xf]  ;;  %v7704_v44 = vld [vmem:[#allocation9 + $0x198] sm:$0xf0] }
 0x4eb   :  { %5881 = vmatmul.bf16.gmra.mxu1 %v15733_v51  ;;  %6646 = vst [vmem:[#allocation11] sm:$0xff] %v6016_v42  ;;  %5970 = vmatmul.bf16.gmra.mxu2 %v13783_v56  ;;  %v7707_v40 = vor.u32 %v7966_v32, %v7704_v44  ;;  %v15742_v44 = vld [vmem:[#allocation99_spill] sm:$0xff] }
 0x4ec   :  { %6279 = vmatpush.bf16.msrb.mxu2 %v7643_v5 }
 0x4ed   :  { %6059 = vmatmul.bf16.gmra.mxu3 %v13824_v17 }
 0x4ee   :  { %v5928_v36 = vpop.f32.mrf.mxu2  ;;  %v6017_v57 = vpop.f32.mrf.mxu3  ;;  %6368 = vmatpush.bf16.msrb.mxu3 %v7707_v40 }
 0x4ef   :  { %v5929_v6 = vadd.f32 %v5928_v36, %v5840_v21  ;;  %v15738_v36 = vld [vmem:[#allocation104_spill] sm:$0xff] }
 0x4f0   :  { %v5842_v23 = vpop.f32.mrf.mxu1 }
 0x4f1   :  { %v5753_v38 = vpop.f32.mrf.mxu0  ;;  %v6018_v15 = vadd.f32 %v6017_v57, %v5929_v6  ;;  %v15739_v57 = vld [vmem:[#allocation172_spill] sm:$0xff]  ;;  %v15740_v6 = vld [vmem:[#allocation45_spill] sm:$0xff] }
 0x4f2   :  { %v5843_v43 = vadd.f32 %v5842_v23, %v5753_v38  ;;  %v15741_v38 = vld [vmem:[#allocation46_spill] sm:$0xff] }
 0x4f3   :  { %6648 = vst [vmem:[#allocation11 + $0x10] sm:$0xff] %v6018_v15  ;;  %v7918_v23 = vld [vmem:[#allocation9 + $0x14] sm:$0xf]  ;;  %v7512_v15 = vld [vmem:[#allocation9 + $0x18] sm:$0xf0] }
 0x4f6   :  { %v5931_v3 = vpop.f32.mrf.mxu2  ;;  %v6020_v11 = vpop.f32.mrf.mxu3 }
 0x4f7   :  { %v5932_v49 = vadd.f32 %v5931_v3, %v5843_v43  ;;  %v7515_v43 = vor.u32 %v7918_v23, %v7512_v15  ;;  %v7934_v3 = vld [vmem:[#allocation9 + $0x94] sm:$0xf]  ;;  %v7948_v23 = vld [vmem:[#allocation9 + $0x104] sm:$0xf]  ;;  %v7632_v15 = vld [vmem:[#allocation9 + $0x108] sm:$0xf0] }
 0x4f8   :  { %v5844_v25 = vpop.f32.mrf.mxu1 }
 0x4f9   :  { %v5755_v48 = vpop.f32.mrf.mxu0  ;;  %v6021_v28 = vadd.f32 %v6020_v11, %v5932_v49  ;;  %v7576_v11 = vld [vmem:[#allocation9 + $0x98] sm:$0xf0]  ;;  %6101 = vmatpush.bf16.msrb.mxu0 %v7515_v43  ;;  %v7635_v43 = vor.u32 %v7948_v23, %v7632_v15 }
 0x4fa   :  { %5797 = vmatmul.bf16.gmra.mxu0 %v15734_v50  ;;  %v5845_v12 = vadd.f32 %v5844_v25, %v5755_v48  ;;  %v7579_v48 = vor.u32 %v7934_v3, %v7576_v11  ;;  %v7964_v3 = vld [vmem:[#allocation9 + $0x184] sm:$0xf]  ;;  %v7696_v11 = vld [vmem:[#allocation9 + $0x188] sm:$0xf0] }
 0x4fb   :  { %5886 = vmatmul.bf16.gmra.mxu1 %v15735_v8  ;;  %6650 = vst [vmem:[#allocation11 + $0x20] sm:$0xff] %v6021_v28  ;;  %5975 = vmatmul.bf16.gmra.mxu2 %v15736_v41 }
 0x4fc   :  { %6190 = vmatpush.bf16.msrb.mxu1 %v7579_v48  ;;  %v7699_v48 = vor.u32 %v7964_v3, %v7696_v11  ;;  %6280 = vmatpush.bf16.msrb.mxu2 %v7635_v43 }
 0x4fd   :  { %6064 = vmatmul.bf16.gmra.mxu3 %v15737_v54 }
 0x4fe   :  { %v5933_v37 = vpop.f32.mrf.mxu2  ;;  %v6022_v14 = vpop.f32.mrf.mxu3  ;;  %6369 = vmatpush.bf16.msrb.mxu3 %v7699_v48 }
 0x4ff   :  { %v5934_v19 = vadd.f32 %v5933_v37, %v5845_v12 }
 0x500   :  { %v5847_v24 = vpop.f32.mrf.mxu1 }
 0x501   :  { %v5758_v39 = vpop.f32.mrf.mxu0  ;;  %v6023_v13 = vadd.f32 %v6022_v14, %v5934_v19 }
 0x502   :  { %v5848_v42 = vadd.f32 %v5847_v24, %v5758_v39 }
 0x503   :  { %6652 = vst [vmem:[#allocation11 + $0x30] sm:$0xff] %v6023_v13 }
 0x506   :  { %v5936_v9 = vpop.f32.mrf.mxu2  ;;  %v6025_v55 = vpop.f32.mrf.mxu3 }
 0x507   :  { %v5937_v52 = vadd.f32 %v5936_v9, %v5848_v42  ;;  %v15743_v42 = vld [vmem:[#allocation101_spill] sm:$0xff] }
 0x508   :  { %v5849_v21 = vpop.f32.mrf.mxu1 }
 0x509   :  { %v5760_v20 = vpop.f32.mrf.mxu0  ;;  %v6026_v35 = vadd.f32 %v6025_v55, %v5937_v52 }
 0x50a   :  { %5802 = vmatmul.bf16.gmra.mxu0 %v15738_v36  ;;  %v5850_v49 = vadd.f32 %v5849_v21, %v5760_v20 }
 0x50b   :  { %5891 = vmatmul.bf16.gmra.mxu1 %v15739_v57  ;;  %6654 = vst [vmem:[#allocation11 + $0x40] sm:$0xff] %v6026_v35  ;;  %5980 = vmatmul.bf16.gmra.mxu2 %v15740_v6 }
 0x50d   :  { %6069 = vmatmul.bf16.gmra.mxu3 %v15741_v38 }
 0x50e   :  { %v5938_v25 = vpop.f32.mrf.mxu2  ;;  %v6027_v28 = vpop.f32.mrf.mxu3 }
 0x50f   :  { %v5939_v12 = vadd.f32 %v5938_v25, %v5850_v49 }
 0x510   :  { %v5852_v14 = vpop.f32.mrf.mxu1 }
 0x511   :  { %v5763_v37 = vpop.f32.mrf.mxu0  ;;  %v6028_v19 = vadd.f32 %v6027_v28, %v5939_v12 }
 0x512   :  { %v5853_v39 = vadd.f32 %v5852_v14, %v5763_v37 }
 0x513   :  { %6656 = vst [vmem:[#allocation11 + $0x50] sm:$0xff] %v6028_v19 }
 0x516   :  { %v5941_v24 = vpop.f32.mrf.mxu2  ;;  %v6030_v13 = vpop.f32.mrf.mxu3 }
 0x517   :  { %v5942_v1 = vadd.f32 %v5941_v24, %v5853_v39  ;;  %v15744_v39 = vld [vmem:[#allocation173_spill] sm:$0xff] }
 0x518   :  { %v5854_v5 = vpop.f32.mrf.mxu1  ;;  %v15745_v24 = vld [vmem:[#allocation105_spill] sm:$0xff] }
 0x519   :  { %v5765_v0 = vpop.f32.mrf.mxu0  ;;  %v6031_v32 = vadd.f32 %v6030_v13, %v5942_v1  ;;  %v7916_v13 = vld [vmem:[#allocation9 + $0x4] sm:$0xf]  ;;  %v7504_v1 = vld [vmem:[#allocation9 + $0x8] sm:$0xf0] }
 0x51a   :  { %5807 = vmatmul.bf16.gmra.mxu0 %v15742_v44  ;;  %v5855_v40 = vadd.f32 %v5854_v5, %v5765_v0  ;;  %v7507_v0 = vor.u32 %v7916_v13, %v7504_v1  ;;  %v7932_v5 = vld [vmem:[#allocation9 + $0x84] sm:$0xf] }
 0x51b   :  { %5896 = vmatmul.bf16.gmra.mxu1 %v15743_v42  ;;  %6658 = vst [vmem:[#allocation11 + $0x60] sm:$0xff] %v6031_v32  ;;  %5985 = vmatmul.bf16.gmra.mxu2 %v14147_v18  ;;  %v7568_v32 = vld [vmem:[#allocation9 + $0x88] sm:$0xf0] }
 0x51c   :  { %6102 = vmatpush.bf16.msrb.mxu0 %v7507_v0 }
 0x51d   :  { %6074 = vmatmul.bf16.gmra.mxu3 %v14195_v4 }
 0x51e   :  { %v5943_v9 = vpop.f32.mrf.mxu2  ;;  %v6032_v55 = vpop.f32.mrf.mxu3 }
 0x51f   :  { %v5944_v52 = vadd.f32 %v5943_v9, %v5855_v40  ;;  %v7571_v9 = vor.u32 %v7932_v5, %v7568_v32 }
 0x520   :  { %v5857_v21 = vpop.f32.mrf.mxu1 }
 0x521   :  { %v5768_v20 = vpop.f32.mrf.mxu0  ;;  %v6033_v35 = vadd.f32 %v6032_v55, %v5944_v52  ;;  %6191 = vmatpush.bf16.msrb.mxu1 %v7571_v9 }
 0x522   :  { %v5858_v49 = vadd.f32 %v5857_v21, %v5768_v20 }
 0x523   :  { %6660 = vst [vmem:[#allocation11 + $0x70] sm:$0xff] %v6033_v35 }
 0x526   :  { %v5946_v25 = vpop.f32.mrf.mxu2  ;;  %v6035_v28 = vpop.f32.mrf.mxu3 }
 0x527   :  { %v5947_v12 = vadd.f32 %v5946_v25, %v5858_v49 }
 0x528   :  { %v5859_v14 = vpop.f32.mrf.mxu1 }
 0x529   :  { %v5770_v37 = vpop.f32.mrf.mxu0  ;;  %v6036_v19 = vadd.f32 %v6035_v28, %v5947_v12  ;;  %v15746_v28 = vld [vmem:[#allocation75_spill] sm:$0xff]  ;;  %v15747_v12 = vld [vmem:[#allocation106_spill] sm:$0xff] }
 0x52a   :  { %5812 = vmatmul.bf16.gmra.mxu0 %v15744_v39  ;;  %v5860_v40 = vadd.f32 %v5859_v14, %v5770_v37 }
 0x52b   :  { %5901 = vmatmul.bf16.gmra.mxu1 %v15745_v24  ;;  %6662 = vst [vmem:[#allocation11 + $0x80] sm:$0xff] %v6036_v19  ;;  %5990 = vmatmul.bf16.gmra.mxu2 %v14252_v33 }
 0x52d   :  { %6079 = vmatmul.bf16.gmra.mxu3 %v14293_v26 }
 0x52e   :  { %v5948_v55 = vpop.f32.mrf.mxu2  ;;  %v6037_v52 = vpop.f32.mrf.mxu3 }
 0x52f   :  { %v5949_v20 = vadd.f32 %v5948_v55, %v5860_v40 }
 0x530   :  { %v5862_v35 = vpop.f32.mrf.mxu1 }
 0x531   :  { %v5773_v21 = vpop.f32.mrf.mxu0  ;;  %v6038_v23 = vadd.f32 %v6037_v52, %v5949_v20 }
 0x532   :  { %v5863_v15 = vadd.f32 %v5862_v35, %v5773_v21  ;;  %v15748_v35 = vld [vmem:[#allocation81_spill] sm:$0xff] }
 0x533   :  { %6664 = vst [vmem:[#allocation11 + $0x90] sm:$0xff] %v6038_v23  ;;  %v15749_v23 = vld [vmem:[#allocation108_spill] sm:$0xff] }
 0x536   :  { %v5951_v43 = vpop.f32.mrf.mxu2  ;;  %v6040_v3 = vpop.f32.mrf.mxu3 }
 0x537   :  { %v5952_v11 = vadd.f32 %v5951_v43, %v5863_v15 }
 0x538   :  { %v5864_v48 = vpop.f32.mrf.mxu1 }
 0x539   :  { %v5775_v49 = vpop.f32.mrf.mxu0  ;;  %v6041_v25 = vadd.f32 %v6040_v3, %v5952_v11 }
 0x53a   :  { %5817 = vmatmul.bf16.gmra.mxu0 %v15746_v28  ;;  %v5865_v37 = vadd.f32 %v5864_v48, %v5775_v49 }
 0x53b   :  { %5906 = vmatmul.bf16.gmra.mxu1 %v15747_v12  ;;  %6666 = vst [vmem:[#allocation11 + $0xa0] sm:$0xff] %v6041_v25  ;;  %5995 = vmatmul.bf16.gmra.mxu2 %v14340_v61 }
 0x53d   :  { %6084 = vmatmul.bf16.gmra.mxu3 %v14366_v58 }
 0x53e   :  { %v5953_v14 = vpop.f32.mrf.mxu2  ;;  %v6042_v19 = vpop.f32.mrf.mxu3 }
 0x53f   :  { %v5954_v13 = vadd.f32 %v5953_v14, %v5865_v37 }
 0x540   :  { %v5867_v0 = vpop.f32.mrf.mxu1 }
 0x541   :  { %v5778_v1 = vpop.f32.mrf.mxu0  ;;  %v6043_v5 = vadd.f32 %v6042_v19, %v5954_v13 }
 0x542   :  { %v5868_v32 = vadd.f32 %v5867_v0, %v5778_v1 }
 0x543   :  { %6668 = vst [vmem:[#allocation11 + $0xb0] sm:$0xff] %v6043_v5 }
 0x546   :  { %v5956_v40 = vpop.f32.mrf.mxu2  ;;  %v6045_v9 = vpop.f32.mrf.mxu3 }
 0x547   :  { %v5957_v55 = vadd.f32 %v5956_v40, %v5868_v32  ;;  %v15750_v32 = vld [vmem:[#allocation84_spill] sm:$0xff]  ;;  %v15751_v40 = vld [vmem:[#allocation89_spill] sm:$0xff] }
 0x548   :  { %v5869_v20 = vpop.f32.mrf.mxu1 }
 0x549   :  { %v5780_v52 = vpop.f32.mrf.mxu0  ;;  %v6046_v21 = vadd.f32 %v6045_v9, %v5957_v55  ;;  %v15752_v9 = vld [vmem:[#allocation77_spill] sm:$0xff]  ;;  %v15753_v55 = vld [vmem:[#allocation78_spill] sm:$0xff] }
 0x54a   :  { %5822 = vmatmul.bf16.gmra.mxu0 %v15748_v35  ;;  %v5870_v15 = vadd.f32 %v5869_v20, %v5780_v52 }
 0x54b   :  { %5911 = vmatmul.bf16.gmra.mxu1 %v15749_v23  ;;  %6670 = vst [vmem:[#allocation11 + $0xc0] sm:$0xff] %v6046_v21  ;;  %6000 = vmatmul.bf16.gmra.mxu2 %v14380_v45 }
 0x54d   :  { %6089 = vmatmul.bf16.gmra.mxu3 %v14383_v29 }
 0x54e   :  { %v5958_v43 = vpop.f32.mrf.mxu2  ;;  %v6047_v3 = vpop.f32.mrf.mxu3 }
 0x54f   :  { %v5959_v11 = vadd.f32 %v5958_v43, %v5870_v15 }
 0x550   :  { %v5872_v48 = vpop.f32.mrf.mxu1 }
 0x551   :  { %v5783_v49 = vpop.f32.mrf.mxu0  ;;  %v6048_v25 = vadd.f32 %v6047_v3, %v5959_v11 }
 0x552   :  { %v5873_v37 = vadd.f32 %v5872_v48, %v5783_v49 }
 0x553   :  { %6672 = vst [vmem:[#allocation11 + $0xd0] sm:$0xff] %v6048_v25 }
 0x556   :  { %v5961_v14 = vpop.f32.mrf.mxu2  ;;  %v6050_v19 = vpop.f32.mrf.mxu3 }
 0x557   :  { %v5962_v13 = vadd.f32 %v5961_v14, %v5873_v37 }
 0x558   :  { %v5874_v0 = vpop.f32.mrf.mxu1 }
 0x559   :  { %v5785_v1 = vpop.f32.mrf.mxu0  ;;  %v6051_v5 = vadd.f32 %v6050_v19, %v5962_v13 }
 0x55a   :  { %6103 = vmatmul.bf16.vlgmr.msrb.gmra.mxu0 %v15750_v32  ;;  %v5875_v52 = vadd.f32 %v5874_v0, %v5785_v1  ;;  %v15755_v32 = vld [vmem:[#allocation90_spill] sm:$0xff]  ;;  %v15756_v1 = vld [vmem:[#allocation103_spill] sm:$0xff] }
 0x55b   :  { %6192 = vmatmul.bf16.vlgmr.msrb.gmra.mxu1 %v15751_v40  ;;  %6674 = vst [vmem:[#allocation11 + $0xe0] sm:$0xff] %v6051_v5  ;;  %6281 = vmatmul.bf16.vlgmr.msrb.gmra.mxu2 %v15752_v9  ;;  %v15754_v5 = vld [vmem:[#allocation93_spill] sm:$0xff]  ;;  %v15757_v0 = vld [vmem:[#allocation107_spill] sm:$0xff] }
 0x55d   :  { %6370 = vmatmul.bf16.vlgmr.msrb.gmra.mxu3 %v15753_v55 }
 0x55e   :  { %v5963_v20 = vpop.f32.mrf.mxu2  ;;  %v6052_v21 = vpop.f32.mrf.mxu3 }
 0x55f   :  { %v5964_v15 = vadd.f32 %v5963_v20, %v5875_v52 }
 0x560   :  { %v5877_v3 = vpop.f32.mrf.mxu1 }
 0x561   :  { %v5788_v43 = vpop.f32.mrf.mxu0  ;;  %v6053_v11 = vadd.f32 %v6052_v21, %v5964_v15 }
 0x562   :  { %v5878_v49 = vadd.f32 %v5877_v3, %v5788_v43 }
 0x563   :  { %6676 = vst [vmem:[#allocation11 + $0xf0] sm:$0xff] %v6053_v11 }
 0x566   :  { %v5966_v48 = vpop.f32.mrf.mxu2  ;;  %v6055_v25 = vpop.f32.mrf.mxu3 }
 0x567   :  { %v5967_v37 = vadd.f32 %v5966_v48, %v5878_v49 }
 0x568   :  { %v5879_v19 = vpop.f32.mrf.mxu1 }
 0x569   :  { %v5790_v14 = vpop.f32.mrf.mxu0  ;;  %v6056_v13 = vadd.f32 %v6055_v25, %v5967_v37 }
 0x56a   :  { %6108 = vmatmul.bf16.gmra.mxu0 %v15754_v5  ;;  %v5880_v40 = vadd.f32 %v5879_v19, %v5790_v14  ;;  %v15759_v5 = vld [vmem:[#allocation47_spill] sm:$0xff]  ;;  %v15760_v14 = vld [vmem:[#allocation109_spill] sm:$0xff]  ;;  %v15761_v19 = vld [vmem:[#allocation110_spill] sm:$0xff] }
 0x56b   :  { %6197 = vmatmul.bf16.gmra.mxu1 %v15755_v32  ;;  %6678 = vst [vmem:[#allocation11 + $0x100] sm:$0xff] %v6056_v13  ;;  %6286 = vmatmul.bf16.gmra.mxu2 %v15756_v1  ;;  %v15758_v13 = vld [vmem:[#allocation91_spill] sm:$0xff] }
 0x56d   :  { %6375 = vmatmul.bf16.gmra.mxu3 %v15757_v0 }
 0x56e   :  { %v5968_v9 = vpop.f32.mrf.mxu2  ;;  %v6057_v55 = vpop.f32.mrf.mxu3 }
 0x56f   :  { %v5969_v52 = vadd.f32 %v5968_v9, %v5880_v40 }
 0x570   :  { %v5882_v21 = vpop.f32.mrf.mxu1 }
 0x571   :  { %v5793_v20 = vpop.f32.mrf.mxu0  ;;  %v6058_v15 = vadd.f32 %v6057_v55, %v5969_v52 }
 0x572   :  { %v5883_v43 = vadd.f32 %v5882_v21, %v5793_v20 }
 0x573   :  { %6680 = vst [vmem:[#allocation11 + $0x110] sm:$0xff] %v6058_v15 }
 0x576   :  { %v5971_v3 = vpop.f32.mrf.mxu2  ;;  %v6060_v11 = vpop.f32.mrf.mxu3 }
 0x577   :  { %v5972_v49 = vadd.f32 %v5971_v3, %v5883_v43 }
 0x578   :  { %v5884_v25 = vpop.f32.mrf.mxu1 }
 0x579   :  { %v5795_v48 = vpop.f32.mrf.mxu0  ;;  %v6061_v37 = vadd.f32 %v6060_v11, %v5972_v49 }
 0x57a   :  { %6113 = vmatmul.bf16.gmra.mxu0 %v15758_v13  ;;  %v5885_v32 = vadd.f32 %v5884_v25, %v5795_v48  ;;  %v15763_v13 = vld [vmem:[#allocation50_spill] sm:$0xff]  ;;  %v15764_v48 = vld [vmem:[#allocation111_spill] sm:$0xff]  ;;  %v15765_v25 = vld [vmem:[#allocation112_spill] sm:$0xff] }
 0x57b   :  { %6202 = vmatmul.bf16.gmra.mxu1 %v15759_v5  ;;  %6682 = vst [vmem:[#allocation11 + $0x120] sm:$0xff] %v6061_v37  ;;  %6291 = vmatmul.bf16.gmra.mxu2 %v15760_v14  ;;  %v15762_v37 = vld [vmem:[#allocation48_spill] sm:$0xff] }
 0x57d   :  { %6380 = vmatmul.bf16.gmra.mxu3 %v15761_v19 }
 0x57e   :  { %v5973_v1 = vpop.f32.mrf.mxu2  ;;  %v6062_v0 = vpop.f32.mrf.mxu3 }
 0x57f   :  { %v5974_v40 = vadd.f32 %v5973_v1, %v5885_v32 }
 0x580   :  { %v5887_v55 = vpop.f32.mrf.mxu1 }
 0x581   :  { %v5798_v9 = vpop.f32.mrf.mxu0  ;;  %v6063_v52 = vadd.f32 %v6062_v0, %v5974_v40 }
 0x582   :  { %v5888_v20 = vadd.f32 %v5887_v55, %v5798_v9 }
 0x583   :  { %6684 = vst [vmem:[#allocation11 + $0x130] sm:$0xff] %v6063_v52 }
 0x586   :  { %v5976_v21 = vpop.f32.mrf.mxu2  ;;  %v6065_v15 = vpop.f32.mrf.mxu3 }
 0x587   :  { %v5977_v43 = vadd.f32 %v5976_v21, %v5888_v20 }
 0x588   :  { %v5889_v11 = vpop.f32.mrf.mxu1 }
 0x589   :  { %v5800_v3 = vpop.f32.mrf.mxu0  ;;  %v6066_v49 = vadd.f32 %v6065_v15, %v5977_v43 }
 0x58a   :  { %6118 = vmatmul.bf16.gmra.mxu0 %v15762_v37  ;;  %v5890_v5 = vadd.f32 %v5889_v11, %v5800_v3  ;;  %v15767_v37 = vld [vmem:[#allocation100_spill] sm:$0xff]  ;;  %v15768_v3 = vld [vmem:[#allocation85_spill] sm:$0xff] }
 0x58b   :  { %6207 = vmatmul.bf16.gmra.mxu1 %v15763_v13  ;;  %6686 = vst [vmem:[#allocation11 + $0x140] sm:$0xff] %v6066_v49  ;;  %6296 = vmatmul.bf16.gmra.mxu2 %v15764_v48  ;;  %v15766_v49 = vld [vmem:[#allocation97_spill] sm:$0xff] }
 0x58c   :  { %v15769_v11 = vld [vmem:[#allocation113_spill] sm:$0xff] }
 0x58d   :  { %6385 = vmatmul.bf16.gmra.mxu3 %v15765_v25 }
 0x58e   :  { %v5978_v14 = vpop.f32.mrf.mxu2  ;;  %v6067_v19 = vpop.f32.mrf.mxu3 }
 0x58f   :  { %v5979_v32 = vadd.f32 %v5978_v14, %v5890_v5 }
 0x590   :  { %v5892_v0 = vpop.f32.mrf.mxu1 }
 0x591   :  { %v5803_v1 = vpop.f32.mrf.mxu0  ;;  %v6068_v40 = vadd.f32 %v6067_v19, %v5979_v32 }
 0x592   :  { %v5893_v9 = vadd.f32 %v5892_v0, %v5803_v1 }
 0x593   :  { %6688 = vst [vmem:[#allocation11 + $0x150] sm:$0xff] %v6068_v40 }
 0x596   :  { %v5981_v55 = vpop.f32.mrf.mxu2  ;;  %v6070_v52 = vpop.f32.mrf.mxu3 }
 0x597   :  { %v5982_v20 = vadd.f32 %v5981_v55, %v5893_v9 }
 0x598   :  { %v5894_v15 = vpop.f32.mrf.mxu1 }
 0x599   :  { %v5805_v21 = vpop.f32.mrf.mxu0  ;;  %v6071_v43 = vadd.f32 %v6070_v52, %v5982_v20 }
 0x59a   :  { %6123 = vmatmul.bf16.gmra.mxu0 %v15766_v49  ;;  %v5895_v13 = vadd.f32 %v5894_v15, %v5805_v21 }
 0x59b   :  { %6212 = vmatmul.bf16.gmra.mxu1 %v15767_v37  ;;  %6690 = vst [vmem:[#allocation11 + $0x160] sm:$0xff] %v6071_v43  ;;  %6301 = vmatmul.bf16.gmra.mxu2 %v15768_v3  ;;  %v15770_v43 = vld [vmem:[#allocation58_spill] sm:$0xff] }
 0x59d   :  { %6390 = vmatmul.bf16.gmra.mxu3 %v15769_v11 }
 0x59e   :  { %v5983_v48 = vpop.f32.mrf.mxu2  ;;  %v6072_v25 = vpop.f32.mrf.mxu3 }
 0x59f   :  { %v5984_v5 = vadd.f32 %v5983_v48, %v5895_v13 }
 0x5a0   :  { %v5897_v19 = vpop.f32.mrf.mxu1 }
 0x5a1   :  { %v5808_v14 = vpop.f32.mrf.mxu0  ;;  %v6073_v32 = vadd.f32 %v6072_v25, %v5984_v5 }
 0x5a2   :  { %v5898_v1 = vadd.f32 %v5897_v19, %v5808_v14 }
 0x5a3   :  { %6692 = vst [vmem:[#allocation11 + $0x170] sm:$0xff] %v6073_v32 }
 0x5a6   :  { %v5986_v0 = vpop.f32.mrf.mxu2  ;;  %v6075_v40 = vpop.f32.mrf.mxu3 }
 0x5a7   :  { %v5987_v9 = vadd.f32 %v5986_v0, %v5898_v1 }
 0x5a8   :  { %v5899_v52 = vpop.f32.mrf.mxu1 }
 0x5a9   :  { %v5810_v55 = vpop.f32.mrf.mxu0  ;;  %v6076_v20 = vadd.f32 %v6075_v40, %v5987_v9 }
 0x5aa   :  { %6128 = vmatmul.bf16.gmra.mxu0 %v15696_v16  ;;  %v5900_v21 = vadd.f32 %v5899_v52, %v5810_v55 }
 0x5ab   :  { %6217 = vmatmul.bf16.gmra.mxu1 %v15770_v43  ;;  %6694 = vst [vmem:[#allocation11 + $0x180] sm:$0xff] %v6076_v20  ;;  %6306 = vmatmul.bf16.gmra.mxu2 %v13240_v59 }
 0x5ad   :  { %6395 = vmatmul.bf16.gmra.mxu3 %v15698_v27 }
 0x5ae   :  { %v5988_v15 = vpop.f32.mrf.mxu2  ;;  %v6077_v49 = vpop.f32.mrf.mxu3 }
 0x5af   :  { %v5989_v37 = vadd.f32 %v5988_v15, %v5900_v21 }
 0x5b0   :  { %v5902_v11 = vpop.f32.mrf.mxu1 }
 0x5b1   :  { %v5813_v3 = vpop.f32.mrf.mxu0  ;;  %v6078_v13 = vadd.f32 %v6077_v49, %v5989_v37 }
 0x5b2   :  { %v5903_v48 = vadd.f32 %v5902_v11, %v5813_v3 }
 0x5b3   :  { %6696 = vst [vmem:[#allocation11 + $0x190] sm:$0xff] %v6078_v13 }
 0x5b6   :  { %v5991_v25 = vpop.f32.mrf.mxu2  ;;  %v6080_v5 = vpop.f32.mrf.mxu3 }
 0x5b7   :  { %v5992_v14 = vadd.f32 %v5991_v25, %v5903_v48 }
 0x5b8   :  { %v5904_v19 = vpop.f32.mrf.mxu1 }
 0x5b9   :  { %v5815_v16 = vpop.f32.mrf.mxu0  ;;  %v6081_v32 = vadd.f32 %v6080_v5, %v5992_v14 }
 0x5ba   :  { %6133 = vmatmul.bf16.gmra.mxu0 %v15709_v47  ;;  %v5905_v59 = vadd.f32 %v5904_v19, %v5815_v16 }
 0x5bb   :  { %6222 = vmatmul.bf16.gmra.mxu1 %v15710_v60  ;;  %6698 = vst [vmem:[#allocation11 + $0x1a0] sm:$0xff] %v6081_v32  ;;  %6311 = vmatmul.bf16.gmra.mxu2 %v15713_v53 }
 0x5bd   :  { %6400 = vmatmul.bf16.gmra.mxu3 %v13421_v46 }
 0x5be   :  { %v5993_v27 = vpop.f32.mrf.mxu2  ;;  %v6082_v1 = vpop.f32.mrf.mxu3 }
 0x5bf   :  { %v5994_v0 = vadd.f32 %v5993_v27, %v5905_v59 }
 0x5c0   :  { %v5907_v9 = vpop.f32.mrf.mxu1 }
 0x5c1   :  { %v5818_v40 = vpop.f32.mrf.mxu0  ;;  %v6083_v55 = vadd.f32 %v6082_v1, %v5994_v0 }
 0x5c2   :  { %v5908_v52 = vadd.f32 %v5907_v9, %v5818_v40 }
 0x5c3   :  { %6700 = vst [vmem:[#allocation11 + $0x1b0] sm:$0xff] %v6083_v55 }
 0x5c6   :  { %v5996_v20 = vpop.f32.mrf.mxu2  ;;  %v6085_v43 = vpop.f32.mrf.mxu3 }
 0x5c7   :  { %v5997_v21 = vadd.f32 %v5996_v20, %v5908_v52 }
 0x5c8   :  { %v5909_v15 = vpop.f32.mrf.mxu1 }
 0x5c9   :  { %v5820_v47 = vpop.f32.mrf.mxu0  ;;  %v6086_v60 = vadd.f32 %v6085_v43, %v5997_v21 }
 0x5ca   :  { %6138 = vmatmul.bf16.gmra.mxu0 %v15724_v31  ;;  %v5910_v46 = vadd.f32 %v5909_v15, %v5820_v47 }
 0x5cb   :  { %6227 = vmatmul.bf16.gmra.mxu1 %v15725_v7  ;;  %6702 = vst [vmem:[#allocation11 + $0x1c0] sm:$0xff] %v6086_v60  ;;  %6316 = vmatmul.bf16.gmra.mxu2 %v13513_v62 }
 0x5cd   :  { %6405 = vmatmul.bf16.gmra.mxu3 %v13563_v22 }
 0x5ce   :  { %v5998_v53 = vpop.f32.mrf.mxu2  ;;  %v6087_v49 = vpop.f32.mrf.mxu3 }
 0x5cf   :  { %v5999_v37 = vadd.f32 %v5998_v53, %v5910_v46 }
 0x5d0   :  { %v5912_v11 = vpop.f32.mrf.mxu1 }
 0x5d1   :  { %v5823_v3 = vpop.f32.mrf.mxu0  ;;  %v6088_v13 = vadd.f32 %v6087_v49, %v5999_v37 }
 0x5d2   :  { %v5913_v48 = vadd.f32 %v5912_v11, %v5823_v3 }
 0x5d3   :  { %6704 = vst [vmem:[#allocation11 + $0x1d0] sm:$0xff] %v6088_v13 }
 0x5d6   :  { %v6001_v25 = vpop.f32.mrf.mxu2  ;;  %v6090_v5 = vpop.f32.mrf.mxu3 }
 0x5d7   :  { %v6002_v14 = vadd.f32 %v6001_v25, %v5913_v48 }
 0x5d8   :  { %v5914_v16 = vpop.f32.mrf.mxu1 }
 0x5d9   :  { %v5825_v31 = vpop.f32.mrf.mxu0  ;;  %v6091_v7 = vadd.f32 %v6090_v5, %v6002_v14 }
 0x5da   :  { %6143 = vmatmul.bf16.gmra.mxu0 %v15730_v2  ;;  %v5915_v62 = vadd.f32 %v5914_v16, %v5825_v31 }
 0x5db   :  { %6232 = vmatmul.bf16.gmra.mxu1 %v15731_v10  ;;  %6706 = vst [vmem:[#allocation11 + $0x1e0] sm:$0xff] %v6091_v7  ;;  %6321 = vmatmul.bf16.gmra.mxu2 %v13647_v30 }
 0x5dd   :  { %6410 = vmatmul.bf16.gmra.mxu3 %v13676_v34 }
 0x5de   :  { %v6003_v22 = vpop.f32.mrf.mxu2  ;;  %v6092_v19 = vpop.f32.mrf.mxu3 }
 0x5df   :  { %v6004_v32 = vadd.f32 %v6003_v22, %v5915_v62 }
 0x5e0   :  { %v6193_v27 = vpop.f32.mrf.mxu1 }
 0x5e1   :  { %v6104_v59 = vpop.f32.mrf.mxu0  ;;  %v6093_v1 = vadd.f32 %v6092_v19, %v6004_v32 }
 0x5e2   :  { %v6194_v0 = vadd.f32 %v6193_v27, %v6104_v59 }
 0x5e3   :  { %6708 = vst [vmem:[#allocation11 + $0x1f0] sm:$0xff] %v6093_v1 }
 0x5e6   :  { %v6282_v40 = vpop.f32.mrf.mxu2  ;;  %v6371_v9 = vpop.f32.mrf.mxu3 }
 0x5e7   :  { %v6283_v55 = vadd.f32 %v6282_v40, %v6194_v0 }
 0x5e8   :  { %v6195_v52 = vpop.f32.mrf.mxu1 }
 0x5e9   :  { %v6106_v2 = vpop.f32.mrf.mxu0  ;;  %v6372_v10 = vadd.f32 %v6371_v9, %v6283_v55 }
 0x5ea   :  { %6148 = vmatmul.bf16.gmra.mxu0 %v15732_v63  ;;  %v6196_v30 = vadd.f32 %v6195_v52, %v6106_v2 }
 0x5eb   :  { %6237 = vmatmul.bf16.gmra.mxu1 %v15733_v51  ;;  %6647 = vst [vmem:[#allocation11 + $0x8] sm:$0xff] %v6372_v10  ;;  %6326 = vmatmul.bf16.gmra.mxu2 %v13783_v56 }
 0x5ed   :  { %6415 = vmatmul.bf16.gmra.mxu3 %v13824_v17 }
 0x5ee   :  { %v6284_v34 = vpop.f32.mrf.mxu2  ;;  %v6373_v20 = vpop.f32.mrf.mxu3 }
 0x5ef   :  { %v6285_v43 = vadd.f32 %v6284_v34, %v6196_v30 }
 0x5f0   :  { %v6198_v47 = vpop.f32.mrf.mxu1 }
 0x5f1   :  { %v6109_v21 = vpop.f32.mrf.mxu0  ;;  %v6374_v15 = vadd.f32 %v6373_v20, %v6285_v43 }
 0x5f2   :  { %v6199_v60 = vadd.f32 %v6198_v47, %v6109_v21 }
 0x5f3   :  { %6649 = vst [vmem:[#allocation11 + $0x18] sm:$0xff] %v6374_v15 }
 0x5f6   :  { %v6287_v46 = vpop.f32.mrf.mxu2  ;;  %v6376_v53 = vpop.f32.mrf.mxu3 }
 0x5f7   :  { %v6288_v49 = vadd.f32 %v6287_v46, %v6199_v60 }
 0x5f8   :  { %v6200_v37 = vpop.f32.mrf.mxu1 }
 0x5f9   :  { %v6111_v63 = vpop.f32.mrf.mxu0  ;;  %v6377_v51 = vadd.f32 %v6376_v53, %v6288_v49 }
 0x5fa   :  { %6153 = vmatmul.bf16.gmra.mxu0 %v15734_v50  ;;  %v6201_v56 = vadd.f32 %v6200_v37, %v6111_v63 }
 0x5fb   :  { %6242 = vmatmul.bf16.gmra.mxu1 %v15735_v8  ;;  %6651 = vst [vmem:[#allocation11 + $0x28] sm:$0xff] %v6377_v51  ;;  %6331 = vmatmul.bf16.gmra.mxu2 %v15736_v41 }
 0x5fd   :  { %6420 = vmatmul.bf16.gmra.mxu3 %v15737_v54 }
 0x5fe   :  { %v6289_v17 = vpop.f32.mrf.mxu2  ;;  %v6378_v3 = vpop.f32.mrf.mxu3 }
 0x5ff   :  { %v6290_v11 = vadd.f32 %v6289_v17, %v6201_v56 }
 0x600   :  { %v6203_v48 = vpop.f32.mrf.mxu1 }
 0x601   :  { %v6114_v13 = vpop.f32.mrf.mxu0  ;;  %v6379_v25 = vadd.f32 %v6378_v3, %v6290_v11 }
 0x602   :  { %v6204_v5 = vadd.f32 %v6203_v48, %v6114_v13 }
 0x603   :  { %6653 = vst [vmem:[#allocation11 + $0x38] sm:$0xff] %v6379_v25 }
 0x606   :  { %v6292_v14 = vpop.f32.mrf.mxu2  ;;  %v6381_v31 = vpop.f32.mrf.mxu3 }
 0x607   :  { %v6293_v16 = vadd.f32 %v6292_v14, %v6204_v5 }
 0x608   :  { %v6205_v7 = vpop.f32.mrf.mxu1 }
 0x609   :  { %v6116_v50 = vpop.f32.mrf.mxu0  ;;  %v6382_v8 = vadd.f32 %v6381_v31, %v6293_v16 }
 0x60a   :  { %6158 = vmatmul.bf16.gmra.mxu0 %v15738_v36  ;;  %v6206_v41 = vadd.f32 %v6205_v7, %v6116_v50 }
 0x60b   :  { %6247 = vmatmul.bf16.gmra.mxu1 %v15739_v57  ;;  %6655 = vst [vmem:[#allocation11 + $0x48] sm:$0xff] %v6382_v8  ;;  %6336 = vmatmul.bf16.gmra.mxu2 %v15740_v6 }
 0x60d   :  { %6425 = vmatmul.bf16.gmra.mxu3 %v15741_v38 }
 0x60e   :  { %v6294_v54 = vpop.f32.mrf.mxu2  ;;  %v6383_v62 = vpop.f32.mrf.mxu3 }
 0x60f   :  { %v6295_v22 = vadd.f32 %v6294_v54, %v6206_v41 }
 0x610   :  { %v6208_v32 = vpop.f32.mrf.mxu1 }
 0x611   :  { %v6119_v19 = vpop.f32.mrf.mxu0  ;;  %v6384_v59 = vadd.f32 %v6383_v62, %v6295_v22 }
 0x612   :  { %v6209_v27 = vadd.f32 %v6208_v32, %v6119_v19 }
 0x613   :  { %6657 = vst [vmem:[#allocation11 + $0x58] sm:$0xff] %v6384_v59 }
 0x616   :  { %v6297_v1 = vpop.f32.mrf.mxu2  ;;  %v6386_v0 = vpop.f32.mrf.mxu3 }
 0x617   :  { %v6298_v40 = vadd.f32 %v6297_v1, %v6209_v27 }
 0x618   :  { %v6210_v9 = vpop.f32.mrf.mxu1 }
 0x619   :  { %v6121_v36 = vpop.f32.mrf.mxu0  ;;  %v6387_v57 = vadd.f32 %v6386_v0, %v6298_v40 }
 0x61a   :  { %6163 = vmatmul.bf16.gmra.mxu0 %v15742_v44  ;;  %v6211_v6 = vadd.f32 %v6210_v9, %v6121_v36 }
 0x61b   :  { %6252 = vmatmul.bf16.gmra.mxu1 %v15743_v42  ;;  %6659 = vst [vmem:[#allocation11 + $0x68] sm:$0xff] %v6387_v57  ;;  %6341 = vmatmul.bf16.gmra.mxu2 %v14147_v18 }
 0x61d   :  { %6430 = vmatmul.bf16.gmra.mxu3 %v14195_v4 }
 0x61e   :  { %v6299_v38 = vpop.f32.mrf.mxu2  ;;  %v6388_v55 = vpop.f32.mrf.mxu3 }
 0x61f   :  { %v6300_v2 = vadd.f32 %v6299_v38, %v6211_v6 }
 0x620   :  { %v6213_v10 = vpop.f32.mrf.mxu1 }
 0x621   :  { %v6124_v52 = vpop.f32.mrf.mxu0  ;;  %v6389_v30 = vadd.f32 %v6388_v55, %v6300_v2 }
 0x622   :  { %v6214_v34 = vadd.f32 %v6213_v10, %v6124_v52 }
 0x623   :  { %6661 = vst [vmem:[#allocation11 + $0x78] sm:$0xff] %v6389_v30 }
 0x626   :  { %v6302_v20 = vpop.f32.mrf.mxu2  ;;  %v6391_v43 = vpop.f32.mrf.mxu3 }
 0x627   :  { %v6303_v21 = vadd.f32 %v6302_v20, %v6214_v34 }
 0x628   :  { %v6215_v47 = vpop.f32.mrf.mxu1 }
 0x629   :  { %v6126_v44 = vpop.f32.mrf.mxu0  ;;  %v6392_v42 = vadd.f32 %v6391_v43, %v6303_v21 }
 0x62a   :  { %6168 = vmatmul.bf16.gmra.mxu0 %v15744_v39  ;;  %v6216_v18 = vadd.f32 %v6215_v47, %v6126_v44 }
 0x62b   :  { %6257 = vmatmul.bf16.gmra.mxu1 %v15745_v24  ;;  %6663 = vst [vmem:[#allocation11 + $0x88] sm:$0xff] %v6392_v42  ;;  %6346 = vmatmul.bf16.gmra.mxu2 %v14252_v33 }
 0x62d   :  { %6435 = vmatmul.bf16.gmra.mxu3 %v14293_v26 }
 0x62e   :  { %v6304_v4 = vpop.f32.mrf.mxu2  ;;  %v6393_v15 = vpop.f32.mrf.mxu3 }
 0x62f   :  { %v6305_v60 = vadd.f32 %v6304_v4, %v6216_v18 }
 0x630   :  { %v6218_v53 = vpop.f32.mrf.mxu1 }
 0x631   :  { %v6129_v46 = vpop.f32.mrf.mxu0  ;;  %v6394_v49 = vadd.f32 %v6393_v15, %v6305_v60 }
 0x632   :  { %v6219_v63 = vadd.f32 %v6218_v53, %v6129_v46 }
 0x633   :  { %6665 = vst [vmem:[#allocation11 + $0x98] sm:$0xff] %v6394_v49 }
 0x636   :  { %v6307_v37 = vpop.f32.mrf.mxu2  ;;  %v6396_v51 = vpop.f32.mrf.mxu3 }
 0x637   :  { %v6308_v56 = vadd.f32 %v6307_v37, %v6219_v63 }
 0x638   :  { %v6220_v17 = vpop.f32.mrf.mxu1 }
 0x639   :  { %v6131_v39 = vpop.f32.mrf.mxu0  ;;  %v6397_v24 = vadd.f32 %v6396_v51, %v6308_v56 }
 0x63a   :  { %6173 = vmatmul.bf16.gmra.mxu0 %v15746_v28  ;;  %v6221_v33 = vadd.f32 %v6220_v17, %v6131_v39 }
 0x63b   :  { %6262 = vmatmul.bf16.gmra.mxu1 %v15747_v12  ;;  %6667 = vst [vmem:[#allocation11 + $0xa8] sm:$0xff] %v6397_v24  ;;  %6351 = vmatmul.bf16.gmra.mxu2 %v14340_v61 }
 0x63d   :  { %6440 = vmatmul.bf16.gmra.mxu3 %v14366_v58 }
 0x63e   :  { %v6309_v26 = vpop.f32.mrf.mxu2  ;;  %v6398_v3 = vpop.f32.mrf.mxu3 }
 0x63f   :  { %v6310_v11 = vadd.f32 %v6309_v26, %v6221_v33 }
 0x640   :  { %v6223_v48 = vpop.f32.mrf.mxu1 }
 0x641   :  { %v6134_v13 = vpop.f32.mrf.mxu0  ;;  %v6399_v25 = vadd.f32 %v6398_v3, %v6310_v11 }
 0x642   :  { %v6224_v5 = vadd.f32 %v6223_v48, %v6134_v13 }
 0x643   :  { %6669 = vst [vmem:[#allocation11 + $0xb8] sm:$0xff] %v6399_v25 }
 0x646   :  { %v6312_v14 = vpop.f32.mrf.mxu2  ;;  %v6401_v31 = vpop.f32.mrf.mxu3 }
 0x647   :  { %v6313_v16 = vadd.f32 %v6312_v14, %v6224_v5 }
 0x648   :  { %v6225_v50 = vpop.f32.mrf.mxu1 }
 0x649   :  { %v6136_v28 = vpop.f32.mrf.mxu0  ;;  %v6402_v12 = vadd.f32 %v6401_v31, %v6313_v16 }
 0x64a   :  { %6178 = vmatmul.bf16.gmra.mxu0 %v15748_v35  ;;  %v6226_v61 = vadd.f32 %v6225_v50, %v6136_v28 }
 0x64b   :  { %6267 = vmatmul.bf16.gmra.mxu1 %v15749_v23  ;;  %6671 = vst [vmem:[#allocation11 + $0xc8] sm:$0xff] %v6402_v12  ;;  %6356 = vmatmul.bf16.gmra.mxu2 %v14380_v45 }
 0x64d   :  { %6445 = vmatmul.bf16.gmra.mxu3 %v14383_v29 }
 0x64e   :  { %v6314_v58 = vpop.f32.mrf.mxu2  ;;  %v6403_v7 = vpop.f32.mrf.mxu3 }
 0x64f   :  { %v6315_v8 = vadd.f32 %v6314_v58, %v6226_v61 }
 0x650   :  { %v6228_v54 = vpop.f32.mrf.mxu1 }
 0x651   :  { %v6139_v41 = vpop.f32.mrf.mxu0  ;;  %v6404_v62 = vadd.f32 %v6403_v7, %v6315_v8 }
 0x652   :  { %v6229_v22 = vadd.f32 %v6228_v54, %v6139_v41 }
 0x653   :  { %6673 = vst [vmem:[#allocation11 + $0xd8] sm:$0xff] %v6404_v62 }
 0x656   :  { %v6317_v19 = vpop.f32.mrf.mxu2  ;;  %v6406_v32 = vpop.f32.mrf.mxu3 }
 0x657   :  { %v6318_v59 = vadd.f32 %v6317_v19, %v6229_v22 }
 0x658   :  { %v6230_v27 = vpop.f32.mrf.mxu1 }
 0x659   :  { %v6141_v35 = vpop.f32.mrf.mxu0  ;;  %v6407_v23 = vadd.f32 %v6406_v32, %v6318_v59 }
 0x65a   :  { %v6231_v1 = vadd.f32 %v6230_v27, %v6141_v35 }
 0x65b   :  { %6675 = vst [vmem:[#allocation11 + $0xe8] sm:$0xff] %v6407_v23 }
 0x65e   :  { %v6319_v45 = vpop.f32.mrf.mxu2  ;;  %v6408_v0 = vpop.f32.mrf.mxu3 }
 0x65f   :  { %v6320_v29 = vadd.f32 %v6319_v45, %v6231_v1 }
 0x660   :  { %v6233_v36 = vpop.f32.mrf.mxu1 }
 0x661   :  { %v6144_v40 = vpop.f32.mrf.mxu0  ;;  %v6409_v9 = vadd.f32 %v6408_v0, %v6320_v29 }
 0x662   :  { %v6234_v57 = vadd.f32 %v6233_v36, %v6144_v40 }
 0x663   :  { %6677 = vst [vmem:[#allocation11 + $0xf8] sm:$0xff] %v6409_v9 }
 0x666   :  { %v6322_v6 = vpop.f32.mrf.mxu2  ;;  %v6411_v38 = vpop.f32.mrf.mxu3 }
 0x667   :  { %v6323_v55 = vadd.f32 %v6322_v6, %v6234_v57 }
 0x668   :  { %v6235_v52 = vpop.f32.mrf.mxu1 }
 0x669   :  { %v6146_v2 = vpop.f32.mrf.mxu0  ;;  %v6412_v10 = vadd.f32 %v6411_v38, %v6323_v55 }
 0x66a   :  { %v6236_v30 = vadd.f32 %v6235_v52, %v6146_v2 }
 0x66b   :  { %6679 = vst [vmem:[#allocation11 + $0x108] sm:$0xff] %v6412_v10 }
 0x66e   :  { %v6324_v34 = vpop.f32.mrf.mxu2  ;;  %v6413_v20 = vpop.f32.mrf.mxu3 }
 0x66f   :  { %v6325_v43 = vadd.f32 %v6324_v34, %v6236_v30 }
 0x670   :  { %v6238_v44 = vpop.f32.mrf.mxu1 }
 0x671   :  { %v6149_v21 = vpop.f32.mrf.mxu0  ;;  %v6414_v47 = vadd.f32 %v6413_v20, %v6325_v43 }
 0x672   :  { %v6239_v42 = vadd.f32 %v6238_v44, %v6149_v21 }
 0x673   :  { %6681 = vst [vmem:[#allocation11 + $0x118] sm:$0xff] %v6414_v47 }
 0x676   :  { %v6327_v18 = vpop.f32.mrf.mxu2  ;;  %v6416_v4 = vpop.f32.mrf.mxu3 }
 0x677   :  { %v6328_v15 = vadd.f32 %v6327_v18, %v6239_v42 }
 0x678   :  { %v6240_v46 = vpop.f32.mrf.mxu1 }
 0x679   :  { %v6151_v60 = vpop.f32.mrf.mxu0  ;;  %v6417_v53 = vadd.f32 %v6416_v4, %v6328_v15 }
 0x67a   :  { %v6241_v49 = vadd.f32 %v6240_v46, %v6151_v60 }
 0x67b   :  { %6683 = vst [vmem:[#allocation11 + $0x128] sm:$0xff] %v6417_v53 }
 0x67e   :  { %v6329_v63 = vpop.f32.mrf.mxu2  ;;  %v6418_v37 = vpop.f32.mrf.mxu3 }
 0x67f   :  { %v6330_v51 = vadd.f32 %v6329_v63, %v6241_v49 }
 0x680   :  { %v6243_v39 = vpop.f32.mrf.mxu1 }
 0x681   :  { %v6154_v56 = vpop.f32.mrf.mxu0  ;;  %v6419_v17 = vadd.f32 %v6418_v37, %v6330_v51 }
 0x682   :  { %v6244_v24 = vadd.f32 %v6243_v39, %v6154_v56 }
 0x683   :  { %6685 = vst [vmem:[#allocation11 + $0x138] sm:$0xff] %v6419_v17 }
 0x686   :  { %v6332_v33 = vpop.f32.mrf.mxu2  ;;  %v6421_v26 = vpop.f32.mrf.mxu3 }
 0x687   :  { %v6333_v3 = vadd.f32 %v6332_v33, %v6244_v24 }
 0x688   :  { %v6245_v13 = vpop.f32.mrf.mxu1 }
 0x689   :  { %v6156_v11 = vpop.f32.mrf.mxu0  ;;  %v6422_v48 = vadd.f32 %v6421_v26, %v6333_v3 }
 0x68a   :  { %v6246_v25 = vadd.f32 %v6245_v13, %v6156_v11 }
 0x68b   :  { %6687 = vst [vmem:[#allocation11 + $0x148] sm:$0xff] %v6422_v48 }
 0x68e   :  { %v6334_v5 = vpop.f32.mrf.mxu2  ;;  %v6423_v14 = vpop.f32.mrf.mxu3 }
 0x68f   :  { %v6335_v31 = vadd.f32 %v6334_v5, %v6246_v25 }
 0x690   :  { %v6248_v28 = vpop.f32.mrf.mxu1 }
 0x691   :  { %v6159_v16 = vpop.f32.mrf.mxu0  ;;  %v6424_v50 = vadd.f32 %v6423_v14, %v6335_v31 }
 0x692   :  { %v6249_v12 = vadd.f32 %v6248_v28, %v6159_v16 }
 0x693   :  { %6689 = vst [vmem:[#allocation11 + $0x158] sm:$0xff] %v6424_v50 }
 0x696   :  { %v6337_v61 = vpop.f32.mrf.mxu2  ;;  %v6426_v58 = vpop.f32.mrf.mxu3 }
 0x697   :  { %v6338_v7 = vadd.f32 %v6337_v61, %v6249_v12 }
 0x698   :  { %v6250_v41 = vpop.f32.mrf.mxu1 }
 0x699   :  { %v6161_v8 = vpop.f32.mrf.mxu0  ;;  %v6427_v54 = vadd.f32 %v6426_v58, %v6338_v7 }
 0x69a   :  { %v6251_v62 = vadd.f32 %v6250_v41, %v6161_v8 }
 0x69b   :  { %6691 = vst [vmem:[#allocation11 + $0x168] sm:$0xff] %v6427_v54 }
 0x69e   :  { %v6339_v22 = vpop.f32.mrf.mxu2  ;;  %v6428_v19 = vpop.f32.mrf.mxu3 }
 0x69f   :  { %v6340_v32 = vadd.f32 %v6339_v22, %v6251_v62 }
 0x6a0   :  { %v6253_v35 = vpop.f32.mrf.mxu1 }
 0x6a1   :  { %v6164_v59 = vpop.f32.mrf.mxu0  ;;  %v6429_v27 = vadd.f32 %v6428_v19, %v6340_v32 }
 0x6a2   :  { %v6254_v23 = vadd.f32 %v6253_v35, %v6164_v59 }
 0x6a3   :  { %6693 = vst [vmem:[#allocation11 + $0x178] sm:$0xff] %v6429_v27 }
 0x6a6   :  { %v6342_v1 = vpop.f32.mrf.mxu2  ;;  %v6431_v45 = vpop.f32.mrf.mxu3 }
 0x6a7   :  { %v6343_v0 = vadd.f32 %v6342_v1, %v6254_v23 }
 0x6a8   :  { %v6255_v40 = vpop.f32.mrf.mxu1 }
 0x6a9   :  { %v6166_v29 = vpop.f32.mrf.mxu0  ;;  %v6432_v36 = vadd.f32 %v6431_v45, %v6343_v0 }
 0x6aa   :  { %v6256_v9 = vadd.f32 %v6255_v40, %v6166_v29 }
 0x6ab   :  { %6695 = vst [vmem:[#allocation11 + $0x188] sm:$0xff] %v6432_v36 }
 0x6ae   :  { %v6344_v57 = vpop.f32.mrf.mxu2  ;;  %v6433_v6 = vpop.f32.mrf.mxu3 }
 0x6af   :  { %v6345_v38 = vadd.f32 %v6344_v57, %v6256_v9 }
 0x6b0   :  { %v6258_v2 = vpop.f32.mrf.mxu1 }
 0x6b1   :  { %v6169_v55 = vpop.f32.mrf.mxu0  ;;  %v6434_v52 = vadd.f32 %v6433_v6, %v6345_v38 }
 0x6b2   :  { %v6259_v10 = vadd.f32 %v6258_v2, %v6169_v55 }
 0x6b3   :  { %6697 = vst [vmem:[#allocation11 + $0x198] sm:$0xff] %v6434_v52 }
 0x6b6   :  { %v6347_v30 = vpop.f32.mrf.mxu2  ;;  %v6436_v34 = vpop.f32.mrf.mxu3 }
 0x6b7   :  { %v6348_v20 = vadd.f32 %v6347_v30, %v6259_v10 }
 0x6b8   :  { %v6260_v21 = vpop.f32.mrf.mxu1 }
 0x6b9   :  { %v6171_v43 = vpop.f32.mrf.mxu0  ;;  %v6437_v44 = vadd.f32 %v6436_v34, %v6348_v20 }
 0x6ba   :  { %v6261_v47 = vadd.f32 %v6260_v21, %v6171_v43 }
 0x6bb   :  { %6699 = vst [vmem:[#allocation11 + $0x1a8] sm:$0xff] %v6437_v44 }
 0x6be   :  { %v6349_v42 = vpop.f32.mrf.mxu2  ;;  %v6438_v18 = vpop.f32.mrf.mxu3 }
 0x6bf   :  { %v6350_v4 = vadd.f32 %v6349_v42, %v6261_v47 }
 0x6c0   :  { %v6263_v60 = vpop.f32.mrf.mxu1 }
 0x6c1   :  { %v6174_v15 = vpop.f32.mrf.mxu0  ;;  %v6439_v46 = vadd.f32 %v6438_v18, %v6350_v4 }
 0x6c2   :  { %v6264_v53 = vadd.f32 %v6263_v60, %v6174_v15 }
 0x6c3   :  { %6701 = vst [vmem:[#allocation11 + $0x1b8] sm:$0xff] %v6439_v46 }
 0x6c6   :  { %v6352_v49 = vpop.f32.mrf.mxu2  ;;  %v6441_v63 = vpop.f32.mrf.mxu3 }
 0x6c7   :  { %v6353_v37 = vadd.f32 %v6352_v49, %v6264_v53 }
 0x6c8   :  { %v6265_v56 = vpop.f32.mrf.mxu1 }
 0x6c9   :  { %v6176_v51 = vpop.f32.mrf.mxu0  ;;  %v6442_v39 = vadd.f32 %v6441_v63, %v6353_v37 }
 0x6ca   :  { %v6266_v17 = vadd.f32 %v6265_v56, %v6176_v51 }
 0x6cb   :  { %6703 = vst [vmem:[#allocation11 + $0x1c8] sm:$0xff] %v6442_v39 }
 0x6ce   :  { %v6354_v24 = vpop.f32.mrf.mxu2  ;;  %v6443_v33 = vpop.f32.mrf.mxu3 }
 0x6cf   :  { %v6355_v26 = vadd.f32 %v6354_v24, %v6266_v17 }
 0x6d0   :  { %v6268_v11 = vpop.f32.mrf.mxu1 }
 0x6d1   :  { %v6179_v3 = vpop.f32.mrf.mxu0  ;;  %v6444_v13 = vadd.f32 %v6443_v33, %v6355_v26 }
 0x6d2   :  { %v6269_v48 = vadd.f32 %v6268_v11, %v6179_v3 }
 0x6d3   :  { %6705 = vst [vmem:[#allocation11 + $0x1d8] sm:$0xff] %v6444_v13 }
 0x6d6   :  { %v6357_v25 = vpop.f32.mrf.mxu2  ;;  %v6446_v5 = vpop.f32.mrf.mxu3 }
 0x6d7   :  { %v6358_v14 = vadd.f32 %v6357_v25, %v6269_v48 }
 0x6d8   :  { %v6270_v28 = vpop.f32.mrf.mxu1 }
 0x6d9   :  { %v6447_v31 = vadd.f32 %v6446_v5, %v6358_v14  ;;  %v6181_v16 = vpop.f32.mrf.mxu0 }
 0x6da   :  { %v6271_v50 = vadd.f32 %v6270_v28, %v6181_v16 }
 0x6db   :  { %6707 = vst [vmem:[#allocation11 + $0x1e8] sm:$0xff] %v6447_v31 }
 0x6de   :  { %v6359_v12 = vpop.f32.mrf.mxu2  ;;  %v6448_v58 = vpop.f32.mrf.mxu3 }
 0x6df   :  { %v6360_v61 = vadd.f32 %v6359_v12, %v6271_v50 }
 0x6e1   :  { %v6449_v7 = vadd.f32 %v6448_v58, %v6360_v61 }
 0x6e3   :  { %6709 = vst [vmem:[#allocation11 + $0x1f8] sm:$0xff] %v6449_v7 }
 0x6e4   :  { %6722 = dma.vmem_to_hbm [thread:$0]  %s6715_s3, 8192, %s6717_s15, [#allocation5], %s8632_s21, %s8632_s21, %s8633_s22  }
 0x6e5   :  { %8628 = dma.done.wait [#allocation5], 8192  }
 0x6e6   :  { %8629 = vsyncadd [#allocation5], 4294959104 }
 0x6e7   :  { %6727 = vsyncpa [#allocation4], 1 }
 0x6e8   :  { %6728 = vsyncpa [#allocation7], 1 }
 0x6e9   :  { %6729 = vsyncpa [#allocation10], 1 }
 0x6ea   :  { %6730 = vsyncpa [#allocation5], 1 }

</bundles_post_ra>
